<compile_context>
chip_gen: v7x
topology: tpu7x:2x2x1
jax: 0.10.0
libtpu: 0.0.40
codegen_flags: <defaults>
</compile_context>

<pallas_src>
import numpy as np

import jax
import jax.numpy as jnp
from jax.experimental import pallas as pl
from jax.experimental.pallas import tpu as pltpu


# ------------------------------ configuration ------------------------------
# Small but structurally faithful configuration of HCN1per_feat.
IN_CHANNEL = 3
NUM_JOINT = 8          # V
NUM_PERSON = 2         # M
OUT_CHANNEL = 16
WINDOW_SIZE = 16
NUM_CLASS = 10         # fc8 exists in the module but is never used by sub_forward
T_LEN = 16
BATCH = 2
FC7_OUT = 256 * 2      # 512


def _conv_stack_spatial():
    h, w = T_LEN, WINDOW_SIZE
    h, w = (h - 2) // 2 + 1, (w - 2) // 2 + 1            # pool after conv3
    h, w = (h - 2) // 2 + 1, (w - 2) // 2 + 1            # pool after conv4
    h, w = (h + 2 - 2) // 2 + 1, (w + 2 - 2) // 2 + 1    # pool after conv5 (padding=1)
    h, w = (h - 2) // 2 + 1, (w - 2) // 2 + 1            # pool after conv6
    return h, w


_FH, _FW = _conv_stack_spatial()
FC7_DIM = OUT_CHANNEL * 4 * _FH * _FW


# ----------------------- host-side operator construction -------------------

def _upsample_matrix(t_out, t_in):
    """1-D bilinear interpolation matrix, align_corners=False (PyTorch F.upsample)."""
    r = np.zeros((t_out, t_in), np.float32)
    scale = t_in / t_out
    for t in range(t_out):
        src = (t + 0.5) * scale - 0.5
        src = min(max(src, 0.0), float(t_in - 1))
        lo = int(np.floor(src))
        hi = min(lo + 1, t_in - 1)
        w_hi = src - lo
        r[t, lo] += 1.0 - w_hi
        r[t, hi] += w_hi
    return r


def _shift_matrices(h, w):
    """9 tap matrices T_k (k = kh*3+kw) with T_k[o, i] = 1 where i is the source pixel
    of output pixel o for a 3x3 / stride 1 / padding 1 conv (zero rows at the border)."""
    mats = np.zeros((9, h * w, h * w), np.float32)
    for kh in range(3):
        for kw in range(3):
            k = kh * 3 + kw
            for oh in range(h):
                ih = oh + kh - 1
                if not 0 <= ih < h:
                    continue
                for ow in range(w):
                    iw = ow + kw - 1
                    if not 0 <= iw < w:
                        continue
                    mats[k, oh * w + ow, ih * w + iw] = 1.0
    return mats


def _pool_matrices(h, w, pad=0):
    """4 corner-gather matrices for MaxPool2d(kernel=2, stride=2, padding=pad).
    Out-of-bounds corners get an all-zero row (only used after ReLU when pad > 0)."""
    ho = (h + 2 * pad - 2) // 2 + 1
    wo = (w + 2 * pad - 2) // 2 + 1
    mats = np.zeros((4, ho * wo, h * w), np.float32)
    for dh in range(2):
        for dw in range(2):
            k = dh * 2 + dw
            for oh in range(ho):
                ih = 2 * oh - pad + dh
                if not 0 <= ih < h:
                    continue
                for ow in range(wo):
                    iw = 2 * ow - pad + dw
                    if not 0 <= iw < w:
                        continue
                    mats[k, oh * wo + ow, ih * w + iw] = 1.0
    return mats, ho, wo


def _conv2_band(w2, t_len):
    """Dense (T*Wwin, T*OC) operator of Conv2d(OC->Wwin, kernel=(3,1), padding=(1,0))
    acting on per-sample matrices whose rows are laid out as (t, channel)."""
    ww, oc = w2.shape[0], w2.shape[1]
    k2 = np.zeros((t_len * ww, t_len * oc), np.float32)
    for t in range(t_len):
        for k in range(3):
            ti = t + k - 1
            if not 0 <= ti < t_len:
                continue
            k2[t * ww:(t + 1) * ww, ti * oc:(ti + 1) * oc] = w2[:, :, k, 0]
    return k2


def init_params(key):
    """Deterministic fan-in init (PyTorch-native weight layouts)."""
    keys = iter(jax.random.split(key, 32))

    def conv(cout, cin, kh, kw):
        fan_in = cin * kh * kw
        w = jax.random.normal(next(keys), (cout, cin, kh, kw), jnp.float32) / np.sqrt(fan_in)
        b = 0.01 * jax.random.normal(next(keys), (cout,), jnp.float32)
        return w, b

    def linear(dout, din):
        w = jax.random.normal(next(keys), (dout, din), jnp.float32) / np.sqrt(din)
        b = 0.01 * jax.random.normal(next(keys), (dout,), jnp.float32)
        return w, b

    p = {}
    p["w1p"], p["b1p"] = conv(OUT_CHANNEL, IN_CHANNEL, 1, 1)
    p["w2p"], p["b2p"] = conv(WINDOW_SIZE, OUT_CHANNEL, 3, 1)
    p["w3p"], p["b3p"] = conv(OUT_CHANNEL // 2, NUM_JOINT, 3, 3)
    p["w4p"], p["b4p"] = conv(OUT_CHANNEL, OUT_CHANNEL // 2, 3, 3)
    p["w1m"], p["b1m"] = conv(OUT_CHANNEL, IN_CHANNEL, 1, 1)
    p["w2m"], p["b2m"] = conv(WINDOW_SIZE, OUT_CHANNEL, 3, 1)
    p["w3m"], p["b3m"] = conv(OUT_CHANNEL // 2, NUM_JOINT, 3, 3)
    p["w4m"], p["b4m"] = conv(OUT_CHANNEL, OUT_CHANNEL // 2, 3, 3)
    p["w5"], p["b5"] = conv(OUT_CHANNEL * 2, OUT_CHANNEL * 2, 3, 3)
    p["w6"], p["b6"] = conv(OUT_CHANNEL * 4, OUT_CHANNEL * 2, 3, 3)
    p["w7"], p["b7"] = linear(FC7_OUT, FC7_DIM)
    return p


def prepare_params(params):
    """One-time host-side preparation: folds conv taps, pooling windows, the
    conv2->conv3 permute and the channel-major flatten into dense f32 matrices."""
    t, c, v = T_LEN, IN_CHANNEL, NUM_JOINT
    oc, ww = OUT_CHANNEL, WINDOW_SIZE
    p = {k: np.asarray(val, np.float32) for k, val in params.items()}
    prep = {}

    # motion stream: temporal diff folded with the bilinear upsample back to T.
    r_up = _upsample_matrix(t, t - 1)
    r_diff = np.zeros((t - 1, t), np.float32)
    for s in range(t - 1):
        r_diff[s, s] = -1.0
        r_diff[s, s + 1] = 1.0
    prep["rkd"] = np.kron(r_up @ r_diff, np.eye(c, dtype=np.float32))    # (T*C, T*C)

    # conv1 (1x1)+ReLU and conv2 ((3,1)) per stream, rows laid out as (t, channel).
    for tag in ("p", "m"):
        w1 = p["w1" + tag][:, :, 0, 0]                                   # (OC, C)
        prep["bd1" + tag] = np.kron(np.eye(t, dtype=np.float32), w1)     # (T*OC, T*C)
        prep["b1" + tag] = np.tile(p["b1" + tag], t).reshape(t * oc, 1)
        prep["k2" + tag] = _conv2_band(p["w2" + tag], t)                 # (T*WW, T*OC)
        prep["b2" + tag] = np.tile(p["b2" + tag], t).reshape(t * ww, 1)

    # column placement of the two streams into the joint(channel) axis of conv3.
    eye_v = np.eye(v, dtype=np.float32)
    zero_v = np.zeros((v, v), np.float32)
    prep["e0"] = np.concatenate([eye_v, zero_v], axis=1)                 # pos -> cols [0, V)
    prep["e1"] = np.concatenate([zero_v, eye_v], axis=1)                 # mot -> cols [V, 2V)

    def tap_t(weight):       # (Cout, Cin, 3, 3) -> (9, Cin, Cout)
        return np.stack([weight[:, :, kh, kw].T for kh in range(3) for kw in range(3)])

    # conv3 / conv3m (block-diagonal over streams), spatial (T, WW).
    h, w = t, ww
    prep["t3"] = _shift_matrices(h, w)
    w3 = np.zeros((9, 2 * v, oc), np.float32)
    w3[:, :v, :oc // 2] = tap_t(p["w3p"])
    w3[:, v:, oc // 2:] = tap_t(p["w3m"])
    prep["w3"] = w3
    prep["b3"] = np.concatenate([p["b3p"], p["b3m"]]).reshape(1, -1)
    prep["s3"], h, w = _pool_matrices(h, w)

    # conv4 / conv4m (block-diagonal); output columns are already cat(out_p, out_m).
    prep["t4"] = _shift_matrices(h, w)
    w4 = np.zeros((9, oc, 2 * oc), np.float32)
    w4[:, :oc // 2, :oc] = tap_t(p["w4p"])
    w4[:, oc // 2:, oc:] = tap_t(p["w4m"])
    prep["w4"] = w4
    prep["b4"] = np.concatenate([p["b4p"], p["b4m"]]).reshape(1, -1)
    prep["s4"], h, w = _pool_matrices(h, w)

    # conv5 + ReLU, then MaxPool2d(2, padding=1).
    prep["t5"] = _shift_matrices(h, w)
    prep["w5"] = tap_t(p["w5"])
    prep["b5"] = p["b5"].reshape(1, -1)
    prep["s5"], h, w = _pool_matrices(h, w, pad=1)

    # conv6 + ReLU, then MaxPool2d(2).
    prep["t6"] = _shift_matrices(h, w)
    prep["w6"] = tap_t(p["w6"])
    prep["b6"] = p["b6"].reshape(1, -1)
    prep["s6"], h, w = _pool_matrices(h, w)

    # fc7: fold PyTorch's channel-major flatten (C, H, W) into the weight block layout.
    hw, c6 = h * w, 4 * oc
    assert p["w7"].shape == (FC7_OUT, c6 * hw)
    prep["w7"] = p["w7"].T.reshape(c6, hw, FC7_OUT).transpose(1, 0, 2)   # (HW, C6, 512)
    prep["b7"] = p["b7"].reshape(1, -1)

    return {k: jnp.asarray(val) for k, val in prep.items()}


_PREP_ORDER = (
    "rkd",
    "bd1p", "b1p", "k2p", "b2p",
    "bd1m", "b1m", "k2m", "b2m",
    "e0", "e1",
    "t3", "w3", "b3", "s3",
    "t4", "w4", "b4", "s4",
    "t5", "w5", "b5", "s5",
    "t6", "w6", "b6", "s6",
    "w7", "b7",
)


# --------------------------------- kernel ----------------------------------

def _hcn_kernel(*refs):
    (x_ref, rkd_ref,
     bd1p_ref, b1p_ref, k2p_ref, b2p_ref,
     bd1m_ref, b1m_ref, k2m_ref, b2m_ref,
     e0_ref, e1_ref,
     t3_ref, w3_ref, b3_ref, s3_ref,
     t4_ref, w4_ref, b4_ref, s4_ref,
     t5_ref, w5_ref, b5_ref, s5_ref,
     t6_ref, w6_ref, b6_ref, s6_ref,
     w7_ref, b7_ref,
     o_ref) = refs

    def dot(a, b):
        return jnp.dot(a, b, preferred_element_type=jnp.float32)

    def conv3x3(x, t_ref, w_ref, b_ref, relu):
        acc = dot(dot(t_ref[0], x), w_ref[0])
        for k in range(1, 9):
            acc = acc + dot(dot(t_ref[k], x), w_ref[k])
        acc = acc + b_ref[...]
        return jnp.maximum(acc, 0.0) if relu else acc

    def maxpool(x, s_ref):
        g0 = dot(s_ref[0], x)
        g1 = dot(s_ref[1], x)
        g2 = dot(s_ref[2], x)
        g3 = dot(s_ref[3], x)
        return jnp.maximum(jnp.maximum(g0, g1), jnp.maximum(g2, g3))

    xs = x_ref[0]                                # (T*C, V); rows = (t, channel), cols = joints
    mot = dot(rkd_ref[...], xs)                  # motion = upsample_T(temporal diff)

    def stage1(inp, bd1, b1, k2, b2):
        a1 = jnp.maximum(dot(bd1, inp) + b1, 0.0)   # conv1 (1x1) + ReLU
        return dot(k2, a1) + b2                     # conv2 ((3,1), pad (1,0))

    y2p = stage1(xs, bd1p_ref[...], b1p_ref[...], k2p_ref[...], b2p_ref[...])
    y2m = stage1(mot, bd1m_ref[...], b1m_ref[...], k2m_ref[...], b2m_ref[...])

    # permute(0,3,2,1): rows become (t, window) pixels, cols become (stream, joint) channels.
    x3 = dot(y2p, e0_ref[...]) + dot(y2m, e1_ref[...])          # (T*WW, 2V)

    c3 = conv3x3(x3, t3_ref, w3_ref, b3_ref, relu=False)        # conv3 / conv3m
    p3 = maxpool(c3, s3_ref)
    c4 = conv3x3(p3, t4_ref, w4_ref, b4_ref, relu=False)        # conv4 / conv4m (+Dropout2d=id)
    p4 = maxpool(c4, s4_ref)                                    # cols already = cat(out_p, out_m)
    c5 = conv3x3(p4, t5_ref, w5_ref, b5_ref, relu=True)         # conv5 + ReLU (+Dropout2d=id)
    p5 = maxpool(c5, s5_ref)                                    # MaxPool2d(2, padding=1)
    c6 = conv3x3(p5, t6_ref, w6_ref, b6_ref, relu=True)         # conv6 + ReLU (+Dropout2d=id)
    p6 = maxpool(c6, s6_ref)                                    # (H6*W6, 4*OC)

    # fc7 + ReLU (+Dropout2d=id); the channel-major flatten is folded into w7's layout.
    acc = dot(p6[0:1, :], w7_ref[0])
    for r in range(1, p6.shape[0]):
        acc = acc + dot(p6[r:r + 1, :], w7_ref[r])
    o_ref[0] = jnp.maximum(acc + b7_ref[...], 0.0)


# -------------------------------- wrappers ---------------------------------

def _full_spec(arr):
    zeros = (0,) * arr.ndim
    return pl.BlockSpec(arr.shape, lambda n, _z=zeros: _z)


def hcn_features(x0, prep):
    """x0: (Nb, C, T, V) person-0 coordinates -> (Nb, 512) fc7 features."""
    nb = x0.shape[0]
    tc = T_LEN * IN_CHANNEL
    x_in = jnp.transpose(x0, (0, 2, 1, 3)).reshape(nb, tc, NUM_JOINT)
    consts = [prep[k] for k in _PREP_ORDER]

    in_specs = [pl.BlockSpec((1, tc, NUM_JOINT), lambda n: (n, 0, 0))]
    in_specs += [_full_spec(a) for a in consts]

    out = pl.pallas_call(
        _hcn_kernel,
        out_shape=jax.ShapeDtypeStruct((nb, 1, FC7_OUT), jnp.float32),
        grid=(nb,),
        in_specs=in_specs,
        out_specs=pl.BlockSpec((1, 1, FC7_OUT), lambda n: (n, 0, 0)),
        compiler_params=pltpu.CompilerParams(dimension_semantics=("parallel",)),
    )(x_in, *consts)
    return out.reshape(nb, FC7_OUT)


def hcn_forward(x1, x2, prep):
    """Mirrors HCN1per_feat.forward(x1, x2) -> (out1, out2), eval mode."""
    n = x1.shape[0]
    x = jnp.concatenate([x1, x2], axis=0)      # both sub_forwards share one kernel launch
    x0 = x[:, :, :, :, 0]                      # person 0 only: reference consumes logits[0]
    feats = hcn_features(x0, prep)
    return feats[:n], feats[n:]


# TODO(synk): hcn_utils.initial_model_weight and Dropout2d train-mode masking are not
# replicated (deterministic fan-in init, eval semantics); fc8 is defined in the module
# but never used by sub_forward, so it is omitted.


if __name__ == "__main__":
    key = jax.random.PRNGKey(0)
    k1, k2, kp = jax.random.split(key, 3)
    shape = (BATCH, IN_CHANNEL, T_LEN, NUM_JOINT, NUM_PERSON)
    x1 = jax.random.normal(k1, shape, dtype=jnp.float32)
    x2 = jax.random.normal(k2, shape, dtype=jnp.float32)

    params = init_params(kp)
    prep = prepare_params(params)            # one-time weight/operator preparation

    fwd = jax.jit(hcn_forward)
    out1, out2 = jax.block_until_ready(fwd(x1, x2, prep))

    assert out1.shape == (BATCH, FC7_OUT) and out2.shape == (BATCH, FC7_OUT)
    assert bool(jnp.all(jnp.isfinite(out1))) and bool(jnp.all(jnp.isfinite(out2)))
    assert float(jnp.sum(jnp.abs(out1))) != 0.0 and float(jnp.sum(jnp.abs(out2))) != 0.0
    print("KERNEL_OK")
</pallas_src>

<mosaic_0001>
module attributes {stable_mosaic.version = 11 : i64} {
  func.func @_hcn_kernel(%arg0: i32, %arg1: memref<1x48x8xf32, #tpu.memory_space<vmem>>, %arg2: memref<48x48xf32, #tpu.memory_space<vmem>>, %arg3: memref<256x48xf32, #tpu.memory_space<vmem>>, %arg4: memref<256x1xf32, #tpu.memory_space<vmem>>, %arg5: memref<256x256xf32, #tpu.memory_space<vmem>>, %arg6: memref<256x1xf32, #tpu.memory_space<vmem>>, %arg7: memref<256x48xf32, #tpu.memory_space<vmem>>, %arg8: memref<256x1xf32, #tpu.memory_space<vmem>>, %arg9: memref<256x256xf32, #tpu.memory_space<vmem>>, %arg10: memref<256x1xf32, #tpu.memory_space<vmem>>, %arg11: memref<8x16xf32, #tpu.memory_space<vmem>>, %arg12: memref<8x16xf32, #tpu.memory_space<vmem>>, %arg13: memref<9x256x256xf32, #tpu.memory_space<vmem>>, %arg14: memref<9x16x16xf32, #tpu.memory_space<vmem>>, %arg15: memref<1x16xf32, #tpu.memory_space<vmem>>, %arg16: memref<4x64x256xf32, #tpu.memory_space<vmem>>, %arg17: memref<9x64x64xf32, #tpu.memory_space<vmem>>, %arg18: memref<9x16x32xf32, #tpu.memory_space<vmem>>, %arg19: memref<1x32xf32, #tpu.memory_space<vmem>>, %arg20: memref<4x16x64xf32, #tpu.memory_space<vmem>>, %arg21: memref<9x16x16xf32, #tpu.memory_space<vmem>>, %arg22: memref<9x32x32xf32, #tpu.memory_space<vmem>>, %arg23: memref<1x32xf32, #tpu.memory_space<vmem>>, %arg24: memref<4x9x16xf32, #tpu.memory_space<vmem>>, %arg25: memref<9x9x9xf32, #tpu.memory_space<vmem>>, %arg26: memref<9x32x64xf32, #tpu.memory_space<vmem>>, %arg27: memref<1x64xf32, #tpu.memory_space<vmem>>, %arg28: memref<4x1x9xf32, #tpu.memory_space<vmem>>, %arg29: memref<1x64x512xf32, #tpu.memory_space<vmem>>, %arg30: memref<1x512xf32, #tpu.memory_space<vmem>>, %arg31: memref<1x1x512xf32, #tpu.memory_space<vmem>>) attributes {dimension_semantics = [#tpu.dimension_semantics<parallel>], iteration_bounds = array<i64: 4>, scalar_prefetch = 0 : i64, scratch_operands = 0 : i64, tpu.core_type = #tpu.core_type<tc>, window_params = [{transform_indices = @transform_0, window_bounds = array<i64: 1, 48, 8>}, {pipeline_mode = #tpu.pipeline_mode<synchronous>, transform_indices = @transform_1, window_bounds = array<i64: 48, 48>}, {pipeline_mode = #tpu.pipeline_mode<synchronous>, transform_indices = @transform_2, window_bounds = array<i64: 256, 48>}, {pipeline_mode = #tpu.pipeline_mode<synchronous>, transform_indices = @transform_3, window_bounds = array<i64: 256, 1>}, {pipeline_mode = #tpu.pipeline_mode<synchronous>, transform_indices = @transform_4, window_bounds = array<i64: 256, 256>}, {pipeline_mode = #tpu.pipeline_mode<synchronous>, transform_indices = @transform_5, window_bounds = array<i64: 256, 1>}, {pipeline_mode = #tpu.pipeline_mode<synchronous>, transform_indices = @transform_6, window_bounds = array<i64: 256, 48>}, {pipeline_mode = #tpu.pipeline_mode<synchronous>, transform_indices = @transform_7, window_bounds = array<i64: 256, 1>}, {pipeline_mode = #tpu.pipeline_mode<synchronous>, transform_indices = @transform_8, window_bounds = array<i64: 256, 256>}, {pipeline_mode = #tpu.pipeline_mode<synchronous>, transform_indices = @transform_9, window_bounds = array<i64: 256, 1>}, {pipeline_mode = #tpu.pipeline_mode<synchronous>, transform_indices = @transform_10, window_bounds = array<i64: 8, 16>}, {pipeline_mode = #tpu.pipeline_mode<synchronous>, transform_indices = @transform_11, window_bounds = array<i64: 8, 16>}, {pipeline_mode = #tpu.pipeline_mode<synchronous>, transform_indices = @transform_12, window_bounds = array<i64: 9, 256, 256>}, {pipeline_mode = #tpu.pipeline_mode<synchronous>, transform_indices = @transform_13, window_bounds = array<i64: 9, 16, 16>}, {pipeline_mode = #tpu.pipeline_mode<synchronous>, transform_indices = @transform_14, window_bounds = array<i64: 1, 16>}, {pipeline_mode = #tpu.pipeline_mode<synchronous>, transform_indices = @transform_15, window_bounds = array<i64: 4, 64, 256>}, {pipeline_mode = #tpu.pipeline_mode<synchronous>, transform_indices = @transform_16, window_bounds = array<i64: 9, 64, 64>}, {pipeline_mode = #tpu.pipeline_mode<synchronous>, transform_indices = @transform_17, window_bounds = array<i64: 9, 16, 32>}, {pipeline_mode = #tpu.pipeline_mode<synchronous>, transform_indices = @transform_18, window_bounds = array<i64: 1, 32>}, {pipeline_mode = #tpu.pipeline_mode<synchronous>, transform_indices = @transform_19, window_bounds = array<i64: 4, 16, 64>}, {pipeline_mode = #tpu.pipeline_mode<synchronous>, transform_indices = @transform_20, window_bounds = array<i64: 9, 16, 16>}, {pipeline_mode = #tpu.pipeline_mode<synchronous>, transform_indices = @transform_21, window_bounds = array<i64: 9, 32, 32>}, {pipeline_mode = #tpu.pipeline_mode<synchronous>, transform_indices = @transform_22, window_bounds = array<i64: 1, 32>}, {pipeline_mode = #tpu.pipeline_mode<synchronous>, transform_indices = @transform_23, window_bounds = array<i64: 4, 9, 16>}, {pipeline_mode = #tpu.pipeline_mode<synchronous>, transform_indices = @transform_24, window_bounds = array<i64: 9, 9, 9>}, {pipeline_mode = #tpu.pipeline_mode<synchronous>, transform_indices = @transform_25, window_bounds = array<i64: 9, 32, 64>}, {pipeline_mode = #tpu.pipeline_mode<synchronous>, transform_indices = @transform_26, window_bounds = array<i64: 1, 64>}, {pipeline_mode = #tpu.pipeline_mode<synchronous>, transform_indices = @transform_27, window_bounds = array<i64: 4, 1, 9>}, {pipeline_mode = #tpu.pipeline_mode<synchronous>, transform_indices = @transform_28, window_bounds = array<i64: 1, 64, 512>}, {pipeline_mode = #tpu.pipeline_mode<synchronous>, transform_indices = @transform_29, window_bounds = array<i64: 1, 512>}, {transform_indices = @transform_30, window_bounds = array<i64: 1, 1, 512>}]} {
    %c0 = arith.constant 0 : index
    %c0_0 = arith.constant 0 : index
    %c0_1 = arith.constant 0 : index
    %0 = vector.load %arg1[%c0, %c0_0, %c0_1] : memref<1x48x8xf32, #tpu.memory_space<vmem>>, vector<1x48x8xf32>
    %1 = vector.shape_cast %0 : vector<1x48x8xf32> to vector<48x8xf32>
    %c0_2 = arith.constant 0 : index
    %c0_3 = arith.constant 0 : index
    %2 = vector.load %arg2[%c0_2, %c0_3] : memref<48x48xf32, #tpu.memory_space<vmem>>, vector<48x48xf32>
    %cst = arith.constant dense<0.000000e+00> : vector<48x8xf32>
    %3 = tpu.matmul %2, %1, %cst {dimension_numbers = #tpu.dot_dimension_numbers<[1], [0], [0], [1], [0, 0, 1, 1], [], []>} : vector<48x48xf32>, vector<48x8xf32>, vector<48x8xf32> -> vector<48x8xf32>
    %c0_4 = arith.constant 0 : index
    %c0_5 = arith.constant 0 : index
    %4 = vector.load %arg3[%c0_4, %c0_5] : memref<256x48xf32, #tpu.memory_space<vmem>>, vector<256x48xf32>
    %c0_6 = arith.constant 0 : index
    %c0_7 = arith.constant 0 : index
    %5 = vector.load %arg4[%c0_6, %c0_7] : memref<256x1xf32, #tpu.memory_space<vmem>>, vector<256x1xf32>
    %c0_8 = arith.constant 0 : index
    %c0_9 = arith.constant 0 : index
    %6 = vector.load %arg5[%c0_8, %c0_9] : memref<256x256xf32, #tpu.memory_space<vmem>>, vector<256x256xf32>
    %c0_10 = arith.constant 0 : index
    %c0_11 = arith.constant 0 : index
    %7 = vector.load %arg6[%c0_10, %c0_11] : memref<256x1xf32, #tpu.memory_space<vmem>>, vector<256x1xf32>
    %cst_12 = arith.constant dense<0.000000e+00> : vector<256x8xf32>
    %8 = tpu.matmul %4, %1, %cst_12 {dimension_numbers = #tpu.dot_dimension_numbers<[1], [0], [0], [1], [0, 0, 1, 1], [], []>} : vector<256x48xf32>, vector<48x8xf32>, vector<256x8xf32> -> vector<256x8xf32>
    %9 = vector.broadcast %5 : vector<256x1xf32> to vector<256x8xf32>
    %10 = arith.addf %8, %9 : vector<256x8xf32>
    %cst_13 = arith.constant 0.000000e+00 : f32
    %11 = vector.broadcast %cst_13 : f32 to vector<256x8xf32>
    %12 = arith.maximumf %10, %11 : vector<256x8xf32>
    %cst_14 = arith.constant dense<0.000000e+00> : vector<256x8xf32>
    %13 = tpu.matmul %6, %12, %cst_14 {dimension_numbers = #tpu.dot_dimension_numbers<[1], [0], [0], [1], [0, 0, 1, 1], [], []>} : vector<256x256xf32>, vector<256x8xf32>, vector<256x8xf32> -> vector<256x8xf32>
    %14 = vector.broadcast %7 : vector<256x1xf32> to vector<256x8xf32>
    %15 = arith.addf %13, %14 : vector<256x8xf32>
    %c0_15 = arith.constant 0 : index
    %c0_16 = arith.constant 0 : index
    %16 = vector.load %arg7[%c0_15, %c0_16] : memref<256x48xf32, #tpu.memory_space<vmem>>, vector<256x48xf32>
    %c0_17 = arith.constant 0 : index
    %c0_18 = arith.constant 0 : index
    %17 = vector.load %arg8[%c0_17, %c0_18] : memref<256x1xf32, #tpu.memory_space<vmem>>, vector<256x1xf32>
    %c0_19 = arith.constant 0 : index
    %c0_20 = arith.constant 0 : index
    %18 = vector.load %arg9[%c0_19, %c0_20] : memref<256x256xf32, #tpu.memory_space<vmem>>, vector<256x256xf32>
    %c0_21 = arith.constant 0 : index
    %c0_22 = arith.constant 0 : index
    %19 = vector.load %arg10[%c0_21, %c0_22] : memref<256x1xf32, #tpu.memory_space<vmem>>, vector<256x1xf32>
    %cst_23 = arith.constant dense<0.000000e+00> : vector<256x8xf32>
    %20 = tpu.matmul %16, %3, %cst_23 {dimension_numbers = #tpu.dot_dimension_numbers<[1], [0], [0], [1], [0, 0, 1, 1], [], []>} : vector<256x48xf32>, vector<48x8xf32>, vector<256x8xf32> -> vector<256x8xf32>
    %21 = vector.broadcast %17 : vector<256x1xf32> to vector<256x8xf32>
    %22 = arith.addf %20, %21 : vector<256x8xf32>
    %cst_24 = arith.constant 0.000000e+00 : f32
    %23 = vector.broadcast %cst_24 : f32 to vector<256x8xf32>
    %24 = arith.maximumf %22, %23 : vector<256x8xf32>
    %cst_25 = arith.constant dense<0.000000e+00> : vector<256x8xf32>
    %25 = tpu.matmul %18, %24, %cst_25 {dimension_numbers = #tpu.dot_dimension_numbers<[1], [0], [0], [1], [0, 0, 1, 1], [], []>} : vector<256x256xf32>, vector<256x8xf32>, vector<256x8xf32> -> vector<256x8xf32>
    %26 = vector.broadcast %19 : vector<256x1xf32> to vector<256x8xf32>
    %27 = arith.addf %25, %26 : vector<256x8xf32>
    %c0_26 = arith.constant 0 : index
    %c0_27 = arith.constant 0 : index
    %28 = vector.load %arg11[%c0_26, %c0_27] : memref<8x16xf32, #tpu.memory_space<vmem>>, vector<8x16xf32>
    %cst_28 = arith.constant dense<0.000000e+00> : vector<256x16xf32>
    %29 = tpu.matmul %15, %28, %cst_28 {dimension_numbers = #tpu.dot_dimension_numbers<[1], [0], [0], [1], [0, 0, 1, 1], [], []>} : vector<256x8xf32>, vector<8x16xf32>, vector<256x16xf32> -> vector<256x16xf32>
    %c0_29 = arith.constant 0 : index
    %c0_30 = arith.constant 0 : index
    %30 = vector.load %arg12[%c0_29, %c0_30] : memref<8x16xf32, #tpu.memory_space<vmem>>, vector<8x16xf32>
    %cst_31 = arith.constant dense<0.000000e+00> : vector<256x16xf32>
    %31 = tpu.matmul %27, %30, %cst_31 {dimension_numbers = #tpu.dot_dimension_numbers<[1], [0], [0], [1], [0, 0, 1, 1], [], []>} : vector<256x8xf32>, vector<8x16xf32>, vector<256x16xf32> -> vector<256x16xf32>
    %32 = arith.addf %29, %31 : vector<256x16xf32>
    %c0_32 = arith.constant 0 : index
    %c0_33 = arith.constant 0 : index
    %c0_34 = arith.constant 0 : index
    %33 = vector.load %arg13[%c0_32, %c0_33, %c0_34] : memref<9x256x256xf32, #tpu.memory_space<vmem>>, vector<1x256x256xf32>
    %34 = vector.shape_cast %33 : vector<1x256x256xf32> to vector<256x256xf32>
    %cst_35 = arith.constant dense<0.000000e+00> : vector<256x16xf32>
    %35 = tpu.matmul %34, %32, %cst_35 {dimension_numbers = #tpu.dot_dimension_numbers<[1], [0], [0], [1], [0, 0, 1, 1], [], []>} : vector<256x256xf32>, vector<256x16xf32>, vector<256x16xf32> -> vector<256x16xf32>
    %c0_36 = arith.constant 0 : index
    %c0_37 = arith.constant 0 : index
    %c0_38 = arith.constant 0 : index
    %36 = vector.load %arg14[%c0_36, %c0_37, %c0_38] : memref<9x16x16xf32, #tpu.memory_space<vmem>>, vector<1x16x16xf32>
    %37 = vector.shape_cast %36 : vector<1x16x16xf32> to vector<16x16xf32>
    %cst_39 = arith.constant dense<0.000000e+00> : vector<256x16xf32>
    %38 = tpu.matmul %35, %37, %cst_39 {dimension_numbers = #tpu.dot_dimension_numbers<[1], [0], [0], [1], [0, 0, 1, 1], [], []>} : vector<256x16xf32>, vector<16x16xf32>, vector<256x16xf32> -> vector<256x16xf32>
    %c1 = arith.constant 1 : index
    %c0_40 = arith.constant 0 : index
    %c0_41 = arith.constant 0 : index
    %39 = vector.load %arg13[%c1, %c0_40, %c0_41] : memref<9x256x256xf32, #tpu.memory_space<vmem>>, vector<1x256x256xf32>
    %40 = vector.shape_cast %39 : vector<1x256x256xf32> to vector<256x256xf32>
    %cst_42 = arith.constant dense<0.000000e+00> : vector<256x16xf32>
    %41 = tpu.matmul %40, %32, %cst_42 {dimension_numbers = #tpu.dot_dimension_numbers<[1], [0], [0], [1], [0, 0, 1, 1], [], []>} : vector<256x256xf32>, vector<256x16xf32>, vector<256x16xf32> -> vector<256x16xf32>
    %c1_43 = arith.constant 1 : index
    %c0_44 = arith.constant 0 : index
    %c0_45 = arith.constant 0 : index
    %42 = vector.load %arg14[%c1_43, %c0_44, %c0_45] : memref<9x16x16xf32, #tpu.memory_space<vmem>>, vector<1x16x16xf32>
    %43 = vector.shape_cast %42 : vector<1x16x16xf32> to vector<16x16xf32>
    %cst_46 = arith.constant dense<0.000000e+00> : vector<256x16xf32>
    %44 = tpu.matmul %41, %43, %cst_46 {dimension_numbers = #tpu.dot_dimension_numbers<[1], [0], [0], [1], [0, 0, 1, 1], [], []>} : vector<256x16xf32>, vector<16x16xf32>, vector<256x16xf32> -> vector<256x16xf32>
    %45 = arith.addf %38, %44 : vector<256x16xf32>
    %c2 = arith.constant 2 : index
    %c0_47 = arith.constant 0 : index
    %c0_48 = arith.constant 0 : index
    %46 = vector.load %arg13[%c2, %c0_47, %c0_48] : memref<9x256x256xf32, #tpu.memory_space<vmem>>, vector<1x256x256xf32>
    %47 = vector.shape_cast %46 : vector<1x256x256xf32> to vector<256x256xf32>
    %cst_49 = arith.constant dense<0.000000e+00> : vector<256x16xf32>
    %48 = tpu.matmul %47, %32, %cst_49 {dimension_numbers = #tpu.dot_dimension_numbers<[1], [0], [0], [1], [0, 0, 1, 1], [], []>} : vector<256x256xf32>, vector<256x16xf32>, vector<256x16xf32> -> vector<256x16xf32>
    %c2_50 = arith.constant 2 : index
    %c0_51 = arith.constant 0 : index
    %c0_52 = arith.constant 0 : index
    %49 = vector.load %arg14[%c2_50, %c0_51, %c0_52] : memref<9x16x16xf32, #tpu.memory_space<vmem>>, vector<1x16x16xf32>
    %50 = vector.shape_cast %49 : vector<1x16x16xf32> to vector<16x16xf32>
    %cst_53 = arith.constant dense<0.000000e+00> : vector<256x16xf32>
    %51 = tpu.matmul %48, %50, %cst_53 {dimension_numbers = #tpu.dot_dimension_numbers<[1], [0], [0], [1], [0, 0, 1, 1], [], []>} : vector<256x16xf32>, vector<16x16xf32>, vector<256x16xf32> -> vector<256x16xf32>
    %52 = arith.addf %45, %51 : vector<256x16xf32>
    %c3 = arith.constant 3 : index
    %c0_54 = arith.constant 0 : index
    %c0_55 = arith.constant 0 : index
    %53 = vector.load %arg13[%c3, %c0_54, %c0_55] : memref<9x256x256xf32, #tpu.memory_space<vmem>>, vector<1x256x256xf32>
    %54 = vector.shape_cast %53 : vector<1x256x256xf32> to vector<256x256xf32>
    %cst_56 = arith.constant dense<0.000000e+00> : vector<256x16xf32>
    %55 = tpu.matmul %54, %32, %cst_56 {dimension_numbers = #tpu.dot_dimension_numbers<[1], [0], [0], [1], [0, 0, 1, 1], [], []>} : vector<256x256xf32>, vector<256x16xf32>, vector<256x16xf32> -> vector<256x16xf32>
    %c3_57 = arith.constant 3 : index
    %c0_58 = arith.constant 0 : index
    %c0_59 = arith.constant 0 : index
    %56 = vector.load %arg14[%c3_57, %c0_58, %c0_59] : memref<9x16x16xf32, #tpu.memory_space<vmem>>, vector<1x16x16xf32>
    %57 = vector.shape_cast %56 : vector<1x16x16xf32> to vector<16x16xf32>
    %cst_60 = arith.constant dense<0.000000e+00> : vector<256x16xf32>
    %58 = tpu.matmul %55, %57, %cst_60 {dimension_numbers = #tpu.dot_dimension_numbers<[1], [0], [0], [1], [0, 0, 1, 1], [], []>} : vector<256x16xf32>, vector<16x16xf32>, vector<256x16xf32> -> vector<256x16xf32>
    %59 = arith.addf %52, %58 : vector<256x16xf32>
    %c4 = arith.constant 4 : index
    %c0_61 = arith.constant 0 : index
    %c0_62 = arith.constant 0 : index
    %60 = vector.load %arg13[%c4, %c0_61, %c0_62] : memref<9x256x256xf32, #tpu.memory_space<vmem>>, vector<1x256x256xf32>
    %61 = vector.shape_cast %60 : vector<1x256x256xf32> to vector<256x256xf32>
    %cst_63 = arith.constant dense<0.000000e+00> : vector<256x16xf32>
    %62 = tpu.matmul %61, %32, %cst_63 {dimension_numbers = #tpu.dot_dimension_numbers<[1], [0], [0], [1], [0, 0, 1, 1], [], []>} : vector<256x256xf32>, vector<256x16xf32>, vector<256x16xf32> -> vector<256x16xf32>
    %c4_64 = arith.constant 4 : index
    %c0_65 = arith.constant 0 : index
    %c0_66 = arith.constant 0 : index
    %63 = vector.load %arg14[%c4_64, %c0_65, %c0_66] : memref<9x16x16xf32, #tpu.memory_space<vmem>>, vector<1x16x16xf32>
    %64 = vector.shape_cast %63 : vector<1x16x16xf32> to vector<16x16xf32>
    %cst_67 = arith.constant dense<0.000000e+00> : vector<256x16xf32>
    %65 = tpu.matmul %62, %64, %cst_67 {dimension_numbers = #tpu.dot_dimension_numbers<[1], [0], [0], [1], [0, 0, 1, 1], [], []>} : vector<256x16xf32>, vector<16x16xf32>, vector<256x16xf32> -> vector<256x16xf32>
    %66 = arith.addf %59, %65 : vector<256x16xf32>
    %c5 = arith.constant 5 : index
    %c0_68 = arith.constant 0 : index
    %c0_69 = arith.constant 0 : index
    %67 = vector.load %arg13[%c5, %c0_68, %c0_69] : memref<9x256x256xf32, #tpu.memory_space<vmem>>, vector<1x256x256xf32>
    %68 = vector.shape_cast %67 : vector<1x256x256xf32> to vector<256x256xf32>
    %cst_70 = arith.constant dense<0.000000e+00> : vector<256x16xf32>
    %69 = tpu.matmul %68, %32, %cst_70 {dimension_numbers = #tpu.dot_dimension_numbers<[1], [0], [0], [1], [0, 0, 1, 1], [], []>} : vector<256x256xf32>, vector<256x16xf32>, vector<256x16xf32> -> vector<256x16xf32>
    %c5_71 = arith.constant 5 : index
    %c0_72 = arith.constant 0 : index
    %c0_73 = arith.constant 0 : index
    %70 = vector.load %arg14[%c5_71, %c0_72, %c0_73] : memref<9x16x16xf32, #tpu.memory_space<vmem>>, vector<1x16x16xf32>
    %71 = vector.shape_cast %70 : vector<1x16x16xf32> to vector<16x16xf32>
    %cst_74 = arith.constant dense<0.000000e+00> : vector<256x16xf32>
    %72 = tpu.matmul %69, %71, %cst_74 {dimension_numbers = #tpu.dot_dimension_numbers<[1], [0], [0], [1], [0, 0, 1, 1], [], []>} : vector<256x16xf32>, vector<16x16xf32>, vector<256x16xf32> -> vector<256x16xf32>
    %73 = arith.addf %66, %72 : vector<256x16xf32>
    %c6 = arith.constant 6 : index
    %c0_75 = arith.constant 0 : index
    %c0_76 = arith.constant 0 : index
    %74 = vector.load %arg13[%c6, %c0_75, %c0_76] : memref<9x256x256xf32, #tpu.memory_space<vmem>>, vector<1x256x256xf32>
    %75 = vector.shape_cast %74 : vector<1x256x256xf32> to vector<256x256xf32>
    %cst_77 = arith.constant dense<0.000000e+00> : vector<256x16xf32>
    %76 = tpu.matmul %75, %32, %cst_77 {dimension_numbers = #tpu.dot_dimension_numbers<[1], [0], [0], [1], [0, 0, 1, 1], [], []>} : vector<256x256xf32>, vector<256x16xf32>, vector<256x16xf32> -> vector<256x16xf32>
    %c6_78 = arith.constant 6 : index
    %c0_79 = arith.constant 0 : index
    %c0_80 = arith.constant 0 : index
    %77 = vector.load %arg14[%c6_78, %c0_79, %c0_80] : memref<9x16x16xf32, #tpu.memory_space<vmem>>, vector<1x16x16xf32>
    %78 = vector.shape_cast %77 : vector<1x16x16xf32> to vector<16x16xf32>
    %cst_81 = arith.constant dense<0.000000e+00> : vector<256x16xf32>
    %79 = tpu.matmul %76, %78, %cst_81 {dimension_numbers = #tpu.dot_dimension_numbers<[1], [0], [0], [1], [0, 0, 1, 1], [], []>} : vector<256x16xf32>, vector<16x16xf32>, vector<256x16xf32> -> vector<256x16xf32>
    %80 = arith.addf %73, %79 : vector<256x16xf32>
    %c7 = arith.constant 7 : index
    %c0_82 = arith.constant 0 : index
    %c0_83 = arith.constant 0 : index
    %81 = vector.load %arg13[%c7, %c0_82, %c0_83] : memref<9x256x256xf32, #tpu.memory_space<vmem>>, vector<1x256x256xf32>
    %82 = vector.shape_cast %81 : vector<1x256x256xf32> to vector<256x256xf32>
    %cst_84 = arith.constant dense<0.000000e+00> : vector<256x16xf32>
    %83 = tpu.matmul %82, %32, %cst_84 {dimension_numbers = #tpu.dot_dimension_numbers<[1], [0], [0], [1], [0, 0, 1, 1], [], []>} : vector<256x256xf32>, vector<256x16xf32>, vector<256x16xf32> -> vector<256x16xf32>
    %c7_85 = arith.constant 7 : index
    %c0_86 = arith.constant 0 : index
    %c0_87 = arith.constant 0 : index
    %84 = vector.load %arg14[%c7_85, %c0_86, %c0_87] : memref<9x16x16xf32, #tpu.memory_space<vmem>>, vector<1x16x16xf32>
    %85 = vector.shape_cast %84 : vector<1x16x16xf32> to vector<16x16xf32>
    %cst_88 = arith.constant dense<0.000000e+00> : vector<256x16xf32>
    %86 = tpu.matmul %83, %85, %cst_88 {dimension_numbers = #tpu.dot_dimension_numbers<[1], [0], [0], [1], [0, 0, 1, 1], [], []>} : vector<256x16xf32>, vector<16x16xf32>, vector<256x16xf32> -> vector<256x16xf32>
    %87 = arith.addf %80, %86 : vector<256x16xf32>
    %c8 = arith.constant 8 : index
    %c0_89 = arith.constant 0 : index
    %c0_90 = arith.constant 0 : index
    %88 = vector.load %arg13[%c8, %c0_89, %c0_90] : memref<9x256x256xf32, #tpu.memory_space<vmem>>, vector<1x256x256xf32>
    %89 = vector.shape_cast %88 : vector<1x256x256xf32> to vector<256x256xf32>
    %cst_91 = arith.constant dense<0.000000e+00> : vector<256x16xf32>
    %90 = tpu.matmul %89, %32, %cst_91 {dimension_numbers = #tpu.dot_dimension_numbers<[1], [0], [0], [1], [0, 0, 1, 1], [], []>} : vector<256x256xf32>, vector<256x16xf32>, vector<256x16xf32> -> vector<256x16xf32>
    %c8_92 = arith.constant 8 : index
    %c0_93 = arith.constant 0 : index
    %c0_94 = arith.constant 0 : index
    %91 = vector.load %arg14[%c8_92, %c0_93, %c0_94] : memref<9x16x16xf32, #tpu.memory_space<vmem>>, vector<1x16x16xf32>
    %92 = vector.shape_cast %91 : vector<1x16x16xf32> to vector<16x16xf32>
    %cst_95 = arith.constant dense<0.000000e+00> : vector<256x16xf32>
    %93 = tpu.matmul %90, %92, %cst_95 {dimension_numbers = #tpu.dot_dimension_numbers<[1], [0], [0], [1], [0, 0, 1, 1], [], []>} : vector<256x16xf32>, vector<16x16xf32>, vector<256x16xf32> -> vector<256x16xf32>
    %94 = arith.addf %87, %93 : vector<256x16xf32>
    %c0_96 = arith.constant 0 : index
    %c0_97 = arith.constant 0 : index
    %95 = vector.load %arg15[%c0_96, %c0_97] : memref<1x16xf32, #tpu.memory_space<vmem>>, vector<1x16xf32>
    %96 = vector.broadcast %95 : vector<1x16xf32> to vector<256x16xf32>
    %97 = arith.addf %94, %96 : vector<256x16xf32>
    %c0_98 = arith.constant 0 : index
    %c0_99 = arith.constant 0 : index
    %c0_100 = arith.constant 0 : index
    %98 = vector.load %arg16[%c0_98, %c0_99, %c0_100] : memref<4x64x256xf32, #tpu.memory_space<vmem>>, vector<1x64x256xf32>
    %99 = vector.shape_cast %98 : vector<1x64x256xf32> to vector<64x256xf32>
    %cst_101 = arith.constant dense<0.000000e+00> : vector<64x16xf32>
    %100 = tpu.matmul %99, %97, %cst_101 {dimension_numbers = #tpu.dot_dimension_numbers<[1], [0], [0], [1], [0, 0, 1, 1], [], []>} : vector<64x256xf32>, vector<256x16xf32>, vector<64x16xf32> -> vector<64x16xf32>
    %c1_102 = arith.constant 1 : index
    %c0_103 = arith.constant 0 : index
    %c0_104 = arith.constant 0 : index
    %101 = vector.load %arg16[%c1_102, %c0_103, %c0_104] : memref<4x64x256xf32, #tpu.memory_space<vmem>>, vector<1x64x256xf32>
    %102 = vector.shape_cast %101 : vector<1x64x256xf32> to vector<64x256xf32>
    %cst_105 = arith.constant dense<0.000000e+00> : vector<64x16xf32>
    %103 = tpu.matmul %102, %97, %cst_105 {dimension_numbers = #tpu.dot_dimension_numbers<[1], [0], [0], [1], [0, 0, 1, 1], [], []>} : vector<64x256xf32>, vector<256x16xf32>, vector<64x16xf32> -> vector<64x16xf32>
    %c2_106 = arith.constant 2 : index
    %c0_107 = arith.constant 0 : index
    %c0_108 = arith.constant 0 : index
    %104 = vector.load %arg16[%c2_106, %c0_107, %c0_108] : memref<4x64x256xf32, #tpu.memory_space<vmem>>, vector<1x64x256xf32>
    %105 = vector.shape_cast %104 : vector<1x64x256xf32> to vector<64x256xf32>
    %cst_109 = arith.constant dense<0.000000e+00> : vector<64x16xf32>
    %106 = tpu.matmul %105, %97, %cst_109 {dimension_numbers = #tpu.dot_dimension_numbers<[1], [0], [0], [1], [0, 0, 1, 1], [], []>} : vector<64x256xf32>, vector<256x16xf32>, vector<64x16xf32> -> vector<64x16xf32>
    %c3_110 = arith.constant 3 : index
    %c0_111 = arith.constant 0 : index
    %c0_112 = arith.constant 0 : index
    %107 = vector.load %arg16[%c3_110, %c0_111, %c0_112] : memref<4x64x256xf32, #tpu.memory_space<vmem>>, vector<1x64x256xf32>
    %108 = vector.shape_cast %107 : vector<1x64x256xf32> to vector<64x256xf32>
    %cst_113 = arith.constant dense<0.000000e+00> : vector<64x16xf32>
    %109 = tpu.matmul %108, %97, %cst_113 {dimension_numbers = #tpu.dot_dimension_numbers<[1], [0], [0], [1], [0, 0, 1, 1], [], []>} : vector<64x256xf32>, vector<256x16xf32>, vector<64x16xf32> -> vector<64x16xf32>
    %110 = arith.maximumf %100, %103 : vector<64x16xf32>
    %111 = arith.maximumf %106, %109 : vector<64x16xf32>
    %112 = arith.maximumf %110, %111 : vector<64x16xf32>
    %c0_114 = arith.constant 0 : index
    %c0_115 = arith.constant 0 : index
    %c0_116 = arith.constant 0 : index
    %113 = vector.load %arg17[%c0_114, %c0_115, %c0_116] : memref<9x64x64xf32, #tpu.memory_space<vmem>>, vector<1x64x64xf32>
    %114 = vector.shape_cast %113 : vector<1x64x64xf32> to vector<64x64xf32>
    %cst_117 = arith.constant dense<0.000000e+00> : vector<64x16xf32>
    %115 = tpu.matmul %114, %112, %cst_117 {dimension_numbers = #tpu.dot_dimension_numbers<[1], [0], [0], [1], [0, 0, 1, 1], [], []>} : vector<64x64xf32>, vector<64x16xf32>, vector<64x16xf32> -> vector<64x16xf32>
    %c0_118 = arith.constant 0 : index
    %c0_119 = arith.constant 0 : index
    %c0_120 = arith.constant 0 : index
    %116 = vector.load %arg18[%c0_118, %c0_119, %c0_120] : memref<9x16x32xf32, #tpu.memory_space<vmem>>, vector<1x16x32xf32>
    %117 = vector.shape_cast %116 : vector<1x16x32xf32> to vector<16x32xf32>
    %cst_121 = arith.constant dense<0.000000e+00> : vector<64x32xf32>
    %118 = tpu.matmul %115, %117, %cst_121 {dimension_numbers = #tpu.dot_dimension_numbers<[1], [0], [0], [1], [0, 0, 1, 1], [], []>} : vector<64x16xf32>, vector<16x32xf32>, vector<64x32xf32> -> vector<64x32xf32>
    %c1_122 = arith.constant 1 : index
    %c0_123 = arith.constant 0 : index
    %c0_124 = arith.constant 0 : index
    %119 = vector.load %arg17[%c1_122, %c0_123, %c0_124] : memref<9x64x64xf32, #tpu.memory_space<vmem>>, vector<1x64x64xf32>
    %120 = vector.shape_cast %119 : vector<1x64x64xf32> to vector<64x64xf32>
    %cst_125 = arith.constant dense<0.000000e+00> : vector<64x16xf32>
    %121 = tpu.matmul %120, %112, %cst_125 {dimension_numbers = #tpu.dot_dimension_numbers<[1], [0], [0], [1], [0, 0, 1, 1], [], []>} : vector<64x64xf32>, vector<64x16xf32>, vector<64x16xf32> -> vector<64x16xf32>
    %c1_126 = arith.constant 1 : index
    %c0_127 = arith.constant 0 : index
    %c0_128 = arith.constant 0 : index
    %122 = vector.load %arg18[%c1_126, %c0_127, %c0_128] : memref<9x16x32xf32, #tpu.memory_space<vmem>>, vector<1x16x32xf32>
    %123 = vector.shape_cast %122 : vector<1x16x32xf32> to vector<16x32xf32>
    %cst_129 = arith.constant dense<0.000000e+00> : vector<64x32xf32>
    %124 = tpu.matmul %121, %123, %cst_129 {dimension_numbers = #tpu.dot_dimension_numbers<[1], [0], [0], [1], [0, 0, 1, 1], [], []>} : vector<64x16xf32>, vector<16x32xf32>, vector<64x32xf32> -> vector<64x32xf32>
    %125 = arith.addf %118, %124 : vector<64x32xf32>
    %c2_130 = arith.constant 2 : index
    %c0_131 = arith.constant 0 : index
    %c0_132 = arith.constant 0 : index
    %126 = vector.load %arg17[%c2_130, %c0_131, %c0_132] : memref<9x64x64xf32, #tpu.memory_space<vmem>>, vector<1x64x64xf32>
    %127 = vector.shape_cast %126 : vector<1x64x64xf32> to vector<64x64xf32>
    %cst_133 = arith.constant dense<0.000000e+00> : vector<64x16xf32>
    %128 = tpu.matmul %127, %112, %cst_133 {dimension_numbers = #tpu.dot_dimension_numbers<[1], [0], [0], [1], [0, 0, 1, 1], [], []>} : vector<64x64xf32>, vector<64x16xf32>, vector<64x16xf32> -> vector<64x16xf32>
    %c2_134 = arith.constant 2 : index
    %c0_135 = arith.constant 0 : index
    %c0_136 = arith.constant 0 : index
    %129 = vector.load %arg18[%c2_134, %c0_135, %c0_136] : memref<9x16x32xf32, #tpu.memory_space<vmem>>, vector<1x16x32xf32>
    %130 = vector.shape_cast %129 : vector<1x16x32xf32> to vector<16x32xf32>
    %cst_137 = arith.constant dense<0.000000e+00> : vector<64x32xf32>
    %131 = tpu.matmul %128, %130, %cst_137 {dimension_numbers = #tpu.dot_dimension_numbers<[1], [0], [0], [1], [0, 0, 1, 1], [], []>} : vector<64x16xf32>, vector<16x32xf32>, vector<64x32xf32> -> vector<64x32xf32>
    %132 = arith.addf %125, %131 : vector<64x32xf32>
    %c3_138 = arith.constant 3 : index
    %c0_139 = arith.constant 0 : index
    %c0_140 = arith.constant 0 : index
    %133 = vector.load %arg17[%c3_138, %c0_139, %c0_140] : memref<9x64x64xf32, #tpu.memory_space<vmem>>, vector<1x64x64xf32>
    %134 = vector.shape_cast %133 : vector<1x64x64xf32> to vector<64x64xf32>
    %cst_141 = arith.constant dense<0.000000e+00> : vector<64x16xf32>
    %135 = tpu.matmul %134, %112, %cst_141 {dimension_numbers = #tpu.dot_dimension_numbers<[1], [0], [0], [1], [0, 0, 1, 1], [], []>} : vector<64x64xf32>, vector<64x16xf32>, vector<64x16xf32> -> vector<64x16xf32>
    %c3_142 = arith.constant 3 : index
    %c0_143 = arith.constant 0 : index
    %c0_144 = arith.constant 0 : index
    %136 = vector.load %arg18[%c3_142, %c0_143, %c0_144] : memref<9x16x32xf32, #tpu.memory_space<vmem>>, vector<1x16x32xf32>
    %137 = vector.shape_cast %136 : vector<1x16x32xf32> to vector<16x32xf32>
    %cst_145 = arith.constant dense<0.000000e+00> : vector<64x32xf32>
    %138 = tpu.matmul %135, %137, %cst_145 {dimension_numbers = #tpu.dot_dimension_numbers<[1], [0], [0], [1], [0, 0, 1, 1], [], []>} : vector<64x16xf32>, vector<16x32xf32>, vector<64x32xf32> -> vector<64x32xf32>
    %139 = arith.addf %132, %138 : vector<64x32xf32>
    %c4_146 = arith.constant 4 : index
    %c0_147 = arith.constant 0 : index
    %c0_148 = arith.constant 0 : index
    %140 = vector.load %arg17[%c4_146, %c0_147, %c0_148] : memref<9x64x64xf32, #tpu.memory_space<vmem>>, vector<1x64x64xf32>
    %141 = vector.shape_cast %140 : vector<1x64x64xf32> to vector<64x64xf32>
    %cst_149 = arith.constant dense<0.000000e+00> : vector<64x16xf32>
    %142 = tpu.matmul %141, %112, %cst_149 {dimension_numbers = #tpu.dot_dimension_numbers<[1], [0], [0], [1], [0, 0, 1, 1], [], []>} : vector<64x64xf32>, vector<64x16xf32>, vector<64x16xf32> -> vector<64x16xf32>
    %c4_150 = arith.constant 4 : index
    %c0_151 = arith.constant 0 : index
    %c0_152 = arith.constant 0 : index
    %143 = vector.load %arg18[%c4_150, %c0_151, %c0_152] : memref<9x16x32xf32, #tpu.memory_space<vmem>>, vector<1x16x32xf32>
    %144 = vector.shape_cast %143 : vector<1x16x32xf32> to vector<16x32xf32>
    %cst_153 = arith.constant dense<0.000000e+00> : vector<64x32xf32>
    %145 = tpu.matmul %142, %144, %cst_153 {dimension_numbers = #tpu.dot_dimension_numbers<[1], [0], [0], [1], [0, 0, 1, 1], [], []>} : vector<64x16xf32>, vector<16x32xf32>, vector<64x32xf32> -> vector<64x32xf32>
    %146 = arith.addf %139, %145 : vector<64x32xf32>
    %c5_154 = arith.constant 5 : index
    %c0_155 = arith.constant 0 : index
    %c0_156 = arith.constant 0 : index
    %147 = vector.load %arg17[%c5_154, %c0_155, %c0_156] : memref<9x64x64xf32, #tpu.memory_space<vmem>>, vector<1x64x64xf32>
    %148 = vector.shape_cast %147 : vector<1x64x64xf32> to vector<64x64xf32>
    %cst_157 = arith.constant dense<0.000000e+00> : vector<64x16xf32>
    %149 = tpu.matmul %148, %112, %cst_157 {dimension_numbers = #tpu.dot_dimension_numbers<[1], [0], [0], [1], [0, 0, 1, 1], [], []>} : vector<64x64xf32>, vector<64x16xf32>, vector<64x16xf32> -> vector<64x16xf32>
    %c5_158 = arith.constant 5 : index
    %c0_159 = arith.constant 0 : index
    %c0_160 = arith.constant 0 : index
    %150 = vector.load %arg18[%c5_158, %c0_159, %c0_160] : memref<9x16x32xf32, #tpu.memory_space<vmem>>, vector<1x16x32xf32>
    %151 = vector.shape_cast %150 : vector<1x16x32xf32> to vector<16x32xf32>
    %cst_161 = arith.constant dense<0.000000e+00> : vector<64x32xf32>
    %152 = tpu.matmul %149, %151, %cst_161 {dimension_numbers = #tpu.dot_dimension_numbers<[1], [0], [0], [1], [0, 0, 1, 1], [], []>} : vector<64x16xf32>, vector<16x32xf32>, vector<64x32xf32> -> vector<64x32xf32>
    %153 = arith.addf %146, %152 : vector<64x32xf32>
    %c6_162 = arith.constant 6 : index
    %c0_163 = arith.constant 0 : index
    %c0_164 = arith.constant 0 : index
    %154 = vector.load %arg17[%c6_162, %c0_163, %c0_164] : memref<9x64x64xf32, #tpu.memory_space<vmem>>, vector<1x64x64xf32>
    %155 = vector.shape_cast %154 : vector<1x64x64xf32> to vector<64x64xf32>
    %cst_165 = arith.constant dense<0.000000e+00> : vector<64x16xf32>
    %156 = tpu.matmul %155, %112, %cst_165 {dimension_numbers = #tpu.dot_dimension_numbers<[1], [0], [0], [1], [0, 0, 1, 1], [], []>} : vector<64x64xf32>, vector<64x16xf32>, vector<64x16xf32> -> vector<64x16xf32>
    %c6_166 = arith.constant 6 : index
    %c0_167 = arith.constant 0 : index
    %c0_168 = arith.constant 0 : index
    %157 = vector.load %arg18[%c6_166, %c0_167, %c0_168] : memref<9x16x32xf32, #tpu.memory_space<vmem>>, vector<1x16x32xf32>
    %158 = vector.shape_cast %157 : vector<1x16x32xf32> to vector<16x32xf32>
    %cst_169 = arith.constant dense<0.000000e+00> : vector<64x32xf32>
    %159 = tpu.matmul %156, %158, %cst_169 {dimension_numbers = #tpu.dot_dimension_numbers<[1], [0], [0], [1], [0, 0, 1, 1], [], []>} : vector<64x16xf32>, vector<16x32xf32>, vector<64x32xf32> -> vector<64x32xf32>
    %160 = arith.addf %153, %159 : vector<64x32xf32>
    %c7_170 = arith.constant 7 : index
    %c0_171 = arith.constant 0 : index
    %c0_172 = arith.constant 0 : index
    %161 = vector.load %arg17[%c7_170, %c0_171, %c0_172] : memref<9x64x64xf32, #tpu.memory_space<vmem>>, vector<1x64x64xf32>
    %162 = vector.shape_cast %161 : vector<1x64x64xf32> to vector<64x64xf32>
    %cst_173 = arith.constant dense<0.000000e+00> : vector<64x16xf32>
    %163 = tpu.matmul %162, %112, %cst_173 {dimension_numbers = #tpu.dot_dimension_numbers<[1], [0], [0], [1], [0, 0, 1, 1], [], []>} : vector<64x64xf32>, vector<64x16xf32>, vector<64x16xf32> -> vector<64x16xf32>
    %c7_174 = arith.constant 7 : index
    %c0_175 = arith.constant 0 : index
    %c0_176 = arith.constant 0 : index
    %164 = vector.load %arg18[%c7_174, %c0_175, %c0_176] : memref<9x16x32xf32, #tpu.memory_space<vmem>>, vector<1x16x32xf32>
    %165 = vector.shape_cast %164 : vector<1x16x32xf32> to vector<16x32xf32>
    %cst_177 = arith.constant dense<0.000000e+00> : vector<64x32xf32>
    %166 = tpu.matmul %163, %165, %cst_177 {dimension_numbers = #tpu.dot_dimension_numbers<[1], [0], [0], [1], [0, 0, 1, 1], [], []>} : vector<64x16xf32>, vector<16x32xf32>, vector<64x32xf32> -> vector<64x32xf32>
    %167 = arith.addf %160, %166 : vector<64x32xf32>
    %c8_178 = arith.constant 8 : index
    %c0_179 = arith.constant 0 : index
    %c0_180 = arith.constant 0 : index
    %168 = vector.load %arg17[%c8_178, %c0_179, %c0_180] : memref<9x64x64xf32, #tpu.memory_space<vmem>>, vector<1x64x64xf32>
    %169 = vector.shape_cast %168 : vector<1x64x64xf32> to vector<64x64xf32>
    %cst_181 = arith.constant dense<0.000000e+00> : vector<64x16xf32>
    %170 = tpu.matmul %169, %112, %cst_181 {dimension_numbers = #tpu.dot_dimension_numbers<[1], [0], [0], [1], [0, 0, 1, 1], [], []>} : vector<64x64xf32>, vector<64x16xf32>, vector<64x16xf32> -> vector<64x16xf32>
    %c8_182 = arith.constant 8 : index
    %c0_183 = arith.constant 0 : index
    %c0_184 = arith.constant 0 : index
    %171 = vector.load %arg18[%c8_182, %c0_183, %c0_184] : memref<9x16x32xf32, #tpu.memory_space<vmem>>, vector<1x16x32xf32>
    %172 = vector.shape_cast %171 : vector<1x16x32xf32> to vector<16x32xf32>
    %cst_185 = arith.constant dense<0.000000e+00> : vector<64x32xf32>
    %173 = tpu.matmul %170, %172, %cst_185 {dimension_numbers = #tpu.dot_dimension_numbers<[1], [0], [0], [1], [0, 0, 1, 1], [], []>} : vector<64x16xf32>, vector<16x32xf32>, vector<64x32xf32> -> vector<64x32xf32>
    %174 = arith.addf %167, %173 : vector<64x32xf32>
    %c0_186 = arith.constant 0 : index
    %c0_187 = arith.constant 0 : index
    %175 = vector.load %arg19[%c0_186, %c0_187] : memref<1x32xf32, #tpu.memory_space<vmem>>, vector<1x32xf32>
    %176 = vector.broadcast %175 : vector<1x32xf32> to vector<64x32xf32>
    %177 = arith.addf %174, %176 : vector<64x32xf32>
    %c0_188 = arith.constant 0 : index
    %c0_189 = arith.constant 0 : index
    %c0_190 = arith.constant 0 : index
    %178 = vector.load %arg20[%c0_188, %c0_189, %c0_190] : memref<4x16x64xf32, #tpu.memory_space<vmem>>, vector<1x16x64xf32>
    %179 = vector.shape_cast %178 : vector<1x16x64xf32> to vector<16x64xf32>
    %cst_191 = arith.constant dense<0.000000e+00> : vector<16x32xf32>
    %180 = tpu.matmul %179, %177, %cst_191 {dimension_numbers = #tpu.dot_dimension_numbers<[1], [0], [0], [1], [0, 0, 1, 1], [], []>} : vector<16x64xf32>, vector<64x32xf32>, vector<16x32xf32> -> vector<16x32xf32>
    %c1_192 = arith.constant 1 : index
    %c0_193 = arith.constant 0 : index
    %c0_194 = arith.constant 0 : index
    %181 = vector.load %arg20[%c1_192, %c0_193, %c0_194] : memref<4x16x64xf32, #tpu.memory_space<vmem>>, vector<1x16x64xf32>
    %182 = vector.shape_cast %181 : vector<1x16x64xf32> to vector<16x64xf32>
    %cst_195 = arith.constant dense<0.000000e+00> : vector<16x32xf32>
    %183 = tpu.matmul %182, %177, %cst_195 {dimension_numbers = #tpu.dot_dimension_numbers<[1], [0], [0], [1], [0, 0, 1, 1], [], []>} : vector<16x64xf32>, vector<64x32xf32>, vector<16x32xf32> -> vector<16x32xf32>
    %c2_196 = arith.constant 2 : index
    %c0_197 = arith.constant 0 : index
    %c0_198 = arith.constant 0 : index
    %184 = vector.load %arg20[%c2_196, %c0_197, %c0_198] : memref<4x16x64xf32, #tpu.memory_space<vmem>>, vector<1x16x64xf32>
    %185 = vector.shape_cast %184 : vector<1x16x64xf32> to vector<16x64xf32>
    %cst_199 = arith.constant dense<0.000000e+00> : vector<16x32xf32>
    %186 = tpu.matmul %185, %177, %cst_199 {dimension_numbers = #tpu.dot_dimension_numbers<[1], [0], [0], [1], [0, 0, 1, 1], [], []>} : vector<16x64xf32>, vector<64x32xf32>, vector<16x32xf32> -> vector<16x32xf32>
    %c3_200 = arith.constant 3 : index
    %c0_201 = arith.constant 0 : index
    %c0_202 = arith.constant 0 : index
    %187 = vector.load %arg20[%c3_200, %c0_201, %c0_202] : memref<4x16x64xf32, #tpu.memory_space<vmem>>, vector<1x16x64xf32>
    %188 = vector.shape_cast %187 : vector<1x16x64xf32> to vector<16x64xf32>
    %cst_203 = arith.constant dense<0.000000e+00> : vector<16x32xf32>
    %189 = tpu.matmul %188, %177, %cst_203 {dimension_numbers = #tpu.dot_dimension_numbers<[1], [0], [0], [1], [0, 0, 1, 1], [], []>} : vector<16x64xf32>, vector<64x32xf32>, vector<16x32xf32> -> vector<16x32xf32>
    %190 = arith.maximumf %180, %183 : vector<16x32xf32>
    %191 = arith.maximumf %186, %189 : vector<16x32xf32>
    %192 = arith.maximumf %190, %191 : vector<16x32xf32>
    %c0_204 = arith.constant 0 : index
    %c0_205 = arith.constant 0 : index
    %c0_206 = arith.constant 0 : index
    %193 = vector.load %arg21[%c0_204, %c0_205, %c0_206] : memref<9x16x16xf32, #tpu.memory_space<vmem>>, vector<1x16x16xf32>
    %194 = vector.shape_cast %193 : vector<1x16x16xf32> to vector<16x16xf32>
    %cst_207 = arith.constant dense<0.000000e+00> : vector<16x32xf32>
    %195 = tpu.matmul %194, %192, %cst_207 {dimension_numbers = #tpu.dot_dimension_numbers<[1], [0], [0], [1], [0, 0, 1, 1], [], []>} : vector<16x16xf32>, vector<16x32xf32>, vector<16x32xf32> -> vector<16x32xf32>
    %c0_208 = arith.constant 0 : index
    %c0_209 = arith.constant 0 : index
    %c0_210 = arith.constant 0 : index
    %196 = vector.load %arg22[%c0_208, %c0_209, %c0_210] : memref<9x32x32xf32, #tpu.memory_space<vmem>>, vector<1x32x32xf32>
    %197 = vector.shape_cast %196 : vector<1x32x32xf32> to vector<32x32xf32>
    %cst_211 = arith.constant dense<0.000000e+00> : vector<16x32xf32>
    %198 = tpu.matmul %195, %197, %cst_211 {dimension_numbers = #tpu.dot_dimension_numbers<[1], [0], [0], [1], [0, 0, 1, 1], [], []>} : vector<16x32xf32>, vector<32x32xf32>, vector<16x32xf32> -> vector<16x32xf32>
    %c1_212 = arith.constant 1 : index
    %c0_213 = arith.constant 0 : index
    %c0_214 = arith.constant 0 : index
    %199 = vector.load %arg21[%c1_212, %c0_213, %c0_214] : memref<9x16x16xf32, #tpu.memory_space<vmem>>, vector<1x16x16xf32>
    %200 = vector.shape_cast %199 : vector<1x16x16xf32> to vector<16x16xf32>
    %cst_215 = arith.constant dense<0.000000e+00> : vector<16x32xf32>
    %201 = tpu.matmul %200, %192, %cst_215 {dimension_numbers = #tpu.dot_dimension_numbers<[1], [0], [0], [1], [0, 0, 1, 1], [], []>} : vector<16x16xf32>, vector<16x32xf32>, vector<16x32xf32> -> vector<16x32xf32>
    %c1_216 = arith.constant 1 : index
    %c0_217 = arith.constant 0 : index
    %c0_218 = arith.constant 0 : index
    %202 = vector.load %arg22[%c1_216, %c0_217, %c0_218] : memref<9x32x32xf32, #tpu.memory_space<vmem>>, vector<1x32x32xf32>
    %203 = vector.shape_cast %202 : vector<1x32x32xf32> to vector<32x32xf32>
    %cst_219 = arith.constant dense<0.000000e+00> : vector<16x32xf32>
    %204 = tpu.matmul %201, %203, %cst_219 {dimension_numbers = #tpu.dot_dimension_numbers<[1], [0], [0], [1], [0, 0, 1, 1], [], []>} : vector<16x32xf32>, vector<32x32xf32>, vector<16x32xf32> -> vector<16x32xf32>
    %205 = arith.addf %198, %204 : vector<16x32xf32>
    %c2_220 = arith.constant 2 : index
    %c0_221 = arith.constant 0 : index
    %c0_222 = arith.constant 0 : index
    %206 = vector.load %arg21[%c2_220, %c0_221, %c0_222] : memref<9x16x16xf32, #tpu.memory_space<vmem>>, vector<1x16x16xf32>
    %207 = vector.shape_cast %206 : vector<1x16x16xf32> to vector<16x16xf32>
    %cst_223 = arith.constant dense<0.000000e+00> : vector<16x32xf32>
    %208 = tpu.matmul %207, %192, %cst_223 {dimension_numbers = #tpu.dot_dimension_numbers<[1], [0], [0], [1], [0, 0, 1, 1], [], []>} : vector<16x16xf32>, vector<16x32xf32>, vector<16x32xf32> -> vector<16x32xf32>
    %c2_224 = arith.constant 2 : index
    %c0_225 = arith.constant 0 : index
    %c0_226 = arith.constant 0 : index
    %209 = vector.load %arg22[%c2_224, %c0_225, %c0_226] : memref<9x32x32xf32, #tpu.memory_space<vmem>>, vector<1x32x32xf32>
    %210 = vector.shape_cast %209 : vector<1x32x32xf32> to vector<32x32xf32>
    %cst_227 = arith.constant dense<0.000000e+00> : vector<16x32xf32>
    %211 = tpu.matmul %208, %210, %cst_227 {dimension_numbers = #tpu.dot_dimension_numbers<[1], [0], [0], [1], [0, 0, 1, 1], [], []>} : vector<16x32xf32>, vector<32x32xf32>, vector<16x32xf32> -> vector<16x32xf32>
    %212 = arith.addf %205, %211 : vector<16x32xf32>
    %c3_228 = arith.constant 3 : index
    %c0_229 = arith.constant 0 : index
    %c0_230 = arith.constant 0 : index
    %213 = vector.load %arg21[%c3_228, %c0_229, %c0_230] : memref<9x16x16xf32, #tpu.memory_space<vmem>>, vector<1x16x16xf32>
    %214 = vector.shape_cast %213 : vector<1x16x16xf32> to vector<16x16xf32>
    %cst_231 = arith.constant dense<0.000000e+00> : vector<16x32xf32>
    %215 = tpu.matmul %214, %192, %cst_231 {dimension_numbers = #tpu.dot_dimension_numbers<[1], [0], [0], [1], [0, 0, 1, 1], [], []>} : vector<16x16xf32>, vector<16x32xf32>, vector<16x32xf32> -> vector<16x32xf32>
    %c3_232 = arith.constant 3 : index
    %c0_233 = arith.constant 0 : index
    %c0_234 = arith.constant 0 : index
    %216 = vector.load %arg22[%c3_232, %c0_233, %c0_234] : memref<9x32x32xf32, #tpu.memory_space<vmem>>, vector<1x32x32xf32>
    %217 = vector.shape_cast %216 : vector<1x32x32xf32> to vector<32x32xf32>
    %cst_235 = arith.constant dense<0.000000e+00> : vector<16x32xf32>
    %218 = tpu.matmul %215, %217, %cst_235 {dimension_numbers = #tpu.dot_dimension_numbers<[1], [0], [0], [1], [0, 0, 1, 1], [], []>} : vector<16x32xf32>, vector<32x32xf32>, vector<16x32xf32> -> vector<16x32xf32>
    %219 = arith.addf %212, %218 : vector<16x32xf32>
    %c4_236 = arith.constant 4 : index
    %c0_237 = arith.constant 0 : index
    %c0_238 = arith.constant 0 : index
    %220 = vector.load %arg21[%c4_236, %c0_237, %c0_238] : memref<9x16x16xf32, #tpu.memory_space<vmem>>, vector<1x16x16xf32>
    %221 = vector.shape_cast %220 : vector<1x16x16xf32> to vector<16x16xf32>
    %cst_239 = arith.constant dense<0.000000e+00> : vector<16x32xf32>
    %222 = tpu.matmul %221, %192, %cst_239 {dimension_numbers = #tpu.dot_dimension_numbers<[1], [0], [0], [1], [0, 0, 1, 1], [], []>} : vector<16x16xf32>, vector<16x32xf32>, vector<16x32xf32> -> vector<16x32xf32>
    %c4_240 = arith.constant 4 : index
    %c0_241 = arith.constant 0 : index
    %c0_242 = arith.constant 0 : index
    %223 = vector.load %arg22[%c4_240, %c0_241, %c0_242] : memref<9x32x32xf32, #tpu.memory_space<vmem>>, vector<1x32x32xf32>
    %224 = vector.shape_cast %223 : vector<1x32x32xf32> to vector<32x32xf32>
    %cst_243 = arith.constant dense<0.000000e+00> : vector<16x32xf32>
    %225 = tpu.matmul %222, %224, %cst_243 {dimension_numbers = #tpu.dot_dimension_numbers<[1], [0], [0], [1], [0, 0, 1, 1], [], []>} : vector<16x32xf32>, vector<32x32xf32>, vector<16x32xf32> -> vector<16x32xf32>
    %226 = arith.addf %219, %225 : vector<16x32xf32>
    %c5_244 = arith.constant 5 : index
    %c0_245 = arith.constant 0 : index
    %c0_246 = arith.constant 0 : index
    %227 = vector.load %arg21[%c5_244, %c0_245, %c0_246] : memref<9x16x16xf32, #tpu.memory_space<vmem>>, vector<1x16x16xf32>
    %228 = vector.shape_cast %227 : vector<1x16x16xf32> to vector<16x16xf32>
    %cst_247 = arith.constant dense<0.000000e+00> : vector<16x32xf32>
    %229 = tpu.matmul %228, %192, %cst_247 {dimension_numbers = #tpu.dot_dimension_numbers<[1], [0], [0], [1], [0, 0, 1, 1], [], []>} : vector<16x16xf32>, vector<16x32xf32>, vector<16x32xf32> -> vector<16x32xf32>
    %c5_248 = arith.constant 5 : index
    %c0_249 = arith.constant 0 : index
    %c0_250 = arith.constant 0 : index
    %230 = vector.load %arg22[%c5_248, %c0_249, %c0_250] : memref<9x32x32xf32, #tpu.memory_space<vmem>>, vector<1x32x32xf32>
    %231 = vector.shape_cast %230 : vector<1x32x32xf32> to vector<32x32xf32>
    %cst_251 = arith.constant dense<0.000000e+00> : vector<16x32xf32>
    %232 = tpu.matmul %229, %231, %cst_251 {dimension_numbers = #tpu.dot_dimension_numbers<[1], [0], [0], [1], [0, 0, 1, 1], [], []>} : vector<16x32xf32>, vector<32x32xf32>, vector<16x32xf32> -> vector<16x32xf32>
    %233 = arith.addf %226, %232 : vector<16x32xf32>
    %c6_252 = arith.constant 6 : index
    %c0_253 = arith.constant 0 : index
    %c0_254 = arith.constant 0 : index
    %234 = vector.load %arg21[%c6_252, %c0_253, %c0_254] : memref<9x16x16xf32, #tpu.memory_space<vmem>>, vector<1x16x16xf32>
    %235 = vector.shape_cast %234 : vector<1x16x16xf32> to vector<16x16xf32>
    %cst_255 = arith.constant dense<0.000000e+00> : vector<16x32xf32>
    %236 = tpu.matmul %235, %192, %cst_255 {dimension_numbers = #tpu.dot_dimension_numbers<[1], [0], [0], [1], [0, 0, 1, 1], [], []>} : vector<16x16xf32>, vector<16x32xf32>, vector<16x32xf32> -> vector<16x32xf32>
    %c6_256 = arith.constant 6 : index
    %c0_257 = arith.constant 0 : index
    %c0_258 = arith.constant 0 : index
    %237 = vector.load %arg22[%c6_256, %c0_257, %c0_258] : memref<9x32x32xf32, #tpu.memory_space<vmem>>, vector<1x32x32xf32>
    %238 = vector.shape_cast %237 : vector<1x32x32xf32> to vector<32x32xf32>
    %cst_259 = arith.constant dense<0.000000e+00> : vector<16x32xf32>
    %239 = tpu.matmul %236, %238, %cst_259 {dimension_numbers = #tpu.dot_dimension_numbers<[1], [0], [0], [1], [0, 0, 1, 1], [], []>} : vector<16x32xf32>, vector<32x32xf32>, vector<16x32xf32> -> vector<16x32xf32>
    %240 = arith.addf %233, %239 : vector<16x32xf32>
    %c7_260 = arith.constant 7 : index
    %c0_261 = arith.constant 0 : index
    %c0_262 = arith.constant 0 : index
    %241 = vector.load %arg21[%c7_260, %c0_261, %c0_262] : memref<9x16x16xf32, #tpu.memory_space<vmem>>, vector<1x16x16xf32>
    %242 = vector.shape_cast %241 : vector<1x16x16xf32> to vector<16x16xf32>
    %cst_263 = arith.constant dense<0.000000e+00> : vector<16x32xf32>
    %243 = tpu.matmul %242, %192, %cst_263 {dimension_numbers = #tpu.dot_dimension_numbers<[1], [0], [0], [1], [0, 0, 1, 1], [], []>} : vector<16x16xf32>, vector<16x32xf32>, vector<16x32xf32> -> vector<16x32xf32>
    %c7_264 = arith.constant 7 : index
    %c0_265 = arith.constant 0 : index
    %c0_266 = arith.constant 0 : index
    %244 = vector.load %arg22[%c7_264, %c0_265, %c0_266] : memref<9x32x32xf32, #tpu.memory_space<vmem>>, vector<1x32x32xf32>
    %245 = vector.shape_cast %244 : vector<1x32x32xf32> to vector<32x32xf32>
    %cst_267 = arith.constant dense<0.000000e+00> : vector<16x32xf32>
    %246 = tpu.matmul %243, %245, %cst_267 {dimension_numbers = #tpu.dot_dimension_numbers<[1], [0], [0], [1], [0, 0, 1, 1], [], []>} : vector<16x32xf32>, vector<32x32xf32>, vector<16x32xf32> -> vector<16x32xf32>
    %247 = arith.addf %240, %246 : vector<16x32xf32>
    %c8_268 = arith.constant 8 : index
    %c0_269 = arith.constant 0 : index
    %c0_270 = arith.constant 0 : index
    %248 = vector.load %arg21[%c8_268, %c0_269, %c0_270] : memref<9x16x16xf32, #tpu.memory_space<vmem>>, vector<1x16x16xf32>
    %249 = vector.shape_cast %248 : vector<1x16x16xf32> to vector<16x16xf32>
    %cst_271 = arith.constant dense<0.000000e+00> : vector<16x32xf32>
    %250 = tpu.matmul %249, %192, %cst_271 {dimension_numbers = #tpu.dot_dimension_numbers<[1], [0], [0], [1], [0, 0, 1, 1], [], []>} : vector<16x16xf32>, vector<16x32xf32>, vector<16x32xf32> -> vector<16x32xf32>
    %c8_272 = arith.constant 8 : index
    %c0_273 = arith.constant 0 : index
    %c0_274 = arith.constant 0 : index
    %251 = vector.load %arg22[%c8_272, %c0_273, %c0_274] : memref<9x32x32xf32, #tpu.memory_space<vmem>>, vector<1x32x32xf32>
    %252 = vector.shape_cast %251 : vector<1x32x32xf32> to vector<32x32xf32>
    %cst_275 = arith.constant dense<0.000000e+00> : vector<16x32xf32>
    %253 = tpu.matmul %250, %252, %cst_275 {dimension_numbers = #tpu.dot_dimension_numbers<[1], [0], [0], [1], [0, 0, 1, 1], [], []>} : vector<16x32xf32>, vector<32x32xf32>, vector<16x32xf32> -> vector<16x32xf32>
    %254 = arith.addf %247, %253 : vector<16x32xf32>
    %c0_276 = arith.constant 0 : index
    %c0_277 = arith.constant 0 : index
    %255 = vector.load %arg23[%c0_276, %c0_277] : memref<1x32xf32, #tpu.memory_space<vmem>>, vector<1x32xf32>
    %256 = vector.broadcast %255 : vector<1x32xf32> to vector<16x32xf32>
    %257 = arith.addf %254, %256 : vector<16x32xf32>
    %cst_278 = arith.constant 0.000000e+00 : f32
    %258 = vector.broadcast %cst_278 : f32 to vector<16x32xf32>
    %259 = arith.maximumf %257, %258 : vector<16x32xf32>
    %c0_279 = arith.constant 0 : index
    %c0_280 = arith.constant 0 : index
    %c0_281 = arith.constant 0 : index
    %260 = vector.load %arg24[%c0_279, %c0_280, %c0_281] : memref<4x9x16xf32, #tpu.memory_space<vmem>>, vector<1x9x16xf32>
    %261 = vector.shape_cast %260 : vector<1x9x16xf32> to vector<9x16xf32>
    %cst_282 = arith.constant dense<0.000000e+00> : vector<9x32xf32>
    %262 = tpu.matmul %261, %259, %cst_282 {dimension_numbers = #tpu.dot_dimension_numbers<[1], [0], [0], [1], [0, 0, 1, 1], [], []>} : vector<9x16xf32>, vector<16x32xf32>, vector<9x32xf32> -> vector<9x32xf32>
    %c1_283 = arith.constant 1 : index
    %c0_284 = arith.constant 0 : index
    %c0_285 = arith.constant 0 : index
    %263 = vector.load %arg24[%c1_283, %c0_284, %c0_285] : memref<4x9x16xf32, #tpu.memory_space<vmem>>, vector<1x9x16xf32>
    %264 = vector.shape_cast %263 : vector<1x9x16xf32> to vector<9x16xf32>
    %cst_286 = arith.constant dense<0.000000e+00> : vector<9x32xf32>
    %265 = tpu.matmul %264, %259, %cst_286 {dimension_numbers = #tpu.dot_dimension_numbers<[1], [0], [0], [1], [0, 0, 1, 1], [], []>} : vector<9x16xf32>, vector<16x32xf32>, vector<9x32xf32> -> vector<9x32xf32>
    %c2_287 = arith.constant 2 : index
    %c0_288 = arith.constant 0 : index
    %c0_289 = arith.constant 0 : index
    %266 = vector.load %arg24[%c2_287, %c0_288, %c0_289] : memref<4x9x16xf32, #tpu.memory_space<vmem>>, vector<1x9x16xf32>
    %267 = vector.shape_cast %266 : vector<1x9x16xf32> to vector<9x16xf32>
    %cst_290 = arith.constant dense<0.000000e+00> : vector<9x32xf32>
    %268 = tpu.matmul %267, %259, %cst_290 {dimension_numbers = #tpu.dot_dimension_numbers<[1], [0], [0], [1], [0, 0, 1, 1], [], []>} : vector<9x16xf32>, vector<16x32xf32>, vector<9x32xf32> -> vector<9x32xf32>
    %c3_291 = arith.constant 3 : index
    %c0_292 = arith.constant 0 : index
    %c0_293 = arith.constant 0 : index
    %269 = vector.load %arg24[%c3_291, %c0_292, %c0_293] : memref<4x9x16xf32, #tpu.memory_space<vmem>>, vector<1x9x16xf32>
    %270 = vector.shape_cast %269 : vector<1x9x16xf32> to vector<9x16xf32>
    %cst_294 = arith.constant dense<0.000000e+00> : vector<9x32xf32>
    %271 = tpu.matmul %270, %259, %cst_294 {dimension_numbers = #tpu.dot_dimension_numbers<[1], [0], [0], [1], [0, 0, 1, 1], [], []>} : vector<9x16xf32>, vector<16x32xf32>, vector<9x32xf32> -> vector<9x32xf32>
    %272 = arith.maximumf %262, %265 : vector<9x32xf32>
    %273 = arith.maximumf %268, %271 : vector<9x32xf32>
    %274 = arith.maximumf %272, %273 : vector<9x32xf32>
    %c0_295 = arith.constant 0 : index
    %c0_296 = arith.constant 0 : index
    %c0_297 = arith.constant 0 : index
    %275 = vector.load %arg25[%c0_295, %c0_296, %c0_297] : memref<9x9x9xf32, #tpu.memory_space<vmem>>, vector<1x9x9xf32>
    %276 = vector.shape_cast %275 : vector<1x9x9xf32> to vector<9x9xf32>
    %cst_298 = arith.constant dense<0.000000e+00> : vector<9x32xf32>
    %277 = tpu.matmul %276, %274, %cst_298 {dimension_numbers = #tpu.dot_dimension_numbers<[1], [0], [0], [1], [0, 0, 1, 1], [], []>} : vector<9x9xf32>, vector<9x32xf32>, vector<9x32xf32> -> vector<9x32xf32>
    %c0_299 = arith.constant 0 : index
    %c0_300 = arith.constant 0 : index
    %c0_301 = arith.constant 0 : index
    %278 = vector.load %arg26[%c0_299, %c0_300, %c0_301] : memref<9x32x64xf32, #tpu.memory_space<vmem>>, vector<1x32x64xf32>
    %279 = vector.shape_cast %278 : vector<1x32x64xf32> to vector<32x64xf32>
    %cst_302 = arith.constant dense<0.000000e+00> : vector<9x64xf32>
    %280 = tpu.matmul %277, %279, %cst_302 {dimension_numbers = #tpu.dot_dimension_numbers<[1], [0], [0], [1], [0, 0, 1, 1], [], []>} : vector<9x32xf32>, vector<32x64xf32>, vector<9x64xf32> -> vector<9x64xf32>
    %c1_303 = arith.constant 1 : index
    %c0_304 = arith.constant 0 : index
    %c0_305 = arith.constant 0 : index
    %281 = vector.load %arg25[%c1_303, %c0_304, %c0_305] : memref<9x9x9xf32, #tpu.memory_space<vmem>>, vector<1x9x9xf32>
    %282 = vector.shape_cast %281 : vector<1x9x9xf32> to vector<9x9xf32>
    %cst_306 = arith.constant dense<0.000000e+00> : vector<9x32xf32>
    %283 = tpu.matmul %282, %274, %cst_306 {dimension_numbers = #tpu.dot_dimension_numbers<[1], [0], [0], [1], [0, 0, 1, 1], [], []>} : vector<9x9xf32>, vector<9x32xf32>, vector<9x32xf32> -> vector<9x32xf32>
    %c1_307 = arith.constant 1 : index
    %c0_308 = arith.constant 0 : index
    %c0_309 = arith.constant 0 : index
    %284 = vector.load %arg26[%c1_307, %c0_308, %c0_309] : memref<9x32x64xf32, #tpu.memory_space<vmem>>, vector<1x32x64xf32>
    %285 = vector.shape_cast %284 : vector<1x32x64xf32> to vector<32x64xf32>
    %cst_310 = arith.constant dense<0.000000e+00> : vector<9x64xf32>
    %286 = tpu.matmul %283, %285, %cst_310 {dimension_numbers = #tpu.dot_dimension_numbers<[1], [0], [0], [1], [0, 0, 1, 1], [], []>} : vector<9x32xf32>, vector<32x64xf32>, vector<9x64xf32> -> vector<9x64xf32>
    %287 = arith.addf %280, %286 : vector<9x64xf32>
    %c2_311 = arith.constant 2 : index
    %c0_312 = arith.constant 0 : index
    %c0_313 = arith.constant 0 : index
    %288 = vector.load %arg25[%c2_311, %c0_312, %c0_313] : memref<9x9x9xf32, #tpu.memory_space<vmem>>, vector<1x9x9xf32>
    %289 = vector.shape_cast %288 : vector<1x9x9xf32> to vector<9x9xf32>
    %cst_314 = arith.constant dense<0.000000e+00> : vector<9x32xf32>
    %290 = tpu.matmul %289, %274, %cst_314 {dimension_numbers = #tpu.dot_dimension_numbers<[1], [0], [0], [1], [0, 0, 1, 1], [], []>} : vector<9x9xf32>, vector<9x32xf32>, vector<9x32xf32> -> vector<9x32xf32>
    %c2_315 = arith.constant 2 : index
    %c0_316 = arith.constant 0 : index
    %c0_317 = arith.constant 0 : index
    %291 = vector.load %arg26[%c2_315, %c0_316, %c0_317] : memref<9x32x64xf32, #tpu.memory_space<vmem>>, vector<1x32x64xf32>
    %292 = vector.shape_cast %291 : vector<1x32x64xf32> to vector<32x64xf32>
    %cst_318 = arith.constant dense<0.000000e+00> : vector<9x64xf32>
    %293 = tpu.matmul %290, %292, %cst_318 {dimension_numbers = #tpu.dot_dimension_numbers<[1], [0], [0], [1], [0, 0, 1, 1], [], []>} : vector<9x32xf32>, vector<32x64xf32>, vector<9x64xf32> -> vector<9x64xf32>
    %294 = arith.addf %287, %293 : vector<9x64xf32>
    %c3_319 = arith.constant 3 : index
    %c0_320 = arith.constant 0 : index
    %c0_321 = arith.constant 0 : index
    %295 = vector.load %arg25[%c3_319, %c0_320, %c0_321] : memref<9x9x9xf32, #tpu.memory_space<vmem>>, vector<1x9x9xf32>
    %296 = vector.shape_cast %295 : vector<1x9x9xf32> to vector<9x9xf32>
    %cst_322 = arith.constant dense<0.000000e+00> : vector<9x32xf32>
    %297 = tpu.matmul %296, %274, %cst_322 {dimension_numbers = #tpu.dot_dimension_numbers<[1], [0], [0], [1], [0, 0, 1, 1], [], []>} : vector<9x9xf32>, vector<9x32xf32>, vector<9x32xf32> -> vector<9x32xf32>
    %c3_323 = arith.constant 3 : index
    %c0_324 = arith.constant 0 : index
    %c0_325 = arith.constant 0 : index
    %298 = vector.load %arg26[%c3_323, %c0_324, %c0_325] : memref<9x32x64xf32, #tpu.memory_space<vmem>>, vector<1x32x64xf32>
    %299 = vector.shape_cast %298 : vector<1x32x64xf32> to vector<32x64xf32>
    %cst_326 = arith.constant dense<0.000000e+00> : vector<9x64xf32>
    %300 = tpu.matmul %297, %299, %cst_326 {dimension_numbers = #tpu.dot_dimension_numbers<[1], [0], [0], [1], [0, 0, 1, 1], [], []>} : vector<9x32xf32>, vector<32x64xf32>, vector<9x64xf32> -> vector<9x64xf32>
    %301 = arith.addf %294, %300 : vector<9x64xf32>
    %c4_327 = arith.constant 4 : index
    %c0_328 = arith.constant 0 : index
    %c0_329 = arith.constant 0 : index
    %302 = vector.load %arg25[%c4_327, %c0_328, %c0_329] : memref<9x9x9xf32, #tpu.memory_space<vmem>>, vector<1x9x9xf32>
    %303 = vector.shape_cast %302 : vector<1x9x9xf32> to vector<9x9xf32>
    %cst_330 = arith.constant dense<0.000000e+00> : vector<9x32xf32>
    %304 = tpu.matmul %303, %274, %cst_330 {dimension_numbers = #tpu.dot_dimension_numbers<[1], [0], [0], [1], [0, 0, 1, 1], [], []>} : vector<9x9xf32>, vector<9x32xf32>, vector<9x32xf32> -> vector<9x32xf32>
    %c4_331 = arith.constant 4 : index
    %c0_332 = arith.constant 0 : index
    %c0_333 = arith.constant 0 : index
    %305 = vector.load %arg26[%c4_331, %c0_332, %c0_333] : memref<9x32x64xf32, #tpu.memory_space<vmem>>, vector<1x32x64xf32>
    %306 = vector.shape_cast %305 : vector<1x32x64xf32> to vector<32x64xf32>
    %cst_334 = arith.constant dense<0.000000e+00> : vector<9x64xf32>
    %307 = tpu.matmul %304, %306, %cst_334 {dimension_numbers = #tpu.dot_dimension_numbers<[1], [0], [0], [1], [0, 0, 1, 1], [], []>} : vector<9x32xf32>, vector<32x64xf32>, vector<9x64xf32> -> vector<9x64xf32>
    %308 = arith.addf %301, %307 : vector<9x64xf32>
    %c5_335 = arith.constant 5 : index
    %c0_336 = arith.constant 0 : index
    %c0_337 = arith.constant 0 : index
    %309 = vector.load %arg25[%c5_335, %c0_336, %c0_337] : memref<9x9x9xf32, #tpu.memory_space<vmem>>, vector<1x9x9xf32>
    %310 = vector.shape_cast %309 : vector<1x9x9xf32> to vector<9x9xf32>
    %cst_338 = arith.constant dense<0.000000e+00> : vector<9x32xf32>
    %311 = tpu.matmul %310, %274, %cst_338 {dimension_numbers = #tpu.dot_dimension_numbers<[1], [0], [0], [1], [0, 0, 1, 1], [], []>} : vector<9x9xf32>, vector<9x32xf32>, vector<9x32xf32> -> vector<9x32xf32>
    %c5_339 = arith.constant 5 : index
    %c0_340 = arith.constant 0 : index
    %c0_341 = arith.constant 0 : index
    %312 = vector.load %arg26[%c5_339, %c0_340, %c0_341] : memref<9x32x64xf32, #tpu.memory_space<vmem>>, vector<1x32x64xf32>
    %313 = vector.shape_cast %312 : vector<1x32x64xf32> to vector<32x64xf32>
    %cst_342 = arith.constant dense<0.000000e+00> : vector<9x64xf32>
    %314 = tpu.matmul %311, %313, %cst_342 {dimension_numbers = #tpu.dot_dimension_numbers<[1], [0], [0], [1], [0, 0, 1, 1], [], []>} : vector<9x32xf32>, vector<32x64xf32>, vector<9x64xf32> -> vector<9x64xf32>
    %315 = arith.addf %308, %314 : vector<9x64xf32>
    %c6_343 = arith.constant 6 : index
    %c0_344 = arith.constant 0 : index
    %c0_345 = arith.constant 0 : index
    %316 = vector.load %arg25[%c6_343, %c0_344, %c0_345] : memref<9x9x9xf32, #tpu.memory_space<vmem>>, vector<1x9x9xf32>
    %317 = vector.shape_cast %316 : vector<1x9x9xf32> to vector<9x9xf32>
    %cst_346 = arith.constant dense<0.000000e+00> : vector<9x32xf32>
    %318 = tpu.matmul %317, %274, %cst_346 {dimension_numbers = #tpu.dot_dimension_numbers<[1], [0], [0], [1], [0, 0, 1, 1], [], []>} : vector<9x9xf32>, vector<9x32xf32>, vector<9x32xf32> -> vector<9x32xf32>
    %c6_347 = arith.constant 6 : index
    %c0_348 = arith.constant 0 : index
    %c0_349 = arith.constant 0 : index
    %319 = vector.load %arg26[%c6_347, %c0_348, %c0_349] : memref<9x32x64xf32, #tpu.memory_space<vmem>>, vector<1x32x64xf32>
    %320 = vector.shape_cast %319 : vector<1x32x64xf32> to vector<32x64xf32>
    %cst_350 = arith.constant dense<0.000000e+00> : vector<9x64xf32>
    %321 = tpu.matmul %318, %320, %cst_350 {dimension_numbers = #tpu.dot_dimension_numbers<[1], [0], [0], [1], [0, 0, 1, 1], [], []>} : vector<9x32xf32>, vector<32x64xf32>, vector<9x64xf32> -> vector<9x64xf32>
    %322 = arith.addf %315, %321 : vector<9x64xf32>
    %c7_351 = arith.constant 7 : index
    %c0_352 = arith.constant 0 : index
    %c0_353 = arith.constant 0 : index
    %323 = vector.load %arg25[%c7_351, %c0_352, %c0_353] : memref<9x9x9xf32, #tpu.memory_space<vmem>>, vector<1x9x9xf32>
    %324 = vector.shape_cast %323 : vector<1x9x9xf32> to vector<9x9xf32>
    %cst_354 = arith.constant dense<0.000000e+00> : vector<9x32xf32>
    %325 = tpu.matmul %324, %274, %cst_354 {dimension_numbers = #tpu.dot_dimension_numbers<[1], [0], [0], [1], [0, 0, 1, 1], [], []>} : vector<9x9xf32>, vector<9x32xf32>, vector<9x32xf32> -> vector<9x32xf32>
    %c7_355 = arith.constant 7 : index
    %c0_356 = arith.constant 0 : index
    %c0_357 = arith.constant 0 : index
    %326 = vector.load %arg26[%c7_355, %c0_356, %c0_357] : memref<9x32x64xf32, #tpu.memory_space<vmem>>, vector<1x32x64xf32>
    %327 = vector.shape_cast %326 : vector<1x32x64xf32> to vector<32x64xf32>
    %cst_358 = arith.constant dense<0.000000e+00> : vector<9x64xf32>
    %328 = tpu.matmul %325, %327, %cst_358 {dimension_numbers = #tpu.dot_dimension_numbers<[1], [0], [0], [1], [0, 0, 1, 1], [], []>} : vector<9x32xf32>, vector<32x64xf32>, vector<9x64xf32> -> vector<9x64xf32>
    %329 = arith.addf %322, %328 : vector<9x64xf32>
    %c8_359 = arith.constant 8 : index
    %c0_360 = arith.constant 0 : index
    %c0_361 = arith.constant 0 : index
    %330 = vector.load %arg25[%c8_359, %c0_360, %c0_361] : memref<9x9x9xf32, #tpu.memory_space<vmem>>, vector<1x9x9xf32>
    %331 = vector.shape_cast %330 : vector<1x9x9xf32> to vector<9x9xf32>
    %cst_362 = arith.constant dense<0.000000e+00> : vector<9x32xf32>
    %332 = tpu.matmul %331, %274, %cst_362 {dimension_numbers = #tpu.dot_dimension_numbers<[1], [0], [0], [1], [0, 0, 1, 1], [], []>} : vector<9x9xf32>, vector<9x32xf32>, vector<9x32xf32> -> vector<9x32xf32>
    %c8_363 = arith.constant 8 : index
    %c0_364 = arith.constant 0 : index
    %c0_365 = arith.constant 0 : index
    %333 = vector.load %arg26[%c8_363, %c0_364, %c0_365] : memref<9x32x64xf32, #tpu.memory_space<vmem>>, vector<1x32x64xf32>
    %334 = vector.shape_cast %333 : vector<1x32x64xf32> to vector<32x64xf32>
    %cst_366 = arith.constant dense<0.000000e+00> : vector<9x64xf32>
    %335 = tpu.matmul %332, %334, %cst_366 {dimension_numbers = #tpu.dot_dimension_numbers<[1], [0], [0], [1], [0, 0, 1, 1], [], []>} : vector<9x32xf32>, vector<32x64xf32>, vector<9x64xf32> -> vector<9x64xf32>
    %336 = arith.addf %329, %335 : vector<9x64xf32>
    %c0_367 = arith.constant 0 : index
    %c0_368 = arith.constant 0 : index
    %337 = vector.load %arg27[%c0_367, %c0_368] : memref<1x64xf32, #tpu.memory_space<vmem>>, vector<1x64xf32>
    %338 = vector.broadcast %337 : vector<1x64xf32> to vector<9x64xf32>
    %339 = arith.addf %336, %338 : vector<9x64xf32>
    %cst_369 = arith.constant 0.000000e+00 : f32
    %340 = vector.broadcast %cst_369 : f32 to vector<9x64xf32>
    %341 = arith.maximumf %339, %340 : vector<9x64xf32>
    %c0_370 = arith.constant 0 : index
    %c0_371 = arith.constant 0 : index
    %c0_372 = arith.constant 0 : index
    %342 = vector.load %arg28[%c0_370, %c0_371, %c0_372] : memref<4x1x9xf32, #tpu.memory_space<vmem>>, vector<1x1x9xf32>
    %343 = vector.shape_cast %342 : vector<1x1x9xf32> to vector<1x9xf32>
    %cst_373 = arith.constant dense<0.000000e+00> : vector<1x64xf32>
    %344 = tpu.matmul %343, %341, %cst_373 {dimension_numbers = #tpu.dot_dimension_numbers<[1], [0], [0], [1], [0, 0, 1, 1], [], []>} : vector<1x9xf32>, vector<9x64xf32>, vector<1x64xf32> -> vector<1x64xf32>
    %c1_374 = arith.constant 1 : index
    %c0_375 = arith.constant 0 : index
    %c0_376 = arith.constant 0 : index
    %345 = vector.load %arg28[%c1_374, %c0_375, %c0_376] : memref<4x1x9xf32, #tpu.memory_space<vmem>>, vector<1x1x9xf32>
    %346 = vector.shape_cast %345 : vector<1x1x9xf32> to vector<1x9xf32>
    %cst_377 = arith.constant dense<0.000000e+00> : vector<1x64xf32>
    %347 = tpu.matmul %346, %341, %cst_377 {dimension_numbers = #tpu.dot_dimension_numbers<[1], [0], [0], [1], [0, 0, 1, 1], [], []>} : vector<1x9xf32>, vector<9x64xf32>, vector<1x64xf32> -> vector<1x64xf32>
    %c2_378 = arith.constant 2 : index
    %c0_379 = arith.constant 0 : index
    %c0_380 = arith.constant 0 : index
    %348 = vector.load %arg28[%c2_378, %c0_379, %c0_380] : memref<4x1x9xf32, #tpu.memory_space<vmem>>, vector<1x1x9xf32>
    %349 = vector.shape_cast %348 : vector<1x1x9xf32> to vector<1x9xf32>
    %cst_381 = arith.constant dense<0.000000e+00> : vector<1x64xf32>
    %350 = tpu.matmul %349, %341, %cst_381 {dimension_numbers = #tpu.dot_dimension_numbers<[1], [0], [0], [1], [0, 0, 1, 1], [], []>} : vector<1x9xf32>, vector<9x64xf32>, vector<1x64xf32> -> vector<1x64xf32>
    %c3_382 = arith.constant 3 : index
    %c0_383 = arith.constant 0 : index
    %c0_384 = arith.constant 0 : index
    %351 = vector.load %arg28[%c3_382, %c0_383, %c0_384] : memref<4x1x9xf32, #tpu.memory_space<vmem>>, vector<1x1x9xf32>
    %352 = vector.shape_cast %351 : vector<1x1x9xf32> to vector<1x9xf32>
    %cst_385 = arith.constant dense<0.000000e+00> : vector<1x64xf32>
    %353 = tpu.matmul %352, %341, %cst_385 {dimension_numbers = #tpu.dot_dimension_numbers<[1], [0], [0], [1], [0, 0, 1, 1], [], []>} : vector<1x9xf32>, vector<9x64xf32>, vector<1x64xf32> -> vector<1x64xf32>
    %354 = arith.maximumf %344, %347 : vector<1x64xf32>
    %355 = arith.maximumf %350, %353 : vector<1x64xf32>
    %356 = arith.maximumf %354, %355 : vector<1x64xf32>
    %c0_386 = arith.constant 0 : index
    %c0_387 = arith.constant 0 : index
    %c0_388 = arith.constant 0 : index
    %357 = vector.load %arg29[%c0_386, %c0_387, %c0_388] : memref<1x64x512xf32, #tpu.memory_space<vmem>>, vector<1x64x512xf32>
    %358 = vector.shape_cast %357 : vector<1x64x512xf32> to vector<64x512xf32>
    %cst_389 = arith.constant dense<0.000000e+00> : vector<1x512xf32>
    %359 = tpu.matmul %356, %358, %cst_389 {dimension_numbers = #tpu.dot_dimension_numbers<[1], [0], [0], [1], [0, 0, 1, 1], [], []>} : vector<1x64xf32>, vector<64x512xf32>, vector<1x512xf32> -> vector<1x512xf32>
    %c0_390 = arith.constant 0 : index
    %c0_391 = arith.constant 0 : index
    %360 = vector.load %arg30[%c0_390, %c0_391] : memref<1x512xf32, #tpu.memory_space<vmem>>, vector<1x512xf32>
    %361 = arith.addf %359, %360 : vector<1x512xf32>
    %cst_392 = arith.constant 0.000000e+00 : f32
    %362 = vector.broadcast %cst_392 : f32 to vector<1x512xf32>
    %363 = arith.maximumf %361, %362 : vector<1x512xf32>
    %c0_393 = arith.constant 0 : index
    %c0_394 = arith.constant 0 : index
    %c0_395 = arith.constant 0 : index
    %364 = vector.load %arg31[%c0_393, %c0_394, %c0_395] : memref<1x1x512xf32, #tpu.memory_space<vmem>>, vector<1x1x512xf32>
    %365 = vector.shape_cast %364 : vector<1x1x512xf32> to vector<1x512xf32>
    %366 = vector.shape_cast %363 : vector<1x512xf32> to vector<1x1x512xf32>
    tpu.vector_store %arg31[%c0_393, %c0_394, %c0_395], %366 {strides = array<i32>} : memref<1x1x512xf32, #tpu.memory_space<vmem>>, vector<1x1x512xf32>,
    return
  }
  func.func @transform_0(%arg0: i32) -> (i32, i32, i32) {
    %c0_i32 = arith.constant 0 : i32
    %c0_i32_0 = arith.constant 0 : i32
    %c0_i32_1 = arith.constant 0 : i32
    return %arg0, %c0_i32, %c0_i32_0 : i32, i32, i32
  }
  func.func @transform_1(%arg0: i32) -> (i32, i32) {
    %c0_i32 = arith.constant 0 : i32
    %c0_i32_0 = arith.constant 0 : i32
    %c0_i32_1 = arith.constant 0 : i32
    return %c0_i32, %c0_i32_0 : i32, i32
  }
  func.func @transform_2(%arg0: i32) -> (i32, i32) {
    %c0_i32 = arith.constant 0 : i32
    %c0_i32_0 = arith.constant 0 : i32
    %c0_i32_1 = arith.constant 0 : i32
    return %c0_i32, %c0_i32_0 : i32, i32
  }
  func.func @transform_3(%arg0: i32) -> (i32, i32) {
    %c0_i32 = arith.constant 0 : i32
    %c0_i32_0 = arith.constant 0 : i32
    %c0_i32_1 = arith.constant 0 : i32
    return %c0_i32, %c0_i32_0 : i32, i32
  }
  func.func @transform_4(%arg0: i32) -> (i32, i32) {
    %c0_i32 = arith.constant 0 : i32
    %c0_i32_0 = arith.constant 0 : i32
    %c0_i32_1 = arith.constant 0 : i32
    return %c0_i32, %c0_i32_0 : i32, i32
  }
  func.func @transform_5(%arg0: i32) -> (i32, i32) {
    %c0_i32 = arith.constant 0 : i32
    %c0_i32_0 = arith.constant 0 : i32
    %c0_i32_1 = arith.constant 0 : i32
    return %c0_i32, %c0_i32_0 : i32, i32
  }
  func.func @transform_6(%arg0: i32) -> (i32, i32) {
    %c0_i32 = arith.constant 0 : i32
    %c0_i32_0 = arith.constant 0 : i32
    %c0_i32_1 = arith.constant 0 : i32
    return %c0_i32, %c0_i32_0 : i32, i32
  }
  func.func @transform_7(%arg0: i32) -> (i32, i32) {
    %c0_i32 = arith.constant 0 : i32
    %c0_i32_0 = arith.constant 0 : i32
    %c0_i32_1 = arith.constant 0 : i32
    return %c0_i32, %c0_i32_0 : i32, i32
  }
  func.func @transform_8(%arg0: i32) -> (i32, i32) {
    %c0_i32 = arith.constant 0 : i32
    %c0_i32_0 = arith.constant 0 : i32
    %c0_i32_1 = arith.constant 0 : i32
    return %c0_i32, %c0_i32_0 : i32, i32
  }
  func.func @transform_9(%arg0: i32) -> (i32, i32) {
    %c0_i32 = arith.constant 0 : i32
    %c0_i32_0 = arith.constant 0 : i32
    %c0_i32_1 = arith.constant 0 : i32
    return %c0_i32, %c0_i32_0 : i32, i32
  }
  func.func @transform_10(%arg0: i32) -> (i32, i32) {
    %c0_i32 = arith.constant 0 : i32
    %c0_i32_0 = arith.constant 0 : i32
    %c0_i32_1 = arith.constant 0 : i32
    return %c0_i32, %c0_i32_0 : i32, i32
  }
  func.func @transform_11(%arg0: i32) -> (i32, i32) {
    %c0_i32 = arith.constant 0 : i32
    %c0_i32_0 = arith.constant 0 : i32
    %c0_i32_1 = arith.constant 0 : i32
    return %c0_i32, %c0_i32_0 : i32, i32
  }
  func.func @transform_12(%arg0: i32) -> (i32, i32, i32) {
    %c0_i32 = arith.constant 0 : i32
    %c0_i32_0 = arith.constant 0 : i32
    %c0_i32_1 = arith.constant 0 : i32
    %c0_i32_2 = arith.constant 0 : i32
    return %c0_i32, %c0_i32_0, %c0_i32_1 : i32, i32, i32
  }
  func.func @transform_13(%arg0: i32) -> (i32, i32, i32) {
    %c0_i32 = arith.constant 0 : i32
    %c0_i32_0 = arith.constant 0 : i32
    %c0_i32_1 = arith.constant 0 : i32
    %c0_i32_2 = arith.constant 0 : i32
    return %c0_i32, %c0_i32_0, %c0_i32_1 : i32, i32, i32
  }
  func.func @transform_14(%arg0: i32) -> (i32, i32) {
    %c0_i32 = arith.constant 0 : i32
    %c0_i32_0 = arith.constant 0 : i32
    %c0_i32_1 = arith.constant 0 : i32
    return %c0_i32, %c0_i32_0 : i32, i32
  }
  func.func @transform_15(%arg0: i32) -> (i32, i32, i32) {
    %c0_i32 = arith.constant 0 : i32
    %c0_i32_0 = arith.constant 0 : i32
    %c0_i32_1 = arith.constant 0 : i32
    %c0_i32_2 = arith.constant 0 : i32
    return %c0_i32, %c0_i32_0, %c0_i32_1 : i32, i32, i32
  }
  func.func @transform_16(%arg0: i32) -> (i32, i32, i32) {
    %c0_i32 = arith.constant 0 : i32
    %c0_i32_0 = arith.constant 0 : i32
    %c0_i32_1 = arith.constant 0 : i32
    %c0_i32_2 = arith.constant 0 : i32
    return %c0_i32, %c0_i32_0, %c0_i32_1 : i32, i32, i32
  }
  func.func @transform_17(%arg0: i32) -> (i32, i32, i32) {
    %c0_i32 = arith.constant 0 : i32
    %c0_i32_0 = arith.constant 0 : i32
    %c0_i32_1 = arith.constant 0 : i32
    %c0_i32_2 = arith.constant 0 : i32
    return %c0_i32, %c0_i32_0, %c0_i32_1 : i32, i32, i32
  }
  func.func @transform_18(%arg0: i32) -> (i32, i32) {
    %c0_i32 = arith.constant 0 : i32
    %c0_i32_0 = arith.constant 0 : i32
    %c0_i32_1 = arith.constant 0 : i32
    return %c0_i32, %c0_i32_0 : i32, i32
  }
  func.func @transform_19(%arg0: i32) -> (i32, i32, i32) {
    %c0_i32 = arith.constant 0 : i32
    %c0_i32_0 = arith.constant 0 : i32
    %c0_i32_1 = arith.constant 0 : i32
    %c0_i32_2 = arith.constant 0 : i32
    return %c0_i32, %c0_i32_0, %c0_i32_1 : i32, i32, i32
  }
  func.func @transform_20(%arg0: i32) -> (i32, i32, i32) {
    %c0_i32 = arith.constant 0 : i32
    %c0_i32_0 = arith.constant 0 : i32
    %c0_i32_1 = arith.constant 0 : i32
    %c0_i32_2 = arith.constant 0 : i32
    return %c0_i32, %c0_i32_0, %c0_i32_1 : i32, i32, i32
  }
  func.func @transform_21(%arg0: i32) -> (i32, i32, i32) {
    %c0_i32 = arith.constant 0 : i32
    %c0_i32_0 = arith.constant 0 : i32
    %c0_i32_1 = arith.constant 0 : i32
    %c0_i32_2 = arith.constant 0 : i32
    return %c0_i32, %c0_i32_0, %c0_i32_1 : i32, i32, i32
  }
  func.func @transform_22(%arg0: i32) -> (i32, i32) {
    %c0_i32 = arith.constant 0 : i32
    %c0_i32_0 = arith.constant 0 : i32
    %c0_i32_1 = arith.constant 0 : i32
    return %c0_i32, %c0_i32_0 : i32, i32
  }
  func.func @transform_23(%arg0: i32) -> (i32, i32, i32) {
    %c0_i32 = arith.constant 0 : i32
    %c0_i32_0 = arith.constant 0 : i32
    %c0_i32_1 = arith.constant 0 : i32
    %c0_i32_2 = arith.constant 0 : i32
    return %c0_i32, %c0_i32_0, %c0_i32_1 : i32, i32, i32
  }
  func.func @transform_24(%arg0: i32) -> (i32, i32, i32) {
    %c0_i32 = arith.constant 0 : i32
    %c0_i32_0 = arith.constant 0 : i32
    %c0_i32_1 = arith.constant 0 : i32
    %c0_i32_2 = arith.constant 0 : i32
    return %c0_i32, %c0_i32_0, %c0_i32_1 : i32, i32, i32
  }
  func.func @transform_25(%arg0: i32) -> (i32, i32, i32) {
    %c0_i32 = arith.constant 0 : i32
    %c0_i32_0 = arith.constant 0 : i32
    %c0_i32_1 = arith.constant 0 : i32
    %c0_i32_2 = arith.constant 0 : i32
    return %c0_i32, %c0_i32_0, %c0_i32_1 : i32, i32, i32
  }
  func.func @transform_26(%arg0: i32) -> (i32, i32) {
    %c0_i32 = arith.constant 0 : i32
    %c0_i32_0 = arith.constant 0 : i32
    %c0_i32_1 = arith.constant 0 : i32
    return %c0_i32, %c0_i32_0 : i32, i32
  }
  func.func @transform_27(%arg0: i32) -> (i32, i32, i32) {
    %c0_i32 = arith.constant 0 : i32
    %c0_i32_0 = arith.constant 0 : i32
    %c0_i32_1 = arith.constant 0 : i32
    %c0_i32_2 = arith.constant 0 : i32
    return %c0_i32, %c0_i32_0, %c0_i32_1 : i32, i32, i32
  }
  func.func @transform_28(%arg0: i32) -> (i32, i32, i32) {
    %c0_i32 = arith.constant 0 : i32
    %c0_i32_0 = arith.constant 0 : i32
    %c0_i32_1 = arith.constant 0 : i32
    %c0_i32_2 = arith.constant 0 : i32
    return %c0_i32, %c0_i32_0, %c0_i32_1 : i32, i32, i32
  }
  func.func @transform_29(%arg0: i32) -> (i32, i32) {
    %c0_i32 = arith.constant 0 : i32
    %c0_i32_0 = arith.constant 0 : i32
    %c0_i32_1 = arith.constant 0 : i32
    return %c0_i32, %c0_i32_0 : i32, i32
  }
  func.func @transform_30(%arg0: i32) -> (i32, i32, i32) {
    %c0_i32 = arith.constant 0 : i32
    %c0_i32_0 = arith.constant 0 : i32
    %c0_i32_1 = arith.constant 0 : i32
    return %arg0, %c0_i32, %c0_i32_0 : i32, i32, i32
  }
}

</mosaic_0001>

<bundles_post_ra>
// kernel: hcn_forward.1
= control target key start
LH: loop header
LB: loop body
LE: loop exit
PB: predicated region body
PF: predicated region fallthrough
CT: control target
= control target key end

     0   :  { %s23648_s6 = smov 1   ;;  %s23649_s10 = smov 2   ;;  %s26602_s0 = inlined_call_operand.smem [shape: u32[31], index: -1, kind: input, shape index: {}] }
   0x1   :  { %s23721_s5 = sld [smem:[%s26602_s0]]   ;;  %s23650_s14 = smov 3  }
   0x2   :  { %s23726_s9 = sld [smem:[%s26602_s0 + %s23648_s6]]   ;;  %s23651_s18 = smov 4  }
   0x3   :  { %s23731_s13 = sld [smem:[%s26602_s0 + %s23649_s10]]   ;;  %s23652_s22 = smov 5  }
   0x4   :  { %s23736_s17 = sld [smem:[%s26602_s0 + %s23650_s14]]   ;;  %s23653_s26 = smov 6  }
   0x5   :  { %s23741_s21 = sld [smem:[%s26602_s0 + %s23651_s18]]   ;;  %s23654_s30 = smov 7  }
   0x6   :  { %s23746_s25 = sld [smem:[%s26602_s0 + %s23652_s22]]   ;;  %s23655_s4 = smov 8  }
   0x7   :  { %26652 = sst [smem:[#allocation48_spill]] %s23721_s5  ;;  %s23656_s10 = smov 9  }
   0x8   :  { %s23751_s29 = sld [smem:[%s26602_s0 + %s23653_s26]]   ;;  %s23657_s15 = smov 10  }
   0x9   :  { %26653 = sst [smem:[#allocation49_spill]] %s23731_s13  ;;  %s23658_s20 = smov 11  }
   0xa   :  { %26654 = sst [smem:[#allocation50_spill]] %s23736_s17  ;;  %s23659_s26 = smov 12  }
   0xb   :  { %s23756_s3 = sld [smem:[%s26602_s0 + %s23654_s30]]   ;;  %s23660_s1 = smov 13  }
   0xc   :  { %26655 = sst [smem:[#allocation51_spill]] %s23746_s25  ;;  %s23661_s7 = smov 14  }
   0xd   :  { %s23761_s8 = sld [smem:[%s26602_s0 + %s23655_s4]]   ;;  %s23663_s22 = smov 16  }
   0xe   :  { %26656 = sst [smem:[#allocation52_spill]] %s23751_s29  ;;  %s23664_s28 = smov 17  }
   0xf   :  { %s23766_s14 = sld [smem:[%s26602_s0 + %s23656_s10]]  }
  0x10   :  { %s23771_s19 = sld [smem:[%s26602_s0 + %s23657_s15]]   ;;  %s23662_s15 = smov 15  }
  0x11   :  { %26657 = sst [smem:[#allocation53_spill]] %s23756_s3 }
  0x12   :  { %s23776_s24 = sld [smem:[%s26602_s0 + %s23658_s20]]  }
  0x13   :  { %26658 = sst [smem:[#allocation54_spill]] %s23761_s8 }
  0x14   :  { %s23781_s30 = sld [smem:[%s26602_s0 + %s23659_s26]]  }
  0x15   :  { %26659 = sst [smem:[#allocation55_spill]] %s23766_s14 }
  0x16   :  { %26660 = sst [smem:[#allocation56_spill]] %s23771_s19 }
  0x17   :  { %s23786_s6 = sld [smem:[%s26602_s0 + %s23660_s1]]  }
  0x18   :  { %s23791_s12 = sld [smem:[%s26602_s0 + %s23661_s7]]   ;;  %s23665_s7 = smov 18  }
  0x19   :  { %s23796_s20 = sld [smem:[%s26602_s0 + %s23662_s15]]   ;;  %s23666_s15 = smov 19  }
  0x1a   :  { %s23801_s27 = sld [smem:[%s26602_s0 + %s23663_s22]]   ;;  %s23667_s22 = smov 20  }
  0x1b   :  { %s23806_s4 = sld [smem:[%s26602_s0 + %s23664_s28]]   ;;  %s23668_s28 = smov 21  }
  0x1c   :  { %s23811_s25 = sld [smem:[%s26602_s0 + %s23665_s7]]   ;;  %s23669_s7 = smov 22  }
  0x1d   :  { %26661 = sst [smem:[#allocation57_spill]] %s23786_s6 }
  0x1e   :  { %26662 = sst [smem:[#allocation58_spill]] %s23791_s12 }
  0x1f   :  { %s23816_s14 = sld [smem:[%s26602_s0 + %s23666_s15]]   ;;  %s23670_s15 = smov 23  }
  0x20   :  { %s23821_s29 = sld [smem:[%s26602_s0 + %s23667_s22]]   ;;  %s23671_s22 = smov 24  }
  0x21   :  { %26663 = sst [smem:[#allocation59_spill]] %s23806_s4 }
  0x22   :  { %s23826_s17 = sld [smem:[%s26602_s0 + %s23668_s28]]   ;;  %s23672_s28 = smov 25  }
  0x23   :  { %s23831_s3 = sld [smem:[%s26602_s0 + %s23669_s7]]   ;;  %s23673_s7 = smov 26  }
  0x24   :  { %s23836_s13 = sld [smem:[%s26602_s0 + %s23670_s15]]   ;;  %s23674_s15 = smov 27  }
  0x25   :  { %26664 = sst [smem:[#allocation60_spill]] %s23816_s14 }
  0x26   :  { %s23841_s5 = sld [smem:[%s26602_s0 + %s23671_s22]]   ;;  %s23675_s22 = smov 28  }
  0x27   :  { %s23851_s14 = sld [smem:[%s26602_s0 + %s23673_s7]]   ;;  %s23677_s7 = smov 30  }
  0x28   :  { %26665 = sst [smem:[#allocation61_spill]] %s23826_s17 }
  0x29   :  { %26666 = sst [smem:[#allocation62_spill]] %s23831_s3 }
  0x2a   :  { %26667 = sst [smem:[#allocation63_spill]] %s23836_s13 }
  0x2b   :  { %s23846_s17 = sld [smem:[%s26602_s0 + %s23672_s28]]   ;;  %s23676_s28 = smov 29  }
  0x2c   :  { %26668 = sst [smem:[#allocation64_spill]] %s23841_s5 }
  0x2d   :  { %26669 = sst [smem:[#allocation65_spill]] %s23851_s14 }
  0x2e   :  { %s23856_s13 = sld [smem:[%s26602_s0 + %s23674_s15]]  }
  0x2f   :  { %s23861_s5 = sld [smem:[%s26602_s0 + %s23675_s22]]  }
  0x30   :  { %s23866_s4 = sld [smem:[%s26602_s0 + %s23676_s28]]  }
  0x31   :  { %s23871_s14 = sld [smem:[%s26602_s0 + %s23677_s7]]  }
  0x32   :  { %66 = vsyncpa [#allocation3], 0 }
  0x33   :  { %67 = vsyncpa [#allocation5], 0 }
  0x34   :  { %68 = vsyncpa [#allocation8], 0 }
  0x35   :  { %69 = vsyncpa [#allocation11], 0 }
  0x36   :  { %70 = vsyncpa [#allocation14], 0 }
  0x37   :  { %71 = vsyncpa [#allocation17], 0 }
  0x38   :  { %72 = vsyncpa [#allocation20], 0 }
  0x39   :  { %73 = vsyncpa [#allocation23], 0 }
  0x3a   :  { %74 = vsyncpa [#allocation26], 0 }
  0x3b   :  { %75 = vsyncpa [#allocation29], 0 }
  0x3c   :  { %76 = vsyncpa [#allocation32], 0 }
  0x3d   :  { %77 = vsyncpa [#allocation35], 0  ;;  %s23873_s15 = smov 0  }
  0x3e LB: > { %s26670_s8 = sld [smem:[#allocation54_spill]]  ;;  %s26671_s6 = sld [smem:[#allocation57_spill]]  ;;  %s23646_s15 = sphi %s23873_s15, %s83_s15  }
  0x3f   : > { %s26672_s3 = sld [smem:[#allocation62_spill]]  ;;  %s26673_s19 = sld [smem:[#allocation56_spill]] }
  0x40   : > { %s26674_s12 = sld [smem:[#allocation58_spill]]  ;;  %s23678_s0 = smov [#allocation4]  }
  0x41   : > { %s780_s16 = sshll.u32 %s23678_s0, 4  ;;  %s23879_s18 = sadd.s32 4294967295, %s23646_s15   ;;  %s23884_s16 = int_to_ptr.vmem [resolvable:$true] %s780_s16 }
  0x42   : > { %p17554_p0 = scmp.ge.s32.totalorder %s23646_s15, 1  ;;  %p749_p1 = scmp.lt.s32.totalorder %s23646_s15, 5 }
  0x43   : > { %p26615_p2 = scmp.eq.s32.totalorder %s23879_s18, 0  ;;  %s23679_s23 = smov [#allocation7]  }
  0x44   : > { %p23886_p3 = pnand %p17554_p0, %p749_p1  ;;  %s819_s26 = sshll.u32 %s23679_s23, 4  ;;  %s23892_s26 = int_to_ptr.vmem [resolvable:$true] %s819_s26 }
  0x45   : > { %s23680_s1 = smov [#allocation10]   ;;  %s23681_s7 = smov [#allocation13]  }
  0x46   : > { %s26675_s22 = scalar_select %p23886_p3, 1, 0 }
  0x47   : > { %p22790_p4 = pneg %p23886_p3  ;;  %s840_s2 = sshll.u32 %s23680_s1, 4  ;;  %s23900_s2 = int_to_ptr.vmem [resolvable:$true] %s840_s2 }
  0x48   : > { %s23902_s10 = sshll.u32 %s23681_s7, 4  ;;  %s22976_s11 = scalar_lea.hbm %s23741_s21, 8192  ;;  %s868_s10 = int_to_ptr.vmem [resolvable:$true] %s23902_s10 }
  0x49   : > { %p23896_p5 = pnand %p26615_p2, %p22790_p4  ;;  %p22977_p6 = scmp.ne.s32.totalorder %s23741_s21, %s22976_s11 }
  0x4a   : > { %p22983_p10 = scmp.lt.u32.totalorder %s22976_s11, %s23741_s21 }
  0x4b   : > { %p23908_p7 = pneg %p23896_p5 }
  0x4d   : > { %p22979_p8 = pnand %p23908_p7, %p22977_p6 }
  0x4f   : > { %p22980_p9 = pneg %p22979_p8 }
  0x51   : > { %p22985_p11 = pnand %p22983_p10, %p22980_p9 }
  0x53   : > { %22988 = shalt.err (!%p22985_p11)
}
  0x54   : > { %s22989_s23 = scalar_lea.vmem %s23884_s16, 8192  ;;  %p22997_p1 = scmp.lt.s32.totalorder %s23884_s16, %s23884_s16 }
  0x55   : > { %p22990_p12 = scmp.ne.s32.totalorder %s23884_s16, %s22989_s23  ;;  %p22998_p4 = scmp.lt.s32.totalorder %s22989_s23, %s22989_s23 }
  0x57   : > { %p22992_p13 = pnand %p22990_p12, %p23908_p7  ;;  %p22999_p2 = por %p22998_p4, %p22997_p1 }
  0x59   : > { %p22993_p0 = pneg %p22992_p13 }
  0x5b   : > { %p23000_p3 = pnand %p22999_p2, %p22993_p0 }
  0x5d   : > { %23003 = shalt.err (!%p23000_p3)
}
  0x5e   : > { %s26617_s1 = smov 256   ;;  %s26619_s7 = smov 16  }
  0x5f   : > { %22796 = dma.hbm_to_vmem [thread:$0]  (!%p23896_p5), %s23741_s21, 8192, %s23884_s16, [#allocation5], %s26617_s1, %s26617_s1, %s26619_s7  }
  0x60   : > { %s23004_s11 = scalar_lea.hbm %s26673_s19, 128 }
  0x61   : > { %p23005_p6 = scmp.ne.s32.totalorder %s26673_s19, %s23004_s11  ;;  %p23011_p3 = scmp.lt.u32.totalorder %s23004_s11, %s26673_s19 }
  0x63   : > { %p23007_p8 = pnand %p23005_p6, %p23908_p7 }
  0x65   : > { %p23008_p2 = pneg %p23007_p8 }
  0x67   : > { %p23013_p9 = pnand %p23011_p3, %p23008_p2 }
  0x69   : > { %23016 = shalt.err (!%p23013_p9)
}
  0x6a   : > { %s23017_s23 = scalar_lea.vmem %s23892_s26, 128  ;;  %p23025_p13 = scmp.lt.s32.totalorder %s23892_s26, %s23892_s26 }
  0x6b   : > { %p23018_p10 = scmp.ne.s32.totalorder %s23892_s26, %s23017_s23  ;;  %p23026_p0 = scmp.lt.s32.totalorder %s23017_s23, %s23017_s23 }
  0x6d   : > { %p23020_p11 = pnand %p23018_p10, %p23908_p7  ;;  %p23027_p1 = por %p23026_p0, %p23025_p13 }
  0x6f   : > { %p23021_p12 = pneg %p23020_p11 }
  0x71   : > { %p23028_p4 = pnand %p23027_p1, %p23021_p12 }
  0x73   : > { %23031 = shalt.err (!%p23028_p4)
}
  0x74   : > { %22802 = dma.hbm_to_vmem [thread:$0]  (!%p23896_p5), %s26673_s19, 128, %s23892_s26, [#allocation8]  }
  0x75   : > { %s23032_s16 = scalar_lea.hbm %s23781_s30, 73728 }
  0x76   : > { %p23033_p6 = scmp.ne.s32.totalorder %s23781_s30, %s23032_s16  ;;  %p23039_p3 = scmp.lt.u32.totalorder %s23032_s16, %s23781_s30 }
  0x78   : > { %p23035_p8 = pnand %p23033_p6, %p23908_p7 }
  0x7a   : > { %p23036_p2 = pneg %p23035_p8 }
  0x7c   : > { %p23041_p9 = pnand %p23039_p3, %p23036_p2 }
  0x7e   : > { %23044 = shalt.err (!%p23041_p9)
}
  0x7f   : > { %s23045_s11 = scalar_lea.vmem %s23900_s2, 73728  ;;  %p23053_p13 = scmp.lt.s32.totalorder %s23900_s2, %s23900_s2 }
  0x80   : > { %p23046_p10 = scmp.ne.s32.totalorder %s23900_s2, %s23045_s11  ;;  %p23054_p0 = scmp.lt.s32.totalorder %s23045_s11, %s23045_s11 }
  0x82   : > { %p23048_p11 = pnand %p23046_p10, %p23908_p7  ;;  %p23055_p1 = por %p23054_p0, %p23053_p13 }
  0x84   : > { %p23049_p12 = pneg %p23048_p11 }
  0x86   : > { %p23056_p4 = pnand %p23055_p1, %p23049_p12 }
  0x88   : > { %23059 = shalt.err (!%p23056_p4)
}
  0x89   : > { %22808 = dma.hbm_to_vmem [thread:$0]  (!%p23896_p5), %s23781_s30, 73728, %s23900_s2, [#allocation11], %s26617_s1, %s26617_s1, %s26619_s7  }
  0x8a   : > { %s23060_s26 = scalar_lea.hbm %s26674_s12, 16 }
  0x8b   : > { %p23061_p6 = scmp.ne.s32.totalorder %s26674_s12, %s23060_s26  ;;  %p23067_p3 = scmp.lt.u32.totalorder %s23060_s26, %s26674_s12 }
  0x8d   : > { %p23063_p8 = pnand %p23061_p6, %p23908_p7 }
  0x8f   : > { %p23064_p2 = pneg %p23063_p8 }
  0x91   : > { %p23069_p9 = pnand %p23067_p3, %p23064_p2 }
  0x93   : > { %23072 = shalt.err (!%p23069_p9)
}
  0x94   : > { %s23073_s23 = scalar_lea.vmem %s868_s10, 16  ;;  %s23080_s16 = scalar_lea.vmem %s868_s10, 32 }
  0x95   : > { %p23074_p10 = scmp.ne.s32.totalorder %s868_s10, %s23073_s23  ;;  %p23081_p13 = scmp.lt.s32.totalorder %s868_s10, %s868_s10 }
  0x96   : > { %p23082_p0 = scmp.lt.s32.totalorder %s23080_s16, %s23073_s23 }
  0x97   : > { %p23076_p11 = pnand %p23074_p10, %p23908_p7 }
  0x98   : > { %p23083_p1 = por %p23082_p0, %p23081_p13 }
  0x99   : > { %p23077_p12 = pneg %p23076_p11 }
  0x9b   : > { %p23084_p4 = pnand %p23083_p1, %p23077_p12 }
  0x9d   : > { %23087 = shalt.err (!%p23084_p4)
}
  0x9e   : > { %22814 = dma.hbm_to_vmem [thread:$0]  (!%p23896_p5), %s26674_s12, 16, %s868_s10, [#allocation14]  }
  0x9f   : > { %s23684_s2 = smov [#allocation16]   ;;  %s23685_s26 = smov [#allocation19]  }
  0xa0   : > { %s890_s11 = sshll.u32 %s23684_s2, 4  ;;  %s917_s1 = sshll.u32 %s23685_s26, 4  ;;  %s891_s11 = int_to_ptr.vmem [resolvable:$true] %s890_s11  ;;  %s918_s1 = int_to_ptr.vmem [resolvable:$true] %s917_s1 }
  0xa1   : > { %s23088_s7 = scalar_lea.hbm %s23801_s27, 9216 }
  0xa2   : > { %p23089_p6 = scmp.ne.s32.totalorder %s23801_s27, %s23088_s7  ;;  %p23095_p3 = scmp.lt.u32.totalorder %s23088_s7, %s23801_s27 }
  0xa4   : > { %p23091_p8 = pnand %p23089_p6, %p23908_p7 }
  0xa6   : > { %p23092_p2 = pneg %p23091_p8 }
  0xa8   : > { %p23097_p9 = pnand %p23095_p3, %p23092_p2 }
  0xaa   : > { %23100 = shalt.err (!%p23097_p9)
}
  0xab   : > { %s23101_s23 = scalar_lea.vmem %s891_s11, 9216  ;;  %p23109_p13 = scmp.lt.s32.totalorder %s891_s11, %s891_s11 }
  0xac   : > { %p23102_p10 = scmp.ne.s32.totalorder %s891_s11, %s23101_s23  ;;  %p23110_p0 = scmp.lt.s32.totalorder %s23101_s23, %s23101_s23 }
  0xae   : > { %p23104_p11 = pnand %p23102_p10, %p23908_p7  ;;  %p23111_p1 = por %p23110_p0, %p23109_p13 }
  0xb0   : > { %p23105_p12 = pneg %p23104_p11 }
  0xb2   : > { %p23112_p4 = pnand %p23111_p1, %p23105_p12 }
  0xb4   : > { %23115 = shalt.err (!%p23112_p4)
}
  0xb5   : > { %s26621_s10 = smov 128   ;;  %s26623_s7 = smov 8  }
  0xb6   : > { %22820 = dma.hbm_to_vmem [thread:$0]  (!%p23896_p5), %s23801_s27, 9216, %s891_s11, [#allocation17], %s26621_s10, %s26621_s10, %s26623_s7  }
  0xb7   : > { %s23116_s16 = scalar_lea.hbm %s23811_s25, 16 }
  0xb8   : > { %p23117_p6 = scmp.ne.s32.totalorder %s23811_s25, %s23116_s16  ;;  %p23123_p3 = scmp.lt.u32.totalorder %s23116_s16, %s23811_s25 }
  0xba   : > { %p23119_p8 = pnand %p23117_p6, %p23908_p7 }
  0xbc   : > { %p23120_p2 = pneg %p23119_p8 }
  0xbe   : > { %p23125_p9 = pnand %p23123_p3, %p23120_p2 }
  0xc0   : > { %23128 = shalt.err (!%p23125_p9)
}
  0xc1   : > { %s23129_s2 = scalar_lea.vmem %s918_s1, 16  ;;  %s23136_s26 = scalar_lea.vmem %s918_s1, 32 }
  0xc2   : > { %p23130_p10 = scmp.ne.s32.totalorder %s918_s1, %s23129_s2  ;;  %p23137_p13 = scmp.lt.s32.totalorder %s918_s1, %s918_s1 }
  0xc3   : > { %p23138_p0 = scmp.lt.s32.totalorder %s23136_s26, %s23129_s2 }
  0xc4   : > { %p23132_p11 = pnand %p23130_p10, %p23908_p7 }
  0xc5   : > { %p23139_p1 = por %p23138_p0, %p23137_p13 }
  0xc6   : > { %p23133_p12 = pneg %p23132_p11 }
  0xc8   : > { %p23140_p4 = pnand %p23139_p1, %p23133_p12 }
  0xca   : > { %23143 = shalt.err (!%p23140_p4)
}
  0xcb   : > { %22826 = dma.hbm_to_vmem [thread:$0]  (!%p23896_p5), %s23811_s25, 16, %s918_s1, [#allocation20]  }
  0xcc   : > { %s23688_s11 = smov [#allocation22]   ;;  %s23689_s16 = smov [#allocation25]  }
  0xcd   : > { %s940_s23 = sshll.u32 %s23688_s11, 4  ;;  %s967_s10 = sshll.u32 %s23689_s16, 4  ;;  %s941_s23 = int_to_ptr.vmem [resolvable:$true] %s940_s23  ;;  %s968_s10 = int_to_ptr.vmem [resolvable:$true] %s967_s10 }
  0xce   : > { %s23144_s7 = scalar_lea.hbm %s23821_s29, 2304 }
  0xcf   : > { %p23145_p6 = scmp.ne.s32.totalorder %s23821_s29, %s23144_s7  ;;  %p23151_p3 = scmp.lt.u32.totalorder %s23144_s7, %s23821_s29 }
  0xd1   : > { %p23147_p8 = pnand %p23145_p6, %p23908_p7 }
  0xd3   : > { %p23148_p2 = pneg %p23147_p8 }
  0xd5   : > { %p23153_p9 = pnand %p23151_p3, %p23148_p2 }
  0xd7   : > { %23156 = shalt.err (!%p23153_p9)
}
  0xd8   : > { %s23157_s2 = scalar_lea.vmem %s941_s23, 2304  ;;  %p23165_p13 = scmp.lt.s32.totalorder %s941_s23, %s941_s23 }
  0xd9   : > { %p23158_p10 = scmp.ne.s32.totalorder %s941_s23, %s23157_s2  ;;  %p23166_p0 = scmp.lt.s32.totalorder %s23157_s2, %s23157_s2 }
  0xdb   : > { %p23160_p11 = pnand %p23158_p10, %p23908_p7  ;;  %p23167_p1 = por %p23166_p0, %p23165_p13 }
  0xdd   : > { %p23161_p12 = pneg %p23160_p11 }
  0xdf   : > { %p23168_p4 = pnand %p23167_p1, %p23161_p12 }
  0xe1   : > { %23171 = shalt.err (!%p23168_p4)
}
  0xe2   : > { %s26678_s1 = smov 8   ;;  %s26679_s26 = smov 128  }
  0xe3   : > { %22832 = dma.hbm_to_vmem [thread:$0]  (!%p23896_p5), %s23821_s29, 2304, %s941_s23, [#allocation23], %s26679_s26, %s26679_s26, %s26678_s1  }
  0xe4   : > { %s23172_s7 = scalar_lea.hbm %s26672_s3, 16 }
  0xe5   : > { %p23173_p6 = scmp.ne.s32.totalorder %s26672_s3, %s23172_s7  ;;  %p23179_p3 = scmp.lt.u32.totalorder %s23172_s7, %s26672_s3 }
  0xe7   : > { %p23175_p8 = pnand %p23173_p6, %p23908_p7 }
  0xe9   : > { %p23176_p2 = pneg %p23175_p8 }
  0xeb   : > { %p23181_p9 = pnand %p23179_p3, %p23176_p2 }
  0xed   : > { %23184 = shalt.err (!%p23181_p9)
}
  0xee   : > { %s23185_s11 = scalar_lea.vmem %s968_s10, 16  ;;  %s23192_s16 = scalar_lea.vmem %s968_s10, 32 }
  0xef   : > { %p23186_p10 = scmp.ne.s32.totalorder %s968_s10, %s23185_s11  ;;  %p23193_p13 = scmp.lt.s32.totalorder %s968_s10, %s968_s10 }
  0xf0   : > { %p23194_p0 = scmp.lt.s32.totalorder %s23192_s16, %s23185_s11 }
  0xf1   : > { %p23188_p11 = pnand %p23186_p10, %p23908_p7 }
  0xf2   : > { %p23195_p1 = por %p23194_p0, %p23193_p13 }
  0xf3   : > { %p23189_p12 = pneg %p23188_p11 }
  0xf5   : > { %p23196_p4 = pnand %p23195_p1, %p23189_p12 }
  0xf7   : > { %23199 = shalt.err (!%p23196_p4)
}
  0xf8   : > { %22838 = dma.hbm_to_vmem [thread:$0]  (!%p23896_p5), %s26672_s3, 16, %s968_s10, [#allocation26]  }
  0xf9   : > { %s23690_s23 = smov [#allocation28]   ;;  %s23691_s7 = smov [#allocation31]  }
  0xfa   : > { %s993_s2 = sshll.u32 %s23690_s23, 4  ;;  %s1017_s12 = sshll.u32 %s23691_s7, 4  ;;  %s994_s2 = int_to_ptr.vmem [resolvable:$true] %s993_s2  ;;  %s1018_s12 = int_to_ptr.vmem [resolvable:$true] %s1017_s12 }
  0xfb   : > { %s23200_s19 = scalar_lea.hbm %s23846_s17, 4608 }
  0xfc   : > { %p23201_p6 = scmp.ne.s32.totalorder %s23846_s17, %s23200_s19  ;;  %p23207_p3 = scmp.lt.u32.totalorder %s23200_s19, %s23846_s17 }
  0xfe   : > { %p23203_p8 = pnand %p23201_p6, %p23908_p7 }
 0x100   : > { %p23204_p2 = pneg %p23203_p8 }
 0x102   : > { %p23209_p9 = pnand %p23207_p3, %p23204_p2 }
 0x104   : > { %23212 = shalt.err (!%p23209_p9)
}
 0x105   : > { %s23213_s11 = scalar_lea.vmem %s994_s2, 4608  ;;  %p23221_p13 = scmp.lt.s32.totalorder %s994_s2, %s994_s2 }
 0x106   : > { %p23214_p10 = scmp.ne.s32.totalorder %s994_s2, %s23213_s11  ;;  %p23222_p0 = scmp.lt.s32.totalorder %s23213_s11, %s23213_s11 }
 0x108   : > { %p23216_p11 = pnand %p23214_p10, %p23908_p7  ;;  %p23223_p1 = por %p23222_p0, %p23221_p13 }
 0x10a   : > { %p23217_p12 = pneg %p23216_p11 }
 0x10c   : > { %p23224_p4 = pnand %p23223_p1, %p23217_p12 }
 0x10e   : > { %23227 = shalt.err (!%p23224_p4)
}
 0x10f   : > { %22844 = dma.hbm_to_vmem [thread:$0]  (!%p23896_p5), %s23846_s17, 4608, %s994_s2, [#allocation29], %s26679_s26, %s26679_s26, %s26678_s1  }
 0x110   : > { %s23228_s19 = scalar_lea.hbm %s23856_s13, 64 }
 0x111   : > { %p23229_p6 = scmp.ne.s32.totalorder %s23856_s13, %s23228_s19  ;;  %p23235_p3 = scmp.lt.u32.totalorder %s23228_s19, %s23856_s13 }
 0x113   : > { %p23231_p8 = pnand %p23229_p6, %p23908_p7 }
 0x115   : > { %p23232_p2 = pneg %p23231_p8 }
 0x117   : > { %p23237_p9 = pnand %p23235_p3, %p23232_p2 }
 0x119   : > { %23240 = shalt.err (!%p23237_p9)
}
 0x11a   : > { %s23241_s10 = scalar_lea.vmem %s1018_s12, 64  ;;  %p23249_p13 = scmp.lt.s32.totalorder %s1018_s12, %s1018_s12 }
 0x11b   : > { %p23242_p10 = scmp.ne.s32.totalorder %s1018_s12, %s23241_s10  ;;  %p23250_p0 = scmp.lt.s32.totalorder %s23241_s10, %s23241_s10 }
 0x11d   : > { %p23244_p11 = pnand %p23242_p10, %p23908_p7  ;;  %p23251_p1 = por %p23250_p0, %p23249_p13 }
 0x11f   : > { %p23245_p12 = pneg %p23244_p11 }
 0x121   : > { %p23252_p4 = pnand %p23251_p1, %p23245_p12 }
 0x123   : > { %23255 = shalt.err (!%p23252_p4)
}
 0x124   : > { %s23692_s16 = smov 1   ;;  %s26680_s23 = smov 16  }
 0x125   : > { %22850 = dma.hbm_to_vmem [thread:$0]  (!%p23896_p5), %s23856_s13, 64, %s1018_s12, [#allocation32], %s26680_s23, %s26680_s23, %s23692_s16  }
 0x126   : > { %s23693_s2 = smov [#allocation2]   ;;  %s23694_s11 = smov [#allocation6]  }
 0x127   : > { %s761_s7 = sshll.u32 %s23693_s2, 4  ;;  %s802_s19 = sshll.u32 %s23694_s11, 4  ;;  %s762_s7 = int_to_ptr.vmem [resolvable:$true] %s761_s7  ;;  %s24043_s19 = int_to_ptr.vmem [resolvable:$true] %s802_s19 }
 0x128   : > { %s23256_s10 = scalar_lea.hbm %s23726_s9, 768 }
 0x129   : > { %p23257_p6 = scmp.ne.s32.totalorder %s23726_s9, %s23256_s10  ;;  %p23263_p3 = scmp.lt.u32.totalorder %s23256_s10, %s23726_s9 }
 0x12b   : > { %p23259_p8 = pnand %p23257_p6, %p23908_p7 }
 0x12d   : > { %p23260_p2 = pneg %p23259_p8 }
 0x12f   : > { %p23265_p9 = pnand %p23263_p3, %p23260_p2 }
 0x131   : > { %23268 = shalt.err (!%p23265_p9)
}
 0x132   : > { %s23269_s3 = scalar_lea.vmem %s762_s7, 768  ;;  %p23277_p13 = scmp.lt.s32.totalorder %s762_s7, %s762_s7 }
 0x133   : > { %p23270_p10 = scmp.ne.s32.totalorder %s762_s7, %s23269_s3  ;;  %p23278_p0 = scmp.lt.s32.totalorder %s23269_s3, %s23269_s3 }
 0x135   : > { %p23272_p11 = pnand %p23270_p10, %p23908_p7  ;;  %p23279_p1 = por %p23278_p0, %p23277_p13 }
 0x137   : > { %p23273_p12 = pneg %p23272_p11 }
 0x139   : > { %p23280_p4 = pnand %p23279_p1, %p23273_p12 }
 0x13b   : > { %23283 = shalt.err (!%p23280_p4)
}
 0x13c   : > { %22793 = dma.hbm_to_vmem [thread:$0]  (!%p23896_p5), %s23726_s9, 768, %s762_s7, [#allocation3], %s26679_s26, %s26679_s26, %s26678_s1  }
 0x13d   : > { %s23284_s12 = scalar_lea.hbm %s26670_s8, 8192 }
 0x13e   : > { %p23285_p6 = scmp.ne.s32.totalorder %s26670_s8, %s23284_s12  ;;  %p23291_p3 = scmp.lt.u32.totalorder %s23284_s12, %s26670_s8 }
 0x140   : > { %p23287_p8 = pnand %p23285_p6, %p23908_p7 }
 0x142   : > { %p23288_p2 = pneg %p23287_p8 }
 0x144   : > { %p23293_p9 = pnand %p23291_p3, %p23288_p2 }
 0x146   : > { %23296 = shalt.err (!%p23293_p9)
}
 0x147   : > { %s23297_s3 = scalar_lea.vmem %s24043_s19, 8192  ;;  %p23305_p13 = scmp.lt.s32.totalorder %s24043_s19, %s24043_s19 }
 0x148   : > { %p23298_p10 = scmp.ne.s32.totalorder %s24043_s19, %s23297_s3  ;;  %p23306_p0 = scmp.lt.s32.totalorder %s23297_s3, %s23297_s3 }
 0x14a   : > { %p23300_p11 = pnand %p23298_p10, %p23908_p7  ;;  %p23307_p1 = por %p23306_p0, %p23305_p13 }
 0x14c   : > { %p23301_p12 = pneg %p23300_p11 }
 0x14e   : > { %p23308_p4 = pnand %p23307_p1, %p23301_p12 }
 0x150   : > { %23311 = shalt.err (!%p23308_p4)
}
 0x151   : > { %s26681_s16 = smov 256   ;;  %s23695_s2 = smov [#allocation9]  }
 0x152   : > { %22799 = dma.hbm_to_vmem [thread:$0]  (!%p23896_p5), %s26670_s8, 8192, %s24043_s19, [#allocation5], %s26681_s16, %s26681_s16, %s26680_s23  }
 0x153   : > { %s830_s7 = sshll.u32 %s23695_s2, 4  ;;  %s23696_s11 = smov [#allocation12]   ;;  %s831_s7 = int_to_ptr.vmem [resolvable:$true] %s830_s7 }
 0x154   : > { %s853_s10 = sshll.u32 %s23696_s11, 4  ;;  %s23312_s12 = scalar_lea.hbm %s23776_s24, 128  ;;  %s24076_s10 = int_to_ptr.vmem [resolvable:$true] %s853_s10 }
 0x155   : > { %p23313_p6 = scmp.ne.s32.totalorder %s23776_s24, %s23312_s12  ;;  %p23319_p3 = scmp.lt.u32.totalorder %s23312_s12, %s23776_s24 }
 0x157   : > { %p23315_p8 = pnand %p23313_p6, %p23908_p7 }
 0x159   : > { %p23316_p2 = pneg %p23315_p8 }
 0x15b   : > { %p23321_p9 = pnand %p23319_p3, %p23316_p2 }
 0x15d   : > { %23324 = shalt.err (!%p23321_p9)
}
 0x15e   : > { %s23325_s3 = scalar_lea.vmem %s831_s7, 128  ;;  %p23333_p13 = scmp.lt.s32.totalorder %s831_s7, %s831_s7 }
 0x15f   : > { %p23326_p10 = scmp.ne.s32.totalorder %s831_s7, %s23325_s3  ;;  %p23334_p0 = scmp.lt.s32.totalorder %s23325_s3, %s23325_s3 }
 0x161   : > { %p23328_p11 = pnand %p23326_p10, %p23908_p7  ;;  %p23335_p1 = por %p23334_p0, %p23333_p13 }
 0x163   : > { %p23329_p12 = pneg %p23328_p11 }
 0x165   : > { %p23336_p4 = pnand %p23335_p1, %p23329_p12 }
 0x167   : > { %23339 = shalt.err (!%p23336_p4)
}
 0x168   : > { %22805 = dma.hbm_to_vmem [thread:$0]  (!%p23896_p5), %s23776_s24, 128, %s831_s7, [#allocation8]  }
 0x169   : > { %s23340_s19 = scalar_lea.hbm %s26671_s6, 2304 }
 0x16a   : > { %p23341_p6 = scmp.ne.s32.totalorder %s26671_s6, %s23340_s19  ;;  %p23347_p3 = scmp.lt.u32.totalorder %s23340_s19, %s26671_s6 }
 0x16c   : > { %p23343_p8 = pnand %p23341_p6, %p23908_p7 }
 0x16e   : > { %p23344_p2 = pneg %p23343_p8 }
 0x170   : > { %p23349_p9 = pnand %p23347_p3, %p23344_p2 }
 0x172   : > { %23352 = shalt.err (!%p23349_p9)
}
 0x173   : > { %s23353_s2 = scalar_lea.vmem %s24076_s10, 2304  ;;  %p23361_p13 = scmp.lt.s32.totalorder %s24076_s10, %s24076_s10 }
 0x174   : > { %p23354_p10 = scmp.ne.s32.totalorder %s24076_s10, %s23353_s2  ;;  %p23362_p0 = scmp.lt.s32.totalorder %s23353_s2, %s23353_s2 }
 0x176   : > { %p23356_p11 = pnand %p23354_p10, %p23908_p7  ;;  %p23363_p1 = por %p23362_p0, %p23361_p13 }
 0x178   : > { %p23357_p12 = pneg %p23356_p11 }
 0x17a   : > { %p23364_p4 = pnand %p23363_p1, %p23357_p12 }
 0x17c   : > { %23367 = shalt.err (!%p23364_p4)
}
 0x17d   : > { %22811 = dma.hbm_to_vmem [thread:$0]  (!%p23896_p5), %s26671_s6, 2304, %s24076_s10, [#allocation11], %s26679_s26, %s26679_s26, %s26678_s1  }
 0x17e   : > { %s23697_s7 = smov [#allocation15]   ;;  %s23698_s12 = smov [#allocation18]  }
 0x17f   : > { %s877_s11 = sshll.u32 %s23697_s7, 4  ;;  %s903_s3 = sshll.u32 %s23698_s12, 4  ;;  %s878_s11 = int_to_ptr.vmem [resolvable:$true] %s877_s11  ;;  %s24106_s3 = int_to_ptr.vmem [resolvable:$true] %s903_s3 }
 0x180   : > { %s23368_s19 = scalar_lea.hbm %s23796_s20, 8192 }
 0x181   : > { %p23369_p6 = scmp.ne.s32.totalorder %s23796_s20, %s23368_s19  ;;  %p23375_p3 = scmp.lt.u32.totalorder %s23368_s19, %s23796_s20 }
 0x183   : > { %p23371_p8 = pnand %p23369_p6, %p23908_p7 }
 0x185   : > { %p23372_p2 = pneg %p23371_p8 }
 0x187   : > { %p23377_p9 = pnand %p23375_p3, %p23372_p2 }
 0x189   : > { %23380 = shalt.err (!%p23377_p9)
}
 0x18a   : > { %s23381_s2 = scalar_lea.vmem %s878_s11, 8192  ;;  %p23389_p13 = scmp.lt.s32.totalorder %s878_s11, %s878_s11 }
 0x18b   : > { %p23382_p10 = scmp.ne.s32.totalorder %s878_s11, %s23381_s2  ;;  %p23390_p0 = scmp.lt.s32.totalorder %s23381_s2, %s23381_s2 }
 0x18d   : > { %p23384_p11 = pnand %p23382_p10, %p23908_p7  ;;  %p23391_p1 = por %p23390_p0, %p23389_p13 }
 0x18f   : > { %p23385_p12 = pneg %p23384_p11 }
 0x191   : > { %p23392_p4 = pnand %p23391_p1, %p23385_p12 }
 0x193   : > { %23395 = shalt.err (!%p23392_p4)
}
 0x194   : > { %s26682_s10 = sld [smem:[#allocation59_spill]] }
 0x195   : > { %22817 = dma.hbm_to_vmem [thread:$0]  (!%p23896_p5), %s23796_s20, 8192, %s878_s11, [#allocation14], %s26681_s16, %s26681_s16, %s26680_s23  }
 0x19a   : > { %s23396_s7 = scalar_lea.hbm %s26682_s10, 2304 }
 0x19b   : > { %p23397_p6 = scmp.ne.s32.totalorder %s26682_s10, %s23396_s7  ;;  %p23403_p3 = scmp.lt.u32.totalorder %s23396_s7, %s26682_s10 }
 0x19d   : > { %p23399_p8 = pnand %p23397_p6, %p23908_p7 }
 0x19f   : > { %p23400_p2 = pneg %p23399_p8 }
 0x1a1   : > { %p23405_p9 = pnand %p23403_p3, %p23400_p2 }
 0x1a3   : > { %23408 = shalt.err (!%p23405_p9)
}
 0x1a4   : > { %s23409_s12 = scalar_lea.vmem %s24106_s3, 2304  ;;  %p23417_p13 = scmp.lt.s32.totalorder %s24106_s3, %s24106_s3 }
 0x1a5   : > { %p23410_p10 = scmp.ne.s32.totalorder %s24106_s3, %s23409_s12  ;;  %p23418_p0 = scmp.lt.s32.totalorder %s23409_s12, %s23409_s12 }
 0x1a7   : > { %p23412_p11 = pnand %p23410_p10, %p23908_p7  ;;  %p23419_p1 = por %p23418_p0, %p23417_p13 }
 0x1a9   : > { %p23413_p12 = pneg %p23412_p11 }
 0x1ab   : > { %p23420_p4 = pnand %p23419_p1, %p23413_p12 }
 0x1ad   : > { %23423 = shalt.err (!%p23420_p4)
}
 0x1ae   : > { %s26683_s23 = sld [smem:[#allocation60_spill]]  ;;  %s23699_s16 = smov [#allocation21]  }
 0x1af   : > { %22823 = dma.hbm_to_vmem [thread:$0]  (!%p23896_p5), %s26682_s10, 2304, %s24106_s3, [#allocation17], %s26679_s26, %s26679_s26, %s26678_s1  }
 0x1b0   : > { %s927_s11 = sshll.u32 %s23699_s16, 4  ;;  %s23700_s19 = smov [#allocation24]   ;;  %s928_s11 = int_to_ptr.vmem [resolvable:$true] %s927_s11 }
 0x1b1   : > { %s953_s2 = sshll.u32 %s23700_s19, 4  ;;  %s24139_s2 = int_to_ptr.vmem [resolvable:$true] %s953_s2 }
 0x1b4   : > { %s23424_s7 = scalar_lea.hbm %s26683_s23, 1024 }
 0x1b5   : > { %p23425_p6 = scmp.ne.s32.totalorder %s26683_s23, %s23424_s7  ;;  %p23431_p3 = scmp.lt.u32.totalorder %s23424_s7, %s26683_s23 }
 0x1b7   : > { %p23427_p8 = pnand %p23425_p6, %p23908_p7 }
 0x1b9   : > { %p23428_p2 = pneg %p23427_p8 }
 0x1bb   : > { %p23433_p9 = pnand %p23431_p3, %p23428_p2 }
 0x1bd   : > { %23436 = shalt.err (!%p23433_p9)
}
 0x1be   : > { %s23437_s12 = scalar_lea.vmem %s928_s11, 1024  ;;  %p23445_p13 = scmp.lt.s32.totalorder %s928_s11, %s928_s11 }
 0x1bf   : > { %p23438_p10 = scmp.ne.s32.totalorder %s928_s11, %s23437_s12  ;;  %p23446_p0 = scmp.lt.s32.totalorder %s23437_s12, %s23437_s12 }
 0x1c1   : > { %p23440_p11 = pnand %p23438_p10, %p23908_p7  ;;  %p23447_p1 = por %p23446_p0, %p23445_p13 }
 0x1c3   : > { %p23441_p12 = pneg %p23440_p11 }
 0x1c5   : > { %p23448_p4 = pnand %p23447_p1, %p23441_p12 }
 0x1c7   : > { %23451 = shalt.err (!%p23448_p4)
}
 0x1c8   : > { %s26684_s3 = sld [smem:[#allocation61_spill]] }
 0x1c9   : > { %22829 = dma.hbm_to_vmem [thread:$0]  (!%p23896_p5), %s26683_s23, 1024, %s928_s11, [#allocation20], %s26679_s26, %s26679_s26, %s26678_s1  }
 0x1ce   : > { %s23452_s16 = scalar_lea.hbm %s26684_s3, 4608 }
 0x1cf   : > { %p23453_p6 = scmp.ne.s32.totalorder %s26684_s3, %s23452_s16  ;;  %p23459_p3 = scmp.lt.u32.totalorder %s23452_s16, %s26684_s3 }
 0x1d1   : > { %p23455_p8 = pnand %p23453_p6, %p23908_p7 }
 0x1d3   : > { %p23456_p2 = pneg %p23455_p8 }
 0x1d5   : > { %p23461_p9 = pnand %p23459_p3, %p23456_p2 }
 0x1d7   : > { %23464 = shalt.err (!%p23461_p9)
}
 0x1d8   : > { %s23465_s19 = scalar_lea.vmem %s24139_s2, 4608  ;;  %p23473_p13 = scmp.lt.s32.totalorder %s24139_s2, %s24139_s2 }
 0x1d9   : > { %p23466_p10 = scmp.ne.s32.totalorder %s24139_s2, %s23465_s19  ;;  %p23474_p0 = scmp.lt.s32.totalorder %s23465_s19, %s23465_s19 }
 0x1db   : > { %p23468_p11 = pnand %p23466_p10, %p23908_p7  ;;  %p23475_p1 = por %p23474_p0, %p23473_p13 }
 0x1dd   : > { %p23469_p12 = pneg %p23468_p11 }
 0x1df   : > { %p23476_p4 = pnand %p23475_p1, %p23469_p12 }
 0x1e1   : > { %23479 = shalt.err (!%p23476_p4)
}
 0x1e2   : > { %s26685_s11 = sld [smem:[#allocation64_spill]]  ;;  %s23701_s7 = smov [#allocation27]  }
 0x1e3   : > { %22835 = dma.hbm_to_vmem [thread:$0]  (!%p23896_p5), %s26684_s3, 4608, %s24139_s2, [#allocation23], %s26679_s26, %s26679_s26, %s26678_s1  }
 0x1e4   : > { %s980_s12 = sshll.u32 %s23701_s7, 4  ;;  %s23702_s16 = smov [#allocation30]   ;;  %s981_s12 = int_to_ptr.vmem [resolvable:$true] %s980_s12 }
 0x1e5   : > { %s1007_s6 = sshll.u32 %s23702_s16, 4  ;;  %s24172_s6 = int_to_ptr.vmem [resolvable:$true] %s1007_s6 }
 0x1e8   : > { %s23480_s19 = scalar_lea.hbm %s26685_s11, 2304 }
 0x1e9   : > { %p23481_p6 = scmp.ne.s32.totalorder %s26685_s11, %s23480_s19  ;;  %p23487_p3 = scmp.lt.u32.totalorder %s23480_s19, %s26685_s11 }
 0x1eb   : > { %p23483_p8 = pnand %p23481_p6, %p23908_p7 }
 0x1ed   : > { %p23484_p2 = pneg %p23483_p8 }
 0x1ef   : > { %p23489_p9 = pnand %p23487_p3, %p23484_p2 }
 0x1f1   : > { %23492 = shalt.err (!%p23489_p9)
}
 0x1f2   : > { %s23493_s8 = scalar_lea.vmem %s981_s12, 2304  ;;  %p23501_p13 = scmp.lt.s32.totalorder %s981_s12, %s981_s12 }
 0x1f3   : > { %p23494_p10 = scmp.ne.s32.totalorder %s981_s12, %s23493_s8  ;;  %p23502_p0 = scmp.lt.s32.totalorder %s23493_s8, %s23493_s8 }
 0x1f5   : > { %p23496_p11 = pnand %p23494_p10, %p23908_p7  ;;  %p23503_p1 = por %p23502_p0, %p23501_p13 }
 0x1f7   : > { %p23497_p12 = pneg %p23496_p11 }
 0x1f9   : > { %p23504_p4 = pnand %p23503_p1, %p23497_p12 }
 0x1fb   : > { %23507 = shalt.err (!%p23504_p4)
}
 0x1fc   : > { %s26686_s2 = sld [smem:[#allocation65_spill]] }
 0x1fd   : > { %22841 = dma.hbm_to_vmem [thread:$0]  (!%p23896_p5), %s26685_s11, 2304, %s981_s12, [#allocation26], %s26679_s26, %s26679_s26, %s26678_s1  }
 0x202   : > { %s23508_s7 = scalar_lea.hbm %s26686_s2, 16 }
 0x203   : > { %p23509_p6 = scmp.ne.s32.totalorder %s26686_s2, %s23508_s7  ;;  %p23515_p3 = scmp.lt.u32.totalorder %s23508_s7, %s26686_s2 }
 0x205   : > { %p23511_p8 = pnand %p23509_p6, %p23908_p7 }
 0x207   : > { %p23512_p2 = pneg %p23511_p8 }
 0x209   : > { %p23517_p9 = pnand %p23515_p3, %p23512_p2 }
 0x20b   : > { %23520 = shalt.err (!%p23517_p9)
}
 0x20c   : > { %s23521_s8 = scalar_lea.vmem %s24172_s6, 16  ;;  %s23528_s16 = scalar_lea.vmem %s24172_s6, 32 }
 0x20d   : > { %p23522_p10 = scmp.ne.s32.totalorder %s24172_s6, %s23521_s8  ;;  %p23529_p13 = scmp.lt.s32.totalorder %s24172_s6, %s24172_s6 }
 0x20e   : > { %p23530_p0 = scmp.lt.s32.totalorder %s23528_s16, %s23521_s8 }
 0x20f   : > { %p23524_p11 = pnand %p23522_p10, %p23908_p7 }
 0x210   : > { %p23531_p1 = por %p23530_p0, %p23529_p13 }
 0x211   : > { %p23525_p12 = pneg %p23524_p11 }
 0x213   : > { %p23532_p4 = pnand %p23531_p1, %p23525_p12 }
 0x215   : > { %23535 = shalt.err (!%p23532_p4)
}
 0x216   : > { %22847 = dma.hbm_to_vmem [thread:$0]  (!%p23896_p5), %s26686_s2, 16, %s24172_s6, [#allocation29]  }
 0x217   : > { %s23703_s1 = smov [#allocation33]   ;;  %s23536_s12 = scalar_lea.hbm %s23861_s5, 4096 }
 0x218   : > { %s1030_s26 = sshll.u32 %s23703_s1, 4  ;;  %p23537_p6 = scmp.ne.s32.totalorder %s23861_s5, %s23536_s12  ;;  %s1031_s26 = int_to_ptr.vmem [resolvable:$true] %s1030_s26 }
 0x219   : > { %p23543_p3 = scmp.lt.u32.totalorder %s23536_s12, %s23861_s5 }
 0x21a   : > { %p23539_p8 = pnand %p23537_p6, %p23908_p7 }
 0x21c   : > { %p23540_p2 = pneg %p23539_p8 }
 0x21e   : > { %p23545_p9 = pnand %p23543_p3, %p23540_p2 }
 0x220   : > { %23548 = shalt.err (!%p23545_p9)
}
 0x221   : > { %s23549_s19 = scalar_lea.vmem %s1031_s26, 4096  ;;  %p23557_p13 = scmp.lt.s32.totalorder %s1031_s26, %s1031_s26 }
 0x222   : > { %p23550_p10 = scmp.ne.s32.totalorder %s1031_s26, %s23549_s19  ;;  %p23558_p0 = scmp.lt.s32.totalorder %s23549_s19, %s23549_s19 }
 0x224   : > { %p23552_p11 = pnand %p23550_p10, %p23908_p7  ;;  %p23559_p1 = por %p23558_p0, %p23557_p13 }
 0x226   : > { %p23553_p12 = pneg %p23552_p11 }
 0x228   : > { %p23560_p4 = pnand %p23559_p1, %p23553_p12 }
 0x22a   : > { %23563 = shalt.err (!%p23560_p4)
}
 0x22b   : > { %s23704_s6 = smov 512   ;;  %s23705_s7 = smov 32  }
 0x22c   : > { %22853 = dma.hbm_to_vmem [thread:$0]  (!%p23896_p5), %s23861_s5, 4096, %s1031_s26, [#allocation32], %s23704_s6, %s23704_s6, %s23705_s7  }
 0x22d   : > { %s23706_s8 = smov [#allocation34]   ;;  %s23564_s1 = scalar_lea.hbm %s23866_s4, 64 }
 0x22e   : > { %s1044_s16 = sshll.u32 %s23706_s8, 4  ;;  %p23565_p6 = scmp.ne.s32.totalorder %s23866_s4, %s23564_s1  ;;  %s1045_s16 = int_to_ptr.vmem [resolvable:$true] %s1044_s16 }
 0x22f   : > { %p23571_p3 = scmp.lt.u32.totalorder %s23564_s1, %s23866_s4 }
 0x230   : > { %p23567_p8 = pnand %p23565_p6, %p23908_p7 }
 0x232   : > { %p23568_p2 = pneg %p23567_p8 }
 0x234   : > { %p23573_p9 = pnand %p23571_p3, %p23568_p2 }
 0x236   : > { %23576 = shalt.err (!%p23573_p9)
}
 0x237   : > { %s23577_s12 = scalar_lea.vmem %s1045_s16, 64  ;;  %p23585_p13 = scmp.lt.s32.totalorder %s1045_s16, %s1045_s16 }
 0x238   : > { %p23578_p10 = scmp.ne.s32.totalorder %s1045_s16, %s23577_s12  ;;  %p23586_p0 = scmp.lt.s32.totalorder %s23577_s12, %s23577_s12 }
 0x23a   : > { %p23580_p11 = pnand %p23578_p10, %p23908_p7  ;;  %p23587_p1 = por %p23586_p0, %p23585_p13 }
 0x23c   : > { %p23581_p12 = pneg %p23580_p11 }
 0x23e   : > { %p23588_p4 = pnand %p23587_p1, %p23581_p12 }
 0x240   : > { %23591 = shalt.err (!%p23588_p4)
}
 0x241   : > { %22856 = dma.hbm_to_vmem [thread:$0]  (!%p23896_p5), %s23866_s4, 64, %s1045_s16, [#allocation35]  }
 0x242   : > { %p26687_p6 = scmp.ne.s32.totalorder %s26675_s22, 0 }
 0x244   : > { %1065 = sbr.rel (%p26687_p6) target bundleno = 6551 (0x1997), region = 140 }
 0x24b   : > { %p26688_p8 = scmp.eq.s32.totalorder %s23879_s18, 0 }
 0x24d   : > { %23597 = dma.done.wait (%p26688_p8), [#allocation3], 768   ;;  %p26689_p2 = pmov %p26688_p8 }
 0x24f   : > { %23599 = vsyncadd (%p26689_p2), [#allocation3], 4294966528  ;;  %p26690_p7 = pmov %p26689_p2 }
 0x250   : > { %p26691_p3 = pmov %p26689_p2 }
 0x251   : > { %23601 = dma.done.wait (%p26690_p7), [#allocation5], 16384  }
 0x252   : > { %23603 = vsyncadd (%p26691_p3), [#allocation5], 4294950912  ;;  %p26692_p9 = pmov %p26689_p2 }
 0x253   : > { %p26693_p5 = pmov %p26689_p2 }
 0x254   : > { %23605 = dma.done.wait (%p26692_p9), [#allocation8], 256  }
 0x255   : > { %23607 = vsyncadd (%p26693_p5), [#allocation8], 4294967040  ;;  %p26694_p10 = pmov %p26689_p2 }
 0x256   : > { %p26695_p11 = pmov %p26689_p2 }
 0x257   : > { %23609 = dma.done.wait (%p26694_p10), [#allocation11], 76032  }
 0x258   : > { %23611 = vsyncadd (%p26695_p11), [#allocation11], 4294891264  ;;  %p26696_p12 = pmov %p26689_p2 }
 0x259   : > { %p26697_p13 = pmov %p26689_p2 }
 0x25a   : > { %23613 = dma.done.wait (%p26696_p12), [#allocation14], 8208  }
 0x25b   : > { %23615 = vsyncadd (%p26697_p13), [#allocation14], 4294959088  ;;  %p26698_p0 = pmov %p26689_p2 }
 0x25d   : > { %23617 = dma.done.wait (%p26698_p0), [#allocation17], 11520   ;;  %p26699_p1 = pmov %p26698_p0 }
 0x25e   : > { %p26700_p4 = pmov %p26698_p0 }
 0x25f   : > { %23619 = vsyncadd (%p26699_p1), [#allocation17], 4294955776 }
 0x260   : > { %23621 = dma.done.wait (%p26700_p4), [#allocation20], 1040   ;;  %p26701_p6 = pmov %p26698_p0 }
 0x261   : > { %p26702_p8 = pmov %p26698_p0 }
 0x262   : > { %23623 = vsyncadd (%p26701_p6), [#allocation20], 4294966256 }
 0x263   : > { %23625 = dma.done.wait (%p26702_p8), [#allocation23], 6912   ;;  %p26703_p2 = pmov %p26698_p0 }
 0x264   : > { %p26704_p7 = pmov %p26698_p0 }
 0x265   : > { %23627 = vsyncadd (%p26703_p2), [#allocation23], 4294960384 }
 0x266   : > { %23629 = dma.done.wait (%p26704_p7), [#allocation26], 2320   ;;  %p26705_p3 = pmov %p26698_p0 }
 0x267   : > { %p26706_p9 = pmov %p26698_p0 }
 0x268   : > { %23631 = vsyncadd (%p26705_p3), [#allocation26], 4294964976 }
 0x269   : > { %23633 = dma.done.wait (%p26706_p9), [#allocation29], 4624   ;;  %p26707_p5 = pmov %p26698_p0 }
 0x26a   : > { %p26708_p10 = pmov %p26698_p0 }
 0x26b   : > { %23635 = vsyncadd (%p26707_p5), [#allocation29], 4294962672 }
 0x26c   : > { %23637 = dma.done.wait (%p26708_p10), [#allocation32], 4160   ;;  %p26709_p11 = pmov %p26698_p0 }
 0x26d   : > { %p26710_p12 = pmov %p26698_p0 }
 0x26e   : > { %23639 = vsyncadd (%p26709_p11), [#allocation32], 4294963136 }
 0x26f   : > { %23641 = dma.done.wait (%p26710_p12), [#allocation35], 64   ;;  %p26711_p13 = pmov %p26698_p0 }
 0x270   : > { %s26712_s22 = sld [smem:[#allocation48_spill]]  ;;  %p1226_p0 = scmp.lt.s32.totalorder %s23879_s18, 3  ;;  %v23707_v0 = vmov 0   ;;  %v1241_v9 = vld [vmem:[#allocation2] sm:$0xff]  ;;  %vm1247_vm0 = vcmask 392192   ;;  %v1242_v16 = vld [vmem:[#allocation2 + $0x8] sm:$0xff] }
 0x271   : > { %23643 = vsyncadd (%p26711_p13), [#allocation35], 4294967232  ;;  %22975 = vset.pattern.permute.xlu1 %v23707_v0  ;;  %22974 = vset.pattern.permute.xlu0 %v23707_v0  ;;  %s26713_s28 = sld [smem:[#allocation49_spill]]  ;;  %s26714_s19 = sld [smem:[#allocation53_spill]]  ;;  %v1243_v18 = vld [vmem:[#allocation2 + $0x10] sm:$0xff]  ;;  %v1244_v22 = vld [vmem:[#allocation2 + $0x18] sm:$0xff] }
 0x272   : > { %s26816_s18 = smov (!%p1226_p0, %s23879_s18), 3  ;;  %19466 = vmatprep.mubr.msk.f32.mxu0 %vm1247_vm0, %v1241_v9  ;;  %v1245_v24 = vld [vmem:[#allocation2 + $0x20] sm:$0xff]  ;;  %v1246_v28 = vld [vmem:[#allocation2 + $0x28] sm:$0xff]  ;;  %s26715_s6 = sld [smem:[#allocation50_spill]]  ;;  %vm3479_vm1 = vcmask 64512   ;;  %vm4706_vm2 = vcmask 130048  }
 0x273   : > { %s22701_s0 = smul.u32 48, %s26816_s18  ;;  %s26716_s7 = sld [smem:[#allocation52_spill]]  ;;  %vm10429_vm3 = vcmask 523264   ;;  %vm13438_vm4 = vcmask 261120   ;;  %vm15159_vm5 = vcmask 72704   ;;  %vm15166_vm6 = vcmask 1040384  }
 0x274   : > { %s26717_s8 = sld [smem:[#allocation55_spill]]  ;;  %s26718_s16 = sld [smem:[#allocation51_spill]]  ;;  %vm23709_vm7 = vmmov 1   ;;  %vm23710_vm9 = vmmov 0  }
 0x275   : > { %s26812_s1 = sld [smem:[#allocation63_spill]]  ;;  %vm26466_vm8 = vmpackc.low %vm15166_vm6, %vm23709_vm7  ;;  %s17602_s12 = sshll.u32 %s26816_s18, 2 }
 0x276   : > { %s1230_s26 = scalar_lea.vmem %s26712_s22, %s22701_s0  ;;  %s1234_s22 = scalar_lea.vmem %s23871_s14, %s17602_s12 }
 0x277   : > { %v1235_v1 = vld [vmem:[%s1230_s26] sm:$0xff]  ;;  %v1236_v2 = vld [vmem:[%s1230_s26 + $0x8] sm:$0xff]  ;;  %v1237_v3 = vld [vmem:[%s1230_s26 + $0x10] sm:$0xff] }
 0x278   : > { %v21015_v4 = vpack.c.bf16 %v1236_v2, %v1235_v1  ;;  %v1238_v5 = vld [vmem:[%s1230_s26 + $0x18] sm:$0xff]  ;;  %v1239_v7 = vld [vmem:[%s1230_s26 + $0x20] sm:$0xff]  ;;  %v1240_v8 = vld [vmem:[%s1230_s26 + $0x28] sm:$0xff] }
 0x279   : > { %v21019_v6 = vpack.c.bf16 %v1238_v5, %v1237_v3  ;;  %v1361_v10 = vld [vmem:[%s26713_s28] sm:$0xff]  ;;  %v21023_v11 = vpack.c.bf16 %v1240_v8, %v1239_v7  ;;  %v2453_v12 = vld [vmem:[%s26714_s19 + $0x10] sm:$0xff]  ;;  %v2454_v14 = vld [vmem:[%s26714_s19 + $0x18] sm:$0xff] }
 0x27a   : > { %21016 = vmatprep.subr.bf16.mxu0 %v21015_v4  ;;  %21028 = vmatprep.subr.bf16.mxu1 %v21015_v4  ;;  %v2451_v13 = vld [vmem:[%s26714_s19] sm:$0xff]  ;;  %v2452_v15 = vld [vmem:[%s26714_s19 + $0x8] sm:$0xff]  ;;  %v1363_v19 = vld [vmem:[%s26713_s28 + $0x10] sm:$0xff] }
 0x27b   : > { %21018 = vmatpush3.bf16.msra.mxu0 %v21015_v4  ;;  %21030 = vmatpush3.bf16.msra.mxu1 %v21015_v4  ;;  %v1362_v17 = vld [vmem:[%s26713_s28 + $0x8] sm:$0xff]  ;;  %v2455_v21 = vld [vmem:[%s26714_s19 + $0x20] sm:$0xff]  ;;  %v1364_v23 = vld [vmem:[%s26713_s28 + $0x18] sm:$0xff] }
 0x27c   : > { %21020 = vmatprep.subr.bf16.mxu0 %v21019_v6  ;;  %21032 = vmatprep.subr.bf16.mxu1 %v21019_v6  ;;  %v2456_v20 = vld [vmem:[%s26714_s19 + $0x28] sm:$0xff]  ;;  %v1365_v25 = vld [vmem:[%s26713_s28 + $0x20] sm:$0xff]  ;;  %v2458_v26 = vld [vmem:[%s26714_s19 + $0x38] sm:$0xff] }
 0x27d   : > { %19487 = vmatprep.mubr.msk.f32.mxu1 %vm1247_vm0, %v1361_v10  ;;  %2591 = vperm.xlu1 %22975, %v2453_v12   ;;  %v2457_v27 = vld [vmem:[%s26714_s19 + $0x30] sm:$0xff]  ;;  %v1366_v29 = vld [vmem:[%s26713_s28 + $0x28] sm:$0xff]  ;;  %v2459_v32 = vld [vmem:[%s26714_s19 + $0x40] sm:$0xff] }
 0x27e   : > { %2581 = vperm.xlu0 %22974, %v2451_v13   ;;  %v1367_v30 = vld [vmem:[%s26713_s28 + $0x30] sm:$0xff]  ;;  %v2460_v31 = vld [vmem:[%s26714_s19 + $0x48] sm:$0xff]  ;;  %v1368_v33 = vld [vmem:[%s26713_s28 + $0x38] sm:$0xff] }
 0x27f   : > { %21022 = vmatpush3.bf16.msra.mxu0 %v21019_v6  ;;  %21034 = vmatpush3.bf16.msra.mxu1 %v21019_v6  ;;  %v1369_v34 = vld [vmem:[%s26713_s28 + $0x40] sm:$0xff]  ;;  %v2462_v35 = vld [vmem:[%s26714_s19 + $0x58] sm:$0xff]  ;;  %v2461_v36 = vld [vmem:[%s26714_s19 + $0x50] sm:$0xff] }
 0x280   : > { %21024 = vmatprep.subr.bf16.mxu0 %v21023_v11  ;;  %21036 = vmatprep.subr.bf16.mxu1 %v21023_v11  ;;  %v1370_v37 = vld [vmem:[%s26713_s28 + $0x48] sm:$0xff]  ;;  %v1371_v38 = vld [vmem:[%s26713_s28 + $0x50] sm:$0xff]  ;;  %v2463_v40 = vld [vmem:[%s26714_s19 + $0x60] sm:$0xff] }
 0x281   : > { %2596 = vperm.xlu1 %22975, %v2454_v14   ;;  %v2464_v39 = vld [vmem:[%s26714_s19 + $0x68] sm:$0xff]  ;;  %v1372_v41 = vld [vmem:[%s26713_s28 + $0x58] sm:$0xff]  ;;  %v1373_v42 = vld [vmem:[%s26713_s28 + $0x60] sm:$0xff] }
 0x282   : > { %2586 = vperm.xlu0 %22974, %v2452_v15   ;;  %v2466_v43 = vld [vmem:[%s26714_s19 + $0x78] sm:$0xff]  ;;  %v2465_v44 = vld [vmem:[%s26714_s19 + $0x70] sm:$0xff]  ;;  %v1374_v45 = vld [vmem:[%s26713_s28 + $0x68] sm:$0xff] }
 0x283   : > { %21026 = vmatpush3.bf16.msra.mxu0 %v21023_v11  ;;  %21038 = vmatpush3.bf16.msra.mxu1 %v21023_v11  ;;  %v1375_v46 = vld [vmem:[%s26713_s28 + $0x70] sm:$0xff]  ;;  %v2468_v47 = vld [vmem:[%s26714_s19 + $0x88] sm:$0xff]  ;;  %v2467_v48 = vld [vmem:[%s26714_s19 + $0x80] sm:$0xff] }
 0x284   : > { %v1376_v49 = vld [vmem:[%s26713_s28 + $0x78] sm:$0xff]  ;;  %v1377_v50 = vld [vmem:[%s26713_s28 + $0x80] sm:$0xff]  ;;  %v2469_v52 = vld [vmem:[%s26714_s19 + $0x90] sm:$0xff] }
 0x285   : > { %2606 = vperm.xlu1 %22975, %v2456_v20   ;;  %v2470_v51 = vld [vmem:[%s26714_s19 + $0x98] sm:$0xff]  ;;  %v1378_v53 = vld [vmem:[%s26713_s28 + $0x88] sm:$0xff]  ;;  %v1379_v54 = vld [vmem:[%s26713_s28 + $0x90] sm:$0xff] }
 0x286   : > { %19467 = vmatmul.mubr.msk.f32.vlgmr.msra.gmra.mrb[0].mxu0 %vm1247_vm0, %v1242_v16  ;;  %19488 = vmatmul.mubr.msk.f32.vlgmr.msra.gmra.mrb[0].mxu1 %vm1247_vm0, %v1362_v17  ;;  %v2472_v55 = vld [vmem:[%s26714_s19 + $0xa8] sm:$0xff]  ;;  %v2471_v56 = vld [vmem:[%s26714_s19 + $0xa0] sm:$0xff]  ;;  %v1380_v57 = vld [vmem:[%s26713_s28 + $0x98] sm:$0xff] }
 0x287   : > { %19469 = vmatprep.mubr.msk.f32.mxu0 %vm1247_vm0, %v1243_v18  ;;  %19490 = vmatprep.mubr.msk.f32.mxu1 %vm1247_vm0, %v1363_v19  ;;  %v1381_v58 = vld [vmem:[%s26713_s28 + $0xa0] sm:$0xff]  ;;  %v2474_v59 = vld [vmem:[%s26714_s19 + $0xb8] sm:$0xff]  ;;  %v2473_v60 = vld [vmem:[%s26714_s19 + $0xb0] sm:$0xff] }
 0x288   : > { %2601 = vperm.xlu0 %22974, %v2455_v21   ;;  %v1382_v61 = vld [vmem:[%s26713_s28 + $0xa8] sm:$0xff]  ;;  %v1383_v62 = vld [vmem:[%s26713_s28 + $0xb0] sm:$0xff]  ;;  %v2475_v0 = vld [vmem:[%s26714_s19 + $0xc0] sm:$0xff] }
 0x289   : > { %2616 = vperm.xlu1 %22975, %v2458_v26   ;;  %v2476_v63 = vld [vmem:[%s26714_s19 + $0xc8] sm:$0xff]  ;;  %v1384_v1 = vld [vmem:[%s26713_s28 + $0xb8] sm:$0xff]  ;;  %v1385_v2 = vld [vmem:[%s26713_s28 + $0xc0] sm:$0xff] }
 0x28a   : > { %19470 = vmatmul.mubr.msk.f32.gmra.mrb[2].mxu0 %vm1247_vm0, %v1244_v22  ;;  %19491 = vmatmul.mubr.msk.f32.gmra.mrb[2].mxu1 %vm1247_vm0, %v1364_v23  ;;  %v2478_v3 = vld [vmem:[%s26714_s19 + $0xd8] sm:$0xff]  ;;  %v2477_v4 = vld [vmem:[%s26714_s19 + $0xd0] sm:$0xff]  ;;  %v1386_v5 = vld [vmem:[%s26713_s28 + $0xc8] sm:$0xff] }
 0x28b   : > { %19472 = vmatprep.mubr.msk.f32.mxu0 %vm1247_vm0, %v1245_v24  ;;  %19493 = vmatprep.mubr.msk.f32.mxu1 %vm1247_vm0, %v1365_v25  ;;  %v1387_v6 = vld [vmem:[%s26713_s28 + $0xd0] sm:$0xff]  ;;  %v2480_v7 = vld [vmem:[%s26714_s19 + $0xe8] sm:$0xff]  ;;  %v2479_v8 = vld [vmem:[%s26714_s19 + $0xe0] sm:$0xff] }
 0x28c   : > { %2611 = vperm.xlu0 %22974, %v2457_v27   ;;  %v1388_v9 = vld [vmem:[%s26713_s28 + $0xd8] sm:$0xff]  ;;  %v1389_v10 = vld [vmem:[%s26713_s28 + $0xe0] sm:$0xff]  ;;  %v2481_v12 = vld [vmem:[%s26714_s19 + $0xf0] sm:$0xff] }
 0x28d   : > { %2626 = vperm.xlu1 %22975, %v2460_v31   ;;  %v2482_v11 = vld [vmem:[%s26714_s19 + $0xf8] sm:$0xff]  ;;  %v1390_v13 = vld [vmem:[%s26713_s28 + $0xe8] sm:$0xff]  ;;  %v1391_v14 = vld [vmem:[%s26713_s28 + $0xf0] sm:$0xff] }
 0x28e   : > { %19473 = vmatmul.mubr.msk.f32.gmra.mrb[4].mxu0 %vm1247_vm0, %v1246_v28  ;;  %19494 = vmatmul.mubr.msk.f32.gmra.mrb[4].mxu1 %vm1247_vm0, %v1366_v29  ;;  %v1394_v15 = vld [vmem:[%s26715_s6 + $0x8] sm:$0xff]  ;;  %v1393_v16 = vld [vmem:[%s26715_s6] sm:$0xff]  ;;  %v1392_v17 = vld [vmem:[%s26713_s28 + $0xf8] sm:$0xff] }
 0x28f   : > { %19496 = vmatprep.mubr.msk.f32.mxu1 %vm1247_vm0, %v1367_v30  ;;  %v1396_v18 = vld [vmem:[%s26715_s6 + $0x18] sm:$0xff]  ;;  %v1395_v19 = vld [vmem:[%s26715_s6 + $0x10] sm:$0xff]  ;;  %v1398_v20 = vld [vmem:[%s26715_s6 + $0x28] sm:$0xff] }
 0x290   : > { %2621 = vperm.xlu0 %22974, %v2459_v32   ;;  %v1397_v21 = vld [vmem:[%s26715_s6 + $0x20] sm:$0xff]  ;;  %v1400_v22 = vld [vmem:[%s26715_s6 + $0x38] sm:$0xff]  ;;  %v1399_v23 = vld [vmem:[%s26715_s6 + $0x30] sm:$0xff] }
 0x291   : > { %2636 = vperm.xlu1 %22975, %v2462_v35   ;;  %v1402_v24 = vld [vmem:[%s26715_s6 + $0x48] sm:$0xff]  ;;  %v1401_v25 = vld [vmem:[%s26715_s6 + $0x40] sm:$0xff]  ;;  %v1404_v26 = vld [vmem:[%s26715_s6 + $0x58] sm:$0xff] }
 0x292   : > { %19497 = vmatmul.mubr.msk.f32.gmra.mrb[6].mxu1 %vm1247_vm0, %v1368_v33  ;;  %v1403_v27 = vld [vmem:[%s26715_s6 + $0x50] sm:$0xff]  ;;  %v1406_v28 = vld [vmem:[%s26715_s6 + $0x68] sm:$0xff]  ;;  %v1405_v29 = vld [vmem:[%s26715_s6 + $0x60] sm:$0xff] }
 0x293   : > { %19499 = vmatprep.mubr.msk.f32.mxu1 %vm1247_vm0, %v1369_v34  ;;  %v1408_v30 = vld [vmem:[%s26715_s6 + $0x78] sm:$0xff]  ;;  %v1407_v31 = vld [vmem:[%s26715_s6 + $0x70] sm:$0xff]  ;;  %v1410_v32 = vld [vmem:[%s26715_s6 + $0x88] sm:$0xff]  ;;  %v26630_v34 = vmov 0.0|0.0  }
 0x294   : > { %2631 = vperm.xlu0 %22974, %v2461_v36   ;;  %v1409_v33 = vld [vmem:[%s26715_s6 + $0x80] sm:$0xff]  ;;  %21039 = vmatprep.subr.bf16.mxu0 %v26630_v34  ;;  %v1412_v35 = vld [vmem:[%s26715_s6 + $0x98] sm:$0xff]  ;;  %v1411_v36 = vld [vmem:[%s26715_s6 + $0x90] sm:$0xff] }
 0x295   : > { %2646 = vperm.xlu1 %22975, %v2464_v39   ;;  %v2419_v39 = vld [vmem:[%s26716_s7] sm:$0xff] }
 0x296   : > { %19500 = vmatmul.mubr.msk.f32.gmra.mrb[8].mxu1 %vm1247_vm0, %v1370_v37  ;;  %v1414_v37 = vld [vmem:[%s26715_s6 + $0xa8] sm:$0xff] }
 0x297   : > { %19502 = vmatprep.mubr.msk.f32.mxu1 %vm1247_vm0, %v1371_v38  ;;  %v1413_v38 = vld [vmem:[%s26715_s6 + $0xa0] sm:$0xff] }
 0x298   : > { %2641 = vperm.xlu0 %22974, %v2463_v40   ;;  %v1416_v40 = vld [vmem:[%s26715_s6 + $0xb8] sm:$0xff] }
 0x299   : > { %2656 = vperm.xlu1 %22975, %v2466_v43   ;;  %v1417_v43 = vld [vmem:[%s26715_s6 + $0xc0] sm:$0xff] }
 0x29a   : > { %19503 = vmatmul.mubr.msk.f32.gmra.mrb[10].mxu1 %vm1247_vm0, %v1372_v41  ;;  %v1415_v41 = vld [vmem:[%s26715_s6 + $0xb0] sm:$0xff] }
 0x29b   : > { %19505 = vmatprep.mubr.msk.f32.mxu1 %vm1247_vm0, %v1373_v42  ;;  %v1418_v42 = vld [vmem:[%s26715_s6 + $0xc8] sm:$0xff] }
 0x29c   : > { %2651 = vperm.xlu0 %22974, %v2465_v44   ;;  %v1420_v44 = vld [vmem:[%s26715_s6 + $0xd8] sm:$0xff] }
 0x29d   : > { %2666 = vperm.xlu1 %22975, %v2468_v47   ;;  %v1421_v47 = vld [vmem:[%s26715_s6 + $0xe0] sm:$0xff] }
 0x29e   : > { %19506 = vmatmul.mubr.msk.f32.gmra.mrb[12].mxu1 %vm1247_vm0, %v1374_v45  ;;  %v1419_v45 = vld [vmem:[%s26715_s6 + $0xd0] sm:$0xff] }
 0x29f   : > { %19508 = vmatprep.mubr.msk.f32.mxu1 %vm1247_vm0, %v1375_v46  ;;  %v1422_v46 = vld [vmem:[%s26715_s6 + $0xe8] sm:$0xff] }
 0x2a0   : > { %2661 = vperm.xlu0 %22974, %v2467_v48   ;;  %v1424_v48 = vld [vmem:[%s26715_s6 + $0xf8] sm:$0xff] }
 0x2a1   : > { %2676 = vperm.xlu1 %22975, %v2470_v51   ;;  %v2548_v51 = vld [vmem:[%s26717_s8 + $0x8] sm:$0xff] }
 0x2a2   : > { %19509 = vmatmul.mubr.msk.f32.gmra.mrb[14].mxu1 %vm1247_vm0, %v1376_v49  ;;  %v1423_v49 = vld [vmem:[%s26715_s6 + $0xf0] sm:$0xff] }
 0x2a3   : > { %19511 = vmatprep.mubr.msk.f32.mxu1 %vm1247_vm0, %v1377_v50  ;;  %v2547_v50 = vld [vmem:[%s26717_s8] sm:$0xff] }
 0x2a4   : > { %2671 = vperm.xlu0 %22974, %v2469_v52  }
 0x2a5   : > { %2686 = vperm.xlu1 %22975, %v2472_v55   ;;  %v2550_v55 = vld [vmem:[%s26717_s8 + $0x18] sm:$0xff] }
 0x2a6   : > { %19512 = vmatmul.mubr.msk.f32.gmra.mrb[16].mxu1 %vm1247_vm0, %v1378_v53 }
 0x2a7   : > { %19514 = vmatprep.mubr.msk.f32.mxu1 %vm1247_vm0, %v1379_v54  ;;  %v2549_v54 = vld [vmem:[%s26717_s8 + $0x10] sm:$0xff] }
 0x2a8   : > { %2681 = vperm.xlu0 %22974, %v2471_v56  }
 0x2a9   : > { %2696 = vperm.xlu1 %22975, %v2474_v59   ;;  %v2552_v59 = vld [vmem:[%s26717_s8 + $0x28] sm:$0xff] }
 0x2aa   : > { %19515 = vmatmul.mubr.msk.f32.gmra.mrb[18].mxu1 %vm1247_vm0, %v1380_v57 }
 0x2ab   : > { %19517 = vmatprep.mubr.msk.f32.mxu1 %vm1247_vm0, %v1381_v58  ;;  %v2551_v58 = vld [vmem:[%s26717_s8 + $0x20] sm:$0xff] }
 0x2ac   : > { %2691 = vperm.xlu0 %22974, %v2473_v60  }
 0x2ad   : > { %2706 = vperm.xlu1 %22975, %v2476_v63   ;;  %v2554_v63 = vld [vmem:[%s26717_s8 + $0x38] sm:$0xff] }
 0x2ae   : > { %19518 = vmatmul.mubr.msk.f32.gmra.mrb[20].mxu1 %vm1247_vm0, %v1382_v61 }
 0x2af   : > { %19520 = vmatprep.mubr.msk.f32.mxu1 %vm1247_vm0, %v1383_v62  ;;  %v2553_v62 = vld [vmem:[%s26717_s8 + $0x30] sm:$0xff] }
 0x2b0   : > { %2701 = vperm.xlu0 %22974, %v2475_v0  }
 0x2b1   : > { %2716 = vperm.xlu1 %22975, %v2478_v3   ;;  %v2556_v3 = vld [vmem:[%s26717_s8 + $0x48] sm:$0xff] }
 0x2b2   : > { %19521 = vmatmul.mubr.msk.f32.gmra.mrb[22].mxu1 %vm1247_vm0, %v1384_v1 }
 0x2b3   : > { %19523 = vmatprep.mubr.msk.f32.mxu1 %vm1247_vm0, %v1385_v2  ;;  %v2555_v2 = vld [vmem:[%s26717_s8 + $0x40] sm:$0xff] }
 0x2b4   : > { %2711 = vperm.xlu0 %22974, %v2477_v4  }
 0x2b5   : > { %2726 = vperm.xlu1 %22975, %v2480_v7   ;;  %v2558_v7 = vld [vmem:[%s26717_s8 + $0x58] sm:$0xff] }
 0x2b6   : > { %19524 = vmatmul.mubr.msk.f32.gmra.mrb[24].mxu1 %vm1247_vm0, %v1386_v5 }
 0x2b7   : > { %19526 = vmatprep.mubr.msk.f32.mxu1 %vm1247_vm0, %v1387_v6  ;;  %v2557_v6 = vld [vmem:[%s26717_s8 + $0x50] sm:$0xff] }
 0x2b8   : > { %2721 = vperm.xlu0 %22974, %v2479_v8  }
 0x2b9   : > { %2736 = vperm.xlu1 %22975, %v2482_v11   ;;  %v2560_v11 = vld [vmem:[%s26717_s8 + $0x68] sm:$0xff] }
 0x2ba   : > { %19527 = vmatmul.mubr.msk.f32.gmra.mrb[26].mxu1 %vm1247_vm0, %v1388_v9 }
 0x2bb   : > { %19529 = vmatprep.mubr.msk.f32.mxu1 %vm1247_vm0, %v1389_v10  ;;  %v2559_v10 = vld [vmem:[%s26717_s8 + $0x60] sm:$0xff] }
 0x2bc   : > { %2731 = vperm.xlu0 %22974, %v2481_v12  }
 0x2bd   : > { %1528 = vperm.xlu1 %22975, %v1394_v15   ;;  %v2562_v15 = vld [vmem:[%s26717_s8 + $0x78] sm:$0xff] }
 0x2be   : > { %19530 = vmatmul.mubr.msk.f32.gmra.mrb[28].mxu1 %vm1247_vm0, %v1390_v13 }
 0x2bf   : > { %19532 = vmatprep.mubr.msk.f32.mxu1 %vm1247_vm0, %v1391_v14  ;;  %v2561_v14 = vld [vmem:[%s26717_s8 + $0x70] sm:$0xff] }
 0x2c0   : > { %1523 = vperm.xlu0 %22974, %v1393_v16  }
 0x2c1   : > { %1538 = vperm.xlu1 %22975, %v1396_v18   ;;  %v1426_v18 = vld [vmem:[#allocation4 + $0x8] sm:$0xff] }
 0x2c2   : > { %19533 = vmatmul.mubr.msk.f32.gmra.mrb[30].mxu1 %vm1247_vm0, %v1392_v17  ;;  %2258 = vmatprep.mubr.f32.mxu0 %v1426_v18 }
 0x2c3   : > { %19547 = vmatprep.mubr.msk.f32.mxu1 %vm1247_vm0, %v2419_v39 }
 0x2c4   : > { %1533 = vperm.xlu0 %22974, %v1395_v19   ;;  %v2563_v19 = vld [vmem:[%s26717_s8 + $0x80] sm:$0xff] }
 0x2c5   : > { %1548 = vperm.xlu1 %22975, %v1398_v20   ;;  %v2564_v20 = vld [vmem:[%s26717_s8 + $0x88] sm:$0xff] }
 0x2c8   : > { %1543 = vperm.xlu0 %22974, %v1397_v21  }
 0x2c9   : > { %1558 = vperm.xlu1 %22975, %v1400_v22  }
 0x2cc   : > { %1553 = vperm.xlu0 %22974, %v1399_v23   ;;  %v2565_v23 = vld [vmem:[%s26717_s8 + $0x90] sm:$0xff] }
 0x2cd   : > { %1568 = vperm.xlu1 %22975, %v1402_v24   ;;  %v2566_v24 = vld [vmem:[%s26717_s8 + $0x98] sm:$0xff] }
 0x2d0   : > { %1563 = vperm.xlu0 %22974, %v1401_v25  }
 0x2d1   : > { %1578 = vperm.xlu1 %22975, %v1404_v26  }
 0x2d4   : > { %1573 = vperm.xlu0 %22974, %v1403_v27   ;;  %v2567_v27 = vld [vmem:[%s26717_s8 + $0xa0] sm:$0xff] }
 0x2d5   : > { %1588 = vperm.xlu1 %22975, %v1406_v28   ;;  %v2568_v28 = vld [vmem:[%s26717_s8 + $0xa8] sm:$0xff] }
 0x2d8   : > { %1583 = vperm.xlu0 %22974, %v1405_v29  }
 0x2d9   : > { %1598 = vperm.xlu1 %22975, %v1408_v30  }
 0x2dc   : > { %1593 = vperm.xlu0 %22974, %v1407_v31   ;;  %v2569_v31 = vld [vmem:[%s26717_s8 + $0xb0] sm:$0xff] }
 0x2dd   : > { %1608 = vperm.xlu1 %22975, %v1410_v32   ;;  %v2570_v32 = vld [vmem:[%s26717_s8 + $0xb8] sm:$0xff] }
 0x2e0   : > { %1603 = vperm.xlu0 %22974, %v1409_v33  }
 0x2e1   : > { %1618 = vperm.xlu1 %22975, %v1412_v35  }
 0x2e4   : > { %1613 = vperm.xlu0 %22974, %v1411_v36   ;;  %v2571_v36 = vld [vmem:[%s26717_s8 + $0xc0] sm:$0xff] }
 0x2e5   : > { %1628 = vperm.xlu1 %22975, %v1414_v37   ;;  %v2572_v37 = vld [vmem:[%s26717_s8 + $0xc8] sm:$0xff] }
 0x2e8   : > { %1623 = vperm.xlu0 %22974, %v1413_v38  }
 0x2e9   : > { %1638 = vperm.xlu1 %22975, %v1416_v40   ;;  %v2573_v40 = vld [vmem:[%s26717_s8 + $0xd0] sm:$0xff] }
 0x2ec   : > { %1633 = vperm.xlu0 %22974, %v1415_v41   ;;  %v2574_v41 = vld [vmem:[%s26717_s8 + $0xd8] sm:$0xff] }
 0x2ed   : > { %1648 = vperm.xlu1 %22975, %v1418_v42  }
 0x2f0   : > { %1643 = vperm.xlu0 %22974, %v1417_v43  }
 0x2f1   : > { %1658 = vperm.xlu1 %22975, %v1420_v44   ;;  %v2575_v44 = vld [vmem:[%s26717_s8 + $0xe0] sm:$0xff] }
 0x2f4   : > { %1653 = vperm.xlu0 %22974, %v1419_v45   ;;  %v2576_v45 = vld [vmem:[%s26717_s8 + $0xe8] sm:$0xff] }
 0x2f5   : > { %1668 = vperm.xlu1 %22975, %v1422_v46  }
 0x2f8   : > { %1663 = vperm.xlu0 %22974, %v1421_v47  }
 0x2f9   : > { %1678 = vperm.xlu1 %22975, %v1424_v48   ;;  %v2577_v48 = vld [vmem:[%s26717_s8 + $0xf0] sm:$0xff] }
 0x2fc   : > { %1673 = vperm.xlu0 %22974, %v1423_v49   ;;  %v24418_v52 = vpop.permute.xlu1 %2591  ;;  %v2578_v49 = vld [vmem:[%s26717_s8 + $0xf8] sm:$0xff] }
 0x2fd   : > { %v24420_v53 = vpop.permute.xlu0 %2581  ;;  %3099 = vperm.xlu1 %22975, %v2548_v51  }
 0x300   : > { %3094 = vperm.xlu0 %22974, %v2547_v50   ;;  %v24424_v56 = vpop.permute.xlu1 %2596 }
 0x301   : > { %v24426_v57 = vpop.permute.xlu0 %2586  ;;  %3109 = vperm.xlu1 %22975, %v2550_v55   ;;  %v1490_v55 = vld [vmem:[%s26718_s16 + $0x8] sm:$0xff] }
 0x304   : > { %3104 = vperm.xlu0 %22974, %v2549_v54   ;;  %v24430_v60 = vpop.permute.xlu1 %2606  ;;  %v1489_v54 = vld [vmem:[%s26718_s16] sm:$0xff] }
 0x305   : > { %3119 = vperm.xlu1 %22975, %v2552_v59  }
 0x307   : > { %v24432_v61 = vpop.permute.xlu0 %2601 }
 0x308   : > { %3114 = vperm.xlu0 %22974, %v2551_v58   ;;  %v24436_v0 = vpop.permute.xlu1 %2616 }
 0x309   : > { %3129 = vperm.xlu1 %22975, %v2554_v63   ;;  %v1492_v63 = vld [vmem:[%s26718_s16 + $0x18] sm:$0xff] }
 0x30b   : > { %v24438_v1 = vpop.permute.xlu0 %2611 }
 0x30c   : > { %3124 = vperm.xlu0 %22974, %v2553_v62   ;;  %v24442_v4 = vpop.permute.xlu1 %2626  ;;  %v1491_v62 = vld [vmem:[%s26718_s16 + $0x10] sm:$0xff] }
 0x30d   : > { %3139 = vperm.xlu1 %22975, %v2556_v3  }
 0x30f   : > { %v24444_v5 = vpop.permute.xlu0 %2621 }
 0x310   : > { %3134 = vperm.xlu0 %22974, %v2555_v2   ;;  %v24448_v8 = vpop.permute.xlu1 %2636 }
 0x311   : > { %3149 = vperm.xlu1 %22975, %v2558_v7   ;;  %v1494_v7 = vld [vmem:[%s26718_s16 + $0x28] sm:$0xff] }
 0x313   : > { %v24450_v9 = vpop.permute.xlu0 %2631 }
 0x314   : > { %3144 = vperm.xlu0 %22974, %v2557_v6   ;;  %v24454_v12 = vpop.permute.xlu1 %2646  ;;  %v1493_v6 = vld [vmem:[%s26718_s16 + $0x20] sm:$0xff] }
 0x315   : > { %3159 = vperm.xlu1 %22975, %v2560_v11  }
 0x317   : > { %v24456_v13 = vpop.permute.xlu0 %2641 }
 0x318   : > { %3154 = vperm.xlu0 %22974, %v2559_v10   ;;  %v24460_v16 = vpop.permute.xlu1 %2656 }
 0x319   : > { %3169 = vperm.xlu1 %22975, %v2562_v15   ;;  %v1496_v15 = vld [vmem:[%s26718_s16 + $0x38] sm:$0xff] }
 0x31b   : > { %v24462_v17 = vpop.permute.xlu0 %2651 }
 0x31c   : > { %3164 = vperm.xlu0 %22974, %v2561_v14   ;;  %v24466_v21 = vpop.permute.xlu1 %2666  ;;  %v1495_v14 = vld [vmem:[%s26718_s16 + $0x30] sm:$0xff] }
 0x31d   : > { %3179 = vperm.xlu1 %22975, %v2564_v20   ;;  %v1497_v20 = vld [vmem:[%s26718_s16 + $0x40] sm:$0xff] }
 0x31f   : > { %v24468_v22 = vpop.permute.xlu0 %2661 }
 0x320   : > { %3174 = vperm.xlu0 %22974, %v2563_v19   ;;  %v24472_v25 = vpop.permute.xlu1 %2676 }
 0x321   : > { %3189 = vperm.xlu1 %22975, %v2566_v24  }
 0x323   : > { %v24474_v26 = vpop.permute.xlu0 %2671 }
 0x324   : > { %3184 = vperm.xlu0 %22974, %v2565_v23   ;;  %v24478_v29 = vpop.permute.xlu1 %2686  ;;  %v1498_v23 = vld [vmem:[%s26718_s16 + $0x48] sm:$0xff] }
 0x325   : > { %3199 = vperm.xlu1 %22975, %v2568_v28   ;;  %v1499_v28 = vld [vmem:[%s26718_s16 + $0x50] sm:$0xff] }
 0x327   : > { %v24480_v30 = vpop.permute.xlu0 %2681 }
 0x328   : > { %3194 = vperm.xlu0 %22974, %v2567_v27   ;;  %v24484_v33 = vpop.permute.xlu1 %2696 }
 0x329   : > { %3209 = vperm.xlu1 %22975, %v2570_v32  }
 0x32b   : > { %v24486_v35 = vpop.permute.xlu0 %2691 }
 0x32c   : > { %3204 = vperm.xlu0 %22974, %v2569_v31   ;;  %v24490_v38 = vpop.permute.xlu1 %2706  ;;  %v1500_v31 = vld [vmem:[%s26718_s16 + $0x58] sm:$0xff] }
 0x32d   : > { %3219 = vperm.xlu1 %22975, %v2572_v37   ;;  %v1501_v37 = vld [vmem:[%s26718_s16 + $0x60] sm:$0xff] }
 0x32f   : > { %v24492_v39 = vpop.permute.xlu0 %2701 }
 0x330   : > { %3214 = vperm.xlu0 %22974, %v2571_v36   ;;  %v24496_v42 = vpop.permute.xlu1 %2716 }
 0x331   : > { %3229 = vperm.xlu1 %22975, %v2574_v41  }
 0x333   : > { %v24498_v43 = vpop.permute.xlu0 %2711 }
 0x334   : > { %3224 = vperm.xlu0 %22974, %v2573_v40   ;;  %v24502_v46 = vpop.permute.xlu1 %2726  ;;  %v1502_v40 = vld [vmem:[%s26718_s16 + $0x68] sm:$0xff] }
 0x335   : > { %3239 = vperm.xlu1 %22975, %v2576_v45  }
 0x337   : > { %v24504_v47 = vpop.permute.xlu0 %2721 }
 0x338   : > { %3234 = vperm.xlu0 %22974, %v2575_v44   ;;  %v24508_v50 = vpop.permute.xlu1 %2736 }
 0x339   : > { %3249 = vperm.xlu1 %22975, %v2578_v49  }
 0x33b   : > { %v24510_v51 = vpop.permute.xlu0 %2731 }
 0x33c   : > { %3244 = vperm.xlu0 %22974, %v2577_v48   ;;  %v1529_v58 = vpop.permute.xlu1 %1528 }
 0x33d   : > { %2041 = vperm.xlu1 %22975, %v1490_v55  }
 0x33f   : > { %v1524_v59 = vpop.permute.xlu0 %1523 }
 0x340   : > { %2036 = vperm.xlu0 %22974, %v1489_v54   ;;  %v1539_v2 = vpop.permute.xlu1 %1538  ;;  %v1503_v54 = vld [vmem:[%s26718_s16 + $0x70] sm:$0xff] }
 0x341   : > { %2051 = vperm.xlu1 %22975, %v1492_v63   ;;  %v1504_v63 = vld [vmem:[%s26718_s16 + $0x78] sm:$0xff] }
 0x343   : > { %v1534_v3 = vpop.permute.xlu0 %1533 }
 0x344   : > { %2046 = vperm.xlu0 %22974, %v1491_v62   ;;  %v1549_v10 = vpop.permute.xlu1 %1548 }
 0x345   : > { %2061 = vperm.xlu1 %22975, %v1494_v7  }
 0x347   : > { %v24518_v11 = vpop.permute.xlu0 %1543 }
 0x348   : > { %2056 = vperm.xlu0 %22974, %v1493_v6   ;;  %v24522_v18 = vpop.permute.xlu1 %1558 }
 0x349   : > { %2071 = vperm.xlu1 %22975, %v1496_v15  }
 0x34b   : > { %v24524_v19 = vpop.permute.xlu0 %1553 }
 0x34c   : > { %2066 = vperm.xlu0 %22974, %v1495_v14   ;;  %v24528_v24 = vpop.permute.xlu1 %1568 }
 0x34d   : > { %2081 = vperm.xlu1 %22975, %v1498_v23  }
 0x34f   : > { %v24530_v27 = vpop.permute.xlu0 %1563 }
 0x350   : > { %2076 = vperm.xlu0 %22974, %v1497_v20   ;;  %v24534_v32 = vpop.permute.xlu1 %1578 }
 0x351   : > { %2091 = vperm.xlu1 %22975, %v1500_v31  }
 0x353   : > { %v24536_v36 = vpop.permute.xlu0 %1573 }
 0x354   : > { %2086 = vperm.xlu0 %22974, %v1499_v28   ;;  %v24542_v7 = vpop.permute.xlu1 %1588 }
 0x355   : > { %2101 = vperm.xlu1 %22975, %v1502_v40  }
 0x357   : > { %v24544_v14 = vpop.permute.xlu0 %1583 }
 0x358   : > { %2096 = vperm.xlu0 %22974, %v1501_v37  }
 0x359   : > { %v19468_v41 = vpop.f32.mrb[0].mxu0  ;;  %v19489_v44 = vpop.f32.mrb[0].mxu1  ;;  %2111 = vperm.xlu1 %22975, %v1504_v63  }
 0x35a   : > { %v1849_v45 = vadd.f32 %v19489_v44, %v1529_v58  ;;  %v1332_v48 = vpop.f32.mrb[1].mxu0  ;;  %v1843_v49 = vpop.f32.mrb[1].mxu1  ;;  %v1505_v44 = vld [vmem:[%s26718_s16 + $0x80] sm:$0xff] }
 0x35b   : > { %v21087_v55 = vpack.c.bf16 %v19468_v41, %v1332_v48  ;;  %v1844_v62 = vadd.f32 %v1843_v49, %v1524_v59 }
 0x35c   : > { %v2003_v6 = vmax.f32 %v1849_v45, 0.0  ;;  %2106 = vperm.xlu0 %22974, %v1503_v54   ;;  %v1506_v45 = vld [vmem:[%s26718_s16 + $0x88] sm:$0xff] }
 0x35d   : > { %v2002_v15 = vmax.f32 %v1844_v62, 0.0  ;;  %v19471_v20 = vpop.f32.mrb[2].mxu0  ;;  %v19492_v23 = vpop.f32.mrb[2].mxu1  ;;  %21088 = vmatprep.subr.bf16.mxu1 %v21087_v55  ;;  %2121 = vperm.xlu1 %22975, %v1506_v45   ;;  %v1509_v45 = vld [vmem:[%s26718_s16 + $0xa0] sm:$0xff] }
 0x35e   : > { %v1859_v28 = vadd.f32 %v19492_v23, %v1539_v2  ;;  %v1342_v58 = vpop.f32.mrb[3].mxu0  ;;  %v1853_v31 = vpop.f32.mrb[3].mxu1  ;;  %21090 = vmatpush3.bf16.msra.mxu1 %v21087_v55  ;;  %v26719_v23 = vmov 0.0|0.0  }
 0x35f   : > { %v21040_v37 = vpack.c.bf16 %v2003_v6, %v2002_v15  ;;  %v21091_v59 = vpack.c.bf16 %v19471_v20, %v1342_v58  ;;  %v1854_v40 = vadd.f32 %v1853_v31, %v1534_v3  ;;  %v24550_v6 = vpop.permute.xlu1 %1598  ;;  %v24552_v20 = vpop.permute.xlu0 %1593 }
 0x360   : > { %v2005_v41 = vmax.f32 %v1859_v28, 0.0  ;;  %2116 = vperm.xlu0 %22974, %v1505_v44   ;;  %v1507_v28 = vld [vmem:[%s26718_s16 + $0x90] sm:$0xff] }
 0x361   : > { %v2004_v48 = vmax.f32 %v1854_v40, 0.0  ;;  %v19474_v49 = vpop.f32.mrb[4].mxu0  ;;  %v19495_v34 = vpop.f32.mrb[4].mxu1  ;;  %21041 = vmatpush1.bf16.msra.mxu0 %v21040_v37  ;;  %21092 = vmatprep.subr.bf16.mxu1 %v21091_v59  ;;  %v2420_v37 = vld [vmem:[%s26716_s7 + $0x8] sm:$0xff] }
 0x362   : > { %v1869_v62 = vadd.f32 %v19495_v34, %v1549_v10  ;;  %v1352_v54 = vpop.f32.mrb[5].mxu0  ;;  %v1863_v2 = vpop.f32.mrb[5].mxu1  ;;  %21094 = vmatpush3.bf16.msra.mxu1 %v21091_v59  ;;  %21042 = vmatprep.subr.bf16.mxu0 %v26719_v23  ;;  %v1508_v34 = vld [vmem:[%s26718_s16 + $0x98] sm:$0xff] }
 0x363   : > { %v21043_v55 = vpack.c.bf16 %v2005_v41, %v2004_v48  ;;  %v21095_v63 = vpack.c.bf16 %v19474_v49, %v1352_v54  ;;  %v1864_v3 = vadd.f32 %v1863_v2, %v24518_v11  ;;  %v2421_v41 = vld [vmem:[%s26716_s7 + $0x10] sm:$0xff]  ;;  %2131 = vperm.xlu1 %22975, %v1508_v34   ;;  %v1510_v48 = vld [vmem:[%s26718_s16 + $0xa8] sm:$0xff]  ;;  %v2422_v2 = vld [vmem:[%s26716_s7 + $0x18] sm:$0xff] }
 0x364   : > { %v2007_v15 = vmax.f32 %v1869_v62, 0.0  ;;  %2126 = vperm.xlu0 %22974, %v1507_v28   ;;  %v24565_v62 = vpop.permute.xlu1 %1608  ;;  %v1511_v34 = vld [vmem:[%s26718_s16 + $0xb0] sm:$0xff] }
 0x365   : > { %v2006_v10 = vmax.f32 %v1864_v3, 0.0  ;;  %v19498_v58 = vpop.f32.mrb[6].mxu1  ;;  %21044 = vmatpush1.bf16.msra.mxu0 %v21043_v55  ;;  %21096 = vmatprep.subr.bf16.mxu1 %v21095_v63  ;;  %v24571_v55 = vpop.permute.xlu0 %1603 }
 0x366   : > { %v1879_v31 = vadd.f32 %v19498_v58, %v24522_v18  ;;  %v1873_v11 = vpop.f32.mrb[7].mxu1  ;;  %21098 = vmatpush3.bf16.msra.mxu1 %v21095_v63  ;;  %21045 = vmatprep.subr.bf16.mxu0 %v26719_v23 }
 0x367   : > { %v21046_v59 = vpack.c.bf16 %v2007_v15, %v2006_v10  ;;  %v1874_v40 = vadd.f32 %v1873_v11, %v24524_v19  ;;  %21099 = vmatprep.subr.bf16.mxu1 %v26719_v23  ;;  %v2423_v15 = vld [vmem:[%s26716_s7 + $0x20] sm:$0xff]  ;;  %2141 = vperm.xlu1 %22975, %v1510_v48   ;;  %v1512_v10 = vld [vmem:[%s26718_s16 + $0xb8] sm:$0xff]  ;;  %v1514_v48 = vld [vmem:[%s26718_s16 + $0xc8] sm:$0xff] }
 0x368   : > { %v2009_v44 = vmax.f32 %v1879_v31, 0.0  ;;  %2136 = vperm.xlu0 %22974, %v1509_v45  }
 0x369   : > { %v2008_v49 = vmax.f32 %v1874_v40, 0.0  ;;  %v19501_v18 = vpop.f32.mrb[8].mxu1  ;;  %21047 = vmatpush1.bf16.msra.mxu0 %v21046_v59  ;;  %19548 = vmatmul.mubr.msk.f32.vlgmr.msra.gmra.mrb[32].mxu1 %vm1247_vm0, %v2420_v37  ;;  %v2425_v40 = vld [vmem:[%s26716_s7 + $0x30] sm:$0xff]  ;;  %v24586_v45 = vpop.permute.xlu0 %1613 }
 0x36a   : > { %v1889_v19 = vadd.f32 %v19501_v18, %v24528_v24  ;;  %v1883_v54 = vpop.f32.mrb[9].mxu1  ;;  %21048 = vmatprep.subr.bf16.mxu0 %v26719_v23  ;;  %19550 = vmatprep.mubr.msk.f32.mxu1 %vm1247_vm0, %v2421_v41  ;;  %v24584_v41 = vpop.permute.xlu1 %1618 }
 0x36b   : > { %v21049_v63 = vpack.c.bf16 %v2009_v44, %v2008_v49  ;;  %v1884_v3 = vadd.f32 %v1883_v54, %v24530_v27  ;;  %v2424_v27 = vld [vmem:[%s26716_s7 + $0x28] sm:$0xff]  ;;  %2151 = vperm.xlu1 %22975, %v1512_v10   ;;  %v2426_v54 = vld [vmem:[%s26716_s7 + $0x38] sm:$0xff] }
 0x36c   : > { %v2011_v28 = vmax.f32 %v1889_v19, 0.0  ;;  %2146 = vperm.xlu0 %22974, %v1511_v34   ;;  %v1516_v34 = vld [vmem:[%s26718_s16 + $0xd8] sm:$0xff] }
 0x36d   : > { %v2010_v24 = vmax.f32 %v1884_v3, 0.0  ;;  %v19504_v58 = vpop.f32.mrb[10].mxu1  ;;  %21050 = vmatpush1.bf16.msra.mxu0 %v21049_v63  ;;  %19551 = vmatmul.mubr.msk.f32.gmra.mrb[34].mxu1 %vm1247_vm0, %v2422_v2  ;;  %v2427_v3 = vld [vmem:[%s26716_s7 + $0x40] sm:$0xff] }
 0x36e   : > { %v1899_v31 = vadd.f32 %v19504_v58, %v24534_v32  ;;  %v1893_v11 = vpop.f32.mrb[11].mxu1  ;;  %21051 = vmatprep.subr.bf16.mxu0 %v26719_v23  ;;  %19553 = vmatprep.mubr.msk.f32.mxu1 %vm1247_vm0, %v2423_v15  ;;  %v1513_v32 = vld [vmem:[%s26718_s16 + $0xc0] sm:$0xff] }
 0x36f   : > { %v21052_v37 = vpack.c.bf16 %v2011_v28, %v2010_v24  ;;  %v1894_v59 = vadd.f32 %v1893_v11, %v24536_v36  ;;  %2161 = vperm.xlu1 %22975, %v1514_v48   ;;  %v1515_v28 = vld [vmem:[%s26718_s16 + $0xd0] sm:$0xff]  ;;  %v1624_v11 = vpop.permute.xlu0 %1623 }
 0x370   : > { %v2013_v44 = vmax.f32 %v1899_v31, 0.0  ;;  %2156 = vperm.xlu0 %22974, %v1513_v32   ;;  %v1518_v32 = vld [vmem:[%s26718_s16 + $0xe8] sm:$0xff] }
 0x371   : > { %v2012_v49 = vmax.f32 %v1894_v59, 0.0  ;;  %v19507_v18 = vpop.f32.mrb[12].mxu1  ;;  %21053 = vmatpush1.bf16.msra.mxu0 %v21052_v37  ;;  %19554 = vmatmul.mubr.msk.f32.gmra.mrb[36].mxu1 %vm1247_vm0, %v2424_v27  ;;  %v2429_v59 = vld [vmem:[%s26716_s7 + $0x50] sm:$0xff] }
 0x372   : > { %v1909_v36 = vadd.f32 %v19507_v18, %v24542_v7  ;;  %v1903_v19 = vpop.f32.mrb[13].mxu1  ;;  %21054 = vmatprep.subr.bf16.mxu0 %v26719_v23  ;;  %19556 = vmatprep.mubr.msk.f32.mxu1 %vm1247_vm0, %v2425_v40  ;;  %v1629_v7 = vpop.permute.xlu1 %1628 }
 0x373   : > { %v21055_v2 = vpack.c.bf16 %v2013_v44, %v2012_v49  ;;  %v1904_v63 = vadd.f32 %v1903_v19, %v24544_v14  ;;  %v2428_v14 = vld [vmem:[%s26716_s7 + $0x48] sm:$0xff]  ;;  %2171 = vperm.xlu1 %22975, %v1516_v34   ;;  %v1517_v44 = vld [vmem:[%s26718_s16 + $0xe0] sm:$0xff] }
 0x374   : > { %v2015_v15 = vmax.f32 %v1909_v36, 0.0  ;;  %2166 = vperm.xlu0 %22974, %v1515_v28   ;;  %v1520_v28 = vld [vmem:[%s26718_s16 + $0xf8] sm:$0xff] }
 0x375   : > { %v2014_v10 = vmax.f32 %v1904_v63, 0.0  ;;  %v19510_v24 = vpop.f32.mrb[14].mxu1  ;;  %21056 = vmatpush1.bf16.msra.mxu0 %v21055_v2  ;;  %19557 = vmatmul.mubr.msk.f32.gmra.mrb[38].mxu1 %vm1247_vm0, %v2426_v54  ;;  %v2431_v54 = vld [vmem:[%s26716_s7 + $0x60] sm:$0xff] }
 0x376   : > { %v1919_v58 = vadd.f32 %v19510_v24, %v24550_v6  ;;  %v1913_v31 = vpop.f32.mrb[15].mxu1  ;;  %21057 = vmatprep.subr.bf16.mxu0 %v26719_v23  ;;  %19559 = vmatprep.mubr.msk.f32.mxu1 %vm1247_vm0, %v2427_v3  ;;  %v1639_v2 = vpop.permute.xlu1 %1638 }
 0x377   : > { %v21058_v27 = vpack.c.bf16 %v2015_v15, %v2014_v10  ;;  %v1914_v37 = vadd.f32 %v1913_v31, %v24552_v20  ;;  %v2430_v20 = vld [vmem:[%s26716_s7 + $0x58] sm:$0xff]  ;;  %2181 = vperm.xlu1 %22975, %v1518_v32   ;;  %v1634_v3 = vpop.permute.xlu0 %1633  ;;  %v1519_v15 = vld [vmem:[%s26718_s16 + $0xf0] sm:$0xff] }
 0x378   : > { %v2017_v40 = vmax.f32 %v1919_v58, 0.0  ;;  %2176 = vperm.xlu0 %22974, %v1517_v44   ;;  %v2434_v32 = vld [vmem:[%s26716_s7 + $0x78] sm:$0xff] }
 0x379   : > { %v2016_v48 = vmax.f32 %v1914_v37, 0.0  ;;  %v19513_v6 = vpop.f32.mrb[16].mxu1  ;;  %21059 = vmatpush1.bf16.msra.mxu0 %v21058_v27  ;;  %19560 = vmatmul.mubr.msk.f32.gmra.mrb[40].mxu1 %vm1247_vm0, %v2428_v14  ;;  %v2433_v14 = vld [vmem:[%s26716_s7 + $0x70] sm:$0xff] }
 0x37a   : > { %v1929_v49 = vadd.f32 %v19513_v6, %v24565_v62  ;;  %v1923_v18 = vpop.f32.mrb[17].mxu1  ;;  %21060 = vmatprep.subr.bf16.mxu0 %v26719_v23  ;;  %19562 = vmatprep.mubr.msk.f32.mxu1 %vm1247_vm0, %v2429_v59 }
 0x37b   : > { %v21061_v36 = vpack.c.bf16 %v2017_v40, %v2016_v48  ;;  %v1924_v19 = vadd.f32 %v1923_v18, %v24571_v55  ;;  %v2432_v55 = vld [vmem:[%s26716_s7 + $0x68] sm:$0xff]  ;;  %2191 = vperm.xlu1 %22975, %v1520_v28   ;;  %v2437_v28 = vld [vmem:[%s26716_s7 + $0x90] sm:$0xff] }
 0x37c   : > { %v2019_v63 = vmax.f32 %v1929_v49, 0.0  ;;  %2186 = vperm.xlu0 %22974, %v1519_v15   ;;  %v2435_v49 = vld [vmem:[%s26716_s7 + $0x80] sm:$0xff] }
 0x37d   : > { %v2018_v62 = vmax.f32 %v1924_v19, 0.0  ;;  %v19516_v34 = vpop.f32.mrb[18].mxu1  ;;  %21062 = vmatpush1.bf16.msra.mxu0 %v21061_v36  ;;  %19563 = vmatmul.mubr.msk.f32.gmra.mrb[42].mxu1 %vm1247_vm0, %v2430_v20 }
 0x37e   : > { %v1939_v10 = vadd.f32 %v19516_v34, %v24584_v41  ;;  %v1933_v24 = vpop.f32.mrb[19].mxu1  ;;  %21063 = vmatprep.subr.bf16.mxu0 %v26719_v23  ;;  %19565 = vmatprep.mubr.msk.f32.mxu1 %vm1247_vm0, %v2431_v54  ;;  %v1649_v41 = vpop.permute.xlu1 %1648  ;;  %v2436_v54 = vld [vmem:[%s26716_s7 + $0x88] sm:$0xff] }
 0x37f   : > { %v21064_v58 = vpack.c.bf16 %v2019_v63, %v2018_v62  ;;  %v1934_v31 = vadd.f32 %v1933_v24, %v24586_v45  ;;  %v1644_v45 = vpop.permute.xlu0 %1643 }
 0x380   : > { %v2021_v27 = vmax.f32 %v1939_v10, 0.0 }
 0x381   : > { %v2020_v37 = vmax.f32 %v1934_v31, 0.0  ;;  %v19519_v59 = vpop.f32.mrb[20].mxu1  ;;  %21065 = vmatpush1.bf16.msra.mxu0 %v21064_v58  ;;  %19566 = vmatmul.mubr.msk.f32.gmra.mrb[44].mxu1 %vm1247_vm0, %v2432_v55  ;;  %v2438_v58 = vld [vmem:[%s26716_s7 + $0x98] sm:$0xff] }
 0x382   : > { %v1949_v40 = vadd.f32 %v19519_v59, %v1629_v7  ;;  %v1943_v44 = vpop.f32.mrb[21].mxu1  ;;  %21066 = vmatprep.subr.bf16.mxu0 %v26719_v23  ;;  %19568 = vmatprep.mubr.msk.f32.mxu1 %vm1247_vm0, %v2433_v14  ;;  %v2439_v14 = vld [vmem:[%s26716_s7 + $0xa0] sm:$0xff] }
 0x383   : > { %v21067_v48 = vpack.c.bf16 %v2021_v27, %v2020_v37  ;;  %v1944_v6 = vadd.f32 %v1943_v44, %v1624_v11  ;;  %v1659_v11 = vpop.permute.xlu1 %1658  ;;  %v1654_v34 = vpop.permute.xlu0 %1653 }
 0x384   : > { %v2023_v18 = vmax.f32 %v1949_v40, 0.0 }
 0x385   : > { %v2022_v20 = vmax.f32 %v1944_v6, 0.0  ;;  %v19522_v36 = vpop.f32.mrb[22].mxu1  ;;  %21068 = vmatpush1.bf16.msra.mxu0 %v21067_v48  ;;  %19569 = vmatmul.mubr.msk.f32.gmra.mrb[46].mxu1 %vm1247_vm0, %v2434_v32  ;;  %v2440_v32 = vld [vmem:[%s26716_s7 + $0xa8] sm:$0xff] }
 0x386   : > { %v1959_v19 = vadd.f32 %v19522_v36, %v1639_v2  ;;  %v1953_v7 = vpop.f32.mrb[23].mxu1  ;;  %21069 = vmatprep.subr.bf16.mxu0 %v26719_v23  ;;  %19571 = vmatprep.mubr.msk.f32.mxu1 %vm1247_vm0, %v2435_v49  ;;  %v2441_v49 = vld [vmem:[%s26716_s7 + $0xb0] sm:$0xff] }
 0x387   : > { %v21070_v63 = vpack.c.bf16 %v2023_v18, %v2022_v20  ;;  %v1954_v15 = vadd.f32 %v1953_v7, %v1634_v3  ;;  %v1669_v40 = vpop.permute.xlu1 %1668  ;;  %v1664_v48 = vpop.permute.xlu0 %1663 }
 0x388   : > { %v2025_v62 = vmax.f32 %v1959_v19, 0.0 }
 0x389   : > { %v2024_v10 = vmax.f32 %v1954_v15, 0.0  ;;  %v19525_v24 = vpop.f32.mrb[24].mxu1  ;;  %21071 = vmatpush1.bf16.msra.mxu0 %v21070_v63  ;;  %19572 = vmatmul.mubr.msk.f32.gmra.mrb[48].mxu1 %vm1247_vm0, %v2436_v54  ;;  %v2442_v54 = vld [vmem:[%s26716_s7 + $0xb8] sm:$0xff] }
 0x38a   : > { %v1969_v2 = vadd.f32 %v19525_v24, %v1649_v41  ;;  %v1963_v55 = vpop.f32.mrb[25].mxu1  ;;  %21072 = vmatprep.subr.bf16.mxu0 %v26719_v23  ;;  %19574 = vmatprep.mubr.msk.f32.mxu1 %vm1247_vm0, %v2437_v28 }
 0x38b   : > { %v21073_v31 = vpack.c.bf16 %v2025_v62, %v2024_v10  ;;  %v1964_v3 = vadd.f32 %v1963_v55, %v1644_v45  ;;  %v1679_v28 = vpop.permute.xlu1 %1678 }
 0x38c   : > { %v2027_v27 = vmax.f32 %v1969_v2, 0.0 }
 0x38d   : > { %v2026_v37 = vmax.f32 %v1964_v3, 0.0  ;;  %v19528_v59 = vpop.f32.mrb[26].mxu1  ;;  %21074 = vmatpush1.bf16.msra.mxu0 %v21073_v31  ;;  %19575 = vmatmul.mubr.msk.f32.gmra.mrb[50].mxu1 %vm1247_vm0, %v2438_v58  ;;  %v2444_v58 = vld [vmem:[%s26716_s7 + $0xc8] sm:$0xff] }
 0x38e   : > { %v1979_v44 = vadd.f32 %v19528_v59, %v1659_v11  ;;  %v1973_v41 = vpop.f32.mrb[27].mxu1  ;;  %21075 = vmatprep.subr.bf16.mxu0 %v26719_v23  ;;  %19577 = vmatprep.mubr.msk.f32.mxu1 %vm1247_vm0, %v2439_v14  ;;  %v2443_v11 = vld [vmem:[%s26716_s7 + $0xc0] sm:$0xff]  ;;  %v2445_v14 = vld [vmem:[%s26716_s7 + $0xd0] sm:$0xff]  ;;  %v2446_v59 = vld [vmem:[%s26716_s7 + $0xd8] sm:$0xff] }
 0x38f   : > { %v21076_v6 = vpack.c.bf16 %v2027_v27, %v2026_v37  ;;  %v1974_v45 = vadd.f32 %v1973_v41, %v1654_v34  ;;  %v1674_v34 = vpop.permute.xlu0 %1673  ;;  %v1425_v41 = vld [vmem:[#allocation4] sm:$0xff] }
 0x390   : > { %v2029_v18 = vmax.f32 %v1979_v44, 0.0  ;;  %v2447_v44 = vld [vmem:[%s26716_s7 + $0xe0] sm:$0xff] }
 0x391   : > { %v2028_v20 = vmax.f32 %v1974_v45, 0.0  ;;  %v19531_v36 = vpop.f32.mrb[28].mxu1  ;;  %21077 = vmatpush1.bf16.msra.mxu0 %v21076_v6  ;;  %19578 = vmatmul.mubr.msk.f32.gmra.mrb[52].mxu1 %vm1247_vm0, %v2440_v32  ;;  %v2448_v32 = vld [vmem:[%s26716_s7 + $0xe8] sm:$0xff]  ;;  %v2449_v6 = vld [vmem:[%s26716_s7 + $0xf0] sm:$0xff]  ;;  %v1427_v45 = vld [vmem:[#allocation4 + $0x10] sm:$0xff] }
 0x392   : > { %v1989_v19 = vadd.f32 %v19531_v36, %v1669_v40  ;;  %v1983_v7 = vpop.f32.mrb[29].mxu1  ;;  %21078 = vmatprep.subr.bf16.mxu0 %v26719_v23  ;;  %19580 = vmatprep.mubr.msk.f32.mxu1 %vm1247_vm0, %v2441_v49  ;;  %v2450_v49 = vld [vmem:[%s26716_s7 + $0xf8] sm:$0xff]  ;;  %v1432_v36 = vld [vmem:[#allocation4 + $0x38] sm:$0xff] }
 0x393   : > { %v21079_v63 = vpack.c.bf16 %v2029_v18, %v2028_v20  ;;  %v1984_v15 = vadd.f32 %v1983_v7, %v1664_v48  ;;  %v1428_v48 = vld [vmem:[#allocation4 + $0x18] sm:$0xff]  ;;  %v1430_v18 = vld [vmem:[#allocation4 + $0x28] sm:$0xff]  ;;  %v1429_v20 = vld [vmem:[#allocation4 + $0x20] sm:$0xff] }
 0x394   : > { %v2031_v62 = vmax.f32 %v1989_v19, 0.0  ;;  %v1431_v19 = vld [vmem:[#allocation4 + $0x30] sm:$0xff]  ;;  %v1434_v7 = vld [vmem:[#allocation4 + $0x48] sm:$0xff] }
 0x395   : > { %v2030_v10 = vmax.f32 %v1984_v15, 0.0  ;;  %v19534_v24 = vpop.f32.mrb[30].mxu1  ;;  %21080 = vmatpush1.bf16.msra.mxu0 %v21079_v63  ;;  %19581 = vmatmul.mubr.msk.f32.gmra.mrb[54].mxu1 %vm1247_vm0, %v2442_v54  ;;  %v1433_v54 = vld [vmem:[#allocation4 + $0x40] sm:$0xff]  ;;  %v1436_v63 = vld [vmem:[#allocation4 + $0x58] sm:$0xff]  ;;  %v1435_v15 = vld [vmem:[#allocation4 + $0x50] sm:$0xff] }
 0x396   : > { %v1999_v2 = vadd.f32 %v19534_v24, %v1679_v28  ;;  %v1993_v55 = vpop.f32.mrb[31].mxu1  ;;  %21081 = vmatprep.subr.bf16.mxu0 %v26719_v23  ;;  %19583 = vmatprep.mubr.msk.f32.mxu1 %vm1247_vm0, %v2443_v11  ;;  %v1438_v28 = vld [vmem:[#allocation4 + $0x68] sm:$0xff]  ;;  %v1437_v11 = vld [vmem:[#allocation4 + $0x60] sm:$0xff] }
 0x397   : > { %v21082_v31 = vpack.c.bf16 %v2031_v62, %v2030_v10  ;;  %v1994_v3 = vadd.f32 %v1993_v55, %v1674_v34  ;;  %v1440_v62 = vld [vmem:[#allocation4 + $0x78] sm:$0xff]  ;;  %v1439_v34 = vld [vmem:[#allocation4 + $0x70] sm:$0xff]  ;;  %v1442_v10 = vld [vmem:[#allocation4 + $0x88] sm:$0xff] }
 0x398   : > { %v2033_v27 = vmax.f32 %v1999_v2, 0.0  ;;  %v1441_v24 = vld [vmem:[#allocation4 + $0x80] sm:$0xff]  ;;  %v1444_v2 = vld [vmem:[#allocation4 + $0x98] sm:$0xff]  ;;  %v1443_v55 = vld [vmem:[#allocation4 + $0x90] sm:$0xff] }
 0x399   : > { %v2032_v37 = vmax.f32 %v1994_v3, 0.0  ;;  %21083 = vmatpush1.bf16.msra.mxu0 %v21082_v31  ;;  %19584 = vmatmul.mubr.msk.f32.gmra.mrb[56].mxu1 %vm1247_vm0, %v2444_v58  ;;  %v1446_v58 = vld [vmem:[#allocation4 + $0xa8] sm:$0xff]  ;;  %v1445_v31 = vld [vmem:[#allocation4 + $0xa0] sm:$0xff]  ;;  %v1448_v3 = vld [vmem:[#allocation4 + $0xb8] sm:$0xff] }
 0x39a   : > { %21084 = vmatprep.subr.bf16.mxu0 %v26719_v23  ;;  %19586 = vmatprep.mubr.msk.f32.mxu1 %vm1247_vm0, %v2445_v14  ;;  %v1447_v14 = vld [vmem:[#allocation4 + $0xb0] sm:$0xff] }
 0x39b   : > { %v21085_v40 = vpack.c.bf16 %v2033_v27, %v2032_v37  ;;  %v1450_v27 = vld [vmem:[#allocation4 + $0xc8] sm:$0xff]  ;;  %v1449_v37 = vld [vmem:[#allocation4 + $0xc0] sm:$0xff] }
 0x39d   : > { %21086 = vmatpush1.bf16.msra.mxu0 %v21085_v40  ;;  %19587 = vmatmul.mubr.msk.f32.gmra.mrb[58].mxu1 %vm1247_vm0, %v2446_v59  ;;  %v1452_v59 = vld [vmem:[#allocation4 + $0xd8] sm:$0xff]  ;;  %v1451_v40 = vld [vmem:[#allocation4 + $0xd0] sm:$0xff] }
 0x39e   : > { %19589 = vmatprep.mubr.msk.f32.mxu1 %vm1247_vm0, %v2447_v44  ;;  %v1454_v44 = vld [vmem:[#allocation4 + $0xe8] sm:$0xff] }
 0x3a0   : > { %2259 = vmatmul.mubr.f32.vlgmr.msra.gmra.mrb[6].mxu0 %v1425_v41  ;;  %v1453_v41 = vld [vmem:[#allocation4 + $0xe0] sm:$0xff] }
 0x3a1   : > { %19590 = vmatmul.mubr.msk.f32.gmra.mrb[60].mxu1 %vm1247_vm0, %v2448_v32  ;;  %2263 = vmatprep.mubr.f32.mxu0 %v1428_v48  ;;  %v1456_v32 = vld [vmem:[#allocation4 + $0xf8] sm:$0xff]  ;;  %v1455_v48 = vld [vmem:[#allocation4 + $0xf0] sm:$0xff] }
 0x3a2   : > { %19592 = vmatprep.mubr.msk.f32.mxu1 %vm1247_vm0, %v2449_v6  ;;  %v1458_v6 = vld [vmem:[#allocation4 + $0x108] sm:$0xff] }
 0x3a4   : > { %2264 = vmatmul.mubr.f32.gmra.mrb[8].mxu0 %v1427_v45  ;;  %v1457_v45 = vld [vmem:[#allocation4 + $0x100] sm:$0xff] }
 0x3a5   : > { %19593 = vmatmul.mubr.msk.f32.gmra.mrb[62].mxu1 %vm1247_vm0, %v2450_v49  ;;  %2268 = vmatprep.mubr.f32.mxu0 %v1430_v18  ;;  %v1460_v49 = vld [vmem:[#allocation4 + $0x118] sm:$0xff]  ;;  %v1459_v18 = vld [vmem:[#allocation4 + $0x110] sm:$0xff] }
 0x3a8   : > { %2269 = vmatmul.mubr.f32.gmra.mrb[10].mxu0 %v1429_v20  ;;  %v1462_v20 = vld [vmem:[#allocation4 + $0x128] sm:$0xff] }
 0x3a9   : > { %2273 = vmatprep.mubr.f32.mxu0 %v1432_v36  ;;  %v1461_v36 = vld [vmem:[#allocation4 + $0x120] sm:$0xff] }
 0x3ac   : > { %2274 = vmatmul.mubr.f32.gmra.mrb[12].mxu0 %v1431_v19  ;;  %v1464_v19 = vld [vmem:[#allocation4 + $0x138] sm:$0xff] }
 0x3ad   : > { %2278 = vmatprep.mubr.f32.mxu0 %v1434_v7  ;;  %v1463_v7 = vld [vmem:[#allocation4 + $0x130] sm:$0xff] }
 0x3b0   : > { %2279 = vmatmul.mubr.f32.gmra.mrb[14].mxu0 %v1433_v54  ;;  %v1466_v54 = vld [vmem:[#allocation4 + $0x148] sm:$0xff] }
 0x3b1   : > { %2283 = vmatprep.mubr.f32.mxu0 %v1436_v63  ;;  %v1465_v63 = vld [vmem:[#allocation4 + $0x140] sm:$0xff] }
 0x3b4   : > { %2284 = vmatmul.mubr.f32.gmra.mrb[16].mxu0 %v1435_v15  ;;  %v1468_v15 = vld [vmem:[#allocation4 + $0x158] sm:$0xff] }
 0x3b5   : > { %2288 = vmatprep.mubr.f32.mxu0 %v1438_v28  ;;  %v1467_v28 = vld [vmem:[#allocation4 + $0x150] sm:$0xff] }
 0x3b8   : > { %2289 = vmatmul.mubr.f32.gmra.mrb[18].mxu0 %v1437_v11  ;;  %v1470_v11 = vld [vmem:[#allocation4 + $0x168] sm:$0xff] }
 0x3b9   : > { %2293 = vmatprep.mubr.f32.mxu0 %v1440_v62  ;;  %v1469_v62 = vld [vmem:[#allocation4 + $0x160] sm:$0xff] }
 0x3bc   : > { %2294 = vmatmul.mubr.f32.gmra.mrb[20].mxu0 %v1439_v34  ;;  %v1472_v34 = vld [vmem:[#allocation4 + $0x178] sm:$0xff] }
 0x3bd   : > { %2298 = vmatprep.mubr.f32.mxu0 %v1442_v10  ;;  %v1471_v10 = vld [vmem:[#allocation4 + $0x170] sm:$0xff] }
 0x3c0   : > { %2299 = vmatmul.mubr.f32.gmra.mrb[22].mxu0 %v1441_v24  ;;  %v1474_v24 = vld [vmem:[#allocation4 + $0x188] sm:$0xff] }
 0x3c1   : > { %2303 = vmatprep.mubr.f32.mxu0 %v1444_v2  ;;  %v1473_v2 = vld [vmem:[#allocation4 + $0x180] sm:$0xff] }
 0x3c4   : > { %2304 = vmatmul.mubr.f32.gmra.mrb[24].mxu0 %v1443_v55  ;;  %v1476_v55 = vld [vmem:[#allocation4 + $0x198] sm:$0xff] }
 0x3c5   : > { %2308 = vmatprep.mubr.f32.mxu0 %v1446_v58  ;;  %v2484_v58 = vld [vmem:[#allocation6 + $0x8] sm:$0xff] }
 0x3c6   : > { %3316 = vmatprep.mubr.f32.mxu1 %v2484_v58 }
 0x3c8   : > { %2309 = vmatmul.mubr.f32.gmra.mrb[26].mxu0 %v1445_v31  ;;  %v1475_v31 = vld [vmem:[#allocation4 + $0x190] sm:$0xff] }
 0x3c9   : > { %2313 = vmatprep.mubr.f32.mxu0 %v1448_v3  ;;  %v1478_v3 = vld [vmem:[#allocation4 + $0x1a8] sm:$0xff] }
 0x3cc   : > { %2314 = vmatmul.mubr.f32.gmra.mrb[28].mxu0 %v1447_v14  ;;  %v1477_v14 = vld [vmem:[#allocation4 + $0x1a0] sm:$0xff] }
 0x3cd   : > { %2318 = vmatprep.mubr.f32.mxu0 %v1450_v27  ;;  %v1480_v27 = vld [vmem:[#allocation4 + $0x1b8] sm:$0xff] }
 0x3d0   : > { %2319 = vmatmul.mubr.f32.gmra.mrb[30].mxu0 %v1449_v37  ;;  %v1479_v37 = vld [vmem:[#allocation4 + $0x1b0] sm:$0xff] }
 0x3d1   : > { %2323 = vmatprep.mubr.f32.mxu0 %v1452_v59  ;;  %v1482_v59 = vld [vmem:[#allocation4 + $0x1c8] sm:$0xff] }
 0x3d4   : > { %2324 = vmatmul.mubr.f32.gmra.mrb[32].mxu0 %v1451_v40  ;;  %v1481_v40 = vld [vmem:[#allocation4 + $0x1c0] sm:$0xff] }
 0x3d5   : > { %2328 = vmatprep.mubr.f32.mxu0 %v1454_v44  ;;  %v1484_v44 = vld [vmem:[#allocation4 + $0x1d8] sm:$0xff] }
 0x3d8   : > { %2329 = vmatmul.mubr.f32.gmra.mrb[34].mxu0 %v1453_v41  ;;  %v1483_v41 = vld [vmem:[#allocation4 + $0x1d0] sm:$0xff] }
 0x3d9   : > { %2333 = vmatprep.mubr.f32.mxu0 %v1456_v32  ;;  %v1486_v32 = vld [vmem:[#allocation4 + $0x1e8] sm:$0xff] }
 0x3dc   : > { %2334 = vmatmul.mubr.f32.gmra.mrb[36].mxu0 %v1455_v48  ;;  %v1485_v48 = vld [vmem:[#allocation4 + $0x1e0] sm:$0xff] }
 0x3dd   : > { %2338 = vmatprep.mubr.f32.mxu0 %v1458_v6  ;;  %v1488_v6 = vld [vmem:[#allocation4 + $0x1f8] sm:$0xff] }
 0x3e0   : > { %2339 = vmatmul.mubr.f32.gmra.mrb[38].mxu0 %v1457_v45  ;;  %v1487_v45 = vld [vmem:[#allocation4 + $0x1f0] sm:$0xff] }
 0x3e1   : > { %2343 = vmatprep.mubr.f32.mxu0 %v1460_v49 }
 0x3e4   : > { %2344 = vmatmul.mubr.f32.gmra.mrb[40].mxu0 %v1459_v18 }
 0x3e5   : > { %2348 = vmatprep.mubr.f32.mxu0 %v1462_v20 }
 0x3e8   : > { %2349 = vmatmul.mubr.f32.gmra.mrb[42].mxu0 %v1461_v36 }
 0x3e9   : > { %2353 = vmatprep.mubr.f32.mxu0 %v1464_v19 }
 0x3ec   : > { %2354 = vmatmul.mubr.f32.gmra.mrb[44].mxu0 %v1463_v7 }
 0x3ed   : > { %2358 = vmatprep.mubr.f32.mxu0 %v1466_v54 }
 0x3f0   : > { %2359 = vmatmul.mubr.f32.gmra.mrb[46].mxu0 %v1465_v63 }
 0x3f1   : > { %2363 = vmatprep.mubr.f32.mxu0 %v1468_v15 }
 0x3f4   : > { %2364 = vmatmul.mubr.f32.gmra.mrb[48].mxu0 %v1467_v28 }
 0x3f5   : > { %2368 = vmatprep.mubr.f32.mxu0 %v1470_v11 }
 0x3f8   : > { %2369 = vmatmul.mubr.f32.gmra.mrb[50].mxu0 %v1469_v62 }
 0x3f9   : > { %2373 = vmatprep.mubr.f32.mxu0 %v1472_v34 }
 0x3fc   : > { %2374 = vmatmul.mubr.f32.gmra.mrb[52].mxu0 %v1471_v10 }
 0x3fd   : > { %2378 = vmatprep.mubr.f32.mxu0 %v1474_v24 }
 0x400   : > { %2379 = vmatmul.mubr.f32.gmra.mrb[54].mxu0 %v1473_v2 }
 0x401   : > { %2383 = vmatprep.mubr.f32.mxu0 %v1476_v55 }
 0x404   : > { %2384 = vmatmul.mubr.f32.gmra.mrb[56].mxu0 %v1475_v31 }
 0x405   : > { %2388 = vmatprep.mubr.f32.mxu0 %v1478_v3 }
 0x408   : > { %2389 = vmatmul.mubr.f32.gmra.mrb[58].mxu0 %v1477_v14 }
 0x409   : > { %2393 = vmatprep.mubr.f32.mxu0 %v1480_v27 }
 0x40c   : > { %2394 = vmatmul.mubr.f32.gmra.mrb[60].mxu0 %v1479_v37 }
 0x40d   : > { %2398 = vmatprep.mubr.f32.mxu0 %v1482_v59 }
 0x410   : > { %2399 = vmatmul.mubr.f32.gmra.mrb[62].mxu0 %v1481_v40 }
 0x411   : > { %2403 = vmatprep.mubr.f32.mxu0 %v1484_v44 }
 0x414   : > { %2404 = vmatmul.mubr.f32.gmra.mrb[64].mxu0 %v1483_v41 }
 0x415   : > { %2408 = vmatprep.mubr.f32.mxu0 %v1486_v32 }
 0x418   : > { %2409 = vmatmul.mubr.f32.gmra.mrb[66].mxu0 %v1485_v48 }
 0x419   : > { %2413 = vmatprep.mubr.f32.mxu0 %v1488_v6 }
 0x41c   : > { %2414 = vmatmul.mubr.f32.gmra.mrb[68].mxu0 %v1487_v45 }
 0x43c   : > { %v19549_v49 = vpop.f32.mrb[32].mxu1 }
 0x43d   : > { %v2907_v18 = vadd.f32 %v19549_v49, %v24426_v57  ;;  %v2901_v20 = vpop.f32.mrb[33].mxu1 }
 0x43e   : > { %v2902_v36 = vadd.f32 %v2901_v20, %v24420_v53 }
 0x43f   : > { %v3061_v19 = vmax.f32 %v2907_v18, 0.0 }
 0x440   : > { %v3060_v7 = vmax.f32 %v2902_v36, 0.0  ;;  %v19552_v54 = vpop.f32.mrb[34].mxu1 }
 0x441   : > { %v2917_v63 = vadd.f32 %v19552_v54, %v24424_v56  ;;  %v2911_v15 = vpop.f32.mrb[35].mxu1 }
 0x442   : > { %v21100_v28 = vpack.c.bf16 %v3061_v19, %v3060_v7  ;;  %v2912_v11 = vadd.f32 %v2911_v15, %v24418_v52 }
 0x443   : > { %v3063_v62 = vmax.f32 %v2917_v63, 0.0 }
 0x444   : > { %v3062_v34 = vmax.f32 %v2912_v11, 0.0  ;;  %v19555_v10 = vpop.f32.mrb[36].mxu1  ;;  %21101 = vmatpush1.bf16.msra.mxu1 %v21100_v28 }
 0x445   : > { %v2927_v24 = vadd.f32 %v19555_v10, %v24430_v60  ;;  %v2921_v2 = vpop.f32.mrb[37].mxu1  ;;  %21102 = vmatprep.subr.bf16.mxu1 %v26719_v23 }
 0x446   : > { %v21103_v57 = vpack.c.bf16 %v3063_v62, %v3062_v34  ;;  %v2922_v53 = vadd.f32 %v2921_v2, %v24432_v61 }
 0x447   : > { %v3065_v55 = vmax.f32 %v2927_v24, 0.0 }
 0x448   : > { %v3064_v58 = vmax.f32 %v2922_v53, 0.0  ;;  %v19558_v31 = vpop.f32.mrb[38].mxu1  ;;  %21104 = vmatpush1.bf16.msra.mxu1 %v21103_v57 }
 0x449   : > { %v2937_v56 = vadd.f32 %v19558_v31, %v24436_v0  ;;  %v2931_v3 = vpop.f32.mrb[39].mxu1  ;;  %21105 = vmatprep.subr.bf16.mxu1 %v26719_v23 }
 0x44a   : > { %v21106_v52 = vpack.c.bf16 %v3065_v55, %v3064_v58  ;;  %v2932_v14 = vadd.f32 %v2931_v3, %v24438_v1 }
 0x44b   : > { %v3067_v27 = vmax.f32 %v2937_v56, 0.0 }
 0x44c   : > { %v3066_v60 = vmax.f32 %v2932_v14, 0.0  ;;  %v19561_v37 = vpop.f32.mrb[40].mxu1  ;;  %21107 = vmatpush1.bf16.msra.mxu1 %v21106_v52 }
 0x44d   : > { %v2947_v59 = vadd.f32 %v19561_v37, %v24442_v4  ;;  %v2941_v40 = vpop.f32.mrb[41].mxu1  ;;  %21108 = vmatprep.subr.bf16.mxu1 %v26719_v23 }
 0x44e   : > { %v21109_v61 = vpack.c.bf16 %v3067_v27, %v3066_v60  ;;  %v2942_v44 = vadd.f32 %v2941_v40, %v24444_v5 }
 0x44f   : > { %v3069_v41 = vmax.f32 %v2947_v59, 0.0 }
 0x450   : > { %v3068_v0 = vmax.f32 %v2942_v44, 0.0  ;;  %v19564_v32 = vpop.f32.mrb[42].mxu1  ;;  %21110 = vmatpush1.bf16.msra.mxu1 %v21109_v61 }
 0x451   : > { %v2957_v48 = vadd.f32 %v19564_v32, %v24448_v8  ;;  %v2951_v6 = vpop.f32.mrb[43].mxu1  ;;  %21111 = vmatprep.subr.bf16.mxu1 %v26719_v23 }
 0x452   : > { %v21112_v1 = vpack.c.bf16 %v3069_v41, %v3068_v0  ;;  %v2952_v45 = vadd.f32 %v2951_v6, %v24450_v9 }
 0x453   : > { %v3071_v49 = vmax.f32 %v2957_v48, 0.0 }
 0x454   : > { %v3070_v4 = vmax.f32 %v2952_v45, 0.0  ;;  %v19567_v18 = vpop.f32.mrb[44].mxu1  ;;  %21113 = vmatpush1.bf16.msra.mxu1 %v21112_v1 }
 0x455   : > { %v2967_v20 = vadd.f32 %v19567_v18, %v24454_v12  ;;  %v2961_v36 = vpop.f32.mrb[45].mxu1  ;;  %21114 = vmatprep.subr.bf16.mxu1 %v26719_v23 }
 0x456   : > { %v21115_v5 = vpack.c.bf16 %v3071_v49, %v3070_v4  ;;  %v2962_v19 = vadd.f32 %v2961_v36, %v24456_v13 }
 0x457   : > { %v3073_v7 = vmax.f32 %v2967_v20, 0.0 }
 0x458   : > { %v3072_v8 = vmax.f32 %v2962_v19, 0.0  ;;  %v19570_v54 = vpop.f32.mrb[46].mxu1  ;;  %21116 = vmatpush1.bf16.msra.mxu1 %v21115_v5 }
 0x459   : > { %v2977_v63 = vadd.f32 %v19570_v54, %v24460_v16  ;;  %v2971_v15 = vpop.f32.mrb[47].mxu1  ;;  %21117 = vmatprep.subr.bf16.mxu1 %v26719_v23 }
 0x45a   : > { %v21118_v9 = vpack.c.bf16 %v3073_v7, %v3072_v8  ;;  %v2972_v28 = vadd.f32 %v2971_v15, %v24462_v17 }
 0x45b   : > { %v3075_v11 = vmax.f32 %v2977_v63, 0.0 }
 0x45c   : > { %v3074_v12 = vmax.f32 %v2972_v28, 0.0  ;;  %v19573_v62 = vpop.f32.mrb[48].mxu1  ;;  %21119 = vmatpush1.bf16.msra.mxu1 %v21118_v9 }
 0x45d   : > { %v2987_v34 = vadd.f32 %v19573_v62, %v24466_v21  ;;  %v2981_v10 = vpop.f32.mrb[49].mxu1  ;;  %21120 = vmatprep.subr.bf16.mxu1 %v26719_v23 }
 0x45e   : > { %v21121_v13 = vpack.c.bf16 %v3075_v11, %v3074_v12  ;;  %v2982_v24 = vadd.f32 %v2981_v10, %v24468_v22 }
 0x45f   : > { %v3077_v2 = vmax.f32 %v2987_v34, 0.0 }
 0x460   : > { %v3076_v16 = vmax.f32 %v2982_v24, 0.0  ;;  %v19576_v57 = vpop.f32.mrb[50].mxu1  ;;  %21122 = vmatpush1.bf16.msra.mxu1 %v21121_v13  ;;  %v2486_v24 = vld [vmem:[#allocation6 + $0x18] sm:$0xff] }
 0x461   : > { %v2997_v53 = vadd.f32 %v19576_v57, %v24472_v25  ;;  %v2991_v55 = vpop.f32.mrb[51].mxu1  ;;  %21123 = vmatprep.subr.bf16.mxu1 %v26719_v23  ;;  %v2488_v57 = vld [vmem:[#allocation6 + $0x28] sm:$0xff] }
 0x462   : > { %v21124_v17 = vpack.c.bf16 %v3077_v2, %v3076_v16  ;;  %v2992_v58 = vadd.f32 %v2991_v55, %v24474_v26  ;;  %v2485_v16 = vld [vmem:[#allocation6 + $0x10] sm:$0xff] }
 0x463   : > { %v3079_v31 = vmax.f32 %v2997_v53, 0.0 }
 0x464   : > { %v3078_v21 = vmax.f32 %v2992_v58, 0.0  ;;  %v19579_v56 = vpop.f32.mrb[52].mxu1  ;;  %21125 = vmatpush1.bf16.msra.mxu1 %v21124_v17  ;;  %v2487_v17 = vld [vmem:[#allocation6 + $0x20] sm:$0xff]  ;;  %v2490_v58 = vld [vmem:[#allocation6 + $0x38] sm:$0xff] }
 0x465   : > { %v3007_v3 = vadd.f32 %v19579_v56, %v24478_v29  ;;  %v3001_v52 = vpop.f32.mrb[53].mxu1  ;;  %21126 = vmatprep.subr.bf16.mxu1 %v26719_v23  ;;  %v2489_v56 = vld [vmem:[#allocation6 + $0x30] sm:$0xff] }
 0x466   : > { %v21127_v22 = vpack.c.bf16 %v3079_v31, %v3078_v21  ;;  %v3002_v14 = vadd.f32 %v3001_v52, %v24480_v30 }
 0x467   : > { %v3081_v27 = vmax.f32 %v3007_v3, 0.0  ;;  %v2492_v3 = vld [vmem:[#allocation6 + $0x48] sm:$0xff] }
 0x468   : > { %v3080_v25 = vmax.f32 %v3002_v14, 0.0  ;;  %v19582_v60 = vpop.f32.mrb[54].mxu1  ;;  %21128 = vmatpush1.bf16.msra.mxu1 %v21127_v22  ;;  %v2491_v14 = vld [vmem:[#allocation6 + $0x40] sm:$0xff] }
 0x469   : > { %v3017_v37 = vadd.f32 %v19582_v60, %v24484_v33  ;;  %v3011_v59 = vpop.f32.mrb[55].mxu1  ;;  %21129 = vmatprep.subr.bf16.mxu1 %v26719_v23 }
 0x46a   : > { %v21130_v26 = vpack.c.bf16 %v3081_v27, %v3080_v25  ;;  %v3012_v40 = vadd.f32 %v3011_v59, %v24486_v35  ;;  %v2494_v27 = vld [vmem:[#allocation6 + $0x58] sm:$0xff]  ;;  %v2496_v59 = vld [vmem:[#allocation6 + $0x68] sm:$0xff] }
 0x46b   : > { %v3083_v61 = vmax.f32 %v3017_v37, 0.0  ;;  %v2493_v37 = vld [vmem:[#allocation6 + $0x50] sm:$0xff] }
 0x46c   : > { %v3082_v29 = vmax.f32 %v3012_v40, 0.0  ;;  %v19585_v44 = vpop.f32.mrb[56].mxu1  ;;  %21131 = vmatpush1.bf16.msra.mxu1 %v21130_v26 }
 0x46d   : > { %v3027_v41 = vadd.f32 %v19585_v44, %v24490_v38  ;;  %v3021_v0 = vpop.f32.mrb[57].mxu1  ;;  %21132 = vmatprep.subr.bf16.mxu1 %v26719_v23 }
 0x46e   : > { %v21133_v30 = vpack.c.bf16 %v3083_v61, %v3082_v29  ;;  %v3022_v32 = vadd.f32 %v3021_v0, %v24492_v39  ;;  %v2495_v61 = vld [vmem:[#allocation6 + $0x60] sm:$0xff]  ;;  %v2498_v29 = vld [vmem:[#allocation6 + $0x78] sm:$0xff]  ;;  %v2497_v0 = vld [vmem:[#allocation6 + $0x70] sm:$0xff] }
 0x46f   : > { %v3085_v48 = vmax.f32 %v3027_v41, 0.0 }
 0x470   : > { %v3084_v33 = vmax.f32 %v3022_v32, 0.0  ;;  %v19588_v6 = vpop.f32.mrb[58].mxu1  ;;  %21134 = vmatpush1.bf16.msra.mxu1 %v21133_v30  ;;  %v2500_v30 = vld [vmem:[#allocation6 + $0x88] sm:$0xff] }
 0x471   : > { %v3037_v1 = vadd.f32 %v19588_v6, %v24496_v42  ;;  %v3031_v45 = vpop.f32.mrb[59].mxu1  ;;  %21135 = vmatprep.subr.bf16.mxu1 %v26719_v23  ;;  %v2502_v6 = vld [vmem:[#allocation6 + $0x98] sm:$0xff] }
 0x472   : > { %v21136_v35 = vpack.c.bf16 %v3085_v48, %v3084_v33  ;;  %v3032_v49 = vadd.f32 %v3031_v45, %v24498_v43  ;;  %v2499_v33 = vld [vmem:[#allocation6 + $0x80] sm:$0xff] }
 0x473   : > { %v3087_v4 = vmax.f32 %v3037_v1, 0.0  ;;  %v24707_v38 = vpop.f32.mrb[6].mxu0 }
 0x474   : > { %v3086_v18 = vmax.f32 %v3032_v49, 0.0  ;;  %v19591_v20 = vpop.f32.mrb[60].mxu1  ;;  %21137 = vmatpush1.bf16.msra.mxu1 %v21136_v35  ;;  %v2262_v36 = vpop.f32.mrb[7].mxu0  ;;  %v2501_v35 = vld [vmem:[#allocation6 + $0x90] sm:$0xff]  ;;  %v2504_v49 = vld [vmem:[#allocation6 + $0xa8] sm:$0xff] }
 0x475   : > { %v3047_v39 = vadd.f32 %v19591_v20, %v24502_v46  ;;  %v3041_v5 = vpop.f32.mrb[61].mxu1  ;;  %21138 = vmatprep.subr.bf16.mxu1 %v26719_v23  ;;  %v2503_v20 = vld [vmem:[#allocation6 + $0xa0] sm:$0xff]  ;;  %v2506_v36 = vld [vmem:[#allocation6 + $0xb8] sm:$0xff] }
 0x476   : > { %v21139_v19 = vpack.c.bf16 %v3087_v4, %v3086_v18  ;;  %v3042_v42 = vadd.f32 %v3041_v5, %v24504_v47 }
 0x477   : > { %v3089_v7 = vmax.f32 %v3047_v39, 0.0  ;;  %v24712_v8 = vpop.f32.mrb[8].mxu0 }
 0x478   : > { %v3088_v54 = vmax.f32 %v3042_v42, 0.0  ;;  %v19594_v43 = vpop.f32.mrb[62].mxu1  ;;  %21140 = vmatpush1.bf16.msra.mxu1 %v21139_v19  ;;  %v2267_v63 = vpop.f32.mrb[9].mxu0  ;;  %v2505_v19 = vld [vmem:[#allocation6 + $0xb0] sm:$0xff]  ;;  %v2508_v42 = vld [vmem:[#allocation6 + $0xc8] sm:$0xff] }
 0x479   : > { %v3057_v15 = vadd.f32 %v19594_v43, %v24508_v50  ;;  %v3051_v9 = vpop.f32.mrb[63].mxu1  ;;  %21141 = vmatprep.subr.bf16.mxu1 %v26719_v23  ;;  %v2483_v50 = vld [vmem:[#allocation6] sm:$0xff]  ;;  %v2510_v63 = vld [vmem:[#allocation6 + $0xd8] sm:$0xff] }
 0x47a   : > { %v21142_v28 = vpack.c.bf16 %v3089_v7, %v3088_v54  ;;  %v3052_v46 = vadd.f32 %v3051_v9, %v24510_v51  ;;  %v2507_v43 = vld [vmem:[#allocation6 + $0xc0] sm:$0xff] }
 0x47b   : > { %v3091_v11 = vmax.f32 %v3057_v15, 0.0  ;;  %v24717_v12 = vpop.f32.mrb[10].mxu0 }
 0x47c   : > { %v3090_v62 = vmax.f32 %v3052_v46, 0.0  ;;  %21143 = vmatpush1.bf16.msra.mxu1 %v21142_v28  ;;  %v2272_v47 = vpop.f32.mrb[11].mxu0  ;;  %v2509_v28 = vld [vmem:[#allocation6 + $0xd0] sm:$0xff]  ;;  %v2512_v46 = vld [vmem:[#allocation6 + $0xe8] sm:$0xff] }
 0x47d   : > { %21144 = vmatprep.subr.bf16.mxu1 %v26719_v23  ;;  %v2511_v47 = vld [vmem:[#allocation6 + $0xe0] sm:$0xff] }
 0x47e   : > { %v21145_v34 = vpack.c.bf16 %v3091_v11, %v3090_v62 }
 0x47f   : > { %v24720_v10 = vpop.f32.mrb[12].mxu0 }
 0x480   : > { %21146 = vmatpush1.bf16.msra.mxu1 %v21145_v34  ;;  %v2277_v13 = vpop.f32.mrb[13].mxu0  ;;  %v2514_v34 = vld [vmem:[#allocation6 + $0xf8] sm:$0xff] }
 0x481   : > { %21147 = vmatprep.subr.bf16.mxu1 %v26719_v23 }
 0x483   : > { %v24723_v2 = vpop.f32.mrb[14].mxu0  ;;  %3317 = vmatmul.mubr.f32.vlgmr.msra.gmra.mrb[64].mxu1 %v2483_v50 }
 0x484   : > { %v2282_v51 = vpop.f32.mrb[15].mxu0  ;;  %3321 = vmatprep.mubr.f32.mxu1 %v2486_v24  ;;  %v2513_v24 = vld [vmem:[#allocation6 + $0xf0] sm:$0xff] }
 0x485   : > { %v2516_v51 = vld [vmem:[#allocation6 + $0x108] sm:$0xff] }
 0x487   : > { %v24725_v53 = vpop.f32.mrb[16].mxu0  ;;  %3322 = vmatmul.mubr.f32.gmra.mrb[66].mxu1 %v2485_v16 }
 0x488   : > { %v2287_v55 = vpop.f32.mrb[17].mxu0  ;;  %3326 = vmatprep.mubr.f32.mxu1 %v2488_v57 }
 0x489   : > { %v2515_v55 = vld [vmem:[#allocation6 + $0x100] sm:$0xff] }
 0x48b   : > { %v24727_v31 = vpop.f32.mrb[18].mxu0  ;;  %3327 = vmatmul.mubr.f32.gmra.mrb[68].mxu1 %v2487_v17  ;;  %v2518_v17 = vld [vmem:[#allocation6 + $0x118] sm:$0xff] }
 0x48c   : > { %v2292_v21 = vpop.f32.mrb[19].mxu0  ;;  %3331 = vmatprep.mubr.f32.mxu1 %v2490_v58 }
 0x48f   : > { %v24729_v52 = vpop.f32.mrb[20].mxu0  ;;  %3332 = vmatmul.mubr.f32.gmra.mrb[70].mxu1 %v2489_v56  ;;  %v2517_v56 = vld [vmem:[#allocation6 + $0x110] sm:$0xff] }
 0x490   : > { %v2297_v22 = vpop.f32.mrb[21].mxu0  ;;  %3336 = vmatprep.mubr.f32.mxu1 %v2492_v3  ;;  %v2520_v3 = vld [vmem:[#allocation6 + $0x128] sm:$0xff] }
 0x493   : > { %v24731_v25 = vpop.f32.mrb[22].mxu0  ;;  %3337 = vmatmul.mubr.f32.gmra.mrb[72].mxu1 %v2491_v14 }
 0x494   : > { %v2302_v60 = vpop.f32.mrb[23].mxu0  ;;  %3341 = vmatprep.mubr.f32.mxu1 %v2494_v27  ;;  %v2519_v27 = vld [vmem:[#allocation6 + $0x120] sm:$0xff] }
 0x495   : > { %v2522_v60 = vld [vmem:[#allocation6 + $0x138] sm:$0xff] }
 0x497   : > { %v24733_v26 = vpop.f32.mrb[24].mxu0  ;;  %3342 = vmatmul.mubr.f32.gmra.mrb[74].mxu1 %v2493_v37 }
 0x498   : > { %v2307_v40 = vpop.f32.mrb[25].mxu0  ;;  %3346 = vmatprep.mubr.f32.mxu1 %v2496_v59 }
 0x499   : > { %v2521_v40 = vld [vmem:[#allocation6 + $0x130] sm:$0xff] }
 0x49b   : > { %v24735_v44 = vpop.f32.mrb[26].mxu0  ;;  %3347 = vmatmul.mubr.f32.gmra.mrb[76].mxu1 %v2495_v61  ;;  %v2524_v61 = vld [vmem:[#allocation6 + $0x148] sm:$0xff] }
 0x49c   : > { %v2312_v41 = vpop.f32.mrb[27].mxu0  ;;  %3351 = vmatprep.mubr.f32.mxu1 %v2498_v29 }
 0x49f   : > { %v24737_v32 = vpop.f32.mrb[28].mxu0  ;;  %3352 = vmatmul.mubr.f32.gmra.mrb[78].mxu1 %v2497_v0  ;;  %v2523_v0 = vld [vmem:[#allocation6 + $0x140] sm:$0xff] }
 0x4a0   : > { %v2317_v48 = vpop.f32.mrb[29].mxu0  ;;  %3356 = vmatprep.mubr.f32.mxu1 %v2500_v30  ;;  %v2526_v30 = vld [vmem:[#allocation6 + $0x158] sm:$0xff] }
 0x4a3   : > { %v24739_v1 = vpop.f32.mrb[30].mxu0  ;;  %3357 = vmatmul.mubr.f32.gmra.mrb[80].mxu1 %v2499_v33 }
 0x4a4   : > { %v2322_v45 = vpop.f32.mrb[31].mxu0  ;;  %3361 = vmatprep.mubr.f32.mxu1 %v2502_v6  ;;  %v2525_v6 = vld [vmem:[#allocation6 + $0x150] sm:$0xff] }
 0x4a5   : > { %v2528_v45 = vld [vmem:[#allocation6 + $0x168] sm:$0xff] }
 0x4a7   : > { %v24741_v4 = vpop.f32.mrb[32].mxu0  ;;  %3362 = vmatmul.mubr.f32.gmra.mrb[82].mxu1 %v2501_v35 }
 0x4a8   : > { %v2327_v18 = vpop.f32.mrb[33].mxu0  ;;  %3366 = vmatprep.mubr.f32.mxu1 %v2504_v49 }
 0x4a9   : > { %v2527_v18 = vld [vmem:[#allocation6 + $0x160] sm:$0xff] }
 0x4ab   : > { %v24743_v39 = vpop.f32.mrb[34].mxu0  ;;  %3367 = vmatmul.mubr.f32.gmra.mrb[84].mxu1 %v2503_v20  ;;  %v2530_v20 = vld [vmem:[#allocation6 + $0x178] sm:$0xff] }
 0x4ac   : > { %v2332_v5 = vpop.f32.mrb[35].mxu0  ;;  %3371 = vmatprep.mubr.f32.mxu1 %v2506_v36  ;;  %v3478_v36 = vld [vmem:[#allocation9] sm:$0xff] }
 0x4ad   : > { %19595 = vmatprep.subr.mxu0 %v3478_v36 }
 0x4ae   : > { %19596 = vmatpush3.msra.mxu0 %v3478_v36 }
 0x4af   : > { %v24745_v7 = vpop.f32.mrb[36].mxu0  ;;  %3372 = vmatmul.mubr.f32.gmra.mrb[86].mxu1 %v2505_v19 }
 0x4b0   : > { %v2337_v54 = vpop.f32.mrb[37].mxu0  ;;  %3376 = vmatprep.mubr.f32.mxu1 %v2508_v42  ;;  %v2529_v42 = vld [vmem:[#allocation6 + $0x170] sm:$0xff] }
 0x4b1   : > { %v2532_v54 = vld [vmem:[#allocation6 + $0x188] sm:$0xff] }
 0x4b3   : > { %v24747_v15 = vpop.f32.mrb[38].mxu0  ;;  %3377 = vmatmul.mubr.f32.gmra.mrb[88].mxu1 %v2507_v43 }
 0x4b4   : > { %v2342_v9 = vpop.f32.mrb[39].mxu0  ;;  %3381 = vmatprep.mubr.f32.mxu1 %v2510_v63 }
 0x4b5   : > { %v2531_v9 = vld [vmem:[#allocation6 + $0x180] sm:$0xff] }
 0x4b7   : > { %v24749_v11 = vpop.f32.mrb[40].mxu0  ;;  %3382 = vmatmul.mubr.f32.gmra.mrb[90].mxu1 %v2509_v28  ;;  %v2534_v28 = vld [vmem:[#allocation6 + $0x198] sm:$0xff] }
 0x4b8   : > { %v2347_v62 = vpop.f32.mrb[41].mxu0  ;;  %3386 = vmatprep.mubr.f32.mxu1 %v2512_v46 }
 0x4bb   : > { %v24751_v13 = vpop.f32.mrb[42].mxu0  ;;  %3387 = vmatmul.mubr.f32.gmra.mrb[92].mxu1 %v2511_v47  ;;  %v2533_v47 = vld [vmem:[#allocation6 + $0x190] sm:$0xff] }
 0x4bc   : > { %v2352_v50 = vpop.f32.mrb[43].mxu0  ;;  %3391 = vmatprep.mubr.f32.mxu1 %v2514_v34  ;;  %v2536_v34 = vld [vmem:[#allocation6 + $0x1a8] sm:$0xff] }
 0x4bf   : > { %v24753_v16 = vpop.f32.mrb[44].mxu0  ;;  %3392 = vmatmul.mubr.f32.gmra.mrb[94].mxu1 %v2513_v24 }
 0x4c0   : > { %v2357_v57 = vpop.f32.mrb[45].mxu0  ;;  %3396 = vmatprep.mubr.f32.mxu1 %v2516_v51  ;;  %v2535_v51 = vld [vmem:[#allocation6 + $0x1a0] sm:$0xff] }
 0x4c1   : > { %v2538_v57 = vld [vmem:[#allocation6 + $0x1b8] sm:$0xff] }
 0x4c3   : > { %v24755_v58 = vpop.f32.mrb[46].mxu0  ;;  %3397 = vmatmul.mubr.f32.gmra.mrb[96].mxu1 %v2515_v55 }
 0x4c4   : > { %v2362_v21 = vpop.f32.mrb[47].mxu0  ;;  %3401 = vmatprep.mubr.f32.mxu1 %v2518_v17 }
 0x4c5   : > { %v2537_v21 = vld [vmem:[#allocation6 + $0x1b0] sm:$0xff] }
 0x4c7   : > { %v24757_v22 = vpop.f32.mrb[48].mxu0  ;;  %3402 = vmatmul.mubr.f32.gmra.mrb[98].mxu1 %v2517_v56  ;;  %v2540_v56 = vld [vmem:[#allocation6 + $0x1c8] sm:$0xff] }
 0x4c8   : > { %v2367_v14 = vpop.f32.mrb[49].mxu0  ;;  %3406 = vmatprep.mubr.f32.mxu1 %v2520_v3 }
 0x4c9   : > { %v2539_v14 = vld [vmem:[#allocation6 + $0x1c0] sm:$0xff] }
 0x4cb   : > { %v24759_v37 = vpop.f32.mrb[50].mxu0  ;;  %3407 = vmatmul.mubr.f32.gmra.mrb[100].mxu1 %v2519_v27 }
 0x4cc   : > { %v2372_v59 = vpop.f32.mrb[51].mxu0  ;;  %3411 = vmatprep.mubr.f32.mxu1 %v2522_v60  ;;  %v2542_v60 = vld [vmem:[#allocation6 + $0x1d8] sm:$0xff] }
 0x4cd   : > { %v2541_v59 = vld [vmem:[#allocation6 + $0x1d0] sm:$0xff] }
 0x4cf   : > { %v24761_v29 = vpop.f32.mrb[52].mxu0  ;;  %3412 = vmatmul.mubr.f32.gmra.mrb[102].mxu1 %v2521_v40  ;;  %v2544_v40 = vld [vmem:[#allocation6 + $0x1e8] sm:$0xff] }
 0x4d0   : > { %v2377_v41 = vpop.f32.mrb[53].mxu0  ;;  %3416 = vmatprep.mubr.f32.mxu1 %v2524_v61  ;;  %v2543_v61 = vld [vmem:[#allocation6 + $0x1e0] sm:$0xff] }
 0x4d1   : > { %v2546_v41 = vld [vmem:[#allocation6 + $0x1f8] sm:$0xff] }
 0x4d3   : > { %v24763_v48 = vpop.f32.mrb[54].mxu0  ;;  %3417 = vmatmul.mubr.f32.gmra.mrb[104].mxu1 %v2523_v0  ;;  %v2545_v0 = vld [vmem:[#allocation6 + $0x1f0] sm:$0xff] }
 0x4d4   : > { %v2382_v33 = vpop.f32.mrb[55].mxu0  ;;  %3421 = vmatprep.mubr.f32.mxu1 %v2526_v30  ;;  %v3095_v30 = vpop.permute.xlu0 %3094 }
 0x4d7   : > { %v24765_v35 = vpop.f32.mrb[56].mxu0  ;;  %3422 = vmatmul.mubr.f32.gmra.mrb[106].mxu1 %v2525_v6  ;;  %v3477_v6 = vld [vmem:[#allocation7] sm:$0xff] }
 0x4d8   : > { %v2387_v49 = vpop.f32.mrb[57].mxu0  ;;  %3426 = vmatprep.mubr.f32.mxu1 %v2528_v45  ;;  %19645 = vmatprep.subr.mxu0 %v3477_v6  ;;  %v3105_v36 = vpop.permute.xlu0 %3104 }
 0x4db   : > { %v24767_v5 = vpop.f32.mrb[58].mxu0  ;;  %3427 = vmatmul.mubr.f32.gmra.mrb[108].mxu1 %v2527_v18  ;;  %v3100_v18 = vpop.permute.xlu1 %3099 }
 0x4dc   : > { %v2392_v19 = vpop.f32.mrb[59].mxu0  ;;  %3431 = vmatprep.mubr.f32.mxu1 %v2530_v20 }
 0x4df   : > { %v24769_v43 = vpop.f32.mrb[60].mxu0  ;;  %3432 = vmatmul.mubr.f32.gmra.mrb[110].mxu1 %v2529_v42 }
 0x4e0   : > { %v2397_v63 = vpop.f32.mrb[61].mxu0  ;;  %3436 = vmatprep.mubr.f32.mxu1 %v2532_v54  ;;  %v3110_v54 = vpop.permute.xlu1 %3109 }
 0x4e3   : > { %v24771_v46 = vpop.f32.mrb[62].mxu0  ;;  %3437 = vmatmul.mubr.f32.gmra.mrb[112].mxu1 %v2531_v9 }
 0x4e4   : > { %v2402_v62 = vpop.f32.mrb[63].mxu0  ;;  %3441 = vmatprep.mubr.f32.mxu1 %v2534_v28 }
 0x4e5   : > { %v3115_v62 = vpop.permute.xlu0 %3114 }
 0x4e7   : > { %v24773_v50 = vpop.f32.mrb[64].mxu0  ;;  %3442 = vmatmul.mubr.f32.gmra.mrb[114].mxu1 %v2533_v47 }
 0x4e8   : > { %v2407_v24 = vpop.f32.mrb[65].mxu0  ;;  %3446 = vmatprep.mubr.f32.mxu1 %v2536_v34 }
 0x4eb   : > { %v24775_v55 = vpop.f32.mrb[66].mxu0  ;;  %3447 = vmatmul.mubr.f32.gmra.mrb[116].mxu1 %v2535_v51  ;;  %v3120_v51 = vpop.permute.xlu1 %3119 }
 0x4ec   : > { %v2412_v17 = vpop.f32.mrb[67].mxu0  ;;  %3451 = vmatprep.mubr.f32.mxu1 %v2538_v57 }
 0x4ed   : > { %v3125_v17 = vpop.permute.xlu0 %3124 }
 0x4ef   : > { %v24777_v3 = vpop.f32.mrb[68].mxu0  ;;  %3452 = vmatmul.mubr.f32.gmra.mrb[118].mxu1 %v2537_v21 }
 0x4f0   : > { %3456 = vmatprep.mubr.f32.mxu1 %v2540_v56  ;;  %v2417_v27 = vpop.f32.mrb[69].mxu0 }
 0x4f3   : > { %3457 = vmatmul.mubr.f32.gmra.mrb[120].mxu1 %v2539_v14  ;;  %v3130_v14 = vpop.permute.xlu1 %3129 }
 0x4f4   : > { %3461 = vmatprep.mubr.f32.mxu1 %v2542_v60 }
 0x4f7   : > { %3462 = vmatmul.mubr.f32.gmra.mrb[122].mxu1 %v2541_v59 }
 0x4f8   : > { %3466 = vmatprep.mubr.f32.mxu1 %v2544_v40  ;;  %v3135_v40 = vpop.permute.xlu0 %3134 }
 0x4fb   : > { %3467 = vmatmul.mubr.f32.gmra.mrb[124].mxu1 %v2543_v61 }
 0x4fc   : > { %3471 = vmatprep.mubr.f32.mxu1 %v2546_v41 }
 0x4ff   : > { %3472 = vmatmul.mubr.f32.gmra.mrb[126].mxu1 %v2545_v0 }
 0x556   : > { %v3318_v33 = vpop.f32.mrb[64].mxu1 }
 0x557   : > { %v3319_v45 = vadd.f32 %v3318_v33, %v3095_v30  ;;  %v3320_v49 = vpop.f32.mrb[65].mxu1  ;;  %v3140_v30 = vpop.permute.xlu1 %3139 }
 0x559   : > { %19597 = vmatprep.mubr.msk.f32.mxu0 %vm3479_vm1, %v3319_v45 }
 0x55a   : > { %v3323_v20 = vpop.f32.mrb[66].mxu1 }
 0x55b   : > { %v3324_v19 = vadd.f32 %v3323_v20, %v3100_v18  ;;  %v3325_v42 = vpop.f32.mrb[67].mxu1  ;;  %v3150_v18 = vpop.permute.xlu1 %3149 }
 0x55d   : > { %19598 = vmatmul.mubr.msk.f32.vlgmr.msra.gmra.mrb[70].mxu0 %vm3479_vm1, %v3324_v19 }
 0x55e   : > { %v3328_v63 = vpop.f32.mrb[68].mxu1  ;;  %19646 = vmatpush3.msra.mxu0 %v3477_v6  ;;  %v3145_v6 = vpop.permute.xlu0 %3144 }
 0x55f   : > { %v3329_v9 = vadd.f32 %v3328_v63, %v3105_v36  ;;  %v3330_v28 = vpop.f32.mrb[69].mxu1  ;;  %21195 = vmatprep.subr.bf16.mxu0 %v26719_v23 }
 0x560   : > { %v3160_v28 = vpop.permute.xlu1 %3159 }
 0x561   : > { %19600 = vmatprep.mubr.msk.f32.mxu0 %vm3479_vm1, %v3329_v9 }
 0x562   : > { %v3333_v47 = vpop.f32.mrb[70].mxu1  ;;  %v3155_v42 = vpop.permute.xlu0 %3154 }
 0x563   : > { %v3334_v34 = vadd.f32 %v3333_v47, %v3110_v54  ;;  %v3335_v24 = vpop.f32.mrb[71].mxu1 }
 0x565   : > { %19601 = vmatmul.mubr.msk.f32.gmra.mrb[72].mxu0 %vm3479_vm1, %v3334_v34 }
 0x566   : > { %v3338_v57 = vpop.f32.mrb[72].mxu1  ;;  %v3165_v47 = vpop.permute.xlu0 %3164 }
 0x567   : > { %v3339_v21 = vadd.f32 %v3338_v57, %v3115_v62  ;;  %v3340_v56 = vpop.f32.mrb[73].mxu1 }
 0x569   : > { %19603 = vmatprep.mubr.msk.f32.mxu0 %vm3479_vm1, %v3339_v21 }
 0x56a   : > { %v3343_v27 = vpop.f32.mrb[74].mxu1  ;;  %v3175_v56 = vpop.permute.xlu0 %3174 }
 0x56b   : > { %v3344_v60 = vadd.f32 %v3343_v27, %v3120_v51  ;;  %v3345_v59 = vpop.f32.mrb[75].mxu1  ;;  %v3170_v51 = vpop.permute.xlu1 %3169 }
 0x56d   : > { %19604 = vmatmul.mubr.msk.f32.gmra.mrb[74].mxu0 %vm3479_vm1, %v3344_v60 }
 0x56e   : > { %v3348_v61 = vpop.f32.mrb[76].mxu1 }
 0x56f   : > { %v3349_v41 = vadd.f32 %v3348_v61, %v3125_v17  ;;  %v3350_v0 = vpop.f32.mrb[77].mxu1  ;;  %v3180_v59 = vpop.permute.xlu1 %3179 }
 0x570   : > { %v3185_v61 = vpop.permute.xlu0 %3184 }
 0x571   : > { %19606 = vmatprep.mubr.msk.f32.mxu0 %vm3479_vm1, %v3349_v41 }
 0x572   : > { %v3353_v33 = vpop.f32.mrb[78].mxu1 }
 0x573   : > { %v3354_v45 = vadd.f32 %v3353_v33, %v3130_v14  ;;  %v3355_v49 = vpop.f32.mrb[79].mxu1 }
 0x574   : > { %v3195_v49 = vpop.permute.xlu0 %3194 }
 0x575   : > { %19607 = vmatmul.mubr.msk.f32.gmra.mrb[76].mxu0 %vm3479_vm1, %v3354_v45 }
 0x576   : > { %v3358_v20 = vpop.f32.mrb[80].mxu1 }
 0x577   : > { %v3359_v36 = vadd.f32 %v3358_v20, %v3135_v40  ;;  %v3360_v19 = vpop.f32.mrb[81].mxu1 }
 0x579   : > { %19609 = vmatprep.mubr.msk.f32.mxu0 %vm3479_vm1, %v3359_v36 }
 0x57a   : > { %v3363_v54 = vpop.f32.mrb[82].mxu1 }
 0x57b   : > { %v3364_v63 = vadd.f32 %v3363_v54, %v3140_v30  ;;  %v3365_v9 = vpop.f32.mrb[83].mxu1  ;;  %v3190_v30 = vpop.permute.xlu1 %3189 }
 0x57c   : > { %v3205_v54 = vpop.permute.xlu0 %3204 }
 0x57d   : > { %19610 = vmatmul.mubr.msk.f32.gmra.mrb[78].mxu0 %vm3479_vm1, %v3364_v63 }
 0x57e   : > { %v3368_v62 = vpop.f32.mrb[84].mxu1 }
 0x57f   : > { %v3369_v34 = vadd.f32 %v3368_v62, %v3145_v6  ;;  %v3370_v24 = vpop.f32.mrb[85].mxu1  ;;  %v3200_v19 = vpop.permute.xlu1 %3199 }
 0x580   : > { %v3215_v24 = vpop.permute.xlu0 %3214 }
 0x581   : > { %19612 = vmatprep.mubr.msk.f32.mxu0 %vm3479_vm1, %v3369_v34 }
 0x582   : > { %v3373_v57 = vpop.f32.mrb[86].mxu1 }
 0x583   : > { %v3374_v17 = vadd.f32 %v3373_v57, %v3150_v18  ;;  %v3375_v21 = vpop.f32.mrb[87].mxu1 }
 0x585   : > { %19613 = vmatmul.mubr.msk.f32.gmra.mrb[80].mxu0 %vm3479_vm1, %v3374_v17 }
 0x586   : > { %v3378_v14 = vpop.f32.mrb[88].mxu1 }
 0x587   : > { %v3379_v27 = vadd.f32 %v3378_v14, %v3155_v42  ;;  %v3380_v60 = vpop.f32.mrb[89].mxu1 }
 0x589   : > { %19615 = vmatprep.mubr.msk.f32.mxu0 %vm3479_vm1, %v3379_v27  ;;  %v3225_v27 = vpop.permute.xlu0 %3224 }
 0x58a   : > { %v3383_v40 = vpop.f32.mrb[90].mxu1 }
 0x58b   : > { %v3384_v41 = vadd.f32 %v3383_v40, %v3160_v28  ;;  %v3385_v0 = vpop.f32.mrb[91].mxu1  ;;  %v3210_v28 = vpop.permute.xlu1 %3209 }
 0x58d   : > { %19616 = vmatmul.mubr.msk.f32.gmra.mrb[82].mxu0 %vm3479_vm1, %v3384_v41 }
 0x58e   : > { %v3388_v33 = vpop.f32.mrb[92].mxu1 }
 0x58f   : > { %v3389_v6 = vadd.f32 %v3388_v33, %v3165_v47  ;;  %v3390_v45 = vpop.f32.mrb[93].mxu1  ;;  %v3220_v21 = vpop.permute.xlu1 %3219 }
 0x590   : > { %v3235_v33 = vpop.permute.xlu0 %3234 }
 0x591   : > { %19618 = vmatprep.mubr.msk.f32.mxu0 %vm3479_vm1, %v3389_v6 }
 0x592   : > { %v3393_v18 = vpop.f32.mrb[94].mxu1 }
 0x593   : > { %v3394_v20 = vadd.f32 %v3393_v18, %v3170_v51  ;;  %v3395_v36 = vpop.f32.mrb[95].mxu1  ;;  %v3230_v40 = vpop.permute.xlu1 %3229 }
 0x594   : > { %v3245_v36 = vpop.permute.xlu0 %3244 }
 0x595   : > { %19619 = vmatmul.mubr.msk.f32.gmra.mrb[84].mxu0 %vm3479_vm1, %v3394_v20 }
 0x596   : > { %v3398_v42 = vpop.f32.mrb[96].mxu1 }
 0x597   : > { %v3399_v63 = vadd.f32 %v3398_v42, %v3175_v56  ;;  %v3400_v9 = vpop.f32.mrb[97].mxu1  ;;  %v3240_v18 = vpop.permute.xlu1 %3239 }
 0x599   : > { %19621 = vmatprep.mubr.msk.f32.mxu0 %vm3479_vm1, %v3399_v63 }
 0x59a   : > { %v3403_v62 = vpop.f32.mrb[98].mxu1 }
 0x59b   : > { %v3404_v34 = vadd.f32 %v3403_v62, %v3180_v59  ;;  %v3405_v47 = vpop.f32.mrb[99].mxu1  ;;  %v3250_v63 = vpop.permute.xlu1 %3249 }
 0x59d   : > { %19622 = vmatmul.mubr.msk.f32.gmra.mrb[86].mxu0 %vm3479_vm1, %v3404_v34  ;;  %v2037_v34 = vpop.permute.xlu0 %2036 }
 0x59e   : > { %v3408_v57 = vpop.f32.mrb[100].mxu1 }
 0x59f   : > { %v3409_v17 = vadd.f32 %v3408_v57, %v3185_v61  ;;  %v3410_v51 = vpop.f32.mrb[101].mxu1 }
 0x5a1   : > { %19624 = vmatprep.mubr.msk.f32.mxu0 %vm3479_vm1, %v3409_v17  ;;  %v2042_v17 = vpop.permute.xlu1 %2041 }
 0x5a2   : > { %v3413_v14 = vpop.f32.mrb[102].mxu1 }
 0x5a3   : > { %v3414_v60 = vadd.f32 %v3413_v14, %v3190_v30  ;;  %v3415_v56 = vpop.f32.mrb[103].mxu1  ;;  %v2047_v14 = vpop.permute.xlu0 %2046 }
 0x5a5   : > { %19625 = vmatmul.mubr.msk.f32.gmra.mrb[88].mxu0 %vm3479_vm1, %v3414_v60  ;;  %v2052_v56 = vpop.permute.xlu1 %2051 }
 0x5a6   : > { %v3418_v41 = vpop.f32.mrb[104].mxu1 }
 0x5a7   : > { %v3419_v0 = vadd.f32 %v3418_v41, %v3195_v49  ;;  %v3420_v59 = vpop.f32.mrb[105].mxu1 }
 0x5a8   : > { %v2057_v59 = vpop.permute.xlu0 %2056 }
 0x5a9   : > { %19627 = vmatprep.mubr.msk.f32.mxu0 %vm3479_vm1, %v3419_v0 }
 0x5aa   : > { %v3423_v6 = vpop.f32.mrb[106].mxu1 }
 0x5ab   : > { %v3424_v45 = vadd.f32 %v3423_v6, %v3200_v19  ;;  %v3425_v61 = vpop.f32.mrb[107].mxu1 }
 0x5ac   : > { %v2062_v61 = vpop.permute.xlu1 %2061 }
 0x5ad   : > { %19628 = vmatmul.mubr.msk.f32.gmra.mrb[90].mxu0 %vm3479_vm1, %v3424_v45 }
 0x5ae   : > { %v3428_v20 = vpop.f32.mrb[108].mxu1 }
 0x5af   : > { %v3429_v42 = vadd.f32 %v3428_v20, %v3205_v54  ;;  %v3430_v30 = vpop.f32.mrb[109].mxu1 }
 0x5b1   : > { %19630 = vmatprep.mubr.msk.f32.mxu0 %vm3479_vm1, %v3429_v42  ;;  %v2067_v42 = vpop.permute.xlu0 %2066 }
 0x5b2   : > { %v3433_v9 = vpop.f32.mrb[110].mxu1 }
 0x5b3   : > { %v3434_v62 = vadd.f32 %v3433_v9, %v3210_v28  ;;  %v3435_v49 = vpop.f32.mrb[111].mxu1  ;;  %v2072_v9 = vpop.permute.xlu1 %2071 }
 0x5b5   : > { %19631 = vmatmul.mubr.msk.f32.gmra.mrb[92].mxu0 %vm3479_vm1, %v3434_v62 }
 0x5b6   : > { %v3438_v47 = vpop.f32.mrb[112].mxu1 }
 0x5b7   : > { %v3439_v57 = vadd.f32 %v3438_v47, %v3215_v24  ;;  %v3440_v19 = vpop.f32.mrb[113].mxu1  ;;  %v2077_v47 = vpop.permute.xlu0 %2076 }
 0x5b9   : > { %19633 = vmatprep.mubr.msk.f32.mxu0 %vm3479_vm1, %v3439_v57 }
 0x5ba   : > { %v3443_v51 = vpop.f32.mrb[114].mxu1 }
 0x5bb   : > { %v3444_v60 = vadd.f32 %v3443_v51, %v3220_v21  ;;  %v3445_v54 = vpop.f32.mrb[115].mxu1  ;;  %v2082_v51 = vpop.permute.xlu1 %2081 }
 0x5bc   : > { %v2087_v54 = vpop.permute.xlu0 %2086 }
 0x5bd   : > { %19634 = vmatmul.mubr.msk.f32.gmra.mrb[94].mxu0 %vm3479_vm1, %v3444_v60 }
 0x5be   : > { %v3448_v41 = vpop.f32.mrb[116].mxu1 }
 0x5bf   : > { %v3449_v0 = vadd.f32 %v3448_v41, %v3225_v27  ;;  %v3450_v28 = vpop.f32.mrb[117].mxu1 }
 0x5c0   : > { %v2092_v28 = vpop.permute.xlu1 %2091 }
 0x5c1   : > { %19636 = vmatprep.mubr.msk.f32.mxu0 %vm3479_vm1, %v3449_v0  ;;  %v2261_v0 = vadd.f32 %v24707_v38, %v2037_v34  ;;  %v2286_v34 = vadd.f32 %v24725_v53, %v2062_v61  ;;  %v2311_v53 = vadd.f32 %v24735_v44, %v2087_v54 }
 0x5c2   : > { %v3453_v6 = vpop.f32.mrb[118].mxu1 }
 0x5c3   : > { %v3454_v45 = vadd.f32 %v3453_v6, %v3230_v40  ;;  %v3455_v24 = vpop.f32.mrb[119].mxu1  ;;  %v2271_v6 = vadd.f32 %v24717_v12, %v2047_v14 }
 0x5c4   : > { %v2281_v24 = vadd.f32 %v24723_v2, %v2057_v59  ;;  %v2306_v2 = vadd.f32 %v24733_v26, %v2082_v51  ;;  %v2316_v59 = vadd.f32 %v24737_v32, %v2092_v28 }
 0x5c5   : > { %19637 = vmatmul.mubr.msk.f32.gmra.mrb[96].mxu0 %vm3479_vm1, %v3454_v45  ;;  %v2276_v45 = vadd.f32 %v24720_v10, %v2052_v56  ;;  %v2301_v10 = vadd.f32 %v24731_v25, %v2077_v47 }
 0x5c6   : > { %v3458_v20 = vpop.f32.mrb[120].mxu1 }
 0x5c7   : > { %v3459_v30 = vadd.f32 %v3458_v20, %v3235_v33  ;;  %v3460_v21 = vpop.f32.mrb[121].mxu1 }
 0x5c9   : > { %19639 = vmatprep.mubr.msk.f32.mxu0 %vm3479_vm1, %v3459_v30 }
 0x5ca   : > { %v3463_v62 = vpop.f32.mrb[122].mxu1 }
 0x5cb   : > { %v3464_v49 = vadd.f32 %v3463_v62, %v3240_v18  ;;  %v3465_v27 = vpop.f32.mrb[123].mxu1  ;;  %v2266_v18 = vadd.f32 %v24712_v8, %v2042_v17  ;;  %v2291_v8 = vadd.f32 %v24727_v31, %v2067_v42  ;;  %v2296_v17 = vadd.f32 %v24729_v52, %v2072_v9 }
 0x5cd   : > { %19640 = vmatmul.mubr.msk.f32.gmra.mrb[98].mxu0 %vm3479_vm1, %v3464_v49 }
 0x5ce   : > { %v3468_v57 = vpop.f32.mrb[124].mxu1 }
 0x5cf   : > { %v3469_v19 = vadd.f32 %v3468_v57, %v3245_v36  ;;  %v3470_v40 = vpop.f32.mrb[125].mxu1  ;;  %v2097_v36 = vpop.permute.xlu0 %2096 }
 0x5d0   : > { %v2321_v52 = vadd.f32 %v24739_v1, %v2097_v36 }
 0x5d1   : > { %19642 = vmatprep.mubr.msk.f32.mxu0 %vm3479_vm1, %v3469_v19 }
 0x5d2   : > { %v3473_v60 = vpop.f32.mrb[126].mxu1 }
 0x5d3   : > { %v3474_v41 = vadd.f32 %v3473_v60, %v3250_v63  ;;  %v3475_v33 = vpop.f32.mrb[127].mxu1  ;;  %v2102_v63 = vpop.permute.xlu1 %2101 }
 0x5d4   : > { %v2107_v38 = vpop.permute.xlu0 %2106  ;;  %v2326_v61 = vadd.f32 %v24741_v4, %v2102_v63 }
 0x5d5   : > { %19643 = vmatmul.mubr.msk.f32.gmra.mrb[100].mxu0 %vm3479_vm1, %v3474_v41  ;;  %v2331_v26 = vadd.f32 %v24743_v39, %v2107_v38 }
 0x5d6   : > { %19647 = vmatprep.mubr.msk.f32.mxu0 %vm3479_vm1, %v2261_v0 }
 0x5d7   : > { %v2112_v12 = vpop.permute.xlu1 %2111 }
 0x5d8   : > { %v2117_v14 = vpop.permute.xlu0 %2116  ;;  %v2336_v44 = vadd.f32 %v24745_v7, %v2112_v12 }
 0x5d9   : > { %19648 = vmatmul.mubr.msk.f32.vlgmr.msra.gmra.mrb[70].mxu0 %vm3479_vm1, %v2266_v18  ;;  %v2341_v32 = vadd.f32 %v24747_v15, %v2117_v14 }
 0x5da   : > { %19650 = vmatprep.mubr.msk.f32.mxu0 %vm3479_vm1, %v2271_v6 }
 0x5db   : > { %v2122_v56 = vpop.permute.xlu1 %2121 }
 0x5dc   : > { %v2127_v31 = vpop.permute.xlu0 %2126  ;;  %v2346_v30 = vadd.f32 %v24749_v11, %v2122_v56 }
 0x5dd   : > { %19651 = vmatmul.mubr.msk.f32.gmra.mrb[72].mxu0 %vm3479_vm1, %v2276_v45  ;;  %v2351_v4 = vadd.f32 %v24751_v13, %v2127_v31 }
 0x5de   : > { %19653 = vmatprep.mubr.msk.f32.mxu0 %vm3479_vm1, %v2281_v24 }
 0x5df   : > { %v2132_v25 = vpop.permute.xlu1 %2131 }
 0x5e0   : > { %v2137_v20 = vpop.permute.xlu0 %2136  ;;  %v2356_v21 = vadd.f32 %v24753_v16, %v2132_v25 }
 0x5e1   : > { %19654 = vmatmul.mubr.msk.f32.gmra.mrb[74].mxu0 %vm3479_vm1, %v2286_v34  ;;  %v2361_v7 = vadd.f32 %v24755_v58, %v2137_v20 }
 0x5e2   : > { %19656 = vmatprep.mubr.msk.f32.mxu0 %vm3479_vm1, %v2291_v8 }
 0x5e3   : > { %v2142_v42 = vpop.permute.xlu1 %2141 }
 0x5e4   : > { %v2147_v1 = vpop.permute.xlu0 %2146  ;;  %v2366_v15 = vadd.f32 %v24757_v22, %v2142_v42 }
 0x5e5   : > { %19657 = vmatmul.mubr.msk.f32.gmra.mrb[76].mxu0 %vm3479_vm1, %v2296_v17  ;;  %v2371_v11 = vadd.f32 %v24759_v37, %v2147_v1 }
 0x5e6   : > { %19659 = vmatprep.mubr.msk.f32.mxu0 %vm3479_vm1, %v2301_v10 }
 0x5e7   : > { %v2152_v39 = vpop.permute.xlu1 %2151 }
 0x5e8   : > { %v2157_v9 = vpop.permute.xlu0 %2156  ;;  %v2376_v49 = vadd.f32 %v24761_v29, %v2152_v39 }
 0x5e9   : > { %19660 = vmatmul.mubr.msk.f32.gmra.mrb[78].mxu0 %vm3479_vm1, %v2306_v2  ;;  %v2381_v16 = vadd.f32 %v24763_v48, %v2157_v9 }
 0x5ea   : > { %19662 = vmatprep.mubr.msk.f32.mxu0 %vm3479_vm1, %v2311_v53 }
 0x5eb   : > { %v2162_v62 = vpop.permute.xlu1 %2161 }
 0x5ec   : > { %v2167_v13 = vpop.permute.xlu0 %2166  ;;  %v2386_v27 = vadd.f32 %v24765_v35, %v2162_v62 }
 0x5ed   : > { %19663 = vmatmul.mubr.msk.f32.gmra.mrb[80].mxu0 %vm3479_vm1, %v2316_v59  ;;  %v2391_v22 = vadd.f32 %v24767_v5, %v2167_v13 }
 0x5ee   : > { %19665 = vmatprep.mubr.msk.f32.mxu0 %vm3479_vm1, %v2321_v52 }
 0x5ef   : > { %v2172_v58 = vpop.permute.xlu1 %2171 }
 0x5f0   : > { %v2177_v47 = vpop.permute.xlu0 %2176  ;;  %v2396_v37 = vadd.f32 %v24769_v43, %v2172_v58  ;;  %v4123_v43 = vld [vmem:[#allocation10 + $0x8] sm:$0xff]  ;;  %v4414_v58 = vld [vmem:[#allocation10 + $0x200] sm:$0xff] }
 0x5f1   : > { %19666 = vmatmul.mubr.msk.f32.gmra.mrb[82].mxu0 %vm3479_vm1, %v2326_v61  ;;  %v2401_v29 = vadd.f32 %v24771_v46, %v2177_v47  ;;  %v4415_v46 = vld [vmem:[#allocation10 + $0x208] sm:$0xff]  ;;  %4250 = vmatprep.mubr.f32.mxu1 %v4123_v43  ;;  %v4124_v47 = vld [vmem:[#allocation10 + $0x10] sm:$0xff] }
 0x5f2   : > { %19668 = vmatprep.mubr.msk.f32.mxu0 %vm3479_vm1, %v2331_v26  ;;  %v4420_v43 = vld [vmem:[#allocation10 + $0x230] sm:$0xff] }
 0x5f3   : > { %v2182_v57 = vpop.permute.xlu1 %2181 }
 0x5f4   : > { %v2187_v48 = vpop.permute.xlu0 %2186  ;;  %v2406_v19 = vadd.f32 %v24773_v50, %v2182_v57  ;;  %v4127_v57 = vld [vmem:[#allocation10 + $0x28] sm:$0xff] }
 0x5f5   : > { %19669 = vmatmul.mubr.msk.f32.gmra.mrb[84].mxu0 %vm3479_vm1, %v2336_v44  ;;  %v2411_v35 = vadd.f32 %v24775_v55, %v2187_v48  ;;  %v4126_v48 = vld [vmem:[#allocation10 + $0x20] sm:$0xff] }
 0x5f6   : > { %19671 = vmatprep.mubr.msk.f32.mxu0 %vm3479_vm1, %v2341_v32 }
 0x5f7   : > { %v2192_v5 = vpop.permute.xlu1 %2191 }
 0x5f8   : > { %v2416_v40 = vadd.f32 %v24777_v3, %v2192_v5  ;;  %v4421_v5 = vld [vmem:[#allocation10 + $0x238] sm:$0xff] }
 0x5f9   : > { %19672 = vmatmul.mubr.msk.f32.gmra.mrb[86].mxu0 %vm3479_vm1, %v2346_v30 }
 0x5fa   : > { %19674 = vmatprep.mubr.msk.f32.mxu0 %vm3479_vm1, %v2351_v4 }
 0x5fd   : > { %19675 = vmatmul.mubr.msk.f32.gmra.mrb[88].mxu0 %vm3479_vm1, %v2356_v21 }
 0x5fe   : > { %19677 = vmatprep.mubr.msk.f32.mxu0 %vm3479_vm1, %v2361_v7 }
 0x601   : > { %19678 = vmatmul.mubr.msk.f32.gmra.mrb[90].mxu0 %vm3479_vm1, %v2366_v15 }
 0x602   : > { %19680 = vmatprep.mubr.msk.f32.mxu0 %vm3479_vm1, %v2371_v11 }
 0x605   : > { %19681 = vmatmul.mubr.msk.f32.gmra.mrb[92].mxu0 %vm3479_vm1, %v2376_v49 }
 0x606   : > { %19683 = vmatprep.mubr.msk.f32.mxu0 %vm3479_vm1, %v2381_v16  ;;  %v4122_v16 = vld [vmem:[#allocation10] sm:$0xff] }
 0x609   : > { %19684 = vmatmul.mubr.msk.f32.gmra.mrb[94].mxu0 %vm3479_vm1, %v2386_v27  ;;  %v4125_v27 = vld [vmem:[#allocation10 + $0x18] sm:$0xff] }
 0x60a   : > { %19686 = vmatprep.mubr.msk.f32.mxu0 %vm3479_vm1, %v2391_v22  ;;  %v4417_v22 = vld [vmem:[#allocation10 + $0x218] sm:$0xff] }
 0x60d   : > { %19687 = vmatmul.mubr.msk.f32.gmra.mrb[96].mxu0 %vm3479_vm1, %v2396_v37  ;;  %v4416_v37 = vld [vmem:[#allocation10 + $0x210] sm:$0xff] }
 0x60e   : > { %19689 = vmatprep.mubr.msk.f32.mxu0 %vm3479_vm1, %v2401_v29  ;;  %v4419_v29 = vld [vmem:[#allocation10 + $0x228] sm:$0xff] }
 0x611   : > { %19690 = vmatmul.mubr.msk.f32.gmra.mrb[98].mxu0 %vm3479_vm1, %v2406_v19  ;;  %v4418_v19 = vld [vmem:[#allocation10 + $0x220] sm:$0xff] }
 0x612   : > { %19692 = vmatprep.mubr.msk.f32.mxu0 %vm3479_vm1, %v2411_v35  ;;  %v4129_v35 = vld [vmem:[#allocation10 + $0x38] sm:$0xff] }
 0x615   : > { %19693 = vmatmul.mubr.msk.f32.gmra.mrb[100].mxu0 %vm3479_vm1, %v2416_v40  ;;  %v4128_v40 = vld [vmem:[#allocation10 + $0x30] sm:$0xff] }
 0x616   : > { %4542 = vmatprep.mubr.f32.mxu0 %v4415_v46  ;;  %v4131_v46 = vld [vmem:[#allocation10 + $0x48] sm:$0xff] }
 0x6ac   : > { %v19649_v51 = vpop.f32.mrb[70].mxu0 }
 0x6ad   : > { %v3963_v60 = vpop.f32.mrb[71].mxu0 }
 0x6ae   : > { %v24876_v54 = vpack.c.bf16 %v19649_v51, %v3963_v60  ;;  %v4423_v51 = vld [vmem:[#allocation10 + $0x248] sm:$0xff]  ;;  %v4130_v60 = vld [vmem:[#allocation10 + $0x40] sm:$0xff] }
 0x6b0   : > { %26720 = vst [vmem:[#allocation66_spill] sm:$0xff] %v24876_v54  ;;  %v19652_v50 = vpop.f32.mrb[72].mxu0  ;;  %21149 = vmatpush1.bf16.msra.mxu1 %v24876_v54  ;;  %21197 = vmatpush1.bf16.msra.mxu0 %v24876_v54 }
 0x6b1   : > { %v3973_v55 = vpop.f32.mrb[73].mxu0  ;;  %21150 = vmatprep.subr.bf16.mxu1 %v26719_v23  ;;  %21198 = vmatprep.subr.bf16.mxu0 %v26719_v23 }
 0x6b2   : > { %v24882_v3 = vpack.c.bf16 %v19652_v50, %v3973_v55  ;;  %v4422_v50 = vld [vmem:[#allocation10 + $0x240] sm:$0xff]  ;;  %v4133_v55 = vld [vmem:[#allocation10 + $0x58] sm:$0xff] }
 0x6b4   : > { %26721 = vst [vmem:[#allocation67_spill] sm:$0xff] %v24882_v3  ;;  %v19655_v41 = vpop.f32.mrb[74].mxu0  ;;  %21152 = vmatpush1.bf16.msra.mxu1 %v24882_v3  ;;  %21200 = vmatpush1.bf16.msra.mxu0 %v24882_v3 }
 0x6b5   : > { %v3983_v33 = vpop.f32.mrb[75].mxu0  ;;  %21153 = vmatprep.subr.bf16.mxu1 %v26719_v23  ;;  %21201 = vmatprep.subr.bf16.mxu0 %v26719_v23 }
 0x6b6   : > { %v24888_v0 = vpack.c.bf16 %v19655_v41, %v3983_v33  ;;  %v4425_v41 = vld [vmem:[#allocation10 + $0x258] sm:$0xff]  ;;  %v4132_v33 = vld [vmem:[#allocation10 + $0x50] sm:$0xff] }
 0x6b8   : > { %26722 = vst [vmem:[#allocation68_spill] sm:$0xff] %v24888_v0  ;;  %v19658_v28 = vpop.f32.mrb[76].mxu0  ;;  %21155 = vmatpush1.bf16.msra.mxu1 %v24888_v0  ;;  %21203 = vmatpush1.bf16.msra.mxu0 %v24888_v0 }
 0x6b9   : > { %v3993_v18 = vpop.f32.mrb[77].mxu0  ;;  %21156 = vmatprep.subr.bf16.mxu1 %v26719_v23  ;;  %21204 = vmatprep.subr.bf16.mxu0 %v26719_v23 }
 0x6ba   : > { %v24894_v6 = vpack.c.bf16 %v19658_v28, %v3993_v18  ;;  %v4424_v28 = vld [vmem:[#allocation10 + $0x250] sm:$0xff]  ;;  %v4135_v18 = vld [vmem:[#allocation10 + $0x68] sm:$0xff] }
 0x6bc   : > { %26723 = vst [vmem:[#allocation69_spill] sm:$0xff] %v24894_v6  ;;  %v19661_v36 = vpop.f32.mrb[78].mxu0  ;;  %21158 = vmatpush1.bf16.msra.mxu1 %v24894_v6  ;;  %21206 = vmatpush1.bf16.msra.mxu0 %v24894_v6 }
 0x6bd   : > { %v4003_v45 = vpop.f32.mrb[79].mxu0  ;;  %21159 = vmatprep.subr.bf16.mxu1 %v26719_v23  ;;  %21207 = vmatprep.subr.bf16.mxu0 %v26719_v23 }
 0x6be   : > { %v24900_v63 = vpack.c.bf16 %v19661_v36, %v4003_v45  ;;  %v4427_v36 = vld [vmem:[#allocation10 + $0x268] sm:$0xff]  ;;  %v4134_v45 = vld [vmem:[#allocation10 + $0x60] sm:$0xff] }
 0x6c0   : > { %26724 = vst [vmem:[#allocation70_spill] sm:$0xff] %v24900_v63  ;;  %v19664_v24 = vpop.f32.mrb[80].mxu0  ;;  %21161 = vmatpush1.bf16.msra.mxu1 %v24900_v63  ;;  %21209 = vmatpush1.bf16.msra.mxu0 %v24900_v63 }
 0x6c1   : > { %v4013_v38 = vpop.f32.mrb[81].mxu0  ;;  %21162 = vmatprep.subr.bf16.mxu1 %v26719_v23  ;;  %21210 = vmatprep.subr.bf16.mxu0 %v26719_v23 }
 0x6c2   : > { %v24906_v34 = vpack.c.bf16 %v19664_v24, %v4013_v38  ;;  %v4426_v24 = vld [vmem:[#allocation10 + $0x260] sm:$0xff]  ;;  %v4137_v38 = vld [vmem:[#allocation10 + $0x78] sm:$0xff] }
 0x6c4   : > { %26725 = vst [vmem:[#allocation71_spill] sm:$0xff] %v24906_v34  ;;  %v19667_v8 = vpop.f32.mrb[82].mxu0  ;;  %21164 = vmatpush1.bf16.msra.mxu1 %v24906_v34  ;;  %21212 = vmatpush1.bf16.msra.mxu0 %v24906_v34 }
 0x6c5   : > { %v4023_v12 = vpop.f32.mrb[83].mxu0  ;;  %21165 = vmatprep.subr.bf16.mxu1 %v26719_v23  ;;  %21213 = vmatprep.subr.bf16.mxu0 %v26719_v23 }
 0x6c6   : > { %v24912_v17 = vpack.c.bf16 %v19667_v8, %v4023_v12  ;;  %v4429_v8 = vld [vmem:[#allocation10 + $0x278] sm:$0xff]  ;;  %v4136_v12 = vld [vmem:[#allocation10 + $0x70] sm:$0xff] }
 0x6c8   : > { %26726 = vst [vmem:[#allocation72_spill] sm:$0xff] %v24912_v17  ;;  %v19670_v10 = vpop.f32.mrb[84].mxu0  ;;  %21167 = vmatpush1.bf16.msra.mxu1 %v24912_v17  ;;  %21215 = vmatpush1.bf16.msra.mxu0 %v24912_v17 }
 0x6c9   : > { %v4033_v14 = vpop.f32.mrb[85].mxu0  ;;  %21168 = vmatprep.subr.bf16.mxu1 %v26719_v23  ;;  %21216 = vmatprep.subr.bf16.mxu0 %v26719_v23 }
 0x6ca   : > { %v24918_v2 = vpack.c.bf16 %v19670_v10, %v4033_v14  ;;  %v4428_v10 = vld [vmem:[#allocation10 + $0x270] sm:$0xff]  ;;  %v4139_v14 = vld [vmem:[#allocation10 + $0x88] sm:$0xff] }
 0x6cc   : > { %26727 = vst [vmem:[#allocation73_spill] sm:$0xff] %v24918_v2  ;;  %v19673_v56 = vpop.f32.mrb[86].mxu0  ;;  %21170 = vmatpush1.bf16.msra.mxu1 %v24918_v2  ;;  %21218 = vmatpush1.bf16.msra.mxu0 %v24918_v2 }
 0x6cd   : > { %v4043_v53 = vpop.f32.mrb[87].mxu0  ;;  %21171 = vmatprep.subr.bf16.mxu1 %v26719_v23  ;;  %21219 = vmatprep.subr.bf16.mxu0 %v26719_v23 }
 0x6ce   : > { %v24924_v31 = vpack.c.bf16 %v19673_v56, %v4043_v53  ;;  %v4431_v56 = vld [vmem:[#allocation10 + $0x288] sm:$0xff]  ;;  %v4138_v53 = vld [vmem:[#allocation10 + $0x80] sm:$0xff] }
 0x6d0   : > { %26728 = vst [vmem:[#allocation74_spill] sm:$0xff] %v24924_v31  ;;  %v19676_v59 = vpop.f32.mrb[88].mxu0  ;;  %21173 = vmatpush1.bf16.msra.mxu1 %v24924_v31  ;;  %21221 = vmatpush1.bf16.msra.mxu0 %v24924_v31 }
 0x6d1   : > { %v4053_v52 = vpop.f32.mrb[89].mxu0  ;;  %21174 = vmatprep.subr.bf16.mxu1 %v26719_v23  ;;  %21222 = vmatprep.subr.bf16.mxu0 %v26719_v23 }
 0x6d2   : > { %v24930_v25 = vpack.c.bf16 %v19676_v59, %v4053_v52  ;;  %v4430_v59 = vld [vmem:[#allocation10 + $0x280] sm:$0xff]  ;;  %v4141_v52 = vld [vmem:[#allocation10 + $0x98] sm:$0xff] }
 0x6d4   : > { %26729 = vst [vmem:[#allocation75_spill] sm:$0xff] %v24930_v25  ;;  %v19679_v61 = vpop.f32.mrb[90].mxu0  ;;  %21176 = vmatpush1.bf16.msra.mxu1 %v24930_v25  ;;  %21224 = vmatpush1.bf16.msra.mxu0 %v24930_v25 }
 0x6d5   : > { %v4063_v26 = vpop.f32.mrb[91].mxu0  ;;  %21177 = vmatprep.subr.bf16.mxu1 %v26719_v23  ;;  %21225 = vmatprep.subr.bf16.mxu0 %v26719_v23 }
 0x6d6   : > { %v24936_v20 = vpack.c.bf16 %v19679_v61, %v4063_v26  ;;  %v4433_v61 = vld [vmem:[#allocation10 + $0x298] sm:$0xff]  ;;  %v4140_v26 = vld [vmem:[#allocation10 + $0x90] sm:$0xff] }
 0x6d8   : > { %26730 = vst [vmem:[#allocation76_spill] sm:$0xff] %v24936_v20  ;;  %v19682_v44 = vpop.f32.mrb[92].mxu0  ;;  %21179 = vmatpush1.bf16.msra.mxu1 %v24936_v20  ;;  %21227 = vmatpush1.bf16.msra.mxu0 %v24936_v20 }
 0x6d9   : > { %v4073_v42 = vpop.f32.mrb[93].mxu0  ;;  %21180 = vmatprep.subr.bf16.mxu1 %v26719_v23  ;;  %21228 = vmatprep.subr.bf16.mxu0 %v26719_v23 }
 0x6da   : > { %v24942_v32 = vpack.c.bf16 %v19682_v44, %v4073_v42  ;;  %v4432_v44 = vld [vmem:[#allocation10 + $0x290] sm:$0xff]  ;;  %v4143_v42 = vld [vmem:[#allocation10 + $0xa8] sm:$0xff] }
 0x6dc   : > { %26731 = vst [vmem:[#allocation77_spill] sm:$0xff] %v24942_v32  ;;  %v19685_v1 = vpop.f32.mrb[94].mxu0  ;;  %21182 = vmatpush1.bf16.msra.mxu1 %v24942_v32  ;;  %21230 = vmatpush1.bf16.msra.mxu0 %v24942_v32 }
 0x6dd   : > { %v4083_v30 = vpop.f32.mrb[95].mxu0  ;;  %21183 = vmatprep.subr.bf16.mxu1 %v26719_v23  ;;  %21231 = vmatprep.subr.bf16.mxu0 %v26719_v23 }
 0x6de   : > { %v24948_v4 = vpack.c.bf16 %v19685_v1, %v4083_v30  ;;  %v4435_v1 = vld [vmem:[#allocation10 + $0x2a8] sm:$0xff]  ;;  %v4142_v30 = vld [vmem:[#allocation10 + $0xa0] sm:$0xff] }
 0x6e0   : > { %26732 = vst [vmem:[#allocation78_spill] sm:$0xff] %v24948_v4  ;;  %v19688_v39 = vpop.f32.mrb[96].mxu0  ;;  %21185 = vmatpush1.bf16.msra.mxu1 %v24948_v4  ;;  %21233 = vmatpush1.bf16.msra.mxu0 %v24948_v4 }
 0x6e1   : > { %v4093_v21 = vpop.f32.mrb[97].mxu0  ;;  %21186 = vmatprep.subr.bf16.mxu1 %v26719_v23  ;;  %21234 = vmatprep.subr.bf16.mxu0 %v26719_v23 }
 0x6e2   : > { %v24954_v7 = vpack.c.bf16 %v19688_v39, %v4093_v21  ;;  %v4434_v39 = vld [vmem:[#allocation10 + $0x2a0] sm:$0xff]  ;;  %v4145_v21 = vld [vmem:[#allocation10 + $0xb8] sm:$0xff] }
 0x6e4   : > { %26733 = vst [vmem:[#allocation79_spill] sm:$0xff] %v24954_v7  ;;  %v19691_v9 = vpop.f32.mrb[98].mxu0  ;;  %21188 = vmatpush1.bf16.msra.mxu1 %v24954_v7  ;;  %21236 = vmatpush1.bf16.msra.mxu0 %v24954_v7 }
 0x6e5   : > { %v4103_v15 = vpop.f32.mrb[99].mxu0  ;;  %21189 = vmatprep.subr.bf16.mxu1 %v26719_v23  ;;  %21237 = vmatprep.subr.bf16.mxu0 %v26719_v23 }
 0x6e6   : > { %v24960_v62 = vpack.c.bf16 %v19691_v9, %v4103_v15  ;;  %v4437_v9 = vld [vmem:[#allocation10 + $0x2b8] sm:$0xff]  ;;  %v4144_v15 = vld [vmem:[#allocation10 + $0xb0] sm:$0xff] }
 0x6e8   : > { %26734 = vst [vmem:[#allocation80_spill] sm:$0xff] %v24960_v62  ;;  %v19694_v11 = vpop.f32.mrb[100].mxu0  ;;  %21191 = vmatpush1.bf16.msra.mxu1 %v24960_v62  ;;  %21239 = vmatpush1.bf16.msra.mxu0 %v24960_v62 }
 0x6e9   : > { %v4113_v13 = vpop.f32.mrb[101].mxu0  ;;  %21192 = vmatprep.subr.bf16.mxu1 %v26719_v23  ;;  %21240 = vmatprep.subr.bf16.mxu0 %v26719_v23 }
 0x6ea   : > { %v24966_v49 = vpack.c.bf16 %v19694_v11, %v4113_v13  ;;  %v4436_v11 = vld [vmem:[#allocation10 + $0x2b0] sm:$0xff]  ;;  %v4147_v13 = vld [vmem:[#allocation10 + $0xc8] sm:$0xff] }
 0x6ec   : > { %26735 = vst [vmem:[#allocation81_spill] sm:$0xff] %v24966_v49  ;;  %21194 = vmatpush1.bf16.msra.mxu1 %v24966_v49  ;;  %21242 = vmatpush1.bf16.msra.mxu0 %v24966_v49 }
 0x6ed   : > { %22285 = vmatprep.subr.bf16.mxu1 %v26719_v23  ;;  %21251 = vmatprep.subr.bf16.mxu0 %v26719_v23 }
 0x6ef   : > { %4251 = vmatmul.mubr.f32.vlgmr.msra.gmra.mrb[128].mxu1 %v4122_v16  ;;  %4543 = vmatmul.mubr.f32.vlgmr.msra.gmra.mrb[102].mxu0 %v4414_v58  ;;  %v4439_v16 = vld [vmem:[#allocation10 + $0x2c8] sm:$0xff]  ;;  %v4146_v58 = vld [vmem:[#allocation10 + $0xc0] sm:$0xff] }
 0x6f0   : > { %22301 = vmatpush1.bf16.msra.mxu1 %v24876_v54  ;;  %21253 = vmatpush1.bf16.msra.mxu0 %v24876_v54 }
 0x6f1   : > { %4255 = vmatprep.mubr.f32.mxu1 %v4125_v27  ;;  %4547 = vmatprep.mubr.f32.mxu0 %v4417_v22  ;;  %v4438_v27 = vld [vmem:[#allocation10 + $0x2c0] sm:$0xff]  ;;  %v4149_v22 = vld [vmem:[#allocation10 + $0xd8] sm:$0xff] }
 0x6f2   : > { %22286 = vmatprep.subr.bf16.mxu1 %v26719_v23  ;;  %21254 = vmatprep.subr.bf16.mxu0 %v26719_v23 }
 0x6f3   : > { %4256 = vmatmul.mubr.f32.gmra.mrb[130].mxu1 %v4124_v47  ;;  %4548 = vmatmul.mubr.f32.gmra.mrb[104].mxu0 %v4416_v37  ;;  %v4441_v47 = vld [vmem:[#allocation10 + $0x2d8] sm:$0xff]  ;;  %v4148_v37 = vld [vmem:[#allocation10 + $0xd0] sm:$0xff] }
 0x6f4   : > { %22302 = vmatpush1.bf16.msra.mxu1 %v24882_v3  ;;  %21256 = vmatpush1.bf16.msra.mxu0 %v24882_v3 }
 0x6f5   : > { %4260 = vmatprep.mubr.f32.mxu1 %v4127_v57  ;;  %4552 = vmatprep.mubr.f32.mxu0 %v4419_v29  ;;  %v4440_v57 = vld [vmem:[#allocation10 + $0x2d0] sm:$0xff]  ;;  %v4151_v29 = vld [vmem:[#allocation10 + $0xe8] sm:$0xff] }
 0x6f6   : > { %22287 = vmatprep.subr.bf16.mxu1 %v26719_v23  ;;  %21257 = vmatprep.subr.bf16.mxu0 %v26719_v23 }
 0x6f7   : > { %4261 = vmatmul.mubr.f32.gmra.mrb[132].mxu1 %v4126_v48  ;;  %4553 = vmatmul.mubr.f32.gmra.mrb[106].mxu0 %v4418_v19  ;;  %v4443_v48 = vld [vmem:[#allocation10 + $0x2e8] sm:$0xff]  ;;  %v4150_v19 = vld [vmem:[#allocation10 + $0xe0] sm:$0xff] }
 0x6f8   : > { %22303 = vmatpush1.bf16.msra.mxu1 %v24888_v0  ;;  %21259 = vmatpush1.bf16.msra.mxu0 %v24888_v0 }
 0x6f9   : > { %4265 = vmatprep.mubr.f32.mxu1 %v4129_v35  ;;  %4557 = vmatprep.mubr.f32.mxu0 %v4421_v5  ;;  %v4442_v35 = vld [vmem:[#allocation10 + $0x2e0] sm:$0xff]  ;;  %v4153_v5 = vld [vmem:[#allocation10 + $0xf8] sm:$0xff] }
 0x6fa   : > { %22288 = vmatprep.subr.bf16.mxu1 %v26719_v23  ;;  %21260 = vmatprep.subr.bf16.mxu0 %v26719_v23 }
 0x6fb   : > { %4266 = vmatmul.mubr.f32.gmra.mrb[134].mxu1 %v4128_v40  ;;  %4558 = vmatmul.mubr.f32.gmra.mrb[108].mxu0 %v4420_v43  ;;  %v4445_v40 = vld [vmem:[#allocation10 + $0x2f8] sm:$0xff]  ;;  %v4152_v43 = vld [vmem:[#allocation10 + $0xf0] sm:$0xff] }
 0x6fc   : > { %22304 = vmatpush1.bf16.msra.mxu1 %v24894_v6  ;;  %21262 = vmatpush1.bf16.msra.mxu0 %v24894_v6 }
 0x6fd   : > { %4270 = vmatprep.mubr.f32.mxu1 %v4131_v46  ;;  %4562 = vmatprep.mubr.f32.mxu0 %v4423_v51  ;;  %v4444_v46 = vld [vmem:[#allocation10 + $0x2f0] sm:$0xff]  ;;  %v4155_v51 = vld [vmem:[#allocation10 + $0x108] sm:$0xff] }
 0x6fe   : > { %22289 = vmatprep.subr.bf16.mxu1 %v26719_v23  ;;  %21263 = vmatprep.subr.bf16.mxu0 %v26719_v23 }
 0x6ff   : > { %4271 = vmatmul.mubr.f32.gmra.mrb[136].mxu1 %v4130_v60  ;;  %4563 = vmatmul.mubr.f32.gmra.mrb[110].mxu0 %v4422_v50  ;;  %v4447_v60 = vld [vmem:[#allocation10 + $0x308] sm:$0xff]  ;;  %v4154_v50 = vld [vmem:[#allocation10 + $0x100] sm:$0xff] }
 0x700   : > { %22305 = vmatpush1.bf16.msra.mxu1 %v24900_v63  ;;  %21265 = vmatpush1.bf16.msra.mxu0 %v24900_v63 }
 0x701   : > { %4275 = vmatprep.mubr.f32.mxu1 %v4133_v55  ;;  %4567 = vmatprep.mubr.f32.mxu0 %v4425_v41  ;;  %v4446_v55 = vld [vmem:[#allocation10 + $0x300] sm:$0xff]  ;;  %v4157_v41 = vld [vmem:[#allocation10 + $0x118] sm:$0xff] }
 0x702   : > { %22290 = vmatprep.subr.bf16.mxu1 %v26719_v23  ;;  %21266 = vmatprep.subr.bf16.mxu0 %v26719_v23 }
 0x703   : > { %4276 = vmatmul.mubr.f32.gmra.mrb[138].mxu1 %v4132_v33  ;;  %4568 = vmatmul.mubr.f32.gmra.mrb[112].mxu0 %v4424_v28  ;;  %v4449_v33 = vld [vmem:[#allocation10 + $0x318] sm:$0xff]  ;;  %v4156_v28 = vld [vmem:[#allocation10 + $0x110] sm:$0xff] }
 0x704   : > { %22306 = vmatpush1.bf16.msra.mxu1 %v24906_v34  ;;  %21268 = vmatpush1.bf16.msra.mxu0 %v24906_v34 }
 0x705   : > { %4280 = vmatprep.mubr.f32.mxu1 %v4135_v18  ;;  %4572 = vmatprep.mubr.f32.mxu0 %v4427_v36  ;;  %v4448_v18 = vld [vmem:[#allocation10 + $0x310] sm:$0xff]  ;;  %v4159_v36 = vld [vmem:[#allocation10 + $0x128] sm:$0xff] }
 0x706   : > { %22291 = vmatprep.subr.bf16.mxu1 %v26719_v23  ;;  %21269 = vmatprep.subr.bf16.mxu0 %v26719_v23 }
 0x707   : > { %4281 = vmatmul.mubr.f32.gmra.mrb[140].mxu1 %v4134_v45  ;;  %4573 = vmatmul.mubr.f32.gmra.mrb[114].mxu0 %v4426_v24  ;;  %v4451_v45 = vld [vmem:[#allocation10 + $0x328] sm:$0xff]  ;;  %v4158_v24 = vld [vmem:[#allocation10 + $0x120] sm:$0xff] }
 0x708   : > { %22307 = vmatpush1.bf16.msra.mxu1 %v24912_v17  ;;  %21271 = vmatpush1.bf16.msra.mxu0 %v24912_v17 }
 0x709   : > { %4285 = vmatprep.mubr.f32.mxu1 %v4137_v38  ;;  %4577 = vmatprep.mubr.f32.mxu0 %v4429_v8  ;;  %v4450_v38 = vld [vmem:[#allocation10 + $0x320] sm:$0xff]  ;;  %v4161_v8 = vld [vmem:[#allocation10 + $0x138] sm:$0xff] }
 0x70a   : > { %22292 = vmatprep.subr.bf16.mxu1 %v26719_v23  ;;  %21272 = vmatprep.subr.bf16.mxu0 %v26719_v23 }
 0x70b   : > { %4286 = vmatmul.mubr.f32.gmra.mrb[142].mxu1 %v4136_v12  ;;  %4578 = vmatmul.mubr.f32.gmra.mrb[116].mxu0 %v4428_v10  ;;  %v4453_v12 = vld [vmem:[#allocation10 + $0x338] sm:$0xff]  ;;  %v4160_v10 = vld [vmem:[#allocation10 + $0x130] sm:$0xff] }
 0x70c   : > { %22308 = vmatpush1.bf16.msra.mxu1 %v24918_v2  ;;  %21274 = vmatpush1.bf16.msra.mxu0 %v24918_v2 }
 0x70d   : > { %4290 = vmatprep.mubr.f32.mxu1 %v4139_v14  ;;  %4582 = vmatprep.mubr.f32.mxu0 %v4431_v56  ;;  %v4452_v14 = vld [vmem:[#allocation10 + $0x330] sm:$0xff]  ;;  %v4163_v56 = vld [vmem:[#allocation10 + $0x148] sm:$0xff] }
 0x70e   : > { %22293 = vmatprep.subr.bf16.mxu1 %v26719_v23  ;;  %21275 = vmatprep.subr.bf16.mxu0 %v26719_v23 }
 0x70f   : > { %4291 = vmatmul.mubr.f32.gmra.mrb[144].mxu1 %v4138_v53  ;;  %4583 = vmatmul.mubr.f32.gmra.mrb[118].mxu0 %v4430_v59  ;;  %v4455_v53 = vld [vmem:[#allocation10 + $0x348] sm:$0xff]  ;;  %v4162_v59 = vld [vmem:[#allocation10 + $0x140] sm:$0xff] }
 0x710   : > { %22309 = vmatpush1.bf16.msra.mxu1 %v24924_v31  ;;  %21277 = vmatpush1.bf16.msra.mxu0 %v24924_v31 }
 0x711   : > { %4295 = vmatprep.mubr.f32.mxu1 %v4141_v52  ;;  %4587 = vmatprep.mubr.f32.mxu0 %v4433_v61  ;;  %v4454_v52 = vld [vmem:[#allocation10 + $0x340] sm:$0xff]  ;;  %v4165_v61 = vld [vmem:[#allocation10 + $0x158] sm:$0xff] }
 0x712   : > { %22294 = vmatprep.subr.bf16.mxu1 %v26719_v23  ;;  %21278 = vmatprep.subr.bf16.mxu0 %v26719_v23 }
 0x713   : > { %4296 = vmatmul.mubr.f32.gmra.mrb[146].mxu1 %v4140_v26  ;;  %4588 = vmatmul.mubr.f32.gmra.mrb[120].mxu0 %v4432_v44  ;;  %v4457_v26 = vld [vmem:[#allocation10 + $0x358] sm:$0xff]  ;;  %v4164_v44 = vld [vmem:[#allocation10 + $0x150] sm:$0xff] }
 0x714   : > { %22310 = vmatpush1.bf16.msra.mxu1 %v24930_v25  ;;  %21280 = vmatpush1.bf16.msra.mxu0 %v24930_v25 }
 0x715   : > { %4300 = vmatprep.mubr.f32.mxu1 %v4143_v42  ;;  %4592 = vmatprep.mubr.f32.mxu0 %v4435_v1  ;;  %v4456_v42 = vld [vmem:[#allocation10 + $0x350] sm:$0xff]  ;;  %v4167_v1 = vld [vmem:[#allocation10 + $0x168] sm:$0xff] }
 0x716   : > { %22295 = vmatprep.subr.bf16.mxu1 %v26719_v23  ;;  %21281 = vmatprep.subr.bf16.mxu0 %v26719_v23 }
 0x717   : > { %4301 = vmatmul.mubr.f32.gmra.mrb[148].mxu1 %v4142_v30  ;;  %4593 = vmatmul.mubr.f32.gmra.mrb[122].mxu0 %v4434_v39  ;;  %v4459_v30 = vld [vmem:[#allocation10 + $0x368] sm:$0xff]  ;;  %v4704_v39 = vld [vmem:[#allocation12 + $0x10] sm:$0xff] }
 0x718   : > { %22311 = vmatpush1.bf16.msra.mxu1 %v24936_v20  ;;  %21283 = vmatpush1.bf16.msra.mxu0 %v24936_v20 }
 0x719   : > { %4305 = vmatprep.mubr.f32.mxu1 %v4145_v21  ;;  %4597 = vmatprep.mubr.f32.mxu0 %v4437_v9  ;;  %v4705_v21 = vld [vmem:[#allocation12 + $0x18] sm:$0xff] }
 0x71a   : > { %22296 = vmatprep.subr.bf16.mxu1 %v26719_v23  ;;  %21284 = vmatprep.subr.bf16.mxu0 %v26719_v23  ;;  %v25035_v9 = vpack.c.bf16 %v4705_v21, %v4704_v39  ;;  %v4476_v39 = vld [vmem:[#allocation10 + $0x3f0] sm:$0xff] }
 0x71b   : > { %4306 = vmatmul.mubr.f32.gmra.mrb[150].mxu1 %v4144_v15  ;;  %4598 = vmatmul.mubr.f32.gmra.mrb[124].mxu0 %v4436_v11  ;;  %v4166_v15 = vld [vmem:[#allocation10 + $0x160] sm:$0xff]  ;;  %v5356_v21 = vld [vmem:[#allocation10 + $0x430] sm:$0xff] }
 0x71c   : > { %22312 = vmatpush1.bf16.msra.mxu1 %v24942_v32  ;;  %21286 = vmatpush1.bf16.msra.mxu0 %v24942_v32  ;;  %v4458_v11 = vld [vmem:[#allocation10 + $0x360] sm:$0xff] }
 0x71d   : > { %4310 = vmatprep.mubr.f32.mxu1 %v4147_v13  ;;  %4602 = vmatprep.mubr.f32.mxu0 %v4439_v16  ;;  %v4169_v13 = vld [vmem:[#allocation10 + $0x178] sm:$0xff] }
 0x71e   : > { %22297 = vmatprep.subr.bf16.mxu1 %v26719_v23  ;;  %21287 = vmatprep.subr.bf16.mxu0 %v26719_v23  ;;  %v4461_v16 = vld [vmem:[#allocation10 + $0x378] sm:$0xff] }
 0x71f   : > { %4311 = vmatmul.mubr.f32.gmra.mrb[152].mxu1 %v4146_v58  ;;  %4603 = vmatmul.mubr.f32.gmra.mrb[126].mxu0 %v4438_v27  ;;  %v4168_v58 = vld [vmem:[#allocation10 + $0x170] sm:$0xff] }
 0x720   : > { %22313 = vmatpush1.bf16.msra.mxu1 %v24948_v4  ;;  %21289 = vmatpush1.bf16.msra.mxu0 %v24948_v4  ;;  %v4460_v27 = vld [vmem:[#allocation10 + $0x370] sm:$0xff] }
 0x721   : > { %4315 = vmatprep.mubr.f32.mxu1 %v4149_v22  ;;  %4607 = vmatprep.mubr.f32.mxu0 %v4441_v47  ;;  %v4171_v22 = vld [vmem:[#allocation10 + $0x188] sm:$0xff] }
 0x722   : > { %22298 = vmatprep.subr.bf16.mxu1 %v26719_v23  ;;  %21290 = vmatprep.subr.bf16.mxu0 %v26719_v23  ;;  %v4463_v47 = vld [vmem:[#allocation10 + $0x388] sm:$0xff] }
 0x723   : > { %4316 = vmatmul.mubr.f32.gmra.mrb[154].mxu1 %v4148_v37  ;;  %4608 = vmatmul.mubr.f32.gmra.mrb[128].mxu0 %v4440_v57  ;;  %v4170_v37 = vld [vmem:[#allocation10 + $0x180] sm:$0xff] }
 0x724   : > { %22314 = vmatpush1.bf16.msra.mxu1 %v24954_v7  ;;  %21292 = vmatpush1.bf16.msra.mxu0 %v24954_v7  ;;  %v4462_v57 = vld [vmem:[#allocation10 + $0x380] sm:$0xff] }
 0x725   : > { %4320 = vmatprep.mubr.f32.mxu1 %v4151_v29  ;;  %4612 = vmatprep.mubr.f32.mxu0 %v4443_v48  ;;  %v4173_v29 = vld [vmem:[#allocation10 + $0x198] sm:$0xff] }
 0x726   : > { %22299 = vmatprep.subr.bf16.mxu1 %v26719_v23  ;;  %21293 = vmatprep.subr.bf16.mxu0 %v26719_v23  ;;  %v4465_v48 = vld [vmem:[#allocation10 + $0x398] sm:$0xff] }
 0x727   : > { %4321 = vmatmul.mubr.f32.gmra.mrb[156].mxu1 %v4150_v19  ;;  %4613 = vmatmul.mubr.f32.gmra.mrb[130].mxu0 %v4442_v35  ;;  %v4172_v19 = vld [vmem:[#allocation10 + $0x190] sm:$0xff] }
 0x728   : > { %22315 = vmatpush1.bf16.msra.mxu1 %v24960_v62  ;;  %21295 = vmatpush1.bf16.msra.mxu0 %v24960_v62  ;;  %v4464_v35 = vld [vmem:[#allocation10 + $0x390] sm:$0xff] }
 0x729   : > { %4325 = vmatprep.mubr.f32.mxu1 %v4153_v5  ;;  %4617 = vmatprep.mubr.f32.mxu0 %v4445_v40  ;;  %v4175_v5 = vld [vmem:[#allocation10 + $0x1a8] sm:$0xff] }
 0x72a   : > { %22300 = vmatprep.subr.bf16.mxu1 %v26719_v23  ;;  %21296 = vmatprep.subr.bf16.mxu0 %v26719_v23  ;;  %v4467_v40 = vld [vmem:[#allocation10 + $0x3a8] sm:$0xff] }
 0x72b   : > { %4326 = vmatmul.mubr.f32.gmra.mrb[158].mxu1 %v4152_v43  ;;  %4618 = vmatmul.mubr.f32.gmra.mrb[132].mxu0 %v4444_v46  ;;  %v4174_v43 = vld [vmem:[#allocation10 + $0x1a0] sm:$0xff] }
 0x72c   : > { %22316 = vmatpush1.bf16.msra.mxu1 %v24966_v49  ;;  %21298 = vmatpush1.bf16.msra.mxu0 %v24966_v49  ;;  %v4466_v46 = vld [vmem:[#allocation10 + $0x3a0] sm:$0xff] }
 0x72d   : > { %4330 = vmatprep.mubr.f32.mxu1 %v4155_v51  ;;  %4622 = vmatprep.mubr.f32.mxu0 %v4447_v60  ;;  %v4177_v51 = vld [vmem:[#allocation10 + $0x1b8] sm:$0xff] }
 0x72e   : > { %21303 = vmatprep.subr.bf16.mxu0 %v26719_v23  ;;  %21244 = vmatprep.subr.bf16.mxu1 %v25035_v9  ;;  %v4469_v60 = vld [vmem:[#allocation10 + $0x3b8] sm:$0xff] }
 0x72f   : > { %4331 = vmatmul.mubr.f32.gmra.mrb[160].mxu1 %v4154_v50  ;;  %4623 = vmatmul.mubr.f32.gmra.mrb[134].mxu0 %v4446_v55  ;;  %v4176_v50 = vld [vmem:[#allocation10 + $0x1b0] sm:$0xff] }
 0x730   : > { %4335 = vmatprep.mubr.f32.mxu1 %v4157_v41  ;;  %4627 = vmatprep.mubr.f32.mxu0 %v4449_v33  ;;  %v4468_v55 = vld [vmem:[#allocation10 + $0x3b0] sm:$0xff]  ;;  %v4179_v41 = vld [vmem:[#allocation10 + $0x1c8] sm:$0xff] }
 0x731   : > { %v4471_v33 = vld [vmem:[#allocation10 + $0x3c8] sm:$0xff] }
 0x733   : > { %4336 = vmatmul.mubr.f32.gmra.mrb[162].mxu1 %v4156_v28  ;;  %4628 = vmatmul.mubr.f32.gmra.mrb[136].mxu0 %v4448_v18  ;;  %v4178_v28 = vld [vmem:[#allocation10 + $0x1c0] sm:$0xff] }
 0x734   : > { %4340 = vmatprep.mubr.f32.mxu1 %v4159_v36  ;;  %4632 = vmatprep.mubr.f32.mxu0 %v4451_v45  ;;  %v4470_v18 = vld [vmem:[#allocation10 + $0x3c0] sm:$0xff]  ;;  %v4181_v36 = vld [vmem:[#allocation10 + $0x1d8] sm:$0xff] }
 0x735   : > { %v4473_v45 = vld [vmem:[#allocation10 + $0x3d8] sm:$0xff] }
 0x737   : > { %4341 = vmatmul.mubr.f32.gmra.mrb[164].mxu1 %v4158_v24  ;;  %4633 = vmatmul.mubr.f32.gmra.mrb[138].mxu0 %v4450_v38  ;;  %v4180_v24 = vld [vmem:[#allocation10 + $0x1d0] sm:$0xff] }
 0x738   : > { %4345 = vmatprep.mubr.f32.mxu1 %v4161_v8  ;;  %4637 = vmatprep.mubr.f32.mxu0 %v4453_v12  ;;  %v4472_v38 = vld [vmem:[#allocation10 + $0x3d0] sm:$0xff]  ;;  %v4183_v8 = vld [vmem:[#allocation10 + $0x1e8] sm:$0xff] }
 0x739   : > { %v5351_v12 = vld [vmem:[#allocation10 + $0x408] sm:$0xff] }
 0x73b   : > { %4346 = vmatmul.mubr.f32.gmra.mrb[166].mxu1 %v4160_v10  ;;  %4638 = vmatmul.mubr.f32.gmra.mrb[140].mxu0 %v4452_v14  ;;  %v4182_v10 = vld [vmem:[#allocation10 + $0x1e0] sm:$0xff] }
 0x73c   : > { %4350 = vmatprep.mubr.f32.mxu1 %v4163_v56  ;;  %4642 = vmatprep.mubr.f32.mxu0 %v4455_v53  ;;  %v5350_v14 = vld [vmem:[#allocation10 + $0x400] sm:$0xff]  ;;  %v4185_v56 = vld [vmem:[#allocation10 + $0x1f8] sm:$0xff] }
 0x73d   : > { %v5353_v53 = vld [vmem:[#allocation10 + $0x418] sm:$0xff] }
 0x73f   : > { %4351 = vmatmul.mubr.f32.gmra.mrb[168].mxu1 %v4162_v59  ;;  %4643 = vmatmul.mubr.f32.gmra.mrb[142].mxu0 %v4454_v52  ;;  %v4184_v59 = vld [vmem:[#allocation10 + $0x1f0] sm:$0xff] }
 0x740   : > { %4355 = vmatprep.mubr.f32.mxu1 %v4165_v61  ;;  %4647 = vmatprep.mubr.f32.mxu0 %v4457_v26  ;;  %v5352_v52 = vld [vmem:[#allocation10 + $0x410] sm:$0xff]  ;;  %v4475_v61 = vld [vmem:[#allocation10 + $0x3e8] sm:$0xff] }
 0x741   : > { %v5355_v26 = vld [vmem:[#allocation10 + $0x428] sm:$0xff] }
 0x743   : > { %4356 = vmatmul.mubr.f32.gmra.mrb[170].mxu1 %v4164_v44  ;;  %4648 = vmatmul.mubr.f32.gmra.mrb[144].mxu0 %v4456_v42  ;;  %v4474_v44 = vld [vmem:[#allocation10 + $0x3e0] sm:$0xff] }
 0x744   : > { %4360 = vmatprep.mubr.f32.mxu1 %v4167_v1  ;;  %4652 = vmatprep.mubr.f32.mxu0 %v4459_v30  ;;  %v5354_v42 = vld [vmem:[#allocation10 + $0x420] sm:$0xff]  ;;  %v4477_v1 = vld [vmem:[#allocation10 + $0x3f8] sm:$0xff] }
 0x745   : > { %v5357_v30 = vld [vmem:[#allocation10 + $0x438] sm:$0xff] }
 0x747   : > { %4361 = vmatmul.mubr.f32.gmra.mrb[172].mxu1 %v4166_v15  ;;  %4653 = vmatmul.mubr.f32.gmra.mrb[146].mxu0 %v4458_v11  ;;  %v5359_v15 = vld [vmem:[#allocation10 + $0x448] sm:$0xff]  ;;  %v5358_v11 = vld [vmem:[#allocation10 + $0x440] sm:$0xff] }
 0x748   : > { %4365 = vmatprep.mubr.f32.mxu1 %v4169_v13  ;;  %4657 = vmatprep.mubr.f32.mxu0 %v4461_v16  ;;  %v5361_v13 = vld [vmem:[#allocation10 + $0x458] sm:$0xff]  ;;  %v5360_v16 = vld [vmem:[#allocation10 + $0x450] sm:$0xff] }
 0x74b   : > { %4366 = vmatmul.mubr.f32.gmra.mrb[174].mxu1 %v4168_v58  ;;  %4658 = vmatmul.mubr.f32.gmra.mrb[148].mxu0 %v4460_v27  ;;  %v5363_v58 = vld [vmem:[#allocation10 + $0x468] sm:$0xff]  ;;  %v5365_v27 = vld [vmem:[#allocation10 + $0x478] sm:$0xff] }
 0x74c   : > { %4370 = vmatprep.mubr.f32.mxu1 %v4171_v22  ;;  %4662 = vmatprep.mubr.f32.mxu0 %v4463_v47  ;;  %v5364_v22 = vld [vmem:[#allocation10 + $0x470] sm:$0xff]  ;;  %v5367_v47 = vld [vmem:[#allocation10 + $0x488] sm:$0xff] }
 0x74f   : > { %4371 = vmatmul.mubr.f32.gmra.mrb[176].mxu1 %v4170_v37  ;;  %4663 = vmatmul.mubr.f32.gmra.mrb[150].mxu0 %v4462_v57  ;;  %v5366_v37 = vld [vmem:[#allocation10 + $0x480] sm:$0xff]  ;;  %v5369_v57 = vld [vmem:[#allocation10 + $0x498] sm:$0xff] }
 0x750   : > { %4375 = vmatprep.mubr.f32.mxu1 %v4173_v29  ;;  %4667 = vmatprep.mubr.f32.mxu0 %v4465_v48  ;;  %v5368_v29 = vld [vmem:[#allocation10 + $0x490] sm:$0xff]  ;;  %v5371_v48 = vld [vmem:[#allocation10 + $0x4a8] sm:$0xff] }
 0x753   : > { %4376 = vmatmul.mubr.f32.gmra.mrb[178].mxu1 %v4172_v19  ;;  %4668 = vmatmul.mubr.f32.gmra.mrb[152].mxu0 %v4464_v35  ;;  %v5370_v19 = vld [vmem:[#allocation10 + $0x4a0] sm:$0xff]  ;;  %v5373_v35 = vld [vmem:[#allocation10 + $0x4b8] sm:$0xff] }
 0x754   : > { %4380 = vmatprep.mubr.f32.mxu1 %v4175_v5  ;;  %4672 = vmatprep.mubr.f32.mxu0 %v4467_v40  ;;  %v5372_v5 = vld [vmem:[#allocation10 + $0x4b0] sm:$0xff]  ;;  %v5375_v40 = vld [vmem:[#allocation10 + $0x4c8] sm:$0xff] }
 0x757   : > { %4381 = vmatmul.mubr.f32.gmra.mrb[180].mxu1 %v4174_v43  ;;  %4673 = vmatmul.mubr.f32.gmra.mrb[154].mxu0 %v4466_v46  ;;  %v5374_v43 = vld [vmem:[#allocation10 + $0x4c0] sm:$0xff]  ;;  %v5377_v46 = vld [vmem:[#allocation10 + $0x4d8] sm:$0xff] }
 0x758   : > { %4385 = vmatprep.mubr.f32.mxu1 %v4177_v51  ;;  %4677 = vmatprep.mubr.f32.mxu0 %v4469_v60  ;;  %v5376_v51 = vld [vmem:[#allocation10 + $0x4d0] sm:$0xff]  ;;  %v5379_v60 = vld [vmem:[#allocation10 + $0x4e8] sm:$0xff] }
 0x75b   : > { %4386 = vmatmul.mubr.f32.gmra.mrb[182].mxu1 %v4176_v50  ;;  %4678 = vmatmul.mubr.f32.gmra.mrb[156].mxu0 %v4468_v55  ;;  %v5378_v50 = vld [vmem:[#allocation10 + $0x4e0] sm:$0xff]  ;;  %v5381_v55 = vld [vmem:[#allocation10 + $0x4f8] sm:$0xff] }
 0x75c   : > { %4390 = vmatprep.mubr.f32.mxu1 %v4179_v41  ;;  %4682 = vmatprep.mubr.f32.mxu0 %v4471_v33  ;;  %v5380_v41 = vld [vmem:[#allocation10 + $0x4f0] sm:$0xff]  ;;  %v5383_v33 = vld [vmem:[#allocation10 + $0x508] sm:$0xff] }
 0x75f   : > { %4391 = vmatmul.mubr.f32.gmra.mrb[184].mxu1 %v4178_v28  ;;  %4683 = vmatmul.mubr.f32.gmra.mrb[158].mxu0 %v4470_v18  ;;  %v5382_v28 = vld [vmem:[#allocation10 + $0x500] sm:$0xff]  ;;  %v5385_v18 = vld [vmem:[#allocation10 + $0x518] sm:$0xff] }
 0x760   : > { %4395 = vmatprep.mubr.f32.mxu1 %v4181_v36  ;;  %4687 = vmatprep.mubr.f32.mxu0 %v4473_v45  ;;  %v5384_v36 = vld [vmem:[#allocation10 + $0x510] sm:$0xff]  ;;  %v5387_v45 = vld [vmem:[#allocation10 + $0x528] sm:$0xff] }
 0x763   : > { %4396 = vmatmul.mubr.f32.gmra.mrb[186].mxu1 %v4180_v24  ;;  %4688 = vmatmul.mubr.f32.gmra.mrb[160].mxu0 %v4472_v38  ;;  %v5386_v24 = vld [vmem:[#allocation10 + $0x520] sm:$0xff]  ;;  %v5389_v38 = vld [vmem:[#allocation10 + $0x538] sm:$0xff] }
 0x764   : > { %4400 = vmatprep.mubr.f32.mxu1 %v4183_v8  ;;  %5478 = vmatprep.mubr.f32.mxu0 %v5351_v12  ;;  %v5388_v8 = vld [vmem:[#allocation10 + $0x530] sm:$0xff]  ;;  %v5391_v12 = vld [vmem:[#allocation10 + $0x548] sm:$0xff] }
 0x767   : > { %4401 = vmatmul.mubr.f32.gmra.mrb[188].mxu1 %v4182_v10  ;;  %5479 = vmatmul.mubr.f32.vlgmr.msra.gmra.mrb[162].mxu0 %v5350_v14  ;;  %v5390_v10 = vld [vmem:[#allocation10 + $0x540] sm:$0xff]  ;;  %v5393_v14 = vld [vmem:[#allocation10 + $0x558] sm:$0xff] }
 0x768   : > { %21305 = vmatpush1.bf16.msra.mxu0 %v24876_v54  ;;  %4405 = vmatprep.mubr.f32.mxu1 %v4185_v56  ;;  %v5392_v56 = vld [vmem:[#allocation10 + $0x550] sm:$0xff] }
 0x769   : > { %5483 = vmatprep.mubr.f32.mxu0 %v5353_v53  ;;  %21306 = vmatprep.subr.bf16.mxu0 %v26719_v23  ;;  %v5395_v53 = vld [vmem:[#allocation10 + $0x568] sm:$0xff] }
 0x76b   : > { %4406 = vmatmul.mubr.f32.gmra.mrb[190].mxu1 %v4184_v59  ;;  %5484 = vmatmul.mubr.f32.gmra.mrb[164].mxu0 %v5352_v52  ;;  %v5394_v59 = vld [vmem:[#allocation10 + $0x560] sm:$0xff]  ;;  %v5397_v52 = vld [vmem:[#allocation10 + $0x578] sm:$0xff] }
 0x76c   : > { %21308 = vmatpush1.bf16.msra.mxu0 %v24882_v3  ;;  %4692 = vmatprep.mubr.f32.mxu1 %v4475_v61  ;;  %v5396_v61 = vld [vmem:[#allocation10 + $0x570] sm:$0xff] }
 0x76d   : > { %5488 = vmatprep.mubr.f32.mxu0 %v5355_v26  ;;  %21309 = vmatprep.subr.bf16.mxu0 %v26719_v23  ;;  %v5399_v26 = vld [vmem:[#allocation10 + $0x588] sm:$0xff] }
 0x76f   : > { %4693 = vmatmul.mubr.f32.vlgmr.msra.gmra.mrb[192].mxu1 %v4474_v44  ;;  %5489 = vmatmul.mubr.f32.gmra.mrb[166].mxu0 %v5354_v42 }
 0x770   : > { %21311 = vmatpush1.bf16.msra.mxu0 %v24888_v0  ;;  %4697 = vmatprep.mubr.f32.mxu1 %v4477_v1 }
 0x771   : > { %5493 = vmatprep.mubr.f32.mxu0 %v5357_v30  ;;  %21312 = vmatprep.subr.bf16.mxu0 %v26719_v23 }
 0x772   : > { %21246 = vmatpush3.bf16.msra.mxu1 %v25035_v9  ;;  %v5362_v9 = vld [vmem:[#allocation10 + $0x460] sm:$0xff] }
 0x773   : > { %4698 = vmatmul.mubr.f32.gmra.mrb[194].mxu1 %v4476_v39  ;;  %5494 = vmatmul.mubr.f32.gmra.mrb[168].mxu0 %v5356_v21  ;;  %v5398_v39 = vld [vmem:[#allocation10 + $0x580] sm:$0xff]  ;;  %v5401_v21 = vld [vmem:[#allocation10 + $0x598] sm:$0xff] }
 0x774   : > { %21314 = vmatpush1.bf16.msra.mxu0 %v24894_v6  ;;  %5498 = vmatprep.mubr.f32.mxu0 %v5359_v15  ;;  %v4411_v15 = vld [vmem:[#allocation12] sm:$0xff] }
 0x775   : > { %21315 = vmatprep.subr.bf16.mxu0 %v26719_v23 }
 0x777   : > { %5499 = vmatmul.mubr.f32.gmra.mrb[170].mxu0 %v5358_v11  ;;  %v4412_v11 = vld [vmem:[#allocation12 + $0x8] sm:$0xff] }
 0x778   : > { %21317 = vmatpush1.bf16.msra.mxu0 %v24900_v63  ;;  %5503 = vmatprep.mubr.f32.mxu0 %v5361_v13 }
 0x779   : > { %21318 = vmatprep.subr.bf16.mxu0 %v26719_v23 }
 0x77b   : > { %5504 = vmatmul.mubr.f32.gmra.mrb[172].mxu0 %v5360_v16 }
 0x77c   : > { %21320 = vmatpush1.bf16.msra.mxu0 %v24906_v34  ;;  %5508 = vmatprep.mubr.f32.mxu0 %v5363_v58  ;;  %v21247_v58 = vpack.c.bf16 %v4412_v11, %v4411_v15 }
 0x77d   : > { %21321 = vmatprep.subr.bf16.mxu0 %v26719_v23 }
 0x77e   : > { %21248 = vmatprep.subr.bf16.mxu1 %v21247_v58 }
 0x77f   : > { %5509 = vmatmul.mubr.f32.gmra.mrb[174].mxu0 %v5362_v9 }
 0x780   : > { %21323 = vmatpush1.bf16.msra.mxu0 %v24912_v17  ;;  %5513 = vmatprep.mubr.f32.mxu0 %v5365_v27 }
 0x781   : > { %21324 = vmatprep.subr.bf16.mxu0 %v26719_v23 }
 0x783   : > { %5514 = vmatmul.mubr.f32.gmra.mrb[176].mxu0 %v5364_v22  ;;  %v5400_v22 = vld [vmem:[#allocation10 + $0x590] sm:$0xff] }
 0x784   : > { %21326 = vmatpush1.bf16.msra.mxu0 %v24918_v2  ;;  %5518 = vmatprep.mubr.f32.mxu0 %v5367_v47  ;;  %v5403_v47 = vld [vmem:[#allocation10 + $0x5a8] sm:$0xff] }
 0x785   : > { %21327 = vmatprep.subr.bf16.mxu0 %v26719_v23 }
 0x787   : > { %5519 = vmatmul.mubr.f32.gmra.mrb[178].mxu0 %v5366_v37 }
 0x788   : > { %21329 = vmatpush1.bf16.msra.mxu0 %v24924_v31  ;;  %5523 = vmatprep.mubr.f32.mxu0 %v5369_v57 }
 0x789   : > { %21330 = vmatprep.subr.bf16.mxu0 %v26719_v23 }
 0x78b   : > { %5524 = vmatmul.mubr.f32.gmra.mrb[180].mxu0 %v5368_v29 }
 0x78c   : > { %21332 = vmatpush1.bf16.msra.mxu0 %v24930_v25  ;;  %5528 = vmatprep.mubr.f32.mxu0 %v5371_v48 }
 0x78d   : > { %21333 = vmatprep.subr.bf16.mxu0 %v26719_v23 }
 0x78f   : > { %5529 = vmatmul.mubr.f32.gmra.mrb[182].mxu0 %v5370_v19  ;;  %v5402_v19 = vld [vmem:[#allocation10 + $0x5a0] sm:$0xff] }
 0x790   : > { %21335 = vmatpush1.bf16.msra.mxu0 %v24936_v20  ;;  %5533 = vmatprep.mubr.f32.mxu0 %v5373_v35  ;;  %v5405_v35 = vld [vmem:[#allocation10 + $0x5b8] sm:$0xff] }
 0x791   : > { %21336 = vmatprep.subr.bf16.mxu0 %v26719_v23 }
 0x793   : > { %5534 = vmatmul.mubr.f32.gmra.mrb[184].mxu0 %v5372_v5 }
 0x794   : > { %21338 = vmatpush1.bf16.msra.mxu0 %v24942_v32  ;;  %5538 = vmatprep.mubr.f32.mxu0 %v5375_v40 }
 0x795   : > { %21339 = vmatprep.subr.bf16.mxu0 %v26719_v23 }
 0x797   : > { %5539 = vmatmul.mubr.f32.gmra.mrb[186].mxu0 %v5374_v43 }
 0x798   : > { %21341 = vmatpush1.bf16.msra.mxu0 %v24948_v4  ;;  %5543 = vmatprep.mubr.f32.mxu0 %v5377_v46 }
 0x799   : > { %21342 = vmatprep.subr.bf16.mxu0 %v26719_v23 }
 0x79b   : > { %5544 = vmatmul.mubr.f32.gmra.mrb[188].mxu0 %v5376_v51  ;;  %v5404_v51 = vld [vmem:[#allocation10 + $0x5b0] sm:$0xff] }
 0x79c   : > { %21344 = vmatpush1.bf16.msra.mxu0 %v24954_v7  ;;  %5548 = vmatprep.mubr.f32.mxu0 %v5379_v60  ;;  %v5407_v60 = vld [vmem:[#allocation10 + $0x5c8] sm:$0xff] }
 0x79d   : > { %21345 = vmatprep.subr.bf16.mxu0 %v26719_v23 }
 0x79f   : > { %5549 = vmatmul.mubr.f32.gmra.mrb[190].mxu0 %v5378_v50 }
 0x7a0   : > { %21347 = vmatpush1.bf16.msra.mxu0 %v24960_v62  ;;  %5553 = vmatprep.mubr.f32.mxu0 %v5381_v55 }
 0x7a1   : > { %21348 = vmatprep.subr.bf16.mxu0 %v26719_v23 }
 0x7a3   : > { %5554 = vmatmul.mubr.f32.gmra.mrb[192].mxu0 %v5380_v41 }
 0x7a4   : > { %21350 = vmatpush1.bf16.msra.mxu0 %v24966_v49  ;;  %5558 = vmatprep.mubr.f32.mxu0 %v5383_v33 }
 0x7a5   : > { %21407 = vmatprep.subr.bf16.mxu0 %v26719_v23 }
 0x7a7   : > { %5559 = vmatmul.mubr.f32.gmra.mrb[194].mxu0 %v5382_v28  ;;  %v5406_v28 = vld [vmem:[#allocation10 + $0x5c0] sm:$0xff] }
 0x7a8   : > { %5563 = vmatprep.mubr.f32.mxu0 %v5385_v18  ;;  %v5409_v18 = vld [vmem:[#allocation10 + $0x5d8] sm:$0xff] }
 0x7ab   : > { %5564 = vmatmul.mubr.f32.gmra.mrb[196].mxu0 %v5384_v36 }
 0x7ac   : > { %5568 = vmatprep.mubr.f32.mxu0 %v5387_v45 }
 0x7af   : > { %5569 = vmatmul.mubr.f32.gmra.mrb[198].mxu0 %v5386_v24 }
 0x7b0   : > { %5573 = vmatprep.mubr.f32.mxu0 %v5389_v38 }
 0x7b3   : > { %5574 = vmatmul.mubr.f32.gmra.mrb[200].mxu0 %v5388_v8  ;;  %v5408_v8 = vld [vmem:[#allocation10 + $0x5d0] sm:$0xff] }
 0x7b4   : > { %5578 = vmatprep.mubr.f32.mxu0 %v5391_v12  ;;  %v5411_v12 = vld [vmem:[#allocation10 + $0x5e8] sm:$0xff] }
 0x7b7   : > { %5579 = vmatmul.mubr.f32.gmra.mrb[202].mxu0 %v5390_v10 }
 0x7b8   : > { %5583 = vmatprep.mubr.f32.mxu0 %v5393_v14 }
 0x7bb   : > { %5584 = vmatmul.mubr.f32.gmra.mrb[204].mxu0 %v5392_v56 }
 0x7bc   : > { %5588 = vmatprep.mubr.f32.mxu0 %v5395_v53 }
 0x7bf   : > { %5589 = vmatmul.mubr.f32.gmra.mrb[206].mxu0 %v5394_v59  ;;  %v5410_v59 = vld [vmem:[#allocation10 + $0x5e0] sm:$0xff] }
 0x7c0   : > { %5593 = vmatprep.mubr.f32.mxu0 %v5397_v52  ;;  %v5413_v52 = vld [vmem:[#allocation10 + $0x5f8] sm:$0xff] }
 0x7c2   : > { %v4544_v44 = vpop.f32.mrb[102].mxu0  ;;  %v25071_v42 = vpop.f32.mrb[128].mxu1 }
 0x7c3   : > { %v4546_v1 = vpop.f32.mrb[103].mxu0  ;;  %19699 = vmatprep.mubr.msk.f32.mxu1 %vm4706_vm2, %v4544_v44  ;;  %5594 = vmatmul.mubr.f32.gmra.mrb[208].mxu0 %v5396_v61  ;;  %v4254_v30 = vpop.f32.mrb[129].mxu1 }
 0x7c4   : > { %5598 = vmatprep.mubr.f32.mxu0 %v5399_v26  ;;  %v5412_v30 = vld [vmem:[#allocation10 + $0x5f0] sm:$0xff] }
 0x7c6   : > { %v4549_v13 = vpop.f32.mrb[104].mxu0  ;;  %v25074_v16 = vpop.f32.mrb[130].mxu1 }
 0x7c7   : > { %v4551_v9 = vpop.f32.mrb[105].mxu0  ;;  %19700 = vmatmul.mubr.msk.f32.vlgmr.msra.gmra.mrb[196].mxu1 %vm4706_vm2, %v4549_v13  ;;  %5599 = vmatmul.mubr.f32.gmra.mrb[210].mxu0 %v5398_v39  ;;  %v4259_v27 = vpop.f32.mrb[131].mxu1  ;;  %v5997_v39 = vld [vmem:[#allocation10 + $0x608] sm:$0xff] }
 0x7c8   : > { %5603 = vmatprep.mubr.f32.mxu0 %v5401_v21  ;;  %21250 = vmatpush3.bf16.msra.mxu1 %v21247_v58  ;;  %v5996_v58 = vld [vmem:[#allocation10 + $0x600] sm:$0xff]  ;;  %v5999_v9 = vld [vmem:[#allocation10 + $0x618] sm:$0xff] }
 0x7ca   : > { %v4554_v37 = vpop.f32.mrb[106].mxu0  ;;  %v25077_v57 = vpop.f32.mrb[132].mxu1 }
 0x7cb   : > { %v4556_v29 = vpop.f32.mrb[107].mxu0  ;;  %19702 = vmatprep.mubr.msk.f32.mxu1 %vm4706_vm2, %v4554_v37  ;;  %5604 = vmatmul.mubr.f32.gmra.mrb[212].mxu0 %v5400_v22  ;;  %v4264_v48 = vpop.f32.mrb[133].mxu1 }
 0x7cc   : > { %5608 = vmatprep.mubr.f32.mxu0 %v5403_v47  ;;  %v5998_v29 = vld [vmem:[#allocation10 + $0x610] sm:$0xff]  ;;  %v6001_v48 = vld [vmem:[#allocation10 + $0x628] sm:$0xff] }
 0x7ce   : > { %v4559_v5 = vpop.f32.mrb[108].mxu0  ;;  %v25080_v40 = vpop.f32.mrb[134].mxu1 }
 0x7cf   : > { %v4561_v43 = vpop.f32.mrb[109].mxu0  ;;  %19703 = vmatmul.mubr.msk.f32.gmra.mrb[198].mxu1 %vm4706_vm2, %v4559_v5  ;;  %5609 = vmatmul.mubr.f32.gmra.mrb[214].mxu0 %v5402_v19  ;;  %v4269_v46 = vpop.f32.mrb[135].mxu1 }
 0x7d0   : > { %5613 = vmatprep.mubr.f32.mxu0 %v5405_v35  ;;  %v6000_v46 = vld [vmem:[#allocation10 + $0x620] sm:$0xff] }
 0x7d2   : > { %v4564_v50 = vpop.f32.mrb[110].mxu0  ;;  %v25083_v55 = vpop.f32.mrb[136].mxu1 }
 0x7d3   : > { %v4566_v41 = vpop.f32.mrb[111].mxu0  ;;  %19705 = vmatprep.mubr.msk.f32.mxu1 %vm4706_vm2, %v4564_v50  ;;  %5614 = vmatmul.mubr.f32.gmra.mrb[216].mxu0 %v5404_v51  ;;  %v4274_v33 = vpop.f32.mrb[137].mxu1  ;;  %v6003_v51 = vld [vmem:[#allocation10 + $0x638] sm:$0xff] }
 0x7d4   : > { %5618 = vmatprep.mubr.f32.mxu0 %v5407_v60 }
 0x7d6   : > { %v4569_v36 = vpop.f32.mrb[112].mxu0  ;;  %v25086_v45 = vpop.f32.mrb[138].mxu1 }
 0x7d7   : > { %v4571_v24 = vpop.f32.mrb[113].mxu0  ;;  %19706 = vmatmul.mubr.msk.f32.gmra.mrb[200].mxu1 %vm4706_vm2, %v4569_v36  ;;  %5619 = vmatmul.mubr.f32.gmra.mrb[218].mxu0 %v5406_v28  ;;  %v4279_v38 = vpop.f32.mrb[139].mxu1  ;;  %v6002_v28 = vld [vmem:[#allocation10 + $0x630] sm:$0xff] }
 0x7d8   : > { %5623 = vmatprep.mubr.f32.mxu0 %v5409_v18  ;;  %v6005_v18 = vld [vmem:[#allocation10 + $0x648] sm:$0xff] }
 0x7da   : > { %v4574_v10 = vpop.f32.mrb[114].mxu0  ;;  %v25089_v14 = vpop.f32.mrb[140].mxu1 }
 0x7db   : > { %v4576_v56 = vpop.f32.mrb[115].mxu0  ;;  %19708 = vmatprep.mubr.msk.f32.mxu1 %vm4706_vm2, %v4574_v10  ;;  %5624 = vmatmul.mubr.f32.gmra.mrb[220].mxu0 %v5408_v8  ;;  %v4284_v53 = vpop.f32.mrb[141].mxu1  ;;  %v6007_v10 = vld [vmem:[#allocation10 + $0x658] sm:$0xff] }
 0x7dc   : > { %5628 = vmatprep.mubr.f32.mxu0 %v5411_v12  ;;  %v6004_v12 = vld [vmem:[#allocation10 + $0x640] sm:$0xff] }
 0x7de   : > { %v4579_v61 = vpop.f32.mrb[116].mxu0  ;;  %v25092_v26 = vpop.f32.mrb[142].mxu1 }
 0x7df   : > { %v4581_v44 = vpop.f32.mrb[117].mxu0  ;;  %19709 = vmatmul.mubr.msk.f32.gmra.mrb[202].mxu1 %vm4706_vm2, %v4579_v61  ;;  %5629 = vmatmul.mubr.f32.gmra.mrb[222].mxu0 %v5410_v59  ;;  %v4289_v1 = vpop.f32.mrb[143].mxu1  ;;  %v6006_v61 = vld [vmem:[#allocation10 + $0x650] sm:$0xff] }
 0x7e0   : > { %5633 = vmatprep.mubr.f32.mxu0 %v5413_v52  ;;  %v6009_v44 = vld [vmem:[#allocation10 + $0x668] sm:$0xff] }
 0x7e2   : > { %v4584_v21 = vpop.f32.mrb[118].mxu0  ;;  %v25095_v15 = vpop.f32.mrb[144].mxu1 }
 0x7e3   : > { %v4586_v11 = vpop.f32.mrb[119].mxu0  ;;  %19711 = vmatprep.mubr.msk.f32.mxu1 %vm4706_vm2, %v4584_v21  ;;  %5634 = vmatmul.mubr.f32.gmra.mrb[224].mxu0 %v5412_v30  ;;  %v4294_v13 = vpop.f32.mrb[145].mxu1 }
 0x7e4   : > { %6124 = vmatprep.mubr.f32.mxu0 %v5997_v39  ;;  %v6008_v11 = vld [vmem:[#allocation10 + $0x660] sm:$0xff]  ;;  %v6011_v13 = vld [vmem:[#allocation10 + $0x678] sm:$0xff] }
 0x7e6   : > { %v4589_v27 = vpop.f32.mrb[120].mxu0  ;;  %v25098_v22 = vpop.f32.mrb[146].mxu1 }
 0x7e7   : > { %v4591_v47 = vpop.f32.mrb[121].mxu0  ;;  %19712 = vmatmul.mubr.msk.f32.gmra.mrb[204].mxu1 %vm4706_vm2, %v4589_v27  ;;  %6125 = vmatmul.mubr.f32.vlgmr.msra.gmra.mrb[226].mxu0 %v5996_v58  ;;  %v4299_v37 = vpop.f32.mrb[147].mxu1 }
 0x7e8   : > { %21409 = vmatpush1.bf16.msra.mxu0 %v24876_v54  ;;  %6129 = vmatprep.mubr.f32.mxu0 %v5999_v9  ;;  %v6010_v37 = vld [vmem:[#allocation10 + $0x670] sm:$0xff] }
 0x7e9   : > { %21410 = vmatprep.subr.bf16.mxu0 %v26719_v23 }
 0x7ea   : > { %v4594_v19 = vpop.f32.mrb[122].mxu0  ;;  %v25103_v35 = vpop.f32.mrb[148].mxu1 }
 0x7eb   : > { %v4596_v5 = vpop.f32.mrb[123].mxu0  ;;  %19714 = vmatprep.mubr.msk.f32.mxu1 %vm4706_vm2, %v4594_v19  ;;  %6130 = vmatmul.mubr.f32.gmra.mrb[228].mxu0 %v5998_v29  ;;  %v4304_v43 = vpop.f32.mrb[149].mxu1  ;;  %v6013_v29 = vld [vmem:[#allocation10 + $0x688] sm:$0xff] }
 0x7ec   : > { %21412 = vmatpush1.bf16.msra.mxu0 %v24882_v3  ;;  %6134 = vmatprep.mubr.f32.mxu0 %v6001_v48 }
 0x7ed   : > { %21413 = vmatprep.subr.bf16.mxu0 %v26719_v23 }
 0x7ee   : > { %v4599_v60 = vpop.f32.mrb[124].mxu0  ;;  %v25108_v50 = vpop.f32.mrb[150].mxu1 }
 0x7ef   : > { %v4601_v41 = vpop.f32.mrb[125].mxu0  ;;  %19715 = vmatmul.mubr.msk.f32.gmra.mrb[206].mxu1 %vm4706_vm2, %v4599_v60  ;;  %6135 = vmatmul.mubr.f32.gmra.mrb[230].mxu0 %v6000_v46  ;;  %v4309_v33 = vpop.f32.mrb[151].mxu1  ;;  %v6012_v46 = vld [vmem:[#allocation10 + $0x680] sm:$0xff] }
 0x7f0   : > { %21415 = vmatpush1.bf16.msra.mxu0 %v24888_v0  ;;  %6139 = vmatprep.mubr.f32.mxu0 %v6003_v51  ;;  %v6015_v51 = vld [vmem:[#allocation10 + $0x698] sm:$0xff]  ;;  %v5640_v60 = vld [vmem:[#allocation12 + $0x20] sm:$0xff]  ;;  %v5641_v41 = vld [vmem:[#allocation12 + $0x28] sm:$0xff] }
 0x7f1   : > { %21416 = vmatprep.subr.bf16.mxu0 %v26719_v23 }
 0x7f2   : > { %v4604_v36 = vpop.f32.mrb[126].mxu0  ;;  %v25113_v24 = vpop.f32.mrb[152].mxu1 }
 0x7f3   : > { %v4606_v38 = vpop.f32.mrb[127].mxu0  ;;  %19717 = vmatprep.mubr.msk.f32.mxu1 %vm4706_vm2, %v4604_v36  ;;  %6140 = vmatmul.mubr.f32.gmra.mrb[232].mxu0 %v6002_v28  ;;  %v4314_v8 = vpop.f32.mrb[153].mxu1 }
 0x7f4   : > { %21418 = vmatpush1.bf16.msra.mxu0 %v24894_v6  ;;  %6144 = vmatprep.mubr.f32.mxu0 %v6005_v18  ;;  %v25140_v18 = vpack.c.bf16 %v5641_v41, %v5640_v60  ;;  %v6014_v8 = vld [vmem:[#allocation10 + $0x690] sm:$0xff] }
 0x7f5   : > { %21419 = vmatprep.subr.bf16.mxu0 %v26719_v23  ;;  %v6022_v41 = vld [vmem:[#allocation10 + $0x6d0] sm:$0xff] }
 0x7f6   : > { %v4609_v56 = vpop.f32.mrb[128].mxu0  ;;  %v25118_v53 = vpop.f32.mrb[154].mxu1  ;;  %21300 = vmatprep.subr.bf16.mxu1 %v25140_v18 }
 0x7f7   : > { %v4611_v59 = vpop.f32.mrb[129].mxu0  ;;  %19718 = vmatmul.mubr.msk.f32.gmra.mrb[208].mxu1 %vm4706_vm2, %v4609_v56  ;;  %6145 = vmatmul.mubr.f32.gmra.mrb[234].mxu0 %v6004_v12  ;;  %v4319_v52 = vpop.f32.mrb[155].mxu1  ;;  %v6017_v12 = vld [vmem:[#allocation10 + $0x6a8] sm:$0xff] }
 0x7f8   : > { %21421 = vmatpush1.bf16.msra.mxu0 %v24900_v63  ;;  %6149 = vmatprep.mubr.f32.mxu0 %v6007_v10 }
 0x7f9   : > { %21422 = vmatprep.subr.bf16.mxu0 %v26719_v23 }
 0x7fa   : > { %v4614_v1 = vpop.f32.mrb[130].mxu0  ;;  %v25123_v30 = vpop.f32.mrb[156].mxu1 }
 0x7fb   : > { %v4616_v39 = vpop.f32.mrb[131].mxu0  ;;  %19720 = vmatprep.mubr.msk.f32.mxu1 %vm4706_vm2, %v4614_v1  ;;  %6150 = vmatmul.mubr.f32.gmra.mrb[236].mxu0 %v6006_v61  ;;  %v4324_v21 = vpop.f32.mrb[157].mxu1  ;;  %v6016_v61 = vld [vmem:[#allocation10 + $0x6a0] sm:$0xff] }
 0x7fc   : > { %21424 = vmatpush1.bf16.msra.mxu0 %v24906_v34  ;;  %6154 = vmatprep.mubr.f32.mxu0 %v6009_v44  ;;  %v6019_v44 = vld [vmem:[#allocation10 + $0x6b8] sm:$0xff] }
 0x7fd   : > { %21425 = vmatprep.subr.bf16.mxu0 %v26719_v23 }
 0x7fe   : > { %v4619_v58 = vpop.f32.mrb[132].mxu0  ;;  %v25128_v9 = vpop.f32.mrb[158].mxu1 }
 0x7ff   : > { %v4621_v27 = vpop.f32.mrb[133].mxu0  ;;  %19721 = vmatmul.mubr.msk.f32.gmra.mrb[210].mxu1 %vm4706_vm2, %v4619_v58  ;;  %6155 = vmatmul.mubr.f32.gmra.mrb[238].mxu0 %v6008_v11  ;;  %v4329_v47 = vpop.f32.mrb[159].mxu1  ;;  %v6021_v58 = vld [vmem:[#allocation10 + $0x6c8] sm:$0xff] }
 0x800   : > { %21427 = vmatpush1.bf16.msra.mxu0 %v24912_v17  ;;  %6159 = vmatprep.mubr.f32.mxu0 %v6011_v13  ;;  %v6018_v13 = vld [vmem:[#allocation10 + $0x6b0] sm:$0xff] }
 0x801   : > { %21428 = vmatprep.subr.bf16.mxu0 %v26719_v23 }
 0x802   : > { %v4624_v48 = vpop.f32.mrb[134].mxu0  ;;  %v25133_v19 = vpop.f32.mrb[160].mxu1 }
 0x803   : > { %v4626_v5 = vpop.f32.mrb[135].mxu0  ;;  %19723 = vmatprep.mubr.msk.f32.mxu1 %vm4706_vm2, %v4624_v48  ;;  %6160 = vmatmul.mubr.f32.gmra.mrb[240].mxu0 %v6010_v37  ;;  %v4334_v43 = vpop.f32.mrb[161].mxu1  ;;  %v6020_v48 = vld [vmem:[#allocation10 + $0x6c0] sm:$0xff] }
 0x804   : > { %21430 = vmatpush1.bf16.msra.mxu0 %v24918_v2  ;;  %6164 = vmatprep.mubr.f32.mxu0 %v6013_v29  ;;  %v6023_v5 = vld [vmem:[#allocation10 + $0x6d8] sm:$0xff] }
 0x805   : > { %21431 = vmatprep.subr.bf16.mxu0 %v26719_v23 }
 0x806   : > { %v4629_v33 = vpop.f32.mrb[136].mxu0  ;;  %v25138_v28 = vpop.f32.mrb[162].mxu1 }
 0x807   : > { %v4631_v36 = vpop.f32.mrb[137].mxu0  ;;  %19724 = vmatmul.mubr.msk.f32.gmra.mrb[212].mxu1 %vm4706_vm2, %v4629_v33  ;;  %6165 = vmatmul.mubr.f32.gmra.mrb[242].mxu0 %v6012_v46  ;;  %v4339_v38 = vpop.f32.mrb[163].mxu1  ;;  %v6025_v33 = vld [vmem:[#allocation10 + $0x6e8] sm:$0xff] }
 0x808   : > { %21433 = vmatpush1.bf16.msra.mxu0 %v24924_v31  ;;  %6169 = vmatprep.mubr.f32.mxu0 %v6015_v51 }
 0x809   : > { %21434 = vmatprep.subr.bf16.mxu0 %v26719_v23 }
 0x80a   : > { %v4634_v10 = vpop.f32.mrb[138].mxu0  ;;  %v25146_v56 = vpop.f32.mrb[164].mxu1 }
 0x80b   : > { %v4636_v59 = vpop.f32.mrb[139].mxu0  ;;  %19726 = vmatprep.mubr.msk.f32.mxu1 %vm4706_vm2, %v4634_v10  ;;  %6170 = vmatmul.mubr.f32.gmra.mrb[244].mxu0 %v6014_v8  ;;  %v4344_v52 = vpop.f32.mrb[165].mxu1  ;;  %v6024_v10 = vld [vmem:[#allocation10 + $0x6e0] sm:$0xff] }
 0x80c   : > { %21436 = vmatpush1.bf16.msra.mxu0 %v24930_v25  ;;  %6174 = vmatprep.mubr.f32.mxu0 %v6017_v12  ;;  %v6027_v59 = vld [vmem:[#allocation10 + $0x6f8] sm:$0xff] }
 0x80d   : > { %21437 = vmatprep.subr.bf16.mxu0 %v26719_v23 }
 0x80e   : > { %v4639_v1 = vpop.f32.mrb[140].mxu0  ;;  %v25151_v39 = vpop.f32.mrb[166].mxu1 }
 0x80f   : > { %v4641_v21 = vpop.f32.mrb[141].mxu0  ;;  %19727 = vmatmul.mubr.msk.f32.gmra.mrb[214].mxu1 %vm4706_vm2, %v4639_v1  ;;  %6175 = vmatmul.mubr.f32.gmra.mrb[246].mxu0 %v6016_v61  ;;  %v4349_v11 = vpop.f32.mrb[167].mxu1 }
 0x810   : > { %21439 = vmatpush1.bf16.msra.mxu0 %v24936_v20  ;;  %6179 = vmatprep.mubr.f32.mxu0 %v6019_v44  ;;  %v6026_v21 = vld [vmem:[#allocation10 + $0x6f0] sm:$0xff]  ;;  %v6029_v11 = vld [vmem:[#allocation10 + $0x708] sm:$0xff] }
 0x811   : > { %21440 = vmatprep.subr.bf16.mxu0 %v26719_v23 }
 0x812   : > { %v4644_v27 = vpop.f32.mrb[142].mxu0  ;;  %v25156_v47 = vpop.f32.mrb[168].mxu1 }
 0x813   : > { %v4646_v37 = vpop.f32.mrb[143].mxu0  ;;  %19729 = vmatprep.mubr.msk.f32.mxu1 %vm4706_vm2, %v4644_v27  ;;  %6180 = vmatmul.mubr.f32.gmra.mrb[248].mxu0 %v6018_v13  ;;  %v4354_v29 = vpop.f32.mrb[169].mxu1 }
 0x814   : > { %21442 = vmatpush1.bf16.msra.mxu0 %v24942_v32  ;;  %6184 = vmatprep.mubr.f32.mxu0 %v6021_v58  ;;  %v6028_v29 = vld [vmem:[#allocation10 + $0x700] sm:$0xff] }
 0x815   : > { %21443 = vmatprep.subr.bf16.mxu0 %v26719_v23 }
 0x816   : > { %v4649_v43 = vpop.f32.mrb[144].mxu0  ;;  %v25161_v46 = vpop.f32.mrb[170].mxu1 }
 0x817   : > { %v4651_v51 = vpop.f32.mrb[145].mxu0  ;;  %19730 = vmatmul.mubr.msk.f32.gmra.mrb[216].mxu1 %vm4706_vm2, %v4649_v43  ;;  %6185 = vmatmul.mubr.f32.gmra.mrb[250].mxu0 %v6020_v48  ;;  %v4359_v60 = vpop.f32.mrb[171].mxu1  ;;  %v6031_v48 = vld [vmem:[#allocation10 + $0x718] sm:$0xff] }
 0x818   : > { %21445 = vmatpush1.bf16.msra.mxu0 %v24948_v4  ;;  %6189 = vmatprep.mubr.f32.mxu0 %v6023_v5 }
 0x819   : > { %21446 = vmatprep.subr.bf16.mxu0 %v26719_v23 }
 0x81a   : > { %v4654_v36 = vpop.f32.mrb[146].mxu0  ;;  %v25166_v38 = vpop.f32.mrb[172].mxu1 }
 0x81b   : > { %v4656_v8 = vpop.f32.mrb[147].mxu0  ;;  %19732 = vmatprep.mubr.msk.f32.mxu1 %vm4706_vm2, %v4654_v36  ;;  %6190 = vmatmul.mubr.f32.gmra.mrb[252].mxu0 %v6022_v41  ;;  %v4364_v12 = vpop.f32.mrb[173].mxu1  ;;  %v6030_v41 = vld [vmem:[#allocation10 + $0x710] sm:$0xff] }
 0x81c   : > { %21448 = vmatpush1.bf16.msra.mxu0 %v24954_v7  ;;  %6194 = vmatprep.mubr.f32.mxu0 %v6025_v33  ;;  %v6033_v33 = vld [vmem:[#allocation10 + $0x728] sm:$0xff] }
 0x81d   : > { %21449 = vmatprep.subr.bf16.mxu0 %v26719_v23 }
 0x81e   : > { %v4659_v52 = vpop.f32.mrb[148].mxu0  ;;  %v25171_v61 = vpop.f32.mrb[174].mxu1 }
 0x81f   : > { %v4661_v44 = vpop.f32.mrb[149].mxu0  ;;  %19733 = vmatmul.mubr.msk.f32.gmra.mrb[218].mxu1 %vm4706_vm2, %v4659_v52  ;;  %6195 = vmatmul.mubr.f32.gmra.mrb[254].mxu0 %v6024_v10  ;;  %v4369_v1 = vpop.f32.mrb[175].mxu1  ;;  %v6035_v52 = vld [vmem:[#allocation10 + $0x738] sm:$0xff] }
 0x820   : > { %21451 = vmatpush1.bf16.msra.mxu0 %v24960_v62  ;;  %6199 = vmatprep.mubr.f32.mxu0 %v6027_v59  ;;  %v6032_v59 = vld [vmem:[#allocation10 + $0x720] sm:$0xff] }
 0x821   : > { %21452 = vmatprep.subr.bf16.mxu0 %v26719_v23 }
 0x822   : > { %v4664_v13 = vpop.f32.mrb[150].mxu0  ;;  %v25176_v58 = vpop.f32.mrb[176].mxu1 }
 0x823   : > { %v4666_v27 = vpop.f32.mrb[151].mxu0  ;;  %19735 = vmatprep.mubr.msk.f32.mxu1 %vm4706_vm2, %v4664_v13  ;;  %6200 = vmatmul.mubr.f32.gmra.mrb[0].mxu0 %v6026_v21  ;;  %v4374_v37 = vpop.f32.mrb[177].mxu1  ;;  %v6034_v13 = vld [vmem:[#allocation10 + $0x730] sm:$0xff] }
 0x824   : > { %21454 = vmatpush1.bf16.msra.mxu0 %v24966_v49  ;;  %6204 = vmatprep.mubr.f32.mxu0 %v6029_v11  ;;  %v6037_v27 = vld [vmem:[#allocation10 + $0x748] sm:$0xff] }
 0x825   : > { %21459 = vmatprep.subr.bf16.mxu0 %v26719_v23 }
 0x826   : > { %v4669_v5 = vpop.f32.mrb[152].mxu0  ;;  %v25181_v43 = vpop.f32.mrb[178].mxu1 }
 0x827   : > { %v4671_v51 = vpop.f32.mrb[153].mxu0  ;;  %19736 = vmatmul.mubr.msk.f32.gmra.mrb[220].mxu1 %vm4706_vm2, %v4669_v5  ;;  %6205 = vmatmul.mubr.f32.gmra.mrb[2].mxu0 %v6028_v29  ;;  %v4379_v60 = vpop.f32.mrb[179].mxu1 }
 0x828   : > { %6209 = vmatprep.mubr.f32.mxu0 %v6031_v48  ;;  %v6036_v51 = vld [vmem:[#allocation10 + $0x740] sm:$0xff]  ;;  %v6039_v60 = vld [vmem:[#allocation10 + $0x758] sm:$0xff] }
 0x82a   : > { %v4674_v36 = vpop.f32.mrb[154].mxu0  ;;  %v25184_v8 = vpop.f32.mrb[180].mxu1 }
 0x82b   : > { %v4676_v12 = vpop.f32.mrb[155].mxu0  ;;  %19738 = vmatprep.mubr.msk.f32.mxu1 %vm4706_vm2, %v4674_v36  ;;  %6210 = vmatmul.mubr.f32.gmra.mrb[4].mxu0 %v6030_v41  ;;  %v4384_v10 = vpop.f32.mrb[181].mxu1 }
 0x82c   : > { %6214 = vmatprep.mubr.f32.mxu0 %v6033_v33  ;;  %v6038_v10 = vld [vmem:[#allocation10 + $0x750] sm:$0xff] }
 0x82e   : > { %v4679_v44 = vpop.f32.mrb[156].mxu0  ;;  %v25187_v1 = vpop.f32.mrb[182].mxu1 }
 0x82f   : > { %v4681_v21 = vpop.f32.mrb[157].mxu0  ;;  %19739 = vmatmul.mubr.msk.f32.gmra.mrb[222].mxu1 %vm4706_vm2, %v4679_v44  ;;  %6215 = vmatmul.mubr.f32.gmra.mrb[6].mxu0 %v6032_v59  ;;  %v4389_v11 = vpop.f32.mrb[183].mxu1  ;;  %v6041_v59 = vld [vmem:[#allocation10 + $0x768] sm:$0xff] }
 0x830   : > { %6219 = vmatprep.mubr.f32.mxu0 %v6035_v52 }
 0x832   : > { %v4684_v37 = vpop.f32.mrb[158].mxu0  ;;  %v25190_v29 = vpop.f32.mrb[184].mxu1 }
 0x833   : > { %v4686_v48 = vpop.f32.mrb[159].mxu0  ;;  %19741 = vmatprep.mubr.msk.f32.mxu1 %vm4706_vm2, %v4684_v37  ;;  %6220 = vmatmul.mubr.f32.gmra.mrb[8].mxu0 %v6034_v13  ;;  %v4394_v5 = vpop.f32.mrb[185].mxu1  ;;  %v6040_v13 = vld [vmem:[#allocation10 + $0x760] sm:$0xff] }
 0x834   : > { %6224 = vmatprep.mubr.f32.mxu0 %v6037_v27  ;;  %v6043_v27 = vld [vmem:[#allocation10 + $0x778] sm:$0xff] }
 0x836   : > { %v4689_v41 = vpop.f32.mrb[160].mxu0  ;;  %v25193_v33 = vpop.f32.mrb[186].mxu1 }
 0x837   : > { %v4691_v36 = vpop.f32.mrb[161].mxu0  ;;  %19742 = vmatmul.mubr.msk.f32.gmra.mrb[224].mxu1 %vm4706_vm2, %v4689_v41  ;;  %6225 = vmatmul.mubr.f32.gmra.mrb[10].mxu0 %v6036_v51  ;;  %v4399_v12 = vpop.f32.mrb[187].mxu1  ;;  %v6045_v41 = vld [vmem:[#allocation10 + $0x788] sm:$0xff] }
 0x838   : > { %6229 = vmatprep.mubr.f32.mxu0 %v6039_v60  ;;  %v6042_v60 = vld [vmem:[#allocation10 + $0x770] sm:$0xff] }
 0x83a   : > { %v25196_v52 = vpop.f32.mrb[162].mxu0  ;;  %v25198_v44 = vpop.f32.mrb[188].mxu1 }
 0x83b   : > { %v5482_v21 = vpop.f32.mrb[163].mxu0  ;;  %6230 = vmatmul.mubr.f32.gmra.mrb[12].mxu0 %v6038_v10  ;;  %v4404_v11 = vpop.f32.mrb[189].mxu1 }
 0x83c   : > { %6234 = vmatprep.mubr.f32.mxu0 %v6041_v59  ;;  %v6044_v59 = vld [vmem:[#allocation10 + $0x780] sm:$0xff]  ;;  %v6047_v21 = vld [vmem:[#allocation10 + $0x798] sm:$0xff] }
 0x83e   : > { %v25200_v37 = vpop.f32.mrb[164].mxu0  ;;  %v25202_v48 = vpop.f32.mrb[190].mxu1 }
 0x83f   : > { %v5487_v5 = vpop.f32.mrb[165].mxu0  ;;  %6235 = vmatmul.mubr.f32.gmra.mrb[14].mxu0 %v6040_v13  ;;  %v4409_v51 = vpop.f32.mrb[191].mxu1 }
 0x840   : > { %6239 = vmatprep.mubr.f32.mxu0 %v6043_v27  ;;  %v6286_v5 = vld [vmem:[#allocation12 + $0x30] sm:$0xff]  ;;  %v6287_v51 = vld [vmem:[#allocation12 + $0x38] sm:$0xff] }
 0x842   : > { %v25204_v36 = vpop.f32.mrb[166].mxu0  ;;  %v4694_v12 = vpop.f32.mrb[192].mxu1 }
 0x843   : > { %v5492_v49 = vpop.f32.mrb[167].mxu0  ;;  %6240 = vmatmul.mubr.f32.gmra.mrb[16].mxu0 %v6042_v60  ;;  %v4696_v10 = vpop.f32.mrb[193].mxu1  ;;  %19744 = vmatprep.mubr.msk.f32.mxu1 %vm4706_vm2, %v4694_v12  ;;  %v6049_v60 = vld [vmem:[#allocation10 + $0x7a8] sm:$0xff] }
 0x844   : > { %6244 = vmatprep.mubr.f32.mxu0 %v6045_v41  ;;  %v6046_v49 = vld [vmem:[#allocation10 + $0x790] sm:$0xff]  ;;  %v25214_v41 = vpack.c.bf16 %v6287_v51, %v6286_v5  ;;  %v6057_v51 = vld [vmem:[#allocation10 + $0x7e8] sm:$0xff] }
 0x846   : > { %v4699_v11 = vpop.f32.mrb[194].mxu1  ;;  %v25207_v62 = vpop.f32.mrb[168].mxu0 }
 0x847   : > { %19745 = vmatmul.mubr.msk.f32.gmra.mrb[226].mxu1 %vm4706_vm2, %v4699_v11  ;;  %v5497_v13 = vpop.f32.mrb[169].mxu0  ;;  %6245 = vmatmul.mubr.f32.gmra.mrb[18].mxu0 %v6044_v59  ;;  %v4701_v27 = vpop.f32.mrb[195].mxu1  ;;  %v6048_v59 = vld [vmem:[#allocation10 + $0x7a0] sm:$0xff]  ;;  %v6051_v11 = vld [vmem:[#allocation10 + $0x7b8] sm:$0xff] }
 0x848   : > { %19751 = vmatprep.mubr.msk.f32.mxu1 %vm4706_vm2, %v25071_v42  ;;  %6249 = vmatprep.mubr.f32.mxu0 %v6047_v21  ;;  %v6055_v27 = vld [vmem:[#allocation10 + $0x7d8] sm:$0xff] }
 0x84a   : > { %v25212_v12 = vpop.f32.mrb[170].mxu0 }
 0x84b   : > { %19752 = vmatmul.mubr.msk.f32.vlgmr.msra.gmra.mrb[196].mxu1 %vm4706_vm2, %v25074_v16  ;;  %v5502_v10 = vpop.f32.mrb[171].mxu0  ;;  %6250 = vmatmul.mubr.f32.gmra.mrb[20].mxu0 %v6046_v49  ;;  %v6050_v16 = vld [vmem:[#allocation10 + $0x7b0] sm:$0xff] }
 0x84c   : > { %19754 = vmatprep.mubr.msk.f32.mxu1 %vm4706_vm2, %v25077_v57  ;;  %6254 = vmatprep.mubr.f32.mxu0 %v6049_v60  ;;  %v6053_v57 = vld [vmem:[#allocation10 + $0x7c8] sm:$0xff]  ;;  %v6059_v60 = vld [vmem:[#allocation10 + $0x7f8] sm:$0xff] }
 0x84d   : > { %21302 = vmatpush3.bf16.msra.mxu1 %v25140_v18 }
 0x84e   : > { %v25221_v42 = vpop.f32.mrb[172].mxu0  ;;  %21352 = vmatprep.subr.bf16.mxu1 %v25214_v41 }
 0x84f   : > { %19755 = vmatmul.mubr.msk.f32.gmra.mrb[198].mxu1 %vm4706_vm2, %v25080_v40  ;;  %v5507_v21 = vpop.f32.mrb[173].mxu0  ;;  %6255 = vmatmul.mubr.f32.gmra.mrb[22].mxu0 %v6048_v59  ;;  %v6052_v40 = vld [vmem:[#allocation10 + $0x7c0] sm:$0xff]  ;;  %v7289_v59 = vld [vmem:[#allocation10 + $0xa08] sm:$0xff] }
 0x850   : > { %19757 = vmatprep.mubr.msk.f32.mxu1 %vm4706_vm2, %v25083_v55  ;;  %6259 = vmatprep.mubr.f32.mxu0 %v6051_v11 }
 0x852   : > { %v25228_v13 = vpop.f32.mrb[174].mxu0 }
 0x853   : > { %19758 = vmatmul.mubr.msk.f32.gmra.mrb[200].mxu1 %vm4706_vm2, %v25086_v45  ;;  %v5512_v18 = vpop.f32.mrb[175].mxu0  ;;  %6260 = vmatmul.mubr.f32.gmra.mrb[24].mxu0 %v6050_v16  ;;  %v6054_v45 = vld [vmem:[#allocation10 + $0x7d0] sm:$0xff]  ;;  %v7291_v16 = vld [vmem:[#allocation10 + $0xa18] sm:$0xff] }
 0x854   : > { %19760 = vmatprep.mubr.msk.f32.mxu1 %vm4706_vm2, %v25089_v14  ;;  %6264 = vmatprep.mubr.f32.mxu0 %v6053_v57  ;;  %v7293_v57 = vld [vmem:[#allocation10 + $0xa28] sm:$0xff] }
 0x856   : > { %v25234_v5 = vpop.f32.mrb[176].mxu0 }
 0x857   : > { %19761 = vmatmul.mubr.msk.f32.gmra.mrb[202].mxu1 %vm4706_vm2, %v25092_v26  ;;  %v5517_v55 = vpop.f32.mrb[177].mxu0  ;;  %6265 = vmatmul.mubr.f32.gmra.mrb[26].mxu0 %v6052_v40  ;;  %v6056_v26 = vld [vmem:[#allocation10 + $0x7e0] sm:$0xff]  ;;  %v7295_v40 = vld [vmem:[#allocation10 + $0xa38] sm:$0xff] }
 0x858   : > { %19763 = vmatprep.mubr.msk.f32.mxu1 %vm4706_vm2, %v25095_v15  ;;  %6269 = vmatprep.mubr.f32.mxu0 %v6055_v27  ;;  %v7297_v55 = vld [vmem:[#allocation10 + $0xa48] sm:$0xff] }
 0x85a   : > { %v25240_v49 = vpop.f32.mrb[178].mxu0 }
 0x85b   : > { %19764 = vmatmul.mubr.msk.f32.gmra.mrb[204].mxu1 %vm4706_vm2, %v25098_v22  ;;  %v5522_v14 = vpop.f32.mrb[179].mxu0  ;;  %6270 = vmatmul.mubr.f32.gmra.mrb[28].mxu0 %v6054_v45  ;;  %v6058_v22 = vld [vmem:[#allocation10 + $0x7f0] sm:$0xff] }
 0x85c   : > { %19766 = vmatprep.mubr.msk.f32.mxu1 %vm4706_vm2, %v25103_v35  ;;  %6274 = vmatprep.mubr.f32.mxu0 %v6057_v51  ;;  %v7299_v51 = vld [vmem:[#allocation10 + $0xa58] sm:$0xff] }
 0x85e   : > { %v25246_v10 = vpop.f32.mrb[180].mxu0 }
 0x85f   : > { %19767 = vmatmul.mubr.msk.f32.gmra.mrb[206].mxu1 %vm4706_vm2, %v25108_v50  ;;  %v5527_v15 = vpop.f32.mrb[181].mxu0  ;;  %6275 = vmatmul.mubr.f32.gmra.mrb[30].mxu0 %v6056_v26  ;;  %v7288_v50 = vld [vmem:[#allocation10 + $0xa00] sm:$0xff]  ;;  %v7301_v26 = vld [vmem:[#allocation10 + $0xa68] sm:$0xff] }
 0x860   : > { %19769 = vmatprep.mubr.msk.f32.mxu1 %vm4706_vm2, %v25113_v24  ;;  %6279 = vmatprep.mubr.f32.mxu0 %v6059_v60  ;;  %v7303_v15 = vld [vmem:[#allocation10 + $0xa78] sm:$0xff] }
 0x862   : > { %v25252_v11 = vpop.f32.mrb[182].mxu0 }
 0x863   : > { %19770 = vmatmul.mubr.msk.f32.gmra.mrb[208].mxu1 %vm4706_vm2, %v25118_v53  ;;  %v5532_v35 = vpop.f32.mrb[183].mxu0  ;;  %6280 = vmatmul.mubr.f32.gmra.mrb[32].mxu0 %v6058_v22  ;;  %v7290_v53 = vld [vmem:[#allocation10 + $0xa10] sm:$0xff] }
 0x864   : > { %19772 = vmatprep.mubr.msk.f32.mxu1 %vm4706_vm2, %v25123_v30  ;;  %7416 = vmatprep.mubr.f32.mxu0 %v7289_v59  ;;  %v7305_v59 = vld [vmem:[#allocation10 + $0xa88] sm:$0xff] }
 0x866   : > { %v25258_v21 = vpop.f32.mrb[184].mxu0 }
 0x867   : > { %19773 = vmatmul.mubr.msk.f32.gmra.mrb[210].mxu1 %vm4706_vm2, %v25128_v9  ;;  %v5537_v24 = vpop.f32.mrb[185].mxu0  ;;  %7417 = vmatmul.mubr.f32.vlgmr.msra.gmra.mrb[34].mxu0 %v7288_v50  ;;  %v7292_v9 = vld [vmem:[#allocation10 + $0xa20] sm:$0xff]  ;;  %v7307_v50 = vld [vmem:[#allocation10 + $0xa98] sm:$0xff] }
 0x868   : > { %21461 = vmatpush1.bf16.msra.mxu0 %v24876_v54  ;;  %19775 = vmatprep.mubr.msk.f32.mxu1 %vm4706_vm2, %v25133_v19  ;;  %v7309_v24 = vld [vmem:[#allocation10 + $0xaa8] sm:$0xff] }
 0x869   : > { %7421 = vmatprep.mubr.f32.mxu0 %v7291_v16  ;;  %21462 = vmatprep.subr.bf16.mxu0 %v26719_v23 }
 0x86a   : > { %v25266_v30 = vpop.f32.mrb[186].mxu0 }
 0x86b   : > { %19776 = vmatmul.mubr.msk.f32.gmra.mrb[212].mxu1 %vm4706_vm2, %v25138_v28  ;;  %v5542_v18 = vpop.f32.mrb[187].mxu0  ;;  %7422 = vmatmul.mubr.f32.gmra.mrb[36].mxu0 %v7290_v53  ;;  %v7294_v28 = vld [vmem:[#allocation10 + $0xa30] sm:$0xff] }
 0x86c   : > { %21464 = vmatpush1.bf16.msra.mxu0 %v24882_v3  ;;  %19778 = vmatprep.mubr.msk.f32.mxu1 %vm4706_vm2, %v25146_v56 }
 0x86d   : > { %7426 = vmatprep.mubr.f32.mxu0 %v7293_v57  ;;  %21465 = vmatprep.subr.bf16.mxu0 %v26719_v23  ;;  %v7311_v57 = vld [vmem:[#allocation10 + $0xab8] sm:$0xff] }
 0x86e   : > { %v25274_v19 = vpop.f32.mrb[188].mxu0 }
 0x86f   : > { %19779 = vmatmul.mubr.msk.f32.gmra.mrb[214].mxu1 %vm4706_vm2, %v25151_v39  ;;  %v5547_v27 = vpop.f32.mrb[189].mxu0  ;;  %7427 = vmatmul.mubr.f32.gmra.mrb[38].mxu0 %v7292_v9  ;;  %v7296_v39 = vld [vmem:[#allocation10 + $0xa40] sm:$0xff]  ;;  %v7313_v9 = vld [vmem:[#allocation10 + $0xac8] sm:$0xff] }
 0x870   : > { %21467 = vmatpush1.bf16.msra.mxu0 %v24888_v0  ;;  %19781 = vmatprep.mubr.msk.f32.mxu1 %vm4706_vm2, %v25156_v47 }
 0x871   : > { %7431 = vmatprep.mubr.f32.mxu0 %v7295_v40  ;;  %21468 = vmatprep.subr.bf16.mxu0 %v26719_v23  ;;  %v7315_v40 = vld [vmem:[#allocation10 + $0xad8] sm:$0xff] }
 0x872   : > { %v25282_v56 = vpop.f32.mrb[190].mxu0 }
 0x873   : > { %19782 = vmatmul.mubr.msk.f32.gmra.mrb[216].mxu1 %vm4706_vm2, %v25161_v46  ;;  %v5552_v45 = vpop.f32.mrb[191].mxu0  ;;  %7432 = vmatmul.mubr.f32.gmra.mrb[40].mxu0 %v7294_v28  ;;  %v7298_v46 = vld [vmem:[#allocation10 + $0xa50] sm:$0xff]  ;;  %v7317_v28 = vld [vmem:[#allocation10 + $0xae8] sm:$0xff] }
 0x874   : > { %21470 = vmatpush1.bf16.msra.mxu0 %v24894_v6  ;;  %19784 = vmatprep.mubr.msk.f32.mxu1 %vm4706_vm2, %v25166_v38  ;;  %v7319_v45 = vld [vmem:[#allocation10 + $0xaf8] sm:$0xff] }
 0x875   : > { %7436 = vmatprep.mubr.f32.mxu0 %v7297_v55  ;;  %21471 = vmatprep.subr.bf16.mxu0 %v26719_v23 }
 0x876   : > { %v25290_v47 = vpop.f32.mrb[192].mxu0 }
 0x877   : > { %19785 = vmatmul.mubr.msk.f32.gmra.mrb[218].mxu1 %vm4706_vm2, %v25171_v61  ;;  %v5557_v14 = vpop.f32.mrb[193].mxu0  ;;  %7437 = vmatmul.mubr.f32.gmra.mrb[42].mxu0 %v7296_v39  ;;  %v7300_v61 = vld [vmem:[#allocation10 + $0xa60] sm:$0xff] }
 0x878   : > { %21473 = vmatpush1.bf16.msra.mxu0 %v24900_v63  ;;  %19787 = vmatprep.mubr.msk.f32.mxu1 %vm4706_vm2, %v25176_v58  ;;  %v7321_v14 = vld [vmem:[#allocation10 + $0xb08] sm:$0xff] }
 0x879   : > { %7441 = vmatprep.mubr.f32.mxu0 %v7299_v51  ;;  %21474 = vmatprep.subr.bf16.mxu0 %v26719_v23  ;;  %v26736_v51 = vld [vmem:[#allocation80_spill] sm:$0xff] }
 0x87a   : > { %v25298_v38 = vpop.f32.mrb[194].mxu0 }
 0x87b   : > { %19788 = vmatmul.mubr.msk.f32.gmra.mrb[220].mxu1 %vm4706_vm2, %v25181_v43  ;;  %v5562_v60 = vpop.f32.mrb[195].mxu0  ;;  %7442 = vmatmul.mubr.f32.gmra.mrb[44].mxu0 %v7298_v46  ;;  %v7302_v43 = vld [vmem:[#allocation10 + $0xa70] sm:$0xff] }
 0x87c   : > { %21476 = vmatpush1.bf16.msra.mxu0 %v24906_v34  ;;  %19790 = vmatprep.mubr.msk.f32.mxu1 %vm4706_vm2, %v25184_v8  ;;  %v7323_v60 = vld [vmem:[#allocation10 + $0xb18] sm:$0xff] }
 0x87d   : > { %7446 = vmatprep.mubr.f32.mxu0 %v7301_v26  ;;  %21477 = vmatprep.subr.bf16.mxu0 %v26719_v23  ;;  %v26737_v26 = vld [vmem:[#allocation81_spill] sm:$0xff] }
 0x87e   : > { %v25306_v58 = vpop.f32.mrb[196].mxu0 }
 0x87f   : > { %19791 = vmatmul.mubr.msk.f32.gmra.mrb[222].mxu1 %vm4706_vm2, %v25187_v1  ;;  %v5567_v22 = vpop.f32.mrb[197].mxu0  ;;  %7447 = vmatmul.mubr.f32.gmra.mrb[46].mxu0 %v7300_v61  ;;  %v7304_v1 = vld [vmem:[#allocation10 + $0xa80] sm:$0xff] }
 0x880   : > { %21479 = vmatpush1.bf16.msra.mxu0 %v24912_v17  ;;  %19793 = vmatprep.mubr.msk.f32.mxu1 %vm4706_vm2, %v25190_v29 }
 0x881   : > { %7451 = vmatprep.mubr.f32.mxu0 %v7303_v15  ;;  %21480 = vmatprep.subr.bf16.mxu0 %v26719_v23  ;;  %v7325_v15 = vld [vmem:[#allocation10 + $0xb28] sm:$0xff] }
 0x882   : > { %v25314_v8 = vpop.f32.mrb[198].mxu0 }
 0x883   : > { %19794 = vmatmul.mubr.msk.f32.gmra.mrb[224].mxu1 %vm4706_vm2, %v25193_v33  ;;  %v5572_v35 = vpop.f32.mrb[199].mxu0  ;;  %7452 = vmatmul.mubr.f32.gmra.mrb[48].mxu0 %v7302_v43  ;;  %v7306_v33 = vld [vmem:[#allocation10 + $0xa90] sm:$0xff] }
 0x884   : > { %21482 = vmatpush1.bf16.msra.mxu0 %v24918_v2  ;;  %19796 = vmatprep.mubr.msk.f32.mxu1 %vm4706_vm2, %v25198_v44 }
 0x885   : > { %7456 = vmatprep.mubr.f32.mxu0 %v7305_v59  ;;  %21483 = vmatprep.subr.bf16.mxu0 %v26719_v23  ;;  %v7327_v59 = vld [vmem:[#allocation10 + $0xb38] sm:$0xff] }
 0x886   : > { %v25322_v29 = vpop.f32.mrb[200].mxu0 }
 0x887   : > { %19797 = vmatmul.mubr.msk.f32.gmra.mrb[226].mxu1 %vm4706_vm2, %v25202_v48  ;;  %v5577_v16 = vpop.f32.mrb[201].mxu0  ;;  %7457 = vmatmul.mubr.f32.gmra.mrb[50].mxu0 %v7304_v1  ;;  %v7308_v48 = vld [vmem:[#allocation10 + $0xaa0] sm:$0xff]  ;;  %v7329_v1 = vld [vmem:[#allocation10 + $0xb48] sm:$0xff] }
 0x888   : > { %21485 = vmatpush1.bf16.msra.mxu0 %v24924_v31  ;;  %19803 = vmatprep.mubr.msk.f32.mxu1 %vm4706_vm2, %v25196_v52  ;;  %v7331_v16 = vld [vmem:[#allocation10 + $0xb58] sm:$0xff] }
 0x889   : > { %7461 = vmatprep.mubr.f32.mxu0 %v7307_v50  ;;  %21486 = vmatprep.subr.bf16.mxu0 %v26719_v23 }
 0x88a   : > { %v25330_v44 = vpop.f32.mrb[202].mxu0 }
 0x88b   : > { %v5582_v53 = vpop.f32.mrb[203].mxu0  ;;  %19804 = vmatmul.mubr.msk.f32.vlgmr.msra.gmra.mrb[196].mxu1 %vm4706_vm2, %v25200_v37  ;;  %7462 = vmatmul.mubr.f32.gmra.mrb[52].mxu0 %v7306_v33  ;;  %v7310_v37 = vld [vmem:[#allocation10 + $0xab0] sm:$0xff] }
 0x88c   : > { %21488 = vmatpush1.bf16.msra.mxu0 %v24930_v25  ;;  %19806 = vmatprep.mubr.msk.f32.mxu1 %vm4706_vm2, %v25204_v36 }
 0x88d   : > { %7466 = vmatprep.mubr.f32.mxu0 %v7309_v24  ;;  %21489 = vmatprep.subr.bf16.mxu0 %v26719_v23  ;;  %v7333_v24 = vld [vmem:[#allocation10 + $0xb68] sm:$0xff] }
 0x88e   : > { %v25338_v52 = vpop.f32.mrb[204].mxu0  ;;  %21354 = vmatpush3.bf16.msra.mxu1 %v25214_v41 }
 0x88f   : > { %v5587_v18 = vpop.f32.mrb[205].mxu0  ;;  %19807 = vmatmul.mubr.msk.f32.gmra.mrb[198].mxu1 %vm4706_vm2, %v25207_v62  ;;  %7467 = vmatmul.mubr.f32.gmra.mrb[54].mxu0 %v7308_v48  ;;  %v7312_v62 = vld [vmem:[#allocation10 + $0xac0] sm:$0xff] }
 0x890   : > { %21491 = vmatpush1.bf16.msra.mxu0 %v24936_v20  ;;  %19809 = vmatprep.mubr.msk.f32.mxu1 %vm4706_vm2, %v25212_v12 }
 0x891   : > { %7471 = vmatprep.mubr.f32.mxu0 %v7311_v57  ;;  %21492 = vmatprep.subr.bf16.mxu0 %v26719_v23  ;;  %v7335_v57 = vld [vmem:[#allocation10 + $0xb78] sm:$0xff] }
 0x892   : > { %v25347_v36 = vpop.f32.mrb[206].mxu0  ;;  %21355 = vmatprep.subr.bf16.mxu1 %v26719_v23 }
 0x893   : > { %v5592_v41 = vpop.f32.mrb[207].mxu0  ;;  %19810 = vmatmul.mubr.msk.f32.gmra.mrb[200].mxu1 %vm4706_vm2, %v25221_v42  ;;  %7472 = vmatmul.mubr.f32.gmra.mrb[56].mxu0 %v7310_v37  ;;  %v7314_v42 = vld [vmem:[#allocation10 + $0xad0] sm:$0xff] }
 0x894   : > { %21494 = vmatpush1.bf16.msra.mxu0 %v24942_v32  ;;  %19812 = vmatprep.mubr.msk.f32.mxu1 %vm4706_vm2, %v25228_v13 }
 0x895   : > { %7476 = vmatprep.mubr.f32.mxu0 %v7313_v9  ;;  %21495 = vmatprep.subr.bf16.mxu0 %v26719_v23  ;;  %v7337_v9 = vld [vmem:[#allocation10 + $0xb88] sm:$0xff] }
 0x896   : > { %v25356_v12 = vpop.f32.mrb[208].mxu0 }
 0x897   : > { %v5597_v27 = vpop.f32.mrb[209].mxu0  ;;  %19813 = vmatmul.mubr.msk.f32.gmra.mrb[202].mxu1 %vm4706_vm2, %v25234_v5  ;;  %7477 = vmatmul.mubr.f32.gmra.mrb[58].mxu0 %v7312_v62  ;;  %v7316_v5 = vld [vmem:[#allocation10 + $0xae0] sm:$0xff] }
 0x898   : > { %21497 = vmatpush1.bf16.msra.mxu0 %v24948_v4  ;;  %19815 = vmatprep.mubr.msk.f32.mxu1 %vm4706_vm2, %v25240_v49 }
 0x899   : > { %7481 = vmatprep.mubr.f32.mxu0 %v7315_v40  ;;  %21498 = vmatprep.subr.bf16.mxu0 %v26719_v23  ;;  %v7339_v40 = vld [vmem:[#allocation10 + $0xb98] sm:$0xff] }
 0x89a   : > { %v25364_v13 = vpop.f32.mrb[210].mxu0 }
 0x89b   : > { %v5602_v55 = vpop.f32.mrb[211].mxu0  ;;  %19816 = vmatmul.mubr.msk.f32.gmra.mrb[204].mxu1 %vm4706_vm2, %v25246_v10  ;;  %7482 = vmatmul.mubr.f32.gmra.mrb[60].mxu0 %v7314_v42  ;;  %v7318_v10 = vld [vmem:[#allocation10 + $0xaf0] sm:$0xff] }
 0x89c   : > { %21500 = vmatpush1.bf16.msra.mxu0 %v24954_v7  ;;  %19818 = vmatprep.mubr.msk.f32.mxu1 %vm4706_vm2, %v25252_v11  ;;  %v7341_v55 = vld [vmem:[#allocation10 + $0xba8] sm:$0xff] }
 0x89d   : > { %7486 = vmatprep.mubr.f32.mxu0 %v7317_v28  ;;  %21501 = vmatprep.subr.bf16.mxu0 %v26719_v23 }
 0x89e   : > { %v5605_v49 = vpop.f32.mrb[212].mxu0 }
 0x89f   : > { %v5607_v39 = vpop.f32.mrb[213].mxu0  ;;  %19819 = vmatmul.mubr.msk.f32.gmra.mrb[206].mxu1 %vm4706_vm2, %v25258_v21  ;;  %7487 = vmatmul.mubr.f32.gmra.mrb[62].mxu0 %v7316_v5  ;;  %v7320_v21 = vld [vmem:[#allocation10 + $0xb00] sm:$0xff] }
 0x8a0   : > { %21503 = vmatpush1.bf16.msra.mxu0 %v26736_v51  ;;  %19821 = vmatprep.mubr.msk.f32.mxu1 %vm4706_vm2, %v25266_v30  ;;  %v7343_v39 = vld [vmem:[#allocation10 + $0xbb8] sm:$0xff] }
 0x8a1   : > { %7491 = vmatprep.mubr.f32.mxu0 %v7319_v45  ;;  %21504 = vmatprep.subr.bf16.mxu0 %v26719_v23 }
 0x8a2   : > { %v5610_v11 = vpop.f32.mrb[214].mxu0 }
 0x8a3   : > { %v5612_v46 = vpop.f32.mrb[215].mxu0  ;;  %19822 = vmatmul.mubr.msk.f32.gmra.mrb[208].mxu1 %vm4706_vm2, %v25274_v19  ;;  %7492 = vmatmul.mubr.f32.gmra.mrb[64].mxu0 %v7318_v10  ;;  %v7322_v19 = vld [vmem:[#allocation10 + $0xb10] sm:$0xff] }
 0x8a4   : > { %21506 = vmatpush1.bf16.msra.mxu0 %v26737_v26  ;;  %19824 = vmatprep.mubr.msk.f32.mxu1 %vm4706_vm2, %v25282_v56  ;;  %v7324_v56 = vld [vmem:[#allocation10 + $0xb20] sm:$0xff]  ;;  %v7345_v46 = vld [vmem:[#allocation10 + $0xbc8] sm:$0xff] }
 0x8a5   : > { %7496 = vmatprep.mubr.f32.mxu0 %v7321_v14  ;;  %21511 = vmatprep.subr.bf16.mxu0 %v26719_v23 }
 0x8a6   : > { %v5615_v30 = vpop.f32.mrb[216].mxu0 }
 0x8a7   : > { %v5617_v61 = vpop.f32.mrb[217].mxu0  ;;  %19825 = vmatmul.mubr.msk.f32.gmra.mrb[210].mxu1 %vm4706_vm2, %v25290_v47  ;;  %7497 = vmatmul.mubr.f32.gmra.mrb[66].mxu0 %v7320_v21 }
 0x8a8   : > { %19827 = vmatprep.mubr.msk.f32.mxu1 %vm4706_vm2, %v25298_v38  ;;  %7501 = vmatprep.mubr.f32.mxu0 %v7323_v60  ;;  %v7326_v38 = vld [vmem:[#allocation10 + $0xb30] sm:$0xff]  ;;  %v7344_v60 = vld [vmem:[#allocation10 + $0xbc0] sm:$0xff] }
 0x8aa   : > { %v5620_v22 = vpop.f32.mrb[218].mxu0 }
 0x8ab   : > { %v5622_v43 = vpop.f32.mrb[219].mxu0  ;;  %19828 = vmatmul.mubr.msk.f32.gmra.mrb[212].mxu1 %vm4706_vm2, %v25306_v58  ;;  %7502 = vmatmul.mubr.f32.gmra.mrb[68].mxu0 %v7322_v19 }
 0x8ac   : > { %19830 = vmatprep.mubr.msk.f32.mxu1 %vm4706_vm2, %v25314_v8  ;;  %7506 = vmatprep.mubr.f32.mxu0 %v7325_v15  ;;  %v7328_v8 = vld [vmem:[#allocation10 + $0xb40] sm:$0xff]  ;;  %v7346_v15 = vld [vmem:[#allocation10 + $0xbd0] sm:$0xff] }
 0x8ae   : > { %v5625_v47 = vpop.f32.mrb[220].mxu0 }
 0x8af   : > { %v5627_v35 = vpop.f32.mrb[221].mxu0  ;;  %19831 = vmatmul.mubr.msk.f32.gmra.mrb[214].mxu1 %vm4706_vm2, %v25322_v29  ;;  %7507 = vmatmul.mubr.f32.gmra.mrb[70].mxu0 %v7324_v56 }
 0x8b0   : > { %19833 = vmatprep.mubr.msk.f32.mxu1 %vm4706_vm2, %v25330_v44  ;;  %7511 = vmatprep.mubr.f32.mxu0 %v7327_v59  ;;  %v7330_v44 = vld [vmem:[#allocation10 + $0xb50] sm:$0xff]  ;;  %v7348_v59 = vld [vmem:[#allocation10 + $0xbe0] sm:$0xff] }
 0x8b2   : > { %v5630_v58 = vpop.f32.mrb[222].mxu0 }
 0x8b3   : > { %v5632_v50 = vpop.f32.mrb[223].mxu0  ;;  %19834 = vmatmul.mubr.msk.f32.gmra.mrb[216].mxu1 %vm4706_vm2, %v25338_v52  ;;  %7512 = vmatmul.mubr.f32.gmra.mrb[72].mxu0 %v7326_v38  ;;  %v7332_v52 = vld [vmem:[#allocation10 + $0xb60] sm:$0xff] }
 0x8b4   : > { %19836 = vmatprep.mubr.msk.f32.mxu1 %vm4706_vm2, %v25347_v36  ;;  %7516 = vmatprep.mubr.f32.mxu0 %v7329_v1  ;;  %v7334_v36 = vld [vmem:[#allocation10 + $0xb70] sm:$0xff] }
 0x8b5   : > { %v7350_v1 = vld [vmem:[#allocation10 + $0xbf0] sm:$0xff] }
 0x8b6   : > { %v5635_v29 = vpop.f32.mrb[224].mxu0 }
 0x8b7   : > { %v5637_v33 = vpop.f32.mrb[225].mxu0  ;;  %19837 = vmatmul.mubr.msk.f32.gmra.mrb[218].mxu1 %vm4706_vm2, %v25356_v12  ;;  %7517 = vmatmul.mubr.f32.gmra.mrb[74].mxu0 %v7328_v8  ;;  %v7336_v12 = vld [vmem:[#allocation10 + $0xb80] sm:$0xff] }
 0x8b8   : > { %19839 = vmatprep.mubr.msk.f32.mxu1 %vm4706_vm2, %v25364_v13  ;;  %7521 = vmatprep.mubr.f32.mxu0 %v7331_v16  ;;  %v7338_v13 = vld [vmem:[#allocation10 + $0xb90] sm:$0xff]  ;;  %v7934_v16 = vld [vmem:[#allocation10 + $0xc00] sm:$0xff] }
 0x8ba   : > { %v6126_v53 = vpop.f32.mrb[226].mxu0 }
 0x8bb   : > { %19840 = vmatmul.mubr.msk.f32.gmra.mrb[220].mxu1 %vm4706_vm2, %v5605_v49  ;;  %v6128_v48 = vpop.f32.mrb[227].mxu0  ;;  %7522 = vmatmul.mubr.f32.gmra.mrb[76].mxu0 %v7330_v44  ;;  %v7340_v49 = vld [vmem:[#allocation10 + $0xba0] sm:$0xff] }
 0x8bc   : > { %19842 = vmatprep.mubr.msk.f32.mxu1 %vm4706_vm2, %v5610_v11  ;;  %7526 = vmatprep.mubr.f32.mxu0 %v7333_v24  ;;  %v7342_v11 = vld [vmem:[#allocation10 + $0xbb0] sm:$0xff] }
 0x8be   : > { %v6131_v18 = vpop.f32.mrb[228].mxu0 }
 0x8bf   : > { %19843 = vmatmul.mubr.msk.f32.gmra.mrb[222].mxu1 %vm4706_vm2, %v5615_v30  ;;  %v6133_v37 = vpop.f32.mrb[229].mxu0  ;;  %7527 = vmatmul.mubr.f32.gmra.mrb[78].mxu0 %v7332_v52  ;;  %v7347_v30 = vld [vmem:[#allocation10 + $0xbd8] sm:$0xff] }
 0x8c0   : > { %19845 = vmatprep.mubr.msk.f32.mxu1 %vm4706_vm2, %v5620_v22  ;;  %7531 = vmatprep.mubr.f32.mxu0 %v7335_v57  ;;  %v7349_v22 = vld [vmem:[#allocation10 + $0xbe8] sm:$0xff] }
 0x8c2   : > { %v6136_v41 = vpop.f32.mrb[230].mxu0 }
 0x8c3   : > { %19846 = vmatmul.mubr.msk.f32.gmra.mrb[224].mxu1 %vm4706_vm2, %v5625_v47  ;;  %v6138_v62 = vpop.f32.mrb[231].mxu0  ;;  %7532 = vmatmul.mubr.f32.gmra.mrb[80].mxu0 %v7334_v36  ;;  %v7351_v47 = vld [vmem:[#allocation10 + $0xbf8] sm:$0xff] }
 0x8c4   : > { %19848 = vmatprep.mubr.msk.f32.mxu1 %vm4706_vm2, %v5630_v58  ;;  %7536 = vmatprep.mubr.f32.mxu0 %v7337_v9  ;;  %v7935_v58 = vld [vmem:[#allocation10 + $0xc08] sm:$0xff]  ;;  %v7936_v62 = vld [vmem:[#allocation10 + $0xc10] sm:$0xff] }
 0x8c6   : > { %v6141_v27 = vpop.f32.mrb[232].mxu0 }
 0x8c7   : > { %19849 = vmatmul.mubr.msk.f32.gmra.mrb[226].mxu1 %vm4706_vm2, %v5635_v29  ;;  %v6143_v42 = vpop.f32.mrb[233].mxu0  ;;  %7537 = vmatmul.mubr.f32.gmra.mrb[82].mxu0 %v7336_v12 }
 0x8c8   : > { %19855 = vmatprep.mubr.msk.f32.mxu1 %vm4706_vm2, %v6126_v53  ;;  %7541 = vmatprep.mubr.f32.mxu0 %v7339_v40  ;;  %v7938_v42 = vld [vmem:[#allocation10 + $0xc20] sm:$0xff] }
 0x8ca   : > { %v6146_v28 = vpop.f32.mrb[234].mxu0 }
 0x8cb   : > { %v6148_v5 = vpop.f32.mrb[235].mxu0  ;;  %19856 = vmatmul.mubr.msk.f32.vlgmr.msra.gmra.mrb[196].mxu1 %vm4706_vm2, %v6131_v18  ;;  %7542 = vmatmul.mubr.f32.gmra.mrb[84].mxu0 %v7338_v13 }
 0x8cc   : > { %21357 = vmatpush1.bf16.msra.mxu1 %v24876_v54  ;;  %19858 = vmatprep.mubr.msk.f32.mxu1 %vm4706_vm2, %v6136_v41  ;;  %v7937_v41 = vld [vmem:[#allocation10 + $0xc18] sm:$0xff]  ;;  %v7940_v5 = vld [vmem:[#allocation10 + $0xc30] sm:$0xff] }
 0x8cd   : > { %21358 = vmatprep.subr.bf16.mxu1 %v26719_v23  ;;  %7546 = vmatprep.mubr.f32.mxu0 %v7341_v55  ;;  %v7941_v55 = vld [vmem:[#allocation10 + $0xc38] sm:$0xff] }
 0x8ce   : > { %v6151_v45 = vpop.f32.mrb[236].mxu0 }
 0x8cf   : > { %v6153_v10 = vpop.f32.mrb[237].mxu0  ;;  %19859 = vmatmul.mubr.msk.f32.gmra.mrb[198].mxu1 %vm4706_vm2, %v6141_v27  ;;  %7547 = vmatmul.mubr.f32.gmra.mrb[86].mxu0 %v7340_v49  ;;  %v7939_v27 = vld [vmem:[#allocation10 + $0xc28] sm:$0xff] }
 0x8d0   : > { %21360 = vmatpush1.bf16.msra.mxu1 %v24882_v3  ;;  %19861 = vmatprep.mubr.msk.f32.mxu1 %vm4706_vm2, %v6146_v28  ;;  %v7942_v10 = vld [vmem:[#allocation10 + $0xc40] sm:$0xff] }
 0x8d1   : > { %21361 = vmatprep.subr.bf16.mxu1 %v26719_v23  ;;  %7551 = vmatprep.mubr.f32.mxu0 %v7343_v39  ;;  %v7943_v39 = vld [vmem:[#allocation10 + $0xc48] sm:$0xff] }
 0x8d2   : > { %v6156_v14 = vpop.f32.mrb[238].mxu0 }
 0x8d3   : > { %v6158_v21 = vpop.f32.mrb[239].mxu0  ;;  %19862 = vmatmul.mubr.msk.f32.gmra.mrb[200].mxu1 %vm4706_vm2, %v6151_v45  ;;  %7552 = vmatmul.mubr.f32.gmra.mrb[88].mxu0 %v7342_v11 }
 0x8d4   : > { %21363 = vmatpush1.bf16.msra.mxu1 %v24888_v0  ;;  %19864 = vmatprep.mubr.msk.f32.mxu1 %vm4706_vm2, %v6156_v14  ;;  %v7944_v21 = vld [vmem:[#allocation10 + $0xc50] sm:$0xff] }
 0x8d5   : > { %21364 = vmatprep.subr.bf16.mxu1 %v26719_v23  ;;  %7556 = vmatprep.mubr.f32.mxu0 %v7345_v46  ;;  %v7945_v46 = vld [vmem:[#allocation10 + $0xc58] sm:$0xff] }
 0x8d6   : > { %v6161_v61 = vpop.f32.mrb[240].mxu0 }
 0x8d7   : > { %v6163_v19 = vpop.f32.mrb[241].mxu0  ;;  %19865 = vmatmul.mubr.msk.f32.gmra.mrb[202].mxu1 %vm4706_vm2, %v6161_v61  ;;  %7557 = vmatmul.mubr.f32.gmra.mrb[90].mxu0 %v7344_v60  ;;  %v7947_v61 = vld [vmem:[#allocation10 + $0xc68] sm:$0xff] }
 0x8d8   : > { %21366 = vmatpush1.bf16.msra.mxu1 %v24894_v6  ;;  %7561 = vmatprep.mubr.f32.mxu0 %v7347_v30  ;;  %v7946_v19 = vld [vmem:[#allocation10 + $0xc60] sm:$0xff] }
 0x8d9   : > { %21367 = vmatprep.subr.bf16.mxu1 %v26719_v23 }
 0x8da   : > { %v6166_v43 = vpop.f32.mrb[242].mxu0 }
 0x8db   : > { %v6168_v56 = vpop.f32.mrb[243].mxu0  ;;  %19867 = vmatprep.mubr.msk.f32.mxu1 %vm4706_vm2, %v6166_v43  ;;  %7562 = vmatmul.mubr.f32.gmra.mrb[92].mxu0 %v7346_v15  ;;  %v7949_v43 = vld [vmem:[#allocation10 + $0xc78] sm:$0xff] }
 0x8dc   : > { %21369 = vmatpush1.bf16.msra.mxu1 %v24900_v63  ;;  %7566 = vmatprep.mubr.f32.mxu0 %v7349_v22  ;;  %v7948_v56 = vld [vmem:[#allocation10 + $0xc70] sm:$0xff] }
 0x8dd   : > { %21370 = vmatprep.subr.bf16.mxu1 %v26719_v23 }
 0x8de   : > { %v6171_v35 = vpop.f32.mrb[244].mxu0 }
 0x8df   : > { %v6173_v38 = vpop.f32.mrb[245].mxu0  ;;  %19868 = vmatmul.mubr.msk.f32.gmra.mrb[204].mxu1 %vm4706_vm2, %v6171_v35  ;;  %7567 = vmatmul.mubr.f32.gmra.mrb[94].mxu0 %v7348_v59  ;;  %v7951_v35 = vld [vmem:[#allocation10 + $0xc88] sm:$0xff] }
 0x8e0   : > { %21372 = vmatpush1.bf16.msra.mxu1 %v24906_v34  ;;  %7571 = vmatprep.mubr.f32.mxu0 %v7351_v47  ;;  %v7950_v38 = vld [vmem:[#allocation10 + $0xc80] sm:$0xff] }
 0x8e1   : > { %21373 = vmatprep.subr.bf16.mxu1 %v26719_v23 }
 0x8e2   : > { %v6176_v50 = vpop.f32.mrb[246].mxu0 }
 0x8e3   : > { %v6178_v8 = vpop.f32.mrb[247].mxu0  ;;  %19870 = vmatprep.mubr.msk.f32.mxu1 %vm4706_vm2, %v6176_v50  ;;  %7572 = vmatmul.mubr.f32.gmra.mrb[96].mxu0 %v7350_v1  ;;  %v7953_v50 = vld [vmem:[#allocation10 + $0xc98] sm:$0xff] }
 0x8e4   : > { %21375 = vmatpush1.bf16.msra.mxu1 %v24912_v17  ;;  %8062 = vmatprep.mubr.f32.mxu0 %v7935_v58  ;;  %v7952_v8 = vld [vmem:[#allocation10 + $0xc90] sm:$0xff] }
 0x8e5   : > { %21376 = vmatprep.subr.bf16.mxu1 %v26719_v23 }
 0x8e6   : > { %v6181_v29 = vpop.f32.mrb[248].mxu0 }
 0x8e7   : > { %v6183_v33 = vpop.f32.mrb[249].mxu0  ;;  %19871 = vmatmul.mubr.msk.f32.gmra.mrb[206].mxu1 %vm4706_vm2, %v6181_v29  ;;  %8063 = vmatmul.mubr.f32.vlgmr.msra.gmra.mrb[98].mxu0 %v7934_v16 }
 0x8e8   : > { %21378 = vmatpush1.bf16.msra.mxu1 %v24918_v2  ;;  %21513 = vmatpush1.bf16.msra.mxu0 %v24876_v54  ;;  %v7955_v33 = vld [vmem:[#allocation10 + $0xca8] sm:$0xff] }
 0x8e9   : > { %21379 = vmatprep.subr.bf16.mxu1 %v26719_v23  ;;  %21514 = vmatprep.subr.bf16.mxu0 %v26719_v23 }
 0x8ea   : > { %v6186_v44 = vpop.f32.mrb[250].mxu0  ;;  %8067 = vmatprep.mubr.f32.mxu0 %v7937_v41 }
 0x8eb   : > { %v6188_v24 = vpop.f32.mrb[251].mxu0  ;;  %19873 = vmatprep.mubr.msk.f32.mxu1 %vm4706_vm2, %v6186_v44  ;;  %8068 = vmatmul.mubr.f32.gmra.mrb[100].mxu0 %v7936_v62  ;;  %v7954_v44 = vld [vmem:[#allocation10 + $0xca0] sm:$0xff]  ;;  %v7961_v62 = vld [vmem:[#allocation10 + $0xcd8] sm:$0xff] }
 0x8ec   : > { %21381 = vmatpush1.bf16.msra.mxu1 %v24924_v31  ;;  %21516 = vmatpush1.bf16.msra.mxu0 %v24882_v3 }
 0x8ed   : > { %21382 = vmatprep.subr.bf16.mxu1 %v26719_v23  ;;  %21517 = vmatprep.subr.bf16.mxu0 %v26719_v23 }
 0x8ee   : > { %v6191_v53 = vpop.f32.mrb[252].mxu0  ;;  %8072 = vmatprep.mubr.f32.mxu0 %v7939_v27 }
 0x8ef   : > { %v6193_v48 = vpop.f32.mrb[253].mxu0  ;;  %19874 = vmatmul.mubr.msk.f32.gmra.mrb[208].mxu1 %vm4706_vm2, %v6191_v53  ;;  %8073 = vmatmul.mubr.f32.gmra.mrb[102].mxu0 %v7938_v42  ;;  %v7963_v42 = vld [vmem:[#allocation10 + $0xce8] sm:$0xff] }
 0x8f0   : > { %21384 = vmatpush1.bf16.msra.mxu1 %v24930_v25  ;;  %21519 = vmatpush1.bf16.msra.mxu0 %v24888_v0  ;;  %v7957_v48 = vld [vmem:[#allocation10 + $0xcb8] sm:$0xff] }
 0x8f1   : > { %21385 = vmatprep.subr.bf16.mxu1 %v26719_v23  ;;  %21520 = vmatprep.subr.bf16.mxu0 %v26719_v23 }
 0x8f2   : > { %v6196_v52 = vpop.f32.mrb[254].mxu0  ;;  %8077 = vmatprep.mubr.f32.mxu0 %v7941_v55 }
 0x8f3   : > { %v6198_v57 = vpop.f32.mrb[255].mxu0  ;;  %19876 = vmatprep.mubr.msk.f32.mxu1 %vm4706_vm2, %v6196_v52  ;;  %8078 = vmatmul.mubr.f32.gmra.mrb[104].mxu0 %v7940_v5  ;;  %v7956_v52 = vld [vmem:[#allocation10 + $0xcb0] sm:$0xff]  ;;  %v7965_v5 = vld [vmem:[#allocation10 + $0xcf8] sm:$0xff] }
 0x8f4   : > { %21387 = vmatpush1.bf16.msra.mxu1 %v24936_v20  ;;  %21522 = vmatpush1.bf16.msra.mxu0 %v24894_v6 }
 0x8f5   : > { %21388 = vmatprep.subr.bf16.mxu1 %v26719_v23  ;;  %21523 = vmatprep.subr.bf16.mxu0 %v26719_v23 }
 0x8f6   : > { %v6201_v18 = vpop.f32.mrb[0].mxu0  ;;  %8082 = vmatprep.mubr.f32.mxu0 %v7943_v39 }
 0x8f7   : > { %v6203_v37 = vpop.f32.mrb[1].mxu0  ;;  %19877 = vmatmul.mubr.msk.f32.gmra.mrb[210].mxu1 %vm4706_vm2, %v6201_v18  ;;  %8083 = vmatmul.mubr.f32.gmra.mrb[106].mxu0 %v7942_v10 }
 0x8f8   : > { %21390 = vmatpush1.bf16.msra.mxu1 %v24942_v32  ;;  %21525 = vmatpush1.bf16.msra.mxu0 %v24900_v63  ;;  %v7959_v37 = vld [vmem:[#allocation10 + $0xcc8] sm:$0xff] }
 0x8f9   : > { %21391 = vmatprep.subr.bf16.mxu1 %v26719_v23  ;;  %21526 = vmatprep.subr.bf16.mxu0 %v26719_v23 }
 0x8fa   : > { %v6206_v36 = vpop.f32.mrb[2].mxu0  ;;  %8087 = vmatprep.mubr.f32.mxu0 %v7945_v46  ;;  %v7966_v46 = vld [vmem:[#allocation10 + $0xd00] sm:$0xff] }
 0x8fb   : > { %v6208_v9 = vpop.f32.mrb[3].mxu0  ;;  %19879 = vmatprep.mubr.msk.f32.mxu1 %vm4706_vm2, %v6206_v36  ;;  %8088 = vmatmul.mubr.f32.gmra.mrb[108].mxu0 %v7944_v21  ;;  %v7958_v36 = vld [vmem:[#allocation10 + $0xcc0] sm:$0xff]  ;;  %v6645_v21 = vld [vmem:[#allocation10 + $0x818] sm:$0xff] }
 0x8fc   : > { %21393 = vmatpush1.bf16.msra.mxu1 %v24948_v4  ;;  %21528 = vmatpush1.bf16.msra.mxu0 %v24906_v34 }
 0x8fd   : > { %21394 = vmatprep.subr.bf16.mxu1 %v26719_v23  ;;  %21529 = vmatprep.subr.bf16.mxu0 %v26719_v23 }
 0x8fe   : > { %v6211_v12 = vpop.f32.mrb[4].mxu0  ;;  %8092 = vmatprep.mubr.f32.mxu0 %v7947_v61 }
 0x8ff   : > { %v6213_v40 = vpop.f32.mrb[5].mxu0  ;;  %19880 = vmatmul.mubr.msk.f32.gmra.mrb[212].mxu1 %vm4706_vm2, %v6211_v12  ;;  %8093 = vmatmul.mubr.f32.gmra.mrb[110].mxu0 %v7946_v19  ;;  %v7960_v12 = vld [vmem:[#allocation10 + $0xcd0] sm:$0xff] }
 0x900   : > { %21396 = vmatpush1.bf16.msra.mxu1 %v24954_v7  ;;  %21531 = vmatpush1.bf16.msra.mxu0 %v24912_v17  ;;  %v6644_v19 = vld [vmem:[#allocation10 + $0x810] sm:$0xff] }
 0x901   : > { %21397 = vmatprep.subr.bf16.mxu1 %v26719_v23  ;;  %21532 = vmatprep.subr.bf16.mxu0 %v26719_v23 }
 0x902   : > { %v6216_v13 = vpop.f32.mrb[6].mxu0  ;;  %8097 = vmatprep.mubr.f32.mxu0 %v7949_v43  ;;  %v7971_v43 = vld [vmem:[#allocation10 + $0xd28] sm:$0xff] }
 0x903   : > { %v6218_v28 = vpop.f32.mrb[7].mxu0  ;;  %19882 = vmatprep.mubr.msk.f32.mxu1 %vm4706_vm2, %v6216_v13  ;;  %8098 = vmatmul.mubr.f32.gmra.mrb[112].mxu0 %v7948_v56  ;;  %v7962_v13 = vld [vmem:[#allocation10 + $0xce0] sm:$0xff] }
 0x904   : > { %21399 = vmatpush1.bf16.msra.mxu1 %v26736_v51  ;;  %21534 = vmatpush1.bf16.msra.mxu0 %v24918_v2  ;;  %v7579_v2 = vld [vmem:[#allocation12 + $0x58] sm:$0xff] }
 0x905   : > { %21400 = vmatprep.subr.bf16.mxu1 %v26719_v23  ;;  %21535 = vmatprep.subr.bf16.mxu0 %v26719_v23 }
 0x906   : > { %v6221_v49 = vpop.f32.mrb[8].mxu0  ;;  %8102 = vmatprep.mubr.f32.mxu0 %v7951_v35  ;;  %v7970_v35 = vld [vmem:[#allocation10 + $0xd20] sm:$0xff] }
 0x907   : > { %v6223_v45 = vpop.f32.mrb[9].mxu0  ;;  %19883 = vmatmul.mubr.msk.f32.gmra.mrb[214].mxu1 %vm4706_vm2, %v6221_v49  ;;  %8103 = vmatmul.mubr.f32.gmra.mrb[114].mxu0 %v7950_v38  ;;  %v7964_v49 = vld [vmem:[#allocation10 + $0xcf0] sm:$0xff]  ;;  %v6649_v38 = vld [vmem:[#allocation10 + $0x838] sm:$0xff] }
 0x908   : > { %21402 = vmatpush1.bf16.msra.mxu1 %v26737_v26  ;;  %21537 = vmatpush1.bf16.msra.mxu0 %v24924_v31  ;;  %v6643_v45 = vld [vmem:[#allocation10 + $0x808] sm:$0xff] }
 0x909   : > { %21538 = vmatprep.subr.bf16.mxu0 %v26719_v23  ;;  %8107 = vmatprep.mubr.f32.mxu0 %v7953_v50 }
 0x90a   : > { %v6226_v11 = vpop.f32.mrb[10].mxu0 }
 0x90b   : > { %v6228_v14 = vpop.f32.mrb[11].mxu0  ;;  %19885 = vmatprep.mubr.msk.f32.mxu1 %vm4706_vm2, %v6226_v11  ;;  %8108 = vmatmul.mubr.f32.gmra.mrb[116].mxu0 %v7952_v8  ;;  %v7967_v11 = vld [vmem:[#allocation10 + $0xd08] sm:$0xff]  ;;  %v6648_v8 = vld [vmem:[#allocation10 + $0x830] sm:$0xff] }
 0x90c   : > { %21540 = vmatpush1.bf16.msra.mxu0 %v24930_v25  ;;  %8112 = vmatprep.mubr.f32.mxu0 %v7955_v33  ;;  %v6642_v14 = vld [vmem:[#allocation10 + $0x800] sm:$0xff]  ;;  %v7975_v33 = vld [vmem:[#allocation10 + $0xd48] sm:$0xff] }
 0x90d   : > { %21541 = vmatprep.subr.bf16.mxu0 %v26719_v23 }
 0x90e   : > { %v6231_v60 = vpop.f32.mrb[12].mxu0 }
 0x90f   : > { %v6233_v30 = vpop.f32.mrb[13].mxu0  ;;  %19886 = vmatmul.mubr.msk.f32.gmra.mrb[216].mxu1 %vm4706_vm2, %v6231_v60  ;;  %8113 = vmatmul.mubr.f32.gmra.mrb[118].mxu0 %v7954_v44  ;;  %v7969_v60 = vld [vmem:[#allocation10 + $0xd18] sm:$0xff] }
 0x910   : > { %21543 = vmatpush1.bf16.msra.mxu0 %v24936_v20  ;;  %8117 = vmatprep.mubr.f32.mxu0 %v7957_v48  ;;  %v7974_v48 = vld [vmem:[#allocation10 + $0xd40] sm:$0xff] }
 0x911   : > { %21544 = vmatprep.subr.bf16.mxu0 %v26719_v23 }
 0x912   : > { %v6236_v15 = vpop.f32.mrb[14].mxu0 }
 0x913   : > { %v6238_v22 = vpop.f32.mrb[15].mxu0  ;;  %19888 = vmatprep.mubr.msk.f32.mxu1 %vm4706_vm2, %v6236_v15  ;;  %8118 = vmatmul.mubr.f32.gmra.mrb[120].mxu0 %v7956_v52  ;;  %v7968_v15 = vld [vmem:[#allocation10 + $0xd10] sm:$0xff]  ;;  %v6653_v52 = vld [vmem:[#allocation10 + $0x858] sm:$0xff] }
 0x914   : > { %21546 = vmatpush1.bf16.msra.mxu0 %v24942_v32  ;;  %8122 = vmatprep.mubr.f32.mxu0 %v7959_v37  ;;  %v6647_v22 = vld [vmem:[#allocation10 + $0x828] sm:$0xff] }
 0x915   : > { %21547 = vmatprep.subr.bf16.mxu0 %v26719_v23 }
 0x916   : > { %v6241_v59 = vpop.f32.mrb[16].mxu0 }
 0x917   : > { %v6243_v47 = vpop.f32.mrb[17].mxu0  ;;  %19889 = vmatmul.mubr.msk.f32.gmra.mrb[218].mxu1 %vm4706_vm2, %v6241_v59  ;;  %8123 = vmatmul.mubr.f32.gmra.mrb[122].mxu0 %v7958_v36  ;;  %v6652_v36 = vld [vmem:[#allocation10 + $0x850] sm:$0xff] }
 0x918   : > { %21549 = vmatpush1.bf16.msra.mxu0 %v24948_v4  ;;  %8127 = vmatprep.mubr.f32.mxu0 %v7961_v62  ;;  %v6646_v47 = vld [vmem:[#allocation10 + $0x820] sm:$0xff]  ;;  %v7979_v62 = vld [vmem:[#allocation10 + $0xd68] sm:$0xff] }
 0x919   : > { %21550 = vmatprep.subr.bf16.mxu0 %v26719_v23 }
 0x91a   : > { %v6246_v1 = vpop.f32.mrb[18].mxu0 }
 0x91b   : > { %v6248_v58 = vpop.f32.mrb[19].mxu0  ;;  %19891 = vmatprep.mubr.msk.f32.mxu1 %vm4706_vm2, %v6246_v1  ;;  %8128 = vmatmul.mubr.f32.gmra.mrb[124].mxu0 %v7960_v12  ;;  %v7973_v1 = vld [vmem:[#allocation10 + $0xd38] sm:$0xff] }
 0x91c   : > { %21552 = vmatpush1.bf16.msra.mxu0 %v24954_v7  ;;  %8132 = vmatprep.mubr.f32.mxu0 %v7963_v42  ;;  %v7978_v42 = vld [vmem:[#allocation10 + $0xd60] sm:$0xff] }
 0x91d   : > { %21553 = vmatprep.subr.bf16.mxu0 %v26719_v23 }
 0x91e   : > { %v6251_v16 = vpop.f32.mrb[20].mxu0 }
 0x91f   : > { %v6253_v29 = vpop.f32.mrb[21].mxu0  ;;  %19892 = vmatmul.mubr.msk.f32.gmra.mrb[220].mxu1 %vm4706_vm2, %v6251_v16  ;;  %8133 = vmatmul.mubr.f32.gmra.mrb[126].mxu0 %v7962_v13  ;;  %v7972_v16 = vld [vmem:[#allocation10 + $0xd30] sm:$0xff]  ;;  %v6657_v13 = vld [vmem:[#allocation10 + $0x878] sm:$0xff] }
 0x920   : > { %21555 = vmatpush1.bf16.msra.mxu0 %v26736_v51  ;;  %8137 = vmatprep.mubr.f32.mxu0 %v7965_v5  ;;  %v6651_v29 = vld [vmem:[#allocation10 + $0x848] sm:$0xff] }
 0x921   : > { %21556 = vmatprep.subr.bf16.mxu0 %v26719_v23 }
 0x922   : > { %v6256_v24 = vpop.f32.mrb[22].mxu0 }
 0x923   : > { %v6258_v53 = vpop.f32.mrb[23].mxu0  ;;  %19894 = vmatprep.mubr.msk.f32.mxu1 %vm4706_vm2, %v6256_v24  ;;  %8138 = vmatmul.mubr.f32.gmra.mrb[128].mxu0 %v7964_v49  ;;  %v6656_v49 = vld [vmem:[#allocation10 + $0x870] sm:$0xff] }
 0x924   : > { %21558 = vmatpush1.bf16.msra.mxu0 %v26737_v26  ;;  %8142 = vmatprep.mubr.f32.mxu0 %v7967_v11  ;;  %v6650_v53 = vld [vmem:[#allocation10 + $0x840] sm:$0xff] }
 0x926   : > { %v6261_v57 = vpop.f32.mrb[24].mxu0 }
 0x927   : > { %v6263_v18 = vpop.f32.mrb[25].mxu0  ;;  %19895 = vmatmul.mubr.msk.f32.gmra.mrb[222].mxu1 %vm4706_vm2, %v6261_v57  ;;  %8143 = vmatmul.mubr.f32.gmra.mrb[130].mxu0 %v7966_v46  ;;  %v7977_v57 = vld [vmem:[#allocation10 + $0xd58] sm:$0xff]  ;;  %v6658_v46 = vld [vmem:[#allocation10 + $0x880] sm:$0xff] }
 0x928   : > { %8147 = vmatprep.mubr.f32.mxu0 %v7969_v60  ;;  %v6661_v60 = vld [vmem:[#allocation10 + $0x898] sm:$0xff] }
 0x92a   : > { %v6266_v9 = vpop.f32.mrb[26].mxu0 }
 0x92b   : > { %v6268_v41 = vpop.f32.mrb[27].mxu0  ;;  %19897 = vmatprep.mubr.msk.f32.mxu1 %vm4706_vm2, %v6266_v9  ;;  %8148 = vmatmul.mubr.f32.gmra.mrb[132].mxu0 %v7968_v15  ;;  %v7976_v9 = vld [vmem:[#allocation10 + $0xd50] sm:$0xff] }
 0x92c   : > { %8152 = vmatprep.mubr.f32.mxu0 %v7971_v43  ;;  %v6655_v41 = vld [vmem:[#allocation10 + $0x868] sm:$0xff]  ;;  %v7984_v43 = vld [vmem:[#allocation10 + $0xd90] sm:$0xff] }
 0x92e   : > { %v6271_v40 = vpop.f32.mrb[28].mxu0 }
 0x92f   : > { %v6273_v27 = vpop.f32.mrb[29].mxu0  ;;  %19898 = vmatmul.mubr.msk.f32.gmra.mrb[224].mxu1 %vm4706_vm2, %v6271_v40  ;;  %8153 = vmatmul.mubr.f32.gmra.mrb[134].mxu0 %v7970_v35 }
 0x930   : > { %8157 = vmatprep.mubr.f32.mxu0 %v7973_v1  ;;  %v6654_v27 = vld [vmem:[#allocation10 + $0x860] sm:$0xff] }
 0x931   : > { %v6662_v1 = vld [vmem:[#allocation10 + $0x8a0] sm:$0xff] }
 0x932   : > { %v6276_v28 = vpop.f32.mrb[30].mxu0 }
 0x933   : > { %v6278_v55 = vpop.f32.mrb[31].mxu0  ;;  %19900 = vmatprep.mubr.msk.f32.mxu1 %vm4706_vm2, %v6276_v28  ;;  %8158 = vmatmul.mubr.f32.gmra.mrb[136].mxu0 %v7972_v16  ;;  %v7981_v28 = vld [vmem:[#allocation10 + $0xd78] sm:$0xff] }
 0x934   : > { %8162 = vmatprep.mubr.f32.mxu0 %v7975_v33  ;;  %v7989_v16 = vld [vmem:[#allocation10 + $0xdb8] sm:$0xff] }
 0x936   : > { %v6281_v39 = vpop.f32.mrb[32].mxu0 }
 0x937   : > { %v6283_v10 = vpop.f32.mrb[33].mxu0  ;;  %19901 = vmatmul.mubr.msk.f32.gmra.mrb[226].mxu1 %vm4706_vm2, %v6281_v39  ;;  %8163 = vmatmul.mubr.f32.gmra.mrb[138].mxu0 %v7974_v48  ;;  %v6659_v39 = vld [vmem:[#allocation10 + $0x888] sm:$0xff] }
 0x938   : > { %6770 = vmatprep.mubr.f32.mxu1 %v6643_v45  ;;  %8167 = vmatprep.mubr.f32.mxu0 %v7977_v57  ;;  %v7980_v45 = vld [vmem:[#allocation10 + $0xd70] sm:$0xff]  ;;  %v7983_v10 = vld [vmem:[#allocation10 + $0xd88] sm:$0xff] }
 0x939   : > { %v6667_v48 = vld [vmem:[#allocation10 + $0x8c8] sm:$0xff] }
 0x93a   : > { %v25505_v30 = vpop.f32.mrb[34].mxu0 }
 0x93b   : > { %6771 = vmatmul.mubr.f32.vlgmr.msra.gmra.mrb[228].mxu1 %v6642_v14  ;;  %v7420_v61 = vpop.f32.mrb[35].mxu0  ;;  %8168 = vmatmul.mubr.f32.gmra.mrb[140].mxu0 %v7976_v9  ;;  %v7990_v9 = vld [vmem:[#allocation10 + $0xdc0] sm:$0xff] }
 0x93c   : > { %6775 = vmatprep.mubr.f32.mxu1 %v6645_v21  ;;  %8172 = vmatprep.mubr.f32.mxu0 %v7979_v62  ;;  %v7982_v21 = vld [vmem:[#allocation10 + $0xd80] sm:$0xff]  ;;  %v7985_v61 = vld [vmem:[#allocation10 + $0xd98] sm:$0xff] }
 0x93d   : > { %v7993_v62 = vld [vmem:[#allocation10 + $0xdd8] sm:$0xff] }
 0x93e   : > { %v25507_v56 = vpop.f32.mrb[36].mxu0 }
 0x93f   : > { %6776 = vmatmul.mubr.f32.gmra.mrb[230].mxu1 %v6644_v19  ;;  %v7425_v59 = vpop.f32.mrb[37].mxu0  ;;  %8173 = vmatmul.mubr.f32.gmra.mrb[142].mxu0 %v7978_v42  ;;  %v6668_v42 = vld [vmem:[#allocation10 + $0x8d0] sm:$0xff] }
 0x940   : > { %6780 = vmatprep.mubr.f32.mxu1 %v6647_v22  ;;  %8177 = vmatprep.mubr.f32.mxu0 %v7981_v28  ;;  %v6660_v22 = vld [vmem:[#allocation10 + $0x890] sm:$0xff]  ;;  %v6663_v59 = vld [vmem:[#allocation10 + $0x8a8] sm:$0xff] }
 0x941   : > { %v6671_v28 = vld [vmem:[#allocation10 + $0x8e8] sm:$0xff] }
 0x942   : > { %v25509_v58 = vpop.f32.mrb[38].mxu0 }
 0x943   : > { %6781 = vmatmul.mubr.f32.gmra.mrb[232].mxu1 %v6646_v47  ;;  %v7430_v50 = vpop.f32.mrb[39].mxu0  ;;  %8178 = vmatmul.mubr.f32.gmra.mrb[144].mxu0 %v7980_v45  ;;  %v7987_v47 = vld [vmem:[#allocation10 + $0xda8] sm:$0xff] }
 0x944   : > { %6785 = vmatprep.mubr.f32.mxu1 %v6649_v38  ;;  %8182 = vmatprep.mubr.f32.mxu0 %v7983_v10  ;;  %v7986_v50 = vld [vmem:[#allocation10 + $0xda0] sm:$0xff] }
 0x945   : > { %v7994_v10 = vld [vmem:[#allocation10 + $0xde0] sm:$0xff] }
 0x946   : > { %v25511_v44 = vpop.f32.mrb[40].mxu0 }
 0x947   : > { %6786 = vmatmul.mubr.f32.gmra.mrb[234].mxu1 %v6648_v8  ;;  %v7435_v24 = vpop.f32.mrb[41].mxu0  ;;  %8183 = vmatmul.mubr.f32.gmra.mrb[146].mxu0 %v7982_v21  ;;  %v6665_v8 = vld [vmem:[#allocation10 + $0x8b8] sm:$0xff] }
 0x948   : > { %6790 = vmatprep.mubr.f32.mxu1 %v6651_v29  ;;  %8187 = vmatprep.mubr.f32.mxu0 %v7985_v61  ;;  %v6664_v24 = vld [vmem:[#allocation10 + $0x8b0] sm:$0xff] }
 0x949   : > { %v6672_v61 = vld [vmem:[#allocation10 + $0x8f0] sm:$0xff] }
 0x94a   : > { %v25513_v18 = vpop.f32.mrb[42].mxu0 }
 0x94b   : > { %6791 = vmatmul.mubr.f32.gmra.mrb[236].mxu1 %v6650_v53  ;;  %v7440_v37 = vpop.f32.mrb[43].mxu0  ;;  %8188 = vmatmul.mubr.f32.gmra.mrb[148].mxu0 %v7984_v43  ;;  %v7988_v53 = vld [vmem:[#allocation10 + $0xdb0] sm:$0xff]  ;;  %v8581_v43 = vld [vmem:[#allocation10 + $0xe08] sm:$0xff] }
 0x94c   : > { %6795 = vmatprep.mubr.f32.mxu1 %v6653_v52  ;;  %8192 = vmatprep.mubr.f32.mxu0 %v7987_v47  ;;  %v7991_v52 = vld [vmem:[#allocation10 + $0xdc8] sm:$0xff] }
 0x94e   : > { %v25515_v12 = vpop.f32.mrb[44].mxu0 }
 0x94f   : > { %6796 = vmatmul.mubr.f32.gmra.mrb[238].mxu1 %v6652_v36  ;;  %v7445_v40 = vpop.f32.mrb[45].mxu0  ;;  %8193 = vmatmul.mubr.f32.gmra.mrb[150].mxu0 %v7986_v50  ;;  %v6666_v36 = vld [vmem:[#allocation10 + $0x8c0] sm:$0xff]  ;;  %v6677_v50 = vld [vmem:[#allocation10 + $0x918] sm:$0xff] }
 0x950   : > { %6800 = vmatprep.mubr.f32.mxu1 %v6655_v41  ;;  %8197 = vmatprep.mubr.f32.mxu0 %v7989_v16  ;;  %v6669_v41 = vld [vmem:[#allocation10 + $0x8d8] sm:$0xff] }
 0x952   : > { %v25517_v55 = vpop.f32.mrb[46].mxu0 }
 0x953   : > { %6801 = vmatmul.mubr.f32.gmra.mrb[240].mxu1 %v6654_v27  ;;  %v7450_v5 = vpop.f32.mrb[47].mxu0  ;;  %8198 = vmatmul.mubr.f32.gmra.mrb[152].mxu0 %v7988_v53  ;;  %v8582_v53 = vld [vmem:[#allocation10 + $0xe10] sm:$0xff] }
 0x954   : > { %6805 = vmatprep.mubr.f32.mxu1 %v6657_v13  ;;  %8202 = vmatprep.mubr.f32.mxu0 %v7991_v52  ;;  %v7992_v13 = vld [vmem:[#allocation10 + $0xdd0] sm:$0xff]  ;;  %v7995_v5 = vld [vmem:[#allocation10 + $0xde8] sm:$0xff] }
 0x955   : > { %v8585_v52 = vld [vmem:[#allocation10 + $0xe28] sm:$0xff] }
 0x956   : > { %v25519_v11 = vpop.f32.mrb[48].mxu0 }
 0x957   : > { %6806 = vmatmul.mubr.f32.gmra.mrb[242].mxu1 %v6656_v49  ;;  %v7455_v14 = vpop.f32.mrb[49].mxu0  ;;  %8203 = vmatmul.mubr.f32.gmra.mrb[154].mxu0 %v7990_v9  ;;  %v6681_v9 = vld [vmem:[#allocation10 + $0x938] sm:$0xff] }
 0x958   : > { %6810 = vmatprep.mubr.f32.mxu1 %v6659_v39  ;;  %8207 = vmatprep.mubr.f32.mxu0 %v7993_v62  ;;  %v6670_v39 = vld [vmem:[#allocation10 + $0x8e0] sm:$0xff]  ;;  %v6673_v14 = vld [vmem:[#allocation10 + $0x8f8] sm:$0xff]  ;;  %v6680_v62 = vld [vmem:[#allocation10 + $0x930] sm:$0xff] }
 0x95a   : > { %v25521_v19 = vpop.f32.mrb[50].mxu0 }
 0x95b   : > { %6811 = vmatmul.mubr.f32.gmra.mrb[244].mxu1 %v6658_v46  ;;  %v7460_v15 = vpop.f32.mrb[51].mxu0  ;;  %8208 = vmatmul.mubr.f32.gmra.mrb[156].mxu0 %v7992_v13  ;;  %v7997_v46 = vld [vmem:[#allocation10 + $0xdf8] sm:$0xff]  ;;  %v8589_v13 = vld [vmem:[#allocation10 + $0xe48] sm:$0xff] }
 0x95c   : > { %6815 = vmatprep.mubr.f32.mxu1 %v6661_v60  ;;  %8212 = vmatprep.mubr.f32.mxu0 %v7995_v5  ;;  %v7996_v15 = vld [vmem:[#allocation10 + $0xdf0] sm:$0xff]  ;;  %v8588_v5 = vld [vmem:[#allocation10 + $0xe40] sm:$0xff] }
 0x95e   : > { %v25523_v35 = vpop.f32.mrb[52].mxu0 }
 0x95f   : > { %6816 = vmatmul.mubr.f32.gmra.mrb[246].mxu1 %v6660_v22  ;;  %v7465_v38 = vpop.f32.mrb[53].mxu0  ;;  %8213 = vmatmul.mubr.f32.gmra.mrb[158].mxu0 %v7994_v10  ;;  %v6675_v22 = vld [vmem:[#allocation10 + $0x908] sm:$0xff]  ;;  %v6684_v10 = vld [vmem:[#allocation10 + $0x950] sm:$0xff] }
 0x960   : > { %6820 = vmatprep.mubr.f32.mxu1 %v6663_v59  ;;  %8217 = vmatprep.mubr.f32.mxu0 %v7997_v46  ;;  %v6674_v38 = vld [vmem:[#allocation10 + $0x900] sm:$0xff] }
 0x961   : > { %v6932_v46 = vld [vmem:[#allocation12 + $0x40] sm:$0xff] }
 0x962   : > { %v25525_v29 = vpop.f32.mrb[54].mxu0 }
 0x963   : > { %6821 = vmatmul.mubr.f32.gmra.mrb[248].mxu1 %v6662_v1  ;;  %v7470_v33 = vpop.f32.mrb[55].mxu0  ;;  %8218 = vmatmul.mubr.f32.gmra.mrb[160].mxu0 %v7996_v15  ;;  %v8580_v1 = vld [vmem:[#allocation10 + $0xe00] sm:$0xff] }
 0x964   : > { %6825 = vmatprep.mubr.f32.mxu1 %v6665_v8  ;;  %8708 = vmatprep.mubr.f32.mxu0 %v8581_v43  ;;  %v8583_v8 = vld [vmem:[#allocation10 + $0xe18] sm:$0xff]  ;;  %v8593_v43 = vld [vmem:[#allocation10 + $0xe68] sm:$0xff] }
 0x966   : > { %v25527_v57 = vpop.f32.mrb[56].mxu0 }
 0x967   : > { %6826 = vmatmul.mubr.f32.gmra.mrb[250].mxu1 %v6664_v24  ;;  %v7475_v37 = vpop.f32.mrb[57].mxu0  ;;  %8709 = vmatmul.mubr.f32.vlgmr.msra.gmra.mrb[162].mxu0 %v8580_v1  ;;  %v6676_v24 = vld [vmem:[#allocation10 + $0x910] sm:$0xff]  ;;  %v6689_v1 = vld [vmem:[#allocation10 + $0x978] sm:$0xff] }
 0x968   : > { %6830 = vmatprep.mubr.f32.mxu1 %v6667_v48  ;;  %8713 = vmatprep.mubr.f32.mxu0 %v8583_v8  ;;  %v6679_v48 = vld [vmem:[#allocation10 + $0x928] sm:$0xff]  ;;  %v6678_v37 = vld [vmem:[#allocation10 + $0x920] sm:$0xff] }
 0x96a   : > { %v25529_v40 = vpop.f32.mrb[58].mxu0 }
 0x96b   : > { %6831 = vmatmul.mubr.f32.gmra.mrb[252].mxu1 %v6666_v36  ;;  %v7480_v27 = vpop.f32.mrb[59].mxu0  ;;  %8714 = vmatmul.mubr.f32.gmra.mrb[164].mxu0 %v8582_v53  ;;  %v8584_v36 = vld [vmem:[#allocation10 + $0xe20] sm:$0xff] }
 0x96c   : > { %6835 = vmatprep.mubr.f32.mxu1 %v6669_v41  ;;  %8718 = vmatprep.mubr.f32.mxu0 %v8585_v52  ;;  %v8587_v41 = vld [vmem:[#allocation10 + $0xe38] sm:$0xff]  ;;  %v8586_v27 = vld [vmem:[#allocation10 + $0xe30] sm:$0xff] }
 0x96d   : > { %v8594_v52 = vld [vmem:[#allocation10 + $0xe70] sm:$0xff] }
 0x96e   : > { %v25531_v49 = vpop.f32.mrb[60].mxu0 }
 0x96f   : > { %6836 = vmatmul.mubr.f32.gmra.mrb[254].mxu1 %v6668_v42  ;;  %v7485_v45 = vpop.f32.mrb[61].mxu0  ;;  %8719 = vmatmul.mubr.f32.gmra.mrb[166].mxu0 %v8584_v36  ;;  %v6683_v42 = vld [vmem:[#allocation10 + $0x948] sm:$0xff] }
 0x970   : > { %6840 = vmatprep.mubr.f32.mxu1 %v6671_v28  ;;  %8723 = vmatprep.mubr.f32.mxu0 %v8587_v41  ;;  %v6682_v28 = vld [vmem:[#allocation10 + $0x940] sm:$0xff]  ;;  %v6685_v45 = vld [vmem:[#allocation10 + $0x958] sm:$0xff]  ;;  %v8597_v36 = vld [vmem:[#allocation10 + $0xe88] sm:$0xff] }
 0x972   : > { %v25533_v21 = vpop.f32.mrb[62].mxu0 }
 0x973   : > { %6841 = vmatmul.mubr.f32.gmra.mrb[0].mxu1 %v6670_v39  ;;  %v7490_v60 = vpop.f32.mrb[63].mxu0  ;;  %8724 = vmatmul.mubr.f32.gmra.mrb[168].mxu0 %v8586_v27  ;;  %v8591_v39 = vld [vmem:[#allocation10 + $0xe58] sm:$0xff]  ;;  %v8596_v27 = vld [vmem:[#allocation10 + $0xe80] sm:$0xff] }
 0x974   : > { %6845 = vmatprep.mubr.f32.mxu1 %v6673_v14  ;;  %8728 = vmatprep.mubr.f32.mxu0 %v8589_v13  ;;  %v6687_v14 = vld [vmem:[#allocation10 + $0x968] sm:$0xff]  ;;  %v8599_v13 = vld [vmem:[#allocation10 + $0xe98] sm:$0xff] }
 0x975   : > { %v6933_v60 = vld [vmem:[#allocation12 + $0x48] sm:$0xff] }
 0x976   : > { %v25535_v59 = vpop.f32.mrb[64].mxu0  ;;  %v21403_v15 = vpack.c.bf16 %v6933_v60, %v6932_v46  ;;  %v6694_v46 = vld [vmem:[#allocation10 + $0x9a0] sm:$0xff] }
 0x977   : > { %6846 = vmatmul.mubr.f32.gmra.mrb[2].mxu1 %v6672_v61  ;;  %v7495_v47 = vpop.f32.mrb[65].mxu0  ;;  %8729 = vmatmul.mubr.f32.gmra.mrb[170].mxu0 %v8588_v5  ;;  %v8590_v61 = vld [vmem:[#allocation10 + $0xe50] sm:$0xff] }
 0x978   : > { %6850 = vmatprep.mubr.f32.mxu1 %v6675_v22  ;;  %8733 = vmatprep.mubr.f32.mxu0 %v8591_v39  ;;  %v6686_v47 = vld [vmem:[#allocation10 + $0x960] sm:$0xff]  ;;  %v8598_v39 = vld [vmem:[#allocation10 + $0xe90] sm:$0xff] }
 0x979   : > { %21404 = vmatprep.subr.bf16.mxu1 %v21403_v15 }
 0x97a   : > { %v25537_v16 = vpop.f32.mrb[66].mxu0  ;;  %21406 = vmatpush3.bf16.msra.mxu1 %v21403_v15  ;;  %v8600_v15 = vld [vmem:[#allocation10 + $0xea0] sm:$0xff] }
 0x97b   : > { %6851 = vmatmul.mubr.f32.gmra.mrb[4].mxu1 %v6674_v38  ;;  %v7500_v33 = vpop.f32.mrb[67].mxu0  ;;  %8734 = vmatmul.mubr.f32.gmra.mrb[172].mxu0 %v8590_v61  ;;  %v6697_v61 = vld [vmem:[#allocation10 + $0x9b8] sm:$0xff] }
 0x97c   : > { %6855 = vmatprep.mubr.f32.mxu1 %v6677_v50  ;;  %8738 = vmatprep.mubr.f32.mxu0 %v8593_v43  ;;  %v8592_v50 = vld [vmem:[#allocation10 + $0xe60] sm:$0xff]  ;;  %v8595_v33 = vld [vmem:[#allocation10 + $0xe78] sm:$0xff] }
 0x97e   : > { %v25539_v22 = vpop.f32.mrb[68].mxu0 }
 0x97f   : > { %6856 = vmatmul.mubr.f32.gmra.mrb[6].mxu1 %v6676_v24  ;;  %v7505_v38 = vpop.f32.mrb[69].mxu0  ;;  %8739 = vmatmul.mubr.f32.gmra.mrb[174].mxu0 %v8592_v50  ;;  %v6688_v24 = vld [vmem:[#allocation10 + $0x970] sm:$0xff]  ;;  %v6699_v50 = vld [vmem:[#allocation10 + $0x9c8] sm:$0xff] }
 0x980   : > { %6860 = vmatprep.mubr.f32.mxu1 %v6679_v48  ;;  %8743 = vmatprep.mubr.f32.mxu0 %v8595_v33  ;;  %v6691_v48 = vld [vmem:[#allocation10 + $0x988] sm:$0xff]  ;;  %v6696_v38 = vld [vmem:[#allocation10 + $0x9b0] sm:$0xff] }
 0x981   : > { %v8602_v33 = vld [vmem:[#allocation10 + $0xeb0] sm:$0xff] }
 0x982   : > { %v25541_v8 = vpop.f32.mrb[70].mxu0 }
 0x983   : > { %6861 = vmatmul.mubr.f32.gmra.mrb[8].mxu1 %v6678_v37  ;;  %v7510_v53 = vpop.f32.mrb[71].mxu0  ;;  %8744 = vmatmul.mubr.f32.gmra.mrb[176].mxu0 %v8594_v52 }
 0x984   : > { %6865 = vmatprep.mubr.f32.mxu1 %v6681_v9  ;;  %v6690_v9 = vld [vmem:[#allocation10 + $0x980] sm:$0xff]  ;;  %8748 = vmatprep.mubr.f32.mxu0 %v8597_v36  ;;  %v8605_v53 = vld [vmem:[#allocation10 + $0xec8] sm:$0xff]  ;;  %v6701_v36 = vld [vmem:[#allocation10 + $0x9d8] sm:$0xff] }
 0x986   : > { %v25543_v37 = vpop.f32.mrb[72].mxu0 }
 0x987   : > { %6866 = vmatmul.mubr.f32.gmra.mrb[10].mxu1 %v6680_v62  ;;  %v7515_v41 = vpop.f32.mrb[73].mxu0  ;;  %v6693_v62 = vld [vmem:[#allocation10 + $0x998] sm:$0xff]  ;;  %8749 = vmatmul.mubr.f32.gmra.mrb[178].mxu0 %v8596_v27  ;;  %v6700_v27 = vld [vmem:[#allocation10 + $0x9d0] sm:$0xff] }
 0x988   : > { %6870 = vmatprep.mubr.f32.mxu1 %v6683_v42  ;;  %8753 = vmatprep.mubr.f32.mxu0 %v8599_v13 }
 0x98a   : > { %v25545_v42 = vpop.f32.mrb[74].mxu0 }
 0x98b   : > { %6871 = vmatmul.mubr.f32.gmra.mrb[12].mxu1 %v6682_v28  ;;  %v6692_v28 = vld [vmem:[#allocation10 + $0x990] sm:$0xff]  ;;  %v7520_v5 = vpop.f32.mrb[75].mxu0  ;;  %8754 = vmatmul.mubr.f32.gmra.mrb[180].mxu0 %v8598_v39  ;;  %v8609_v39 = vld [vmem:[#allocation10 + $0xee8] sm:$0xff] }
 0x98c   : > { %6875 = vmatprep.mubr.f32.mxu1 %v6685_v45  ;;  %v6695_v45 = vld [vmem:[#allocation10 + $0x9a8] sm:$0xff]  ;;  %v8606_v5 = vld [vmem:[#allocation10 + $0xed0] sm:$0xff] }
 0x98f   : > { %6876 = vmatmul.mubr.f32.gmra.mrb[14].mxu1 %v6684_v10  ;;  %v25547_v10 = vpop.f32.mrb[76].mxu0 }
 0x990   : > { %6880 = vmatprep.mubr.f32.mxu1 %v6687_v14  ;;  %v8601_v14 = vld [vmem:[#allocation10 + $0xea8] sm:$0xff]  ;;  %v7525_v60 = vpop.f32.mrb[77].mxu0 }
 0x991   : > { %8758 = vmatprep.mubr.f32.mxu0 %v8601_v14  ;;  %v6702_v14 = vld [vmem:[#allocation10 + $0x9e0] sm:$0xff]  ;;  %v6705_v60 = vld [vmem:[#allocation10 + $0x9f8] sm:$0xff] }
 0x992   : > { %8759 = vmatmul.mubr.f32.gmra.mrb[182].mxu0 %v8600_v15  ;;  %v25549_v43 = vpop.f32.mrb[78].mxu0 }
 0x993   : > { %6881 = vmatmul.mubr.f32.gmra.mrb[16].mxu1 %v6686_v47  ;;  %v8603_v47 = vld [vmem:[#allocation10 + $0xeb8] sm:$0xff] }
 0x994   : > { %6885 = vmatprep.mubr.f32.mxu1 %v6689_v1  ;;  %8763 = vmatprep.mubr.f32.mxu0 %v8603_v47  ;;  %v7530_v1 = vpop.f32.mrb[79].mxu0  ;;  %v8611_v47 = vld [vmem:[#allocation10 + $0xef8] sm:$0xff] }
 0x996   : > { %8764 = vmatmul.mubr.f32.gmra.mrb[184].mxu0 %v8602_v33 }
 0x997   : > { %6886 = vmatmul.mubr.f32.gmra.mrb[18].mxu1 %v6688_v24  ;;  %v25551_v24 = vpop.f32.mrb[80].mxu0  ;;  %8768 = vmatprep.mubr.f32.mxu0 %v8605_v53  ;;  %v8613_v53 = vld [vmem:[#allocation10 + $0xf08] sm:$0xff] }
 0x998   : > { %6890 = vmatprep.mubr.f32.mxu1 %v6691_v48  ;;  %v6698_v48 = vld [vmem:[#allocation10 + $0x9c0] sm:$0xff]  ;;  %v7535_v52 = vpop.f32.mrb[81].mxu0 }
 0x999   : > { %v8612_v52 = vld [vmem:[#allocation10 + $0xf00] sm:$0xff] }
 0x99a   : > { %v25553_v41 = vpop.f32.mrb[82].mxu0 }
 0x99b   : > { %6891 = vmatmul.mubr.f32.gmra.mrb[20].mxu1 %v6690_v9  ;;  %v8604_v9 = vld [vmem:[#allocation10 + $0xec0] sm:$0xff]  ;;  %v7540_v13 = vpop.f32.mrb[83].mxu0 }
 0x99c   : > { %6895 = vmatprep.mubr.f32.mxu1 %v6693_v62  ;;  %8769 = vmatmul.mubr.f32.gmra.mrb[186].mxu0 %v8604_v9  ;;  %v8607_v62 = vld [vmem:[#allocation10 + $0xed8] sm:$0xff] }
 0x99d   : > { %8773 = vmatprep.mubr.f32.mxu0 %v8607_v62  ;;  %v8615_v9 = vld [vmem:[#allocation10 + $0xf18] sm:$0xff] }
 0x99f   : > { %6896 = vmatmul.mubr.f32.gmra.mrb[22].mxu1 %v6692_v28  ;;  %v6703_v28 = vld [vmem:[#allocation10 + $0x9e8] sm:$0xff] }
 0x9a0   : > { %6900 = vmatprep.mubr.f32.mxu1 %v6695_v45  ;;  %8774 = vmatmul.mubr.f32.gmra.mrb[188].mxu0 %v8606_v5  ;;  %v25555_v45 = vpop.f32.mrb[84].mxu0 }
 0x9a1   : > { %8778 = vmatprep.mubr.f32.mxu0 %v8609_v39  ;;  %v8616_v39 = vld [vmem:[#allocation10 + $0xf20] sm:$0xff] }
 0x9a3   : > { %6901 = vmatmul.mubr.f32.gmra.mrb[24].mxu1 %v6694_v46  ;;  %v7545_v46 = vpop.f32.mrb[85].mxu0 }
 0x9a4   : > { %6905 = vmatprep.mubr.f32.mxu1 %v6697_v61  ;;  %v8608_v61 = vld [vmem:[#allocation10 + $0xee0] sm:$0xff]  ;;  %v25557_v15 = vpop.f32.mrb[86].mxu0  ;;  %v8619_v46 = vld [vmem:[#allocation10 + $0xf38] sm:$0xff] }
 0x9a5   : > { %8779 = vmatmul.mubr.f32.gmra.mrb[190].mxu0 %v8608_v61  ;;  %v7550_v1 = vpop.f32.mrb[87].mxu0  ;;  %v8618_v61 = vld [vmem:[#allocation10 + $0xf30] sm:$0xff] }
 0x9a6   : > { %8783 = vmatprep.mubr.f32.mxu0 %v8611_v47  ;;  %v25559_v33 = vpop.f32.mrb[88].mxu0 }
 0x9a7   : > { %6906 = vmatmul.mubr.f32.gmra.mrb[26].mxu1 %v6696_v38  ;;  %v6704_v38 = vld [vmem:[#allocation10 + $0x9f0] sm:$0xff] }
 0x9a8   : > { %6910 = vmatprep.mubr.f32.mxu1 %v6699_v50  ;;  %v8610_v50 = vld [vmem:[#allocation10 + $0xef0] sm:$0xff] }
 0x9a9   : > { %8784 = vmatmul.mubr.f32.gmra.mrb[192].mxu0 %v8610_v50  ;;  %v8620_v50 = vld [vmem:[#allocation10 + $0xf40] sm:$0xff] }
 0x9aa   : > { %8788 = vmatprep.mubr.f32.mxu0 %v8613_v53 }
 0x9ab   : > { %6911 = vmatmul.mubr.f32.gmra.mrb[28].mxu1 %v6698_v48  ;;  %v7555_v48 = vpop.f32.mrb[89].mxu0 }
 0x9ac   : > { %6915 = vmatprep.mubr.f32.mxu1 %v6701_v36  ;;  %v25561_v36 = vpop.f32.mrb[90].mxu0  ;;  %v8623_v48 = vld [vmem:[#allocation10 + $0xf58] sm:$0xff] }
 0x9ad   : > { %8789 = vmatmul.mubr.f32.gmra.mrb[194].mxu0 %v8612_v52  ;;  %v7560_v62 = vpop.f32.mrb[91].mxu0 }
 0x9ae   : > { %8793 = vmatprep.mubr.f32.mxu0 %v8615_v9  ;;  %v25563_v13 = vpop.f32.mrb[92].mxu0  ;;  %v8622_v9 = vld [vmem:[#allocation10 + $0xf50] sm:$0xff]  ;;  %v8625_v62 = vld [vmem:[#allocation10 + $0xf68] sm:$0xff] }
 0x9af   : > { %6916 = vmatmul.mubr.f32.gmra.mrb[30].mxu1 %v6700_v27  ;;  %v8614_v27 = vld [vmem:[#allocation10 + $0xf10] sm:$0xff]  ;;  %v7565_v5 = vpop.f32.mrb[93].mxu0 }
 0x9b0   : > { %6920 = vmatprep.mubr.f32.mxu1 %v6703_v28  ;;  %v8617_v28 = vld [vmem:[#allocation10 + $0xf28] sm:$0xff] }
 0x9b1   : > { %8794 = vmatmul.mubr.f32.gmra.mrb[196].mxu0 %v8614_v27 }
 0x9b2   : > { %8798 = vmatprep.mubr.f32.mxu0 %v8617_v28  ;;  %v8624_v28 = vld [vmem:[#allocation10 + $0xf60] sm:$0xff] }
 0x9b3   : > { %6921 = vmatmul.mubr.f32.gmra.mrb[32].mxu1 %v6702_v14  ;;  %v25565_v14 = vpop.f32.mrb[94].mxu0 }
 0x9b4   : > { %6925 = vmatprep.mubr.f32.mxu1 %v6705_v60  ;;  %v7570_v60 = vpop.f32.mrb[95].mxu0 }
 0x9b5   : > { %8799 = vmatmul.mubr.f32.gmra.mrb[198].mxu0 %v8616_v39  ;;  %v8627_v39 = vld [vmem:[#allocation10 + $0xf78] sm:$0xff]  ;;  %v8626_v60 = vld [vmem:[#allocation10 + $0xf70] sm:$0xff] }
 0x9b6   : > { %8803 = vmatprep.mubr.f32.mxu0 %v8619_v46  ;;  %v25567_v47 = vpop.f32.mrb[96].mxu0 }
 0x9b7   : > { %6926 = vmatmul.mubr.f32.gmra.mrb[34].mxu1 %v6704_v38  ;;  %v8621_v38 = vld [vmem:[#allocation10 + $0xf48] sm:$0xff]  ;;  %v7575_v1 = vpop.f32.mrb[97].mxu0 }
 0x9b9   : > { %8804 = vmatmul.mubr.f32.gmra.mrb[200].mxu0 %v8618_v61 }
 0x9ba   : > { %8808 = vmatprep.mubr.f32.mxu0 %v8621_v38  ;;  %v25569_v53 = vpop.f32.mrb[98].mxu0  ;;  %v8629_v38 = vld [vmem:[#allocation10 + $0xf88] sm:$0xff] }
 0x9bb   : > { %v8066_v52 = vpop.f32.mrb[99].mxu0 }
 0x9bc   : > { %v8631_v52 = vld [vmem:[#allocation10 + $0xf98] sm:$0xff] }
 0x9bd   : > { %8809 = vmatmul.mubr.f32.gmra.mrb[202].mxu0 %v8620_v50  ;;  %v8628_v50 = vld [vmem:[#allocation10 + $0xf80] sm:$0xff] }
 0x9be   : > { %8813 = vmatprep.mubr.f32.mxu0 %v8623_v48  ;;  %v25571_v27 = vpop.f32.mrb[100].mxu0 }
 0x9bf   : > { %v8071_v5 = vpop.f32.mrb[101].mxu0 }
 0x9c0   : > { %v8633_v5 = vld [vmem:[#allocation10 + $0xfa8] sm:$0xff] }
 0x9c1   : > { %8814 = vmatmul.mubr.f32.gmra.mrb[204].mxu0 %v8622_v9 }
 0x9c2   : > { %8818 = vmatprep.mubr.f32.mxu0 %v8625_v62  ;;  %v25573_v46 = vpop.f32.mrb[102].mxu0  ;;  %v8630_v62 = vld [vmem:[#allocation10 + $0xf90] sm:$0xff] }
 0x9c3   : > { %v8076_v61 = vpop.f32.mrb[103].mxu0 }
 0x9c4   : > { %v8632_v61 = vld [vmem:[#allocation10 + $0xfa0] sm:$0xff] }
 0x9c5   : > { %8819 = vmatmul.mubr.f32.gmra.mrb[206].mxu0 %v8624_v28 }
 0x9c6   : > { %8823 = vmatprep.mubr.f32.mxu0 %v8627_v39  ;;  %v25575_v1 = vpop.f32.mrb[104].mxu0 }
 0x9c7   : > { %v8081_v48 = vpop.f32.mrb[105].mxu0 }
 0x9c8   : > { %v8634_v48 = vld [vmem:[#allocation10 + $0xfb0] sm:$0xff] }
 0x9c9   : > { %8824 = vmatmul.mubr.f32.gmra.mrb[208].mxu0 %v8626_v60 }
 0x9ca   : > { %8828 = vmatprep.mubr.f32.mxu0 %v8629_v38  ;;  %v25577_v9 = vpop.f32.mrb[106].mxu0  ;;  %v8635_v38 = vld [vmem:[#allocation10 + $0xfb8] sm:$0xff] }
 0x9cb   : > { %v8086_v28 = vpop.f32.mrb[107].mxu0 }
 0x9cc   : > { %v8636_v28 = vld [vmem:[#allocation10 + $0xfc0] sm:$0xff] }
 0x9cd   : > { %8829 = vmatmul.mubr.f32.gmra.mrb[210].mxu0 %v8628_v50 }
 0x9ce   : > { %8833 = vmatprep.mubr.f32.mxu0 %v8631_v52  ;;  %v25579_v39 = vpop.f32.mrb[108].mxu0  ;;  %v8637_v52 = vld [vmem:[#allocation10 + $0xfc8] sm:$0xff] }
 0x9cf   : > { %v8091_v60 = vpop.f32.mrb[109].mxu0 }
 0x9d0   : > { %v8638_v60 = vld [vmem:[#allocation10 + $0xfd0] sm:$0xff] }
 0x9d1   : > { %8834 = vmatmul.mubr.f32.gmra.mrb[212].mxu0 %v8630_v62 }
 0x9d2   : > { %8838 = vmatprep.mubr.f32.mxu0 %v8633_v5  ;;  %v25581_v26 = vpop.f32.mrb[110].mxu0  ;;  %v8639_v5 = vld [vmem:[#allocation10 + $0xfd8] sm:$0xff] }
 0x9d3   : > { %v8096_v50 = vpop.f32.mrb[111].mxu0 }
 0x9d4   : > { %v8640_v50 = vld [vmem:[#allocation10 + $0xfe0] sm:$0xff] }
 0x9d5   : > { %8839 = vmatmul.mubr.f32.gmra.mrb[214].mxu0 %v8632_v61 }
 0x9d6   : > { %8843 = vmatprep.mubr.f32.mxu0 %v8635_v38  ;;  %v25583_v51 = vpop.f32.mrb[112].mxu0  ;;  %v8641_v38 = vld [vmem:[#allocation10 + $0xfe8] sm:$0xff] }
 0x9d7   : > { %v8101_v62 = vpop.f32.mrb[113].mxu0 }
 0x9d8   : > { %v8642_v62 = vld [vmem:[#allocation10 + $0xff0] sm:$0xff] }
 0x9d9   : > { %8844 = vmatmul.mubr.f32.gmra.mrb[216].mxu0 %v8634_v48 }
 0x9da   : > { %8848 = vmatprep.mubr.f32.mxu0 %v8637_v52  ;;  %v25585_v7 = vpop.f32.mrb[114].mxu0  ;;  %v8643_v52 = vld [vmem:[#allocation10 + $0xff8] sm:$0xff] }
 0x9db   : > { %v8106_v61 = vpop.f32.mrb[115].mxu0 }
 0x9dd   : > { %8849 = vmatmul.mubr.f32.gmra.mrb[218].mxu0 %v8636_v28 }
 0x9de   : > { %8853 = vmatprep.mubr.f32.mxu0 %v8639_v5  ;;  %v25587_v4 = vpop.f32.mrb[116].mxu0 }
 0x9df   : > { %v8111_v48 = vpop.f32.mrb[117].mxu0 }
 0x9e1   : > { %8854 = vmatmul.mubr.f32.gmra.mrb[220].mxu0 %v8638_v60 }
 0x9e2   : > { %8858 = vmatprep.mubr.f32.mxu0 %v8641_v38  ;;  %v25589_v32 = vpop.f32.mrb[118].mxu0 }
 0x9e3   : > { %v8116_v28 = vpop.f32.mrb[119].mxu0 }
 0x9e5   : > { %8859 = vmatmul.mubr.f32.gmra.mrb[222].mxu0 %v8640_v50  ;;  %v7578_v50 = vld [vmem:[#allocation12 + $0x50] sm:$0xff] }
 0x9e6   : > { %8863 = vmatprep.mubr.f32.mxu0 %v8643_v52  ;;  %v25591_v5 = vpop.f32.mrb[120].mxu0  ;;  %v21455_v17 = vpack.c.bf16 %v7579_v2, %v7578_v50 }
 0x9e7   : > { %v8121_v20 = vpop.f32.mrb[121].mxu0 }
 0x9e8   : > { %21456 = vmatprep.subr.bf16.mxu1 %v21455_v17 }
 0x9e9   : > { %8864 = vmatmul.mubr.f32.gmra.mrb[224].mxu0 %v8642_v62 }
 0x9ea   : > { %v25593_v25 = vpop.f32.mrb[122].mxu0 }
 0x9eb   : > { %v8126_v60 = vpop.f32.mrb[123].mxu0 }
 0x9ee   : > { %v25595_v61 = vpop.f32.mrb[124].mxu0 }
 0x9ef   : > { %v8131_v38 = vpop.f32.mrb[125].mxu0 }
 0x9f2   : > { %v25597_v31 = vpop.f32.mrb[126].mxu0 }
 0x9f3   : > { %v8136_v48 = vpop.f32.mrb[127].mxu0 }
 0x9f6   : > { %v25599_v52 = vpop.f32.mrb[128].mxu0 }
 0x9f7   : > { %v8141_v34 = vpop.f32.mrb[129].mxu0 }
 0x9fa   : > { %v25601_v28 = vpop.f32.mrb[130].mxu0 }
 0x9fb   : > { %v8146_v60 = vpop.f32.mrb[131].mxu0 }
 0x9fe   : > { %v25604_v6 = vpop.f32.mrb[132].mxu0 }
 0x9ff   : > { %26738 = vst [vmem:[#allocation82_spill] sm:$0xff] %v25604_v6  ;;  %v8151_v48 = vpop.f32.mrb[133].mxu0 }
 0xa02   : > { %v25607_v3 = vpop.f32.mrb[134].mxu0 }
 0xa03   : > { %26739 = vst [vmem:[#allocation83_spill] sm:$0xff] %v25607_v3  ;;  %v8156_v2 = vpop.f32.mrb[135].mxu0 }
 0xa0e   : > { %v6772_v62 = vpop.f32.mrb[228].mxu1 }
 0xa0f   : > { %v6774_v20 = vpop.f32.mrb[229].mxu1  ;;  %19907 = vmatprep.mubr.msk.f32.mxu1 %vm4706_vm2, %v6772_v62 }
 0xa10   : > { %v25610_v20 = vpop.f32.mrb[136].mxu0 }
 0xa11   : > { %26740 = vst [vmem:[#allocation84_spill] sm:$0xff] %v25610_v20  ;;  %v8161_v60 = vpop.f32.mrb[137].mxu0 }
 0xa12   : > { %v6777_v63 = vpop.f32.mrb[230].mxu1 }
 0xa13   : > { %v6779_v38 = vpop.f32.mrb[231].mxu1  ;;  %19908 = vmatmul.mubr.msk.f32.vlgmr.msra.gmra.mrb[196].mxu1 %vm4706_vm2, %v6777_v63 }
 0xa14   : > { %21458 = vmatpush3.bf16.msra.mxu1 %v21455_v17  ;;  %v25613_v38 = vpop.f32.mrb[138].mxu0 }
 0xa15   : > { %26741 = vst [vmem:[#allocation85_spill] sm:$0xff] %v25613_v38  ;;  %v8166_v17 = vpop.f32.mrb[139].mxu0 }
 0xa16   : > { %v6782_v0 = vpop.f32.mrb[232].mxu1  ;;  %v25616_v3 = vpop.f32.mrb[140].mxu0 }
 0xa17   : > { %v6784_v34 = vpop.f32.mrb[233].mxu1  ;;  %19910 = vmatprep.mubr.msk.f32.mxu1 %vm4706_vm2, %v6782_v0  ;;  %26742 = vst [vmem:[#allocation86_spill] sm:$0xff] %v25616_v3  ;;  %v8171_v0 = vpop.f32.mrb[141].mxu0 }
 0xa18   : > { %v25619_v20 = vpop.f32.mrb[142].mxu0 }
 0xa19   : > { %26743 = vst [vmem:[#allocation87_spill] sm:$0xff] %v25619_v20 }
 0xa1a   : > { %v6787_v50 = vpop.f32.mrb[234].mxu1 }
 0xa1b   : > { %v6789_v62 = vpop.f32.mrb[235].mxu1  ;;  %19911 = vmatmul.mubr.msk.f32.gmra.mrb[198].mxu1 %vm4706_vm2, %v6787_v50  ;;  %v8176_v50 = vpop.f32.mrb[143].mxu0 }
 0xa1c   : > { %v25622_v38 = vpop.f32.mrb[144].mxu0 }
 0xa1d   : > { %26744 = vst [vmem:[#allocation88_spill] sm:$0xff] %v25622_v38 }
 0xa1e   : > { %v6792_v54 = vpop.f32.mrb[236].mxu1 }
 0xa1f   : > { %v6794_v63 = vpop.f32.mrb[237].mxu1  ;;  %19913 = vmatprep.mubr.msk.f32.mxu1 %vm4706_vm2, %v6792_v54  ;;  %v8181_v54 = vpop.f32.mrb[145].mxu0 }
 0xa20   : > { %v25625_v3 = vpop.f32.mrb[146].mxu0 }
 0xa21   : > { %26745 = vst [vmem:[#allocation89_spill] sm:$0xff] %v25625_v3 }
 0xa22   : > { %v6797_v48 = vpop.f32.mrb[238].mxu1 }
 0xa23   : > { %v6799_v34 = vpop.f32.mrb[239].mxu1  ;;  %19914 = vmatmul.mubr.msk.f32.gmra.mrb[200].mxu1 %vm4706_vm2, %v6797_v48  ;;  %v8186_v48 = vpop.f32.mrb[147].mxu0 }
 0xa24   : > { %v25628_v20 = vpop.f32.mrb[148].mxu0 }
 0xa25   : > { %26746 = vst [vmem:[#allocation90_spill] sm:$0xff] %v25628_v20 }
 0xa26   : > { %v6802_v2 = vpop.f32.mrb[240].mxu1 }
 0xa27   : > { %v6804_v62 = vpop.f32.mrb[241].mxu1  ;;  %19916 = vmatprep.mubr.msk.f32.mxu1 %vm4706_vm2, %v6802_v2  ;;  %v8191_v2 = vpop.f32.mrb[149].mxu0 }
 0xa28   : > { %v25631_v38 = vpop.f32.mrb[150].mxu0 }
 0xa29   : > { %26747 = vst [vmem:[#allocation91_spill] sm:$0xff] %v25631_v38 }
 0xa2a   : > { %v6807_v60 = vpop.f32.mrb[242].mxu1 }
 0xa2b   : > { %v6809_v63 = vpop.f32.mrb[243].mxu1  ;;  %19917 = vmatmul.mubr.msk.f32.gmra.mrb[202].mxu1 %vm4706_vm2, %v6807_v60  ;;  %v8196_v60 = vpop.f32.mrb[151].mxu0 }
 0xa2c   : > { %v25634_v3 = vpop.f32.mrb[152].mxu0 }
 0xa2d   : > { %26748 = vst [vmem:[#allocation92_spill] sm:$0xff] %v25634_v3 }
 0xa2e   : > { %v6812_v17 = vpop.f32.mrb[244].mxu1 }
 0xa2f   : > { %v6814_v34 = vpop.f32.mrb[245].mxu1  ;;  %19919 = vmatprep.mubr.msk.f32.mxu1 %vm4706_vm2, %v6812_v17  ;;  %v8201_v17 = vpop.f32.mrb[153].mxu0 }
 0xa30   : > { %v25637_v20 = vpop.f32.mrb[154].mxu0  ;;  %v8224_v17 = vld [vmem:[#allocation12 + $0x60] sm:$0xff] }
 0xa31   : > { %26749 = vst [vmem:[#allocation93_spill] sm:$0xff] %v25637_v20  ;;  %v8225_v20 = vld [vmem:[#allocation12 + $0x68] sm:$0xff] }
 0xa32   : > { %v6817_v0 = vpop.f32.mrb[246].mxu1 }
 0xa33   : > { %v6819_v62 = vpop.f32.mrb[247].mxu1  ;;  %19920 = vmatmul.mubr.msk.f32.gmra.mrb[204].mxu1 %vm4706_vm2, %v6817_v0  ;;  %v8206_v0 = vpop.f32.mrb[155].mxu0 }
 0xa34   : > { %v25640_v38 = vpop.f32.mrb[156].mxu0 }
 0xa35   : > { %26750 = vst [vmem:[#allocation94_spill] sm:$0xff] %v25640_v38 }
 0xa36   : > { %v6822_v50 = vpop.f32.mrb[248].mxu1 }
 0xa37   : > { %v6824_v63 = vpop.f32.mrb[249].mxu1  ;;  %19922 = vmatprep.mubr.msk.f32.mxu1 %vm4706_vm2, %v6822_v50  ;;  %v8211_v50 = vpop.f32.mrb[157].mxu0 }
 0xa38   : > { %v25643_v3 = vpop.f32.mrb[158].mxu0 }
 0xa39   : > { %26751 = vst [vmem:[#allocation95_spill] sm:$0xff] %v25643_v3 }
 0xa3a   : > { %v6827_v54 = vpop.f32.mrb[250].mxu1 }
 0xa3b   : > { %v6829_v34 = vpop.f32.mrb[251].mxu1  ;;  %19923 = vmatmul.mubr.msk.f32.gmra.mrb[206].mxu1 %vm4706_vm2, %v6827_v54  ;;  %v8216_v54 = vpop.f32.mrb[159].mxu0 }
 0xa3c   : > { %v25646_v6 = vpop.f32.mrb[160].mxu0 }
 0xa3d   : > { %26752 = vst [vmem:[#allocation96_spill] sm:$0xff] %v25646_v6 }
 0xa3e   : > { %v6832_v48 = vpop.f32.mrb[252].mxu1 }
 0xa3f   : > { %v6834_v62 = vpop.f32.mrb[253].mxu1  ;;  %19925 = vmatprep.mubr.msk.f32.mxu1 %vm4706_vm2, %v6832_v48  ;;  %v25648_v48 = vpack.c.bf16 %v8225_v20, %v8224_v17 }
 0xa41   : > { %21508 = vmatprep.subr.bf16.mxu1 %v25648_v48 }
 0xa42   : > { %v6837_v2 = vpop.f32.mrb[254].mxu1 }
 0xa43   : > { %v6839_v63 = vpop.f32.mrb[255].mxu1  ;;  %19926 = vmatmul.mubr.msk.f32.gmra.mrb[208].mxu1 %vm4706_vm2, %v6837_v2 }
 0xa44   : > { %v8221_v63 = vpop.f32.mrb[161].mxu0 }
 0xa45   : > { %v25652_v50 = vpop.f32.mrb[162].mxu0 }
 0xa46   : > { %v6842_v60 = vpop.f32.mrb[0].mxu1  ;;  %26753 = vst [vmem:[#allocation97_spill] sm:$0xff] %v25652_v50 }
 0xa47   : > { %v6844_v34 = vpop.f32.mrb[1].mxu1  ;;  %19928 = vmatprep.mubr.msk.f32.mxu1 %vm4706_vm2, %v6842_v60  ;;  %v8712_v60 = vpop.f32.mrb[163].mxu0 }
 0xa48   : > { %v25655_v3 = vpop.f32.mrb[164].mxu0 }
 0xa49   : > { %26754 = vst [vmem:[#allocation98_spill] sm:$0xff] %v25655_v3  ;;  %v8717_v20 = vpop.f32.mrb[165].mxu0 }
 0xa4a   : > { %v6847_v62 = vpop.f32.mrb[2].mxu1 }
 0xa4b   : > { %v6849_v0 = vpop.f32.mrb[3].mxu1  ;;  %19929 = vmatmul.mubr.msk.f32.gmra.mrb[210].mxu1 %vm4706_vm2, %v6847_v62 }
 0xa4c   : > { %v25658_v0 = vpop.f32.mrb[166].mxu0 }
 0xa4d   : > { %26755 = vst [vmem:[#allocation99_spill] sm:$0xff] %v25658_v0  ;;  %v8722_v63 = vpop.f32.mrb[167].mxu0 }
 0xa4e   : > { %v6852_v2 = vpop.f32.mrb[4].mxu1  ;;  %v25661_v50 = vpop.f32.mrb[168].mxu0 }
 0xa4f   : > { %v6854_v34 = vpop.f32.mrb[5].mxu1  ;;  %19931 = vmatprep.mubr.msk.f32.mxu1 %vm4706_vm2, %v6852_v2  ;;  %26756 = vst [vmem:[#allocation100_spill] sm:$0xff] %v25661_v50  ;;  %v8727_v2 = vpop.f32.mrb[169].mxu0 }
 0xa50   : > { %v25664_v3 = vpop.f32.mrb[170].mxu0 }
 0xa51   : > { %26757 = vst [vmem:[#allocation101_spill] sm:$0xff] %v25664_v3 }
 0xa52   : > { %v6857_v54 = vpop.f32.mrb[6].mxu1 }
 0xa53   : > { %v6859_v38 = vpop.f32.mrb[7].mxu1  ;;  %19932 = vmatmul.mubr.msk.f32.gmra.mrb[212].mxu1 %vm4706_vm2, %v6857_v54  ;;  %v8732_v54 = vpop.f32.mrb[171].mxu0 }
 0xa54   : > { %v25667_v0 = vpop.f32.mrb[172].mxu0 }
 0xa55   : > { %26758 = vst [vmem:[#allocation102_spill] sm:$0xff] %v25667_v0 }
 0xa56   : > { %v6862_v17 = vpop.f32.mrb[8].mxu1 }
 0xa57   : > { %v6864_v62 = vpop.f32.mrb[9].mxu1  ;;  %19934 = vmatprep.mubr.msk.f32.mxu1 %vm4706_vm2, %v6862_v17  ;;  %v8737_v17 = vpop.f32.mrb[173].mxu0 }
 0xa58   : > { %v25670_v50 = vpop.f32.mrb[174].mxu0 }
 0xa59   : > { %26759 = vst [vmem:[#allocation103_spill] sm:$0xff] %v25670_v50 }
 0xa5a   : > { %v6867_v6 = vpop.f32.mrb[10].mxu1 }
 0xa5b   : > { %v6869_v34 = vpop.f32.mrb[11].mxu1  ;;  %19935 = vmatmul.mubr.msk.f32.gmra.mrb[214].mxu1 %vm4706_vm2, %v6867_v6  ;;  %v8742_v6 = vpop.f32.mrb[175].mxu0 }
 0xa5c   : > { %v25673_v3 = vpop.f32.mrb[176].mxu0 }
 0xa5d   : > { %26760 = vst [vmem:[#allocation104_spill] sm:$0xff] %v25673_v3 }
 0xa5e   : > { %v6872_v60 = vpop.f32.mrb[12].mxu1 }
 0xa5f   : > { %v6874_v38 = vpop.f32.mrb[13].mxu1  ;;  %19937 = vmatprep.mubr.msk.f32.mxu1 %vm4706_vm2, %v6872_v60  ;;  %v8747_v60 = vpop.f32.mrb[177].mxu0 }
 0xa60   : > { %v25676_v0 = vpop.f32.mrb[178].mxu0 }
 0xa61   : > { %26761 = vst [vmem:[#allocation105_spill] sm:$0xff] %v25676_v0 }
 0xa62   : > { %v6877_v20 = vpop.f32.mrb[14].mxu1 }
 0xa63   : > { %v6879_v62 = vpop.f32.mrb[15].mxu1  ;;  %19938 = vmatmul.mubr.msk.f32.gmra.mrb[216].mxu1 %vm4706_vm2, %v6877_v20  ;;  %v8752_v20 = vpop.f32.mrb[179].mxu0 }
 0xa64   : > { %v25679_v50 = vpop.f32.mrb[180].mxu0 }
 0xa65   : > { %26762 = vst [vmem:[#allocation106_spill] sm:$0xff] %v25679_v50 }
 0xa66   : > { %v6882_v63 = vpop.f32.mrb[16].mxu1 }
 0xa67   : > { %v6884_v34 = vpop.f32.mrb[17].mxu1  ;;  %19940 = vmatprep.mubr.msk.f32.mxu1 %vm4706_vm2, %v6882_v63  ;;  %v8757_v63 = vpop.f32.mrb[181].mxu0 }
 0xa68   : > { %v25682_v3 = vpop.f32.mrb[182].mxu0 }
 0xa69   : > { %26763 = vst [vmem:[#allocation107_spill] sm:$0xff] %v25682_v3 }
 0xa6a   : > { %v6887_v2 = vpop.f32.mrb[18].mxu1 }
 0xa6b   : > { %v6889_v38 = vpop.f32.mrb[19].mxu1  ;;  %19941 = vmatmul.mubr.msk.f32.gmra.mrb[218].mxu1 %vm4706_vm2, %v6887_v2  ;;  %v8762_v2 = vpop.f32.mrb[183].mxu0 }
 0xa6c   : > { %v25685_v0 = vpop.f32.mrb[184].mxu0 }
 0xa6d   : > { %26764 = vst [vmem:[#allocation108_spill] sm:$0xff] %v25685_v0 }
 0xa6e   : > { %v6892_v54 = vpop.f32.mrb[20].mxu1 }
 0xa6f   : > { %v6894_v62 = vpop.f32.mrb[21].mxu1  ;;  %19943 = vmatprep.mubr.msk.f32.mxu1 %vm4706_vm2, %v6892_v54  ;;  %v8767_v54 = vpop.f32.mrb[185].mxu0 }
 0xa70   : > { %v25688_v50 = vpop.f32.mrb[186].mxu0 }
 0xa71   : > { %26765 = vst [vmem:[#allocation109_spill] sm:$0xff] %v25688_v50 }
 0xa72   : > { %v6897_v17 = vpop.f32.mrb[22].mxu1 }
 0xa73   : > { %v6899_v34 = vpop.f32.mrb[23].mxu1  ;;  %19944 = vmatmul.mubr.msk.f32.gmra.mrb[220].mxu1 %vm4706_vm2, %v6897_v17  ;;  %v8772_v17 = vpop.f32.mrb[187].mxu0 }
 0xa74   : > { %v25691_v3 = vpop.f32.mrb[188].mxu0 }
 0xa75   : > { %26766 = vst [vmem:[#allocation110_spill] sm:$0xff] %v25691_v3 }
 0xa76   : > { %v6902_v6 = vpop.f32.mrb[24].mxu1 }
 0xa77   : > { %v6904_v38 = vpop.f32.mrb[25].mxu1  ;;  %19946 = vmatprep.mubr.msk.f32.mxu1 %vm4706_vm2, %v6902_v6  ;;  %v8777_v6 = vpop.f32.mrb[189].mxu0 }
 0xa78   : > { %v25694_v0 = vpop.f32.mrb[190].mxu0 }
 0xa7a   : > { %v6907_v60 = vpop.f32.mrb[26].mxu1 }
 0xa7b   : > { %v6909_v62 = vpop.f32.mrb[27].mxu1  ;;  %19947 = vmatmul.mubr.msk.f32.gmra.mrb[222].mxu1 %vm4706_vm2, %v6907_v60  ;;  %v8782_v60 = vpop.f32.mrb[191].mxu0 }
 0xa7c   : > { %v25697_v50 = vpop.f32.mrb[192].mxu0  ;;  %v26790_v60 = vld [vmem:[#allocation68_spill] sm:$0xff] }
 0xa7d   : > { %v8787_v3 = vpop.f32.mrb[193].mxu0 }
 0xa7e   : > { %v6912_v20 = vpop.f32.mrb[28].mxu1 }
 0xa7f   : > { %v6914_v34 = vpop.f32.mrb[29].mxu1  ;;  %19949 = vmatprep.mubr.msk.f32.mxu1 %vm4706_vm2, %v6912_v20  ;;  %v8871_v20 = vld [vmem:[#allocation12 + $0x78] sm:$0xff] }
 0xa80   : > { %v8870_v34 = vld [vmem:[#allocation12 + $0x70] sm:$0xff] }
 0xa82   : > { %v6917_v63 = vpop.f32.mrb[30].mxu1 }
 0xa83   : > { %v6919_v38 = vpop.f32.mrb[31].mxu1  ;;  %19950 = vmatmul.mubr.msk.f32.gmra.mrb[224].mxu1 %vm4706_vm2, %v6917_v63  ;;  %v25702_v63 = vpack.c.bf16 %v8871_v20, %v8870_v34  ;;  %v26792_v34 = vld [vmem:[#allocation104_spill] sm:$0xff]  ;;  %v26793_v20 = vld [vmem:[#allocation69_spill] sm:$0xff] }
 0xa84   : > { %v25704_v38 = vpop.f32.mrb[194].mxu0 }
 0xa85   : > { %v8792_v6 = vpop.f32.mrb[195].mxu0 }
 0xa86   : > { %v6922_v2 = vpop.f32.mrb[32].mxu1  ;;  %v26796_v6 = vld [vmem:[#allocation70_spill] sm:$0xff] }
 0xa87   : > { %v6924_v62 = vpop.f32.mrb[33].mxu1  ;;  %19952 = vmatprep.mubr.msk.f32.mxu1 %vm4706_vm2, %v6922_v2  ;;  %v25712_v2 = vpop.f32.mrb[196].mxu0 }
 0xa88   : > { %v8797_v3 = vpop.f32.mrb[197].mxu0  ;;  %v26789_v62 = vld [vmem:[#allocation102_spill] sm:$0xff] }
 0xa89   : > { %v26797_v3 = vld [vmem:[#allocation107_spill] sm:$0xff] }
 0xa8a   : > { %v6927_v54 = vpop.f32.mrb[34].mxu1 }
 0xa8b   : > { %v6929_v17 = vpop.f32.mrb[35].mxu1  ;;  %19953 = vmatmul.mubr.msk.f32.gmra.mrb[226].mxu1 %vm4706_vm2, %v6927_v54  ;;  %v26791_v54 = vld [vmem:[#allocation103_spill] sm:$0xff] }
 0xa8c   : > { %19959 = vmatprep.mubr.msk.f32.mxu1 %vm4706_vm2, %v25505_v30  ;;  %v25718_v30 = vpop.f32.mrb[198].mxu0  ;;  %v26794_v17 = vld [vmem:[#allocation105_spill] sm:$0xff] }
 0xa8f   : > { %19960 = vmatmul.mubr.msk.f32.vlgmr.msra.gmra.mrb[196].mxu1 %vm4706_vm2, %v25507_v56  ;;  %v8802_v56 = vpop.f32.mrb[199].mxu0 }
 0xa90   : > { %19962 = vmatprep.mubr.msk.f32.mxu1 %vm4706_vm2, %v25509_v58  ;;  %21510 = vmatpush3.bf16.msra.mxu1 %v25648_v48  ;;  %v25724_v58 = vpop.f32.mrb[200].mxu0  ;;  %v26798_v56 = vld [vmem:[#allocation108_spill] sm:$0xff] }
 0xa91   : > { %21560 = vmatprep.subr.bf16.mxu1 %v25702_v63  ;;  %v8807_v48 = vpop.f32.mrb[201].mxu0 }
 0xa92   : > { %v26799_v48 = vld [vmem:[#allocation71_spill] sm:$0xff] }
 0xa93   : > { %19963 = vmatmul.mubr.msk.f32.gmra.mrb[198].mxu1 %vm4706_vm2, %v25511_v44  ;;  %v25730_v44 = vpop.f32.mrb[202].mxu0 }
 0xa94   : > { %19965 = vmatprep.mubr.msk.f32.mxu1 %vm4706_vm2, %v25513_v18  ;;  %v8812_v18 = vpop.f32.mrb[203].mxu0 }
 0xa95   : > { %v26800_v18 = vld [vmem:[#allocation109_spill] sm:$0xff] }
 0xa97   : > { %19966 = vmatmul.mubr.msk.f32.gmra.mrb[200].mxu1 %vm4706_vm2, %v25515_v12  ;;  %v25736_v12 = vpop.f32.mrb[204].mxu0 }
 0xa98   : > { %19968 = vmatprep.mubr.msk.f32.mxu1 %vm4706_vm2, %v25517_v55  ;;  %v8817_v55 = vpop.f32.mrb[205].mxu0 }
 0xa99   : > { %v26801_v55 = vld [vmem:[#allocation110_spill] sm:$0xff] }
 0xa9b   : > { %19969 = vmatmul.mubr.msk.f32.gmra.mrb[202].mxu1 %vm4706_vm2, %v25519_v11  ;;  %v25742_v11 = vpop.f32.mrb[206].mxu0 }
 0xa9c   : > { %19971 = vmatprep.mubr.msk.f32.mxu1 %vm4706_vm2, %v25521_v19  ;;  %v8822_v19 = vpop.f32.mrb[207].mxu0 }
 0xa9d   : > { %v26802_v19 = vld [vmem:[#allocation72_spill] sm:$0xff] }
 0xa9f   : > { %19972 = vmatmul.mubr.msk.f32.gmra.mrb[204].mxu1 %vm4706_vm2, %v25523_v35  ;;  %v25748_v35 = vpop.f32.mrb[208].mxu0 }
 0xaa0   : > { %19974 = vmatprep.mubr.msk.f32.mxu1 %vm4706_vm2, %v25525_v29  ;;  %v8827_v29 = vpop.f32.mrb[209].mxu0 }
 0xaa1   : > { %v26803_v29 = vld [vmem:[#allocation73_spill] sm:$0xff] }
 0xaa3   : > { %19975 = vmatmul.mubr.msk.f32.gmra.mrb[206].mxu1 %vm4706_vm2, %v25527_v57  ;;  %v25754_v57 = vpop.f32.mrb[210].mxu0 }
 0xaa4   : > { %19977 = vmatprep.mubr.msk.f32.mxu1 %vm4706_vm2, %v25529_v40  ;;  %v8832_v40 = vpop.f32.mrb[211].mxu0 }
 0xaa5   : > { %v26804_v40 = vld [vmem:[#allocation74_spill] sm:$0xff] }
 0xaa7   : > { %19978 = vmatmul.mubr.msk.f32.gmra.mrb[208].mxu1 %vm4706_vm2, %v25531_v49  ;;  %v25760_v49 = vpop.f32.mrb[212].mxu0 }
 0xaa8   : > { %19980 = vmatprep.mubr.msk.f32.mxu1 %vm4706_vm2, %v25533_v21  ;;  %v8837_v21 = vpop.f32.mrb[213].mxu0 }
 0xaa9   : > { %v9230_v21 = vld [vmem:[#allocation10 + $0x1020] sm:$0xff] }
 0xaab   : > { %19981 = vmatmul.mubr.msk.f32.gmra.mrb[210].mxu1 %vm4706_vm2, %v25535_v59  ;;  %v25766_v59 = vpop.f32.mrb[214].mxu0 }
 0xaac   : > { %19983 = vmatprep.mubr.msk.f32.mxu1 %vm4706_vm2, %v25537_v16  ;;  %v8842_v16 = vpop.f32.mrb[215].mxu0 }
 0xaad   : > { %v9232_v16 = vld [vmem:[#allocation10 + $0x1030] sm:$0xff] }
 0xaaf   : > { %19984 = vmatmul.mubr.msk.f32.gmra.mrb[212].mxu1 %vm4706_vm2, %v25539_v22  ;;  %v25772_v22 = vpop.f32.mrb[216].mxu0 }
 0xab0   : > { %19986 = vmatprep.mubr.msk.f32.mxu1 %vm4706_vm2, %v25541_v8  ;;  %v8847_v8 = vpop.f32.mrb[217].mxu0 }
 0xab1   : > { %v9234_v8 = vld [vmem:[#allocation10 + $0x1040] sm:$0xff] }
 0xab3   : > { %19987 = vmatmul.mubr.msk.f32.gmra.mrb[214].mxu1 %vm4706_vm2, %v25543_v37  ;;  %v25778_v37 = vpop.f32.mrb[218].mxu0 }
 0xab4   : > { %19989 = vmatprep.mubr.msk.f32.mxu1 %vm4706_vm2, %v25545_v42  ;;  %v8852_v42 = vpop.f32.mrb[219].mxu0 }
 0xab5   : > { %v9236_v42 = vld [vmem:[#allocation10 + $0x1050] sm:$0xff] }
 0xab7   : > { %19990 = vmatmul.mubr.msk.f32.gmra.mrb[216].mxu1 %vm4706_vm2, %v25547_v10  ;;  %v25784_v10 = vpop.f32.mrb[220].mxu0 }
 0xab8   : > { %19992 = vmatprep.mubr.msk.f32.mxu1 %vm4706_vm2, %v25549_v43  ;;  %v8857_v43 = vpop.f32.mrb[221].mxu0 }
 0xab9   : > { %v9238_v43 = vld [vmem:[#allocation10 + $0x1060] sm:$0xff] }
 0xabb   : > { %19993 = vmatmul.mubr.msk.f32.gmra.mrb[218].mxu1 %vm4706_vm2, %v25551_v24  ;;  %v25790_v24 = vpop.f32.mrb[222].mxu0 }
 0xabc   : > { %19995 = vmatprep.mubr.msk.f32.mxu1 %vm4706_vm2, %v25553_v41  ;;  %v8862_v41 = vpop.f32.mrb[223].mxu0 }
 0xabd   : > { %v9240_v41 = vld [vmem:[#allocation10 + $0x1070] sm:$0xff] }
 0xabf   : > { %19996 = vmatmul.mubr.msk.f32.gmra.mrb[220].mxu1 %vm4706_vm2, %v25555_v45  ;;  %v25796_v45 = vpop.f32.mrb[224].mxu0 }
 0xac0   : > { %19998 = vmatprep.mubr.msk.f32.mxu1 %vm4706_vm2, %v25557_v15  ;;  %v8867_v15 = vpop.f32.mrb[225].mxu0 }
 0xac1   : > { %v9242_v15 = vld [vmem:[#allocation10 + $0x1080] sm:$0xff] }
 0xac3   : > { %19999 = vmatmul.mubr.msk.f32.gmra.mrb[222].mxu1 %vm4706_vm2, %v25559_v33  ;;  %v26774_v33 = vld [vmem:[#allocation89_spill] sm:$0xff] }
 0xac4   : > { %20001 = vmatprep.mubr.msk.f32.mxu1 %vm4706_vm2, %v25561_v36  ;;  %v26775_v36 = vld [vmem:[#allocation90_spill] sm:$0xff] }
 0xac7   : > { %20002 = vmatmul.mubr.msk.f32.gmra.mrb[224].mxu1 %vm4706_vm2, %v25563_v13  ;;  %v26776_v13 = vld [vmem:[#allocation91_spill] sm:$0xff] }
 0xac8   : > { %20004 = vmatprep.mubr.msk.f32.mxu1 %vm4706_vm2, %v25565_v14  ;;  %v26777_v14 = vld [vmem:[#allocation92_spill] sm:$0xff] }
 0xacb   : > { %20005 = vmatmul.mubr.msk.f32.gmra.mrb[226].mxu1 %vm4706_vm2, %v25567_v47  ;;  %v26778_v47 = vld [vmem:[#allocation93_spill] sm:$0xff] }
 0xacc   : > { %20011 = vmatprep.mubr.msk.f32.mxu1 %vm4706_vm2, %v25569_v53  ;;  %v26779_v53 = vld [vmem:[#allocation94_spill] sm:$0xff] }
 0xacf   : > { %20012 = vmatmul.mubr.msk.f32.vlgmr.msra.gmra.mrb[196].mxu1 %vm4706_vm2, %v25571_v27  ;;  %v26780_v27 = vld [vmem:[#allocation95_spill] sm:$0xff] }
 0xad0   : > { %20014 = vmatprep.mubr.msk.f32.mxu1 %vm4706_vm2, %v25573_v46  ;;  %21562 = vmatpush3.bf16.msra.mxu1 %v25702_v63  ;;  %v26781_v46 = vld [vmem:[#allocation96_spill] sm:$0xff]  ;;  %v26795_v63 = vld [vmem:[#allocation106_spill] sm:$0xff] }
 0xad1   : > { %21563 = vmatprep.subr.bf16.mxu1 %v26719_v23 }
 0xad3   : > { %20015 = vmatmul.mubr.msk.f32.gmra.mrb[198].mxu1 %vm4706_vm2, %v25575_v1  ;;  %v26782_v1 = vld [vmem:[#allocation97_spill] sm:$0xff] }
 0xad4   : > { %20017 = vmatprep.mubr.msk.f32.mxu1 %vm4706_vm2, %v25577_v9  ;;  %v26783_v9 = vld [vmem:[#allocation98_spill] sm:$0xff] }
 0xad7   : > { %20018 = vmatmul.mubr.msk.f32.gmra.mrb[200].mxu1 %vm4706_vm2, %v25579_v39  ;;  %v26784_v39 = vld [vmem:[#allocation66_spill] sm:$0xff] }
 0xad8   : > { %20020 = vmatprep.mubr.msk.f32.mxu1 %vm4706_vm2, %v25581_v26  ;;  %v26773_v26 = vld [vmem:[#allocation88_spill] sm:$0xff] }
 0xadb   : > { %20021 = vmatmul.mubr.msk.f32.gmra.mrb[202].mxu1 %vm4706_vm2, %v25583_v51  ;;  %v26771_v51 = vld [vmem:[#allocation86_spill] sm:$0xff] }
 0xadc   : > { %20023 = vmatprep.mubr.msk.f32.mxu1 %vm4706_vm2, %v25585_v7  ;;  %v26769_v7 = vld [vmem:[#allocation84_spill] sm:$0xff] }
 0xadf   : > { %20024 = vmatmul.mubr.msk.f32.gmra.mrb[204].mxu1 %vm4706_vm2, %v25587_v4  ;;  %v26767_v4 = vld [vmem:[#allocation82_spill] sm:$0xff] }
 0xae0   : > { %20026 = vmatprep.mubr.msk.f32.mxu1 %vm4706_vm2, %v25589_v32  ;;  %v26768_v32 = vld [vmem:[#allocation83_spill] sm:$0xff] }
 0xae3   : > { %20027 = vmatmul.mubr.msk.f32.gmra.mrb[206].mxu1 %vm4706_vm2, %v25591_v5  ;;  %v26785_v5 = vld [vmem:[#allocation99_spill] sm:$0xff] }
 0xae4   : > { %20029 = vmatprep.mubr.msk.f32.mxu1 %vm4706_vm2, %v25593_v25  ;;  %v26770_v25 = vld [vmem:[#allocation85_spill] sm:$0xff] }
 0xae7   : > { %20030 = vmatmul.mubr.msk.f32.gmra.mrb[208].mxu1 %vm4706_vm2, %v25595_v61  ;;  %v26786_v61 = vld [vmem:[#allocation100_spill] sm:$0xff] }
 0xae8   : > { %20032 = vmatprep.mubr.msk.f32.mxu1 %vm4706_vm2, %v25597_v31  ;;  %v26772_v31 = vld [vmem:[#allocation87_spill] sm:$0xff] }
 0xaeb   : > { %20033 = vmatmul.mubr.msk.f32.gmra.mrb[210].mxu1 %vm4706_vm2, %v25599_v52  ;;  %v26787_v52 = vld [vmem:[#allocation67_spill] sm:$0xff] }
 0xaec   : > { %20035 = vmatprep.mubr.msk.f32.mxu1 %vm4706_vm2, %v25601_v28  ;;  %v26788_v28 = vld [vmem:[#allocation101_spill] sm:$0xff] }
 0xaef   : > { %20036 = vmatmul.mubr.msk.f32.gmra.mrb[212].mxu1 %vm4706_vm2, %v26767_v4  ;;  %v9245_v4 = vld [vmem:[#allocation10 + $0x1098] sm:$0xff] }
 0xaf0   : > { %20038 = vmatprep.mubr.msk.f32.mxu1 %vm4706_vm2, %v26768_v32  ;;  %v9244_v32 = vld [vmem:[#allocation10 + $0x1090] sm:$0xff] }
 0xaf3   : > { %20039 = vmatmul.mubr.msk.f32.gmra.mrb[214].mxu1 %vm4706_vm2, %v26769_v7  ;;  %v9247_v7 = vld [vmem:[#allocation10 + $0x10a8] sm:$0xff] }
 0xaf4   : > { %20041 = vmatprep.mubr.msk.f32.mxu1 %vm4706_vm2, %v26770_v25  ;;  %v9246_v25 = vld [vmem:[#allocation10 + $0x10a0] sm:$0xff] }
 0xaf7   : > { %20042 = vmatmul.mubr.msk.f32.gmra.mrb[216].mxu1 %vm4706_vm2, %v26771_v51  ;;  %v9249_v51 = vld [vmem:[#allocation10 + $0x10b8] sm:$0xff] }
 0xaf8   : > { %20044 = vmatprep.mubr.msk.f32.mxu1 %vm4706_vm2, %v26772_v31  ;;  %v9248_v31 = vld [vmem:[#allocation10 + $0x10b0] sm:$0xff] }
 0xafb   : > { %20045 = vmatmul.mubr.msk.f32.gmra.mrb[218].mxu1 %vm4706_vm2, %v26773_v26  ;;  %v9251_v26 = vld [vmem:[#allocation10 + $0x10c8] sm:$0xff] }
 0xafc   : > { %20047 = vmatprep.mubr.msk.f32.mxu1 %vm4706_vm2, %v26774_v33  ;;  %v9250_v33 = vld [vmem:[#allocation10 + $0x10c0] sm:$0xff] }
 0xaff   : > { %20048 = vmatmul.mubr.msk.f32.gmra.mrb[220].mxu1 %vm4706_vm2, %v26775_v36  ;;  %v9253_v36 = vld [vmem:[#allocation10 + $0x10d8] sm:$0xff] }
 0xb00   : > { %20050 = vmatprep.mubr.msk.f32.mxu1 %vm4706_vm2, %v26776_v13  ;;  %v9252_v13 = vld [vmem:[#allocation10 + $0x10d0] sm:$0xff] }
 0xb03   : > { %20051 = vmatmul.mubr.msk.f32.gmra.mrb[222].mxu1 %vm4706_vm2, %v26777_v14  ;;  %v9255_v14 = vld [vmem:[#allocation10 + $0x10e8] sm:$0xff] }
 0xb04   : > { %20053 = vmatprep.mubr.msk.f32.mxu1 %vm4706_vm2, %v26778_v47  ;;  %v9254_v47 = vld [vmem:[#allocation10 + $0x10e0] sm:$0xff] }
 0xb07   : > { %20054 = vmatmul.mubr.msk.f32.gmra.mrb[224].mxu1 %vm4706_vm2, %v26779_v53  ;;  %v9257_v53 = vld [vmem:[#allocation10 + $0x10f8] sm:$0xff] }
 0xb08   : > { %20056 = vmatprep.mubr.msk.f32.mxu1 %vm4706_vm2, %v26780_v27  ;;  %v9256_v27 = vld [vmem:[#allocation10 + $0x10f0] sm:$0xff] }
 0xb0b   : > { %20057 = vmatmul.mubr.msk.f32.gmra.mrb[226].mxu1 %vm4706_vm2, %v26781_v46  ;;  %v9259_v46 = vld [vmem:[#allocation10 + $0x1108] sm:$0xff] }
 0xb0c   : > { %20063 = vmatprep.mubr.msk.f32.mxu1 %vm4706_vm2, %v26782_v1  ;;  %v9258_v1 = vld [vmem:[#allocation10 + $0x1100] sm:$0xff] }
 0xb0f   : > { %20064 = vmatmul.mubr.msk.f32.vlgmr.msra.gmra.mrb[196].mxu1 %vm4706_vm2, %v26783_v9  ;;  %v9261_v9 = vld [vmem:[#allocation10 + $0x1118] sm:$0xff] }
 0xb10   : > { %21565 = vmatpush1.bf16.msra.mxu1 %v26784_v39  ;;  %20066 = vmatprep.mubr.msk.f32.mxu1 %vm4706_vm2, %v26785_v5  ;;  %v9260_v39 = vld [vmem:[#allocation10 + $0x1110] sm:$0xff]  ;;  %v9263_v5 = vld [vmem:[#allocation10 + $0x1128] sm:$0xff] }
 0xb11   : > { %21566 = vmatprep.subr.bf16.mxu1 %v26719_v23 }
 0xb13   : > { %20067 = vmatmul.mubr.msk.f32.gmra.mrb[198].mxu1 %vm4706_vm2, %v26786_v61  ;;  %v9262_v61 = vld [vmem:[#allocation10 + $0x1120] sm:$0xff] }
 0xb14   : > { %21568 = vmatpush1.bf16.msra.mxu1 %v26787_v52  ;;  %20069 = vmatprep.mubr.msk.f32.mxu1 %vm4706_vm2, %v26788_v28  ;;  %v9265_v52 = vld [vmem:[#allocation10 + $0x1138] sm:$0xff]  ;;  %v9264_v28 = vld [vmem:[#allocation10 + $0x1130] sm:$0xff] }
 0xb15   : > { %21569 = vmatprep.subr.bf16.mxu1 %v26719_v23 }
 0xb17   : > { %20070 = vmatmul.mubr.msk.f32.gmra.mrb[200].mxu1 %vm4706_vm2, %v26789_v62  ;;  %v9267_v62 = vld [vmem:[#allocation10 + $0x1148] sm:$0xff] }
 0xb18   : > { %21571 = vmatpush1.bf16.msra.mxu1 %v26790_v60  ;;  %20072 = vmatprep.mubr.msk.f32.mxu1 %vm4706_vm2, %v26791_v54  ;;  %v9266_v60 = vld [vmem:[#allocation10 + $0x1140] sm:$0xff]  ;;  %v9269_v54 = vld [vmem:[#allocation10 + $0x1158] sm:$0xff] }
 0xb19   : > { %21572 = vmatprep.subr.bf16.mxu1 %v26719_v23 }
 0xb1b   : > { %20073 = vmatmul.mubr.msk.f32.gmra.mrb[202].mxu1 %vm4706_vm2, %v26792_v34  ;;  %v9268_v34 = vld [vmem:[#allocation10 + $0x1150] sm:$0xff] }
 0xb1c   : > { %21574 = vmatpush1.bf16.msra.mxu1 %v26793_v20  ;;  %20075 = vmatprep.mubr.msk.f32.mxu1 %vm4706_vm2, %v26794_v17  ;;  %v9271_v20 = vld [vmem:[#allocation10 + $0x1168] sm:$0xff]  ;;  %v9516_v17 = vld [vmem:[#allocation12 + $0x80] sm:$0xff] }
 0xb1d   : > { %21575 = vmatprep.subr.bf16.mxu1 %v26719_v23 }
 0xb1f   : > { %20076 = vmatmul.mubr.msk.f32.gmra.mrb[204].mxu1 %vm4706_vm2, %v26795_v63  ;;  %v9517_v63 = vld [vmem:[#allocation12 + $0x88] sm:$0xff] }
 0xb20   : > { %21577 = vmatpush1.bf16.msra.mxu1 %v26796_v6  ;;  %20078 = vmatprep.mubr.msk.f32.mxu1 %vm4706_vm2, %v26797_v3  ;;  %v21611_v6 = vpack.c.bf16 %v9517_v63, %v9516_v17  ;;  %v9270_v3 = vld [vmem:[#allocation10 + $0x1160] sm:$0xff] }
 0xb21   : > { %21578 = vmatprep.subr.bf16.mxu1 %v26719_v23 }
 0xb23   : > { %20079 = vmatmul.mubr.msk.f32.gmra.mrb[206].mxu1 %vm4706_vm2, %v26798_v56  ;;  %v9273_v56 = vld [vmem:[#allocation10 + $0x1178] sm:$0xff] }
 0xb24   : > { %21580 = vmatpush1.bf16.msra.mxu1 %v26799_v48  ;;  %20081 = vmatprep.mubr.msk.f32.mxu1 %vm4706_vm2, %v26800_v18  ;;  %v9272_v48 = vld [vmem:[#allocation10 + $0x1170] sm:$0xff]  ;;  %v9275_v18 = vld [vmem:[#allocation10 + $0x1188] sm:$0xff] }
 0xb25   : > { %21581 = vmatprep.subr.bf16.mxu1 %v26719_v23 }
 0xb27   : > { %20082 = vmatmul.mubr.msk.f32.gmra.mrb[208].mxu1 %vm4706_vm2, %v26801_v55  ;;  %v9274_v55 = vld [vmem:[#allocation10 + $0x1180] sm:$0xff] }
 0xb28   : > { %21583 = vmatpush1.bf16.msra.mxu1 %v26802_v19  ;;  %20084 = vmatprep.mubr.msk.f32.mxu1 %vm4706_vm2, %v25694_v0  ;;  %v26806_v0 = vld [vmem:[#allocation76_spill] sm:$0xff]  ;;  %v9277_v19 = vld [vmem:[#allocation10 + $0x1198] sm:$0xff] }
 0xb29   : > { %21584 = vmatprep.subr.bf16.mxu1 %v26719_v23 }
 0xb2b   : > { %20085 = vmatmul.mubr.msk.f32.gmra.mrb[210].mxu1 %vm4706_vm2, %v25697_v50  ;;  %v26805_v50 = vld [vmem:[#allocation75_spill] sm:$0xff] }
 0xb2c   : > { %21586 = vmatpush1.bf16.msra.mxu1 %v26803_v29  ;;  %20087 = vmatprep.mubr.msk.f32.mxu1 %vm4706_vm2, %v25704_v38  ;;  %v26807_v38 = vld [vmem:[#allocation77_spill] sm:$0xff]  ;;  %v9276_v29 = vld [vmem:[#allocation10 + $0x1190] sm:$0xff] }
 0xb2d   : > { %21587 = vmatprep.subr.bf16.mxu1 %v26719_v23 }
 0xb2f   : > { %20088 = vmatmul.mubr.msk.f32.gmra.mrb[212].mxu1 %vm4706_vm2, %v25712_v2  ;;  %v26808_v2 = vld [vmem:[#allocation78_spill] sm:$0xff] }
 0xb30   : > { %21589 = vmatpush1.bf16.msra.mxu1 %v26804_v40  ;;  %20090 = vmatprep.mubr.msk.f32.mxu1 %vm4706_vm2, %v25718_v30  ;;  %v26809_v30 = vld [vmem:[#allocation79_spill] sm:$0xff]  ;;  %v9279_v40 = vld [vmem:[#allocation10 + $0x11a8] sm:$0xff] }
 0xb31   : > { %21590 = vmatprep.subr.bf16.mxu1 %v26719_v23 }
 0xb33   : > { %20091 = vmatmul.mubr.msk.f32.gmra.mrb[214].mxu1 %vm4706_vm2, %v25724_v58  ;;  %v26810_v58 = vld [vmem:[#allocation80_spill] sm:$0xff] }
 0xb34   : > { %21592 = vmatpush1.bf16.msra.mxu1 %v26805_v50  ;;  %20093 = vmatprep.mubr.msk.f32.mxu1 %vm4706_vm2, %v25730_v44  ;;  %v9227_v44 = vld [vmem:[#allocation10 + $0x1008] sm:$0xff]  ;;  %v9278_v50 = vld [vmem:[#allocation10 + $0x11a0] sm:$0xff] }
 0xb35   : > { %21593 = vmatprep.subr.bf16.mxu1 %v26719_v23 }
 0xb37   : > { %20094 = vmatmul.mubr.msk.f32.gmra.mrb[216].mxu1 %vm4706_vm2, %v25736_v12  ;;  %v26811_v12 = vld [vmem:[#allocation81_spill] sm:$0xff] }
 0xb38   : > { %21595 = vmatpush1.bf16.msra.mxu1 %v26806_v0  ;;  %20096 = vmatprep.mubr.msk.f32.mxu1 %vm4706_vm2, %v25742_v11  ;;  %v9226_v11 = vld [vmem:[#allocation10 + $0x1000] sm:$0xff]  ;;  %v9281_v0 = vld [vmem:[#allocation10 + $0x11b8] sm:$0xff] }
 0xb39   : > { %21596 = vmatprep.subr.bf16.mxu1 %v26719_v23 }
 0xb3b   : > { %20097 = vmatmul.mubr.msk.f32.gmra.mrb[218].mxu1 %vm4706_vm2, %v25748_v35  ;;  %v9229_v35 = vld [vmem:[#allocation10 + $0x1018] sm:$0xff] }
 0xb3c   : > { %21598 = vmatpush1.bf16.msra.mxu1 %v26807_v38  ;;  %20099 = vmatprep.mubr.msk.f32.mxu1 %vm4706_vm2, %v25754_v57  ;;  %v9228_v57 = vld [vmem:[#allocation10 + $0x1010] sm:$0xff] }
 0xb3d   : > { %21599 = vmatprep.subr.bf16.mxu1 %v26719_v23  ;;  %v9280_v38 = vld [vmem:[#allocation10 + $0x11b0] sm:$0xff] }
 0xb3f   : > { %20100 = vmatmul.mubr.msk.f32.gmra.mrb[220].mxu1 %vm4706_vm2, %v25760_v49  ;;  %v9231_v49 = vld [vmem:[#allocation10 + $0x1028] sm:$0xff] }
 0xb40   : > { %21601 = vmatpush1.bf16.msra.mxu1 %v26808_v2  ;;  %20102 = vmatprep.mubr.msk.f32.mxu1 %vm4706_vm2, %v25766_v59  ;;  %v9233_v59 = vld [vmem:[#allocation10 + $0x1038] sm:$0xff]  ;;  %v9283_v2 = vld [vmem:[#allocation10 + $0x11c8] sm:$0xff] }
 0xb41   : > { %21602 = vmatprep.subr.bf16.mxu1 %v26719_v23 }
 0xb43   : > { %20103 = vmatmul.mubr.msk.f32.gmra.mrb[222].mxu1 %vm4706_vm2, %v25772_v22  ;;  %v9235_v22 = vld [vmem:[#allocation10 + $0x1048] sm:$0xff] }
 0xb44   : > { %21604 = vmatpush1.bf16.msra.mxu1 %v26809_v30  ;;  %20105 = vmatprep.mubr.msk.f32.mxu1 %vm4706_vm2, %v25778_v37  ;;  %v9237_v37 = vld [vmem:[#allocation10 + $0x1058] sm:$0xff]  ;;  %v9282_v30 = vld [vmem:[#allocation10 + $0x11c0] sm:$0xff] }
 0xb45   : > { %21605 = vmatprep.subr.bf16.mxu1 %v26719_v23 }
 0xb47   : > { %20106 = vmatmul.mubr.msk.f32.gmra.mrb[224].mxu1 %vm4706_vm2, %v25784_v10  ;;  %v9239_v10 = vld [vmem:[#allocation10 + $0x1068] sm:$0xff] }
 0xb48   : > { %21607 = vmatpush1.bf16.msra.mxu1 %v26810_v58  ;;  %20108 = vmatprep.mubr.msk.f32.mxu1 %vm4706_vm2, %v25790_v24  ;;  %v9241_v24 = vld [vmem:[#allocation10 + $0x1078] sm:$0xff] }
 0xb49   : > { %21608 = vmatprep.subr.bf16.mxu1 %v26719_v23  ;;  %v9285_v58 = vld [vmem:[#allocation10 + $0x11d8] sm:$0xff] }
 0xb4b   : > { %20109 = vmatmul.mubr.msk.f32.gmra.mrb[226].mxu1 %vm4706_vm2, %v25796_v45  ;;  %v9243_v45 = vld [vmem:[#allocation10 + $0x1088] sm:$0xff] }
 0xb4c   : > { %21610 = vmatpush1.bf16.msra.mxu1 %v26811_v12  ;;  %9354 = vmatprep.mubr.f32.mxu1 %v9227_v44  ;;  %v9284_v44 = vld [vmem:[#allocation10 + $0x11d0] sm:$0xff]  ;;  %v9287_v12 = vld [vmem:[#allocation10 + $0x11e8] sm:$0xff] }
 0xb4d   : > { %21612 = vmatprep.subr.bf16.mxu1 %v21611_v6 }
 0xb4f   : > { %9355 = vmatmul.mubr.f32.vlgmr.msra.gmra.mrb[36].mxu1 %v9226_v11  ;;  %v9286_v11 = vld [vmem:[#allocation10 + $0x11e0] sm:$0xff] }
 0xb50   : > { %9359 = vmatprep.mubr.f32.mxu1 %v9229_v35  ;;  %21614 = vmatpush3.bf16.msra.mxu1 %v21611_v6  ;;  %v9289_v35 = vld [vmem:[#allocation10 + $0x11f8] sm:$0xff] }
 0xb53   : > { %9360 = vmatmul.mubr.f32.gmra.mrb[38].mxu1 %v9228_v57  ;;  %v9288_v57 = vld [vmem:[#allocation10 + $0x11f0] sm:$0xff] }
 0xb54   : > { %9364 = vmatprep.mubr.f32.mxu1 %v9231_v49 }
 0xb57   : > { %9365 = vmatmul.mubr.f32.gmra.mrb[40].mxu1 %v9230_v21 }
 0xb58   : > { %9369 = vmatprep.mubr.f32.mxu1 %v9233_v59 }
 0xb5b   : > { %9370 = vmatmul.mubr.f32.gmra.mrb[42].mxu1 %v9232_v16 }
 0xb5c   : > { %9374 = vmatprep.mubr.f32.mxu1 %v9235_v22 }
 0xb5f   : > { %9375 = vmatmul.mubr.f32.gmra.mrb[44].mxu1 %v9234_v8 }
 0xb60   : > { %9379 = vmatprep.mubr.f32.mxu1 %v9237_v37 }
 0xb63   : > { %9380 = vmatmul.mubr.f32.gmra.mrb[46].mxu1 %v9236_v42 }
 0xb64   : > { %9384 = vmatprep.mubr.f32.mxu1 %v9239_v10 }
 0xb67   : > { %9385 = vmatmul.mubr.f32.gmra.mrb[48].mxu1 %v9238_v43 }
 0xb68   : > { %9389 = vmatprep.mubr.f32.mxu1 %v9241_v24 }
 0xb6b   : > { %9390 = vmatmul.mubr.f32.gmra.mrb[50].mxu1 %v9240_v41 }
 0xb6c   : > { %9394 = vmatprep.mubr.f32.mxu1 %v9243_v45 }
 0xb6f   : > { %9395 = vmatmul.mubr.f32.gmra.mrb[52].mxu1 %v9242_v15 }
 0xb70   : > { %9399 = vmatprep.mubr.f32.mxu1 %v9245_v4 }
 0xb73   : > { %9400 = vmatmul.mubr.f32.gmra.mrb[54].mxu1 %v9244_v32 }
 0xb74   : > { %9404 = vmatprep.mubr.f32.mxu1 %v9247_v7 }
 0xb77   : > { %9405 = vmatmul.mubr.f32.gmra.mrb[56].mxu1 %v9246_v25 }
 0xb78   : > { %9409 = vmatprep.mubr.f32.mxu1 %v9249_v51 }
 0xb7b   : > { %9410 = vmatmul.mubr.f32.gmra.mrb[58].mxu1 %v9248_v31 }
 0xb7c   : > { %9414 = vmatprep.mubr.f32.mxu1 %v9251_v26 }
 0xb7f   : > { %9415 = vmatmul.mubr.f32.gmra.mrb[60].mxu1 %v9250_v33 }
 0xb80   : > { %9419 = vmatprep.mubr.f32.mxu1 %v9253_v36 }
 0xb83   : > { %9420 = vmatmul.mubr.f32.gmra.mrb[62].mxu1 %v9252_v13 }
 0xb84   : > { %9424 = vmatprep.mubr.f32.mxu1 %v9255_v14 }
 0xb87   : > { %9425 = vmatmul.mubr.f32.gmra.mrb[64].mxu1 %v9254_v47 }
 0xb88   : > { %9429 = vmatprep.mubr.f32.mxu1 %v9257_v53 }
 0xb8b   : > { %9430 = vmatmul.mubr.f32.gmra.mrb[66].mxu1 %v9256_v27 }
 0xb8c   : > { %9434 = vmatprep.mubr.f32.mxu1 %v9259_v46 }
 0xb8f   : > { %9435 = vmatmul.mubr.f32.gmra.mrb[68].mxu1 %v9258_v1 }
 0xb90   : > { %9439 = vmatprep.mubr.f32.mxu1 %v9261_v9 }
 0xb93   : > { %9440 = vmatmul.mubr.f32.gmra.mrb[70].mxu1 %v9260_v39 }
 0xb94   : > { %9444 = vmatprep.mubr.f32.mxu1 %v9263_v5 }
 0xb97   : > { %9445 = vmatmul.mubr.f32.gmra.mrb[72].mxu1 %v9262_v61 }
 0xb98   : > { %9449 = vmatprep.mubr.f32.mxu1 %v9265_v52 }
 0xb9b   : > { %9450 = vmatmul.mubr.f32.gmra.mrb[74].mxu1 %v9264_v28 }
 0xb9c   : > { %9454 = vmatprep.mubr.f32.mxu1 %v9267_v62 }
 0xb9f   : > { %9455 = vmatmul.mubr.f32.gmra.mrb[76].mxu1 %v9266_v60 }
 0xba0   : > { %9459 = vmatprep.mubr.f32.mxu1 %v9269_v54 }
 0xba3   : > { %9460 = vmatmul.mubr.f32.gmra.mrb[78].mxu1 %v9268_v34 }
 0xba4   : > { %9464 = vmatprep.mubr.f32.mxu1 %v9271_v20 }
 0xba7   : > { %9465 = vmatmul.mubr.f32.gmra.mrb[80].mxu1 %v9270_v3 }
 0xba8   : > { %9469 = vmatprep.mubr.f32.mxu1 %v9273_v56 }
 0xbab   : > { %9470 = vmatmul.mubr.f32.gmra.mrb[82].mxu1 %v9272_v48 }
 0xbac   : > { %9474 = vmatprep.mubr.f32.mxu1 %v9275_v18 }
 0xbaf   : > { %9475 = vmatmul.mubr.f32.gmra.mrb[84].mxu1 %v9274_v55 }
 0xbb0   : > { %9479 = vmatprep.mubr.f32.mxu1 %v9277_v19 }
 0xbb3   : > { %9480 = vmatmul.mubr.f32.gmra.mrb[86].mxu1 %v9276_v29 }
 0xbb4   : > { %9484 = vmatprep.mubr.f32.mxu1 %v9279_v40 }
 0xbb7   : > { %9485 = vmatmul.mubr.f32.gmra.mrb[88].mxu1 %v9278_v50 }
 0xbb8   : > { %9489 = vmatprep.mubr.f32.mxu1 %v9281_v0 }
 0xbbb   : > { %9490 = vmatmul.mubr.f32.gmra.mrb[90].mxu1 %v9280_v38 }
 0xbbc   : > { %9494 = vmatprep.mubr.f32.mxu1 %v9283_v2 }
 0xbbf   : > { %9495 = vmatmul.mubr.f32.gmra.mrb[92].mxu1 %v9282_v30 }
 0xbc0   : > { %9499 = vmatprep.mubr.f32.mxu1 %v9285_v58 }
 0xbc3   : > { %9500 = vmatmul.mubr.f32.gmra.mrb[94].mxu1 %v9284_v44 }
 0xbc4   : > { %9504 = vmatprep.mubr.f32.mxu1 %v9287_v12 }
 0xbc7   : > { %9505 = vmatmul.mubr.f32.gmra.mrb[96].mxu1 %v9286_v11 }
 0xbc8   : > { %9509 = vmatprep.mubr.f32.mxu1 %v9289_v35 }
 0xbcb   : > { %9510 = vmatmul.mubr.f32.gmra.mrb[98].mxu1 %v9288_v57 }
 0xc22   : > { %v9356_v49 = vpop.f32.mrb[36].mxu1 }
 0xc23   : > { %v9358_v21 = vpop.f32.mrb[37].mxu1  ;;  %20115 = vmatprep.mubr.msk.f32.mxu1 %vm4706_vm2, %v9356_v49 }
 0xc24   : > { %v25993_v21 = vld [vmem:[#allocation13] ss:$0 sm:$0xff] }
 0xc26   : > { %v9361_v59 = vpop.f32.mrb[38].mxu1 }
 0xc27   : > { %v9363_v16 = vpop.f32.mrb[39].mxu1  ;;  %20116 = vmatmul.mubr.msk.f32.vlgmr.msra.gmra.mrb[196].mxu1 %vm4706_vm2, %v9361_v59 }
 0xc28   : > { %v9911_v16 = vld [vmem:[#allocation15 + $0x8] sm:$0xff] }
 0xc29   : > { %9990 = vmatprep.mubr.f32.mxu0 %v9911_v16 }
 0xc2a   : > { %v9366_v22 = vpop.f32.mrb[40].mxu1 }
 0xc2b   : > { %v9368_v8 = vpop.f32.mrb[41].mxu1  ;;  %20118 = vmatprep.mubr.msk.f32.mxu1 %vm4706_vm2, %v9366_v22 }
 0xc2e   : > { %v9371_v37 = vpop.f32.mrb[42].mxu1 }
 0xc2f   : > { %v9373_v42 = vpop.f32.mrb[43].mxu1  ;;  %20119 = vmatmul.mubr.msk.f32.gmra.mrb[198].mxu1 %vm4706_vm2, %v9371_v37 }
 0xc32   : > { %v9376_v10 = vpop.f32.mrb[44].mxu1 }
 0xc33   : > { %v9378_v43 = vpop.f32.mrb[45].mxu1  ;;  %20121 = vmatprep.mubr.msk.f32.mxu1 %vm4706_vm2, %v9376_v10 }
 0xc36   : > { %v9381_v24 = vpop.f32.mrb[46].mxu1 }
 0xc37   : > { %v9383_v41 = vpop.f32.mrb[47].mxu1  ;;  %20122 = vmatmul.mubr.msk.f32.gmra.mrb[200].mxu1 %vm4706_vm2, %v9381_v24 }
 0xc3a   : > { %v9386_v45 = vpop.f32.mrb[48].mxu1 }
 0xc3b   : > { %v9388_v15 = vpop.f32.mrb[49].mxu1  ;;  %20124 = vmatprep.mubr.msk.f32.mxu1 %vm4706_vm2, %v9386_v45 }
 0xc3e   : > { %v9391_v4 = vpop.f32.mrb[50].mxu1 }
 0xc3f   : > { %v9393_v32 = vpop.f32.mrb[51].mxu1  ;;  %20125 = vmatmul.mubr.msk.f32.gmra.mrb[202].mxu1 %vm4706_vm2, %v9391_v4 }
 0xc42   : > { %v9396_v7 = vpop.f32.mrb[52].mxu1 }
 0xc43   : > { %v9398_v25 = vpop.f32.mrb[53].mxu1  ;;  %20127 = vmatprep.mubr.msk.f32.mxu1 %vm4706_vm2, %v9396_v7 }
 0xc46   : > { %v9401_v51 = vpop.f32.mrb[54].mxu1 }
 0xc47   : > { %v9403_v31 = vpop.f32.mrb[55].mxu1  ;;  %20128 = vmatmul.mubr.msk.f32.gmra.mrb[204].mxu1 %vm4706_vm2, %v9401_v51 }
 0xc4a   : > { %v9406_v26 = vpop.f32.mrb[56].mxu1 }
 0xc4b   : > { %v9408_v33 = vpop.f32.mrb[57].mxu1  ;;  %20130 = vmatprep.mubr.msk.f32.mxu1 %vm4706_vm2, %v9406_v26 }
 0xc4e   : > { %v9411_v36 = vpop.f32.mrb[58].mxu1 }
 0xc4f   : > { %v9413_v13 = vpop.f32.mrb[59].mxu1  ;;  %20131 = vmatmul.mubr.msk.f32.gmra.mrb[206].mxu1 %vm4706_vm2, %v9411_v36 }
 0xc52   : > { %v9416_v14 = vpop.f32.mrb[60].mxu1 }
 0xc53   : > { %v9418_v47 = vpop.f32.mrb[61].mxu1  ;;  %20133 = vmatprep.mubr.msk.f32.mxu1 %vm4706_vm2, %v9416_v14 }
 0xc56   : > { %v9421_v53 = vpop.f32.mrb[62].mxu1 }
 0xc57   : > { %v9423_v27 = vpop.f32.mrb[63].mxu1  ;;  %20134 = vmatmul.mubr.msk.f32.gmra.mrb[208].mxu1 %vm4706_vm2, %v9421_v53 }
 0xc5a   : > { %v9426_v46 = vpop.f32.mrb[64].mxu1 }
 0xc5b   : > { %v9428_v1 = vpop.f32.mrb[65].mxu1  ;;  %20136 = vmatprep.mubr.msk.f32.mxu1 %vm4706_vm2, %v9426_v46 }
 0xc5e   : > { %v9431_v9 = vpop.f32.mrb[66].mxu1 }
 0xc5f   : > { %v9433_v39 = vpop.f32.mrb[67].mxu1  ;;  %20137 = vmatmul.mubr.msk.f32.gmra.mrb[210].mxu1 %vm4706_vm2, %v9431_v9 }
 0xc62   : > { %v9436_v5 = vpop.f32.mrb[68].mxu1 }
 0xc63   : > { %v9438_v61 = vpop.f32.mrb[69].mxu1  ;;  %20139 = vmatprep.mubr.msk.f32.mxu1 %vm4706_vm2, %v9436_v5 }
 0xc66   : > { %v9441_v52 = vpop.f32.mrb[70].mxu1 }
 0xc67   : > { %v9443_v28 = vpop.f32.mrb[71].mxu1  ;;  %20140 = vmatmul.mubr.msk.f32.gmra.mrb[212].mxu1 %vm4706_vm2, %v9441_v52 }
 0xc6a   : > { %v9446_v62 = vpop.f32.mrb[72].mxu1 }
 0xc6b   : > { %v9448_v60 = vpop.f32.mrb[73].mxu1  ;;  %20142 = vmatprep.mubr.msk.f32.mxu1 %vm4706_vm2, %v9446_v62 }
 0xc6e   : > { %v9451_v54 = vpop.f32.mrb[74].mxu1 }
 0xc6f   : > { %20143 = vmatmul.mubr.msk.f32.gmra.mrb[214].mxu1 %vm4706_vm2, %v9451_v54  ;;  %v9453_v34 = vpop.f32.mrb[75].mxu1 }
 0xc72   : > { %v9456_v20 = vpop.f32.mrb[76].mxu1 }
 0xc73   : > { %v9458_v17 = vpop.f32.mrb[77].mxu1  ;;  %20145 = vmatprep.mubr.msk.f32.mxu1 %vm4706_vm2, %v9456_v20 }
 0xc76   : > { %v9461_v63 = vpop.f32.mrb[78].mxu1 }
 0xc77   : > { %20146 = vmatmul.mubr.msk.f32.gmra.mrb[216].mxu1 %vm4706_vm2, %v9461_v63  ;;  %v9463_v6 = vpop.f32.mrb[79].mxu1 }
 0xc7a   : > { %v9466_v3 = vpop.f32.mrb[80].mxu1 }
 0xc7b   : > { %v9468_v56 = vpop.f32.mrb[81].mxu1  ;;  %20148 = vmatprep.mubr.msk.f32.mxu1 %vm4706_vm2, %v9466_v3 }
 0xc7e   : > { %v9471_v48 = vpop.f32.mrb[82].mxu1 }
 0xc7f   : > { %20149 = vmatmul.mubr.msk.f32.gmra.mrb[218].mxu1 %vm4706_vm2, %v9471_v48  ;;  %v9473_v18 = vpop.f32.mrb[83].mxu1 }
 0xc82   : > { %v9476_v55 = vpop.f32.mrb[84].mxu1 }
 0xc83   : > { %v9478_v19 = vpop.f32.mrb[85].mxu1  ;;  %20151 = vmatprep.mubr.msk.f32.mxu1 %vm4706_vm2, %v9476_v55 }
 0xc86   : > { %v9481_v29 = vpop.f32.mrb[86].mxu1 }
 0xc87   : > { %20152 = vmatmul.mubr.msk.f32.gmra.mrb[220].mxu1 %vm4706_vm2, %v9481_v29  ;;  %v9483_v40 = vpop.f32.mrb[87].mxu1 }
 0xc8a   : > { %v9486_v50 = vpop.f32.mrb[88].mxu1 }
 0xc8b   : > { %v9488_v0 = vpop.f32.mrb[89].mxu1  ;;  %20154 = vmatprep.mubr.msk.f32.mxu1 %vm4706_vm2, %v9486_v50 }
 0xc8e   : > { %v9491_v38 = vpop.f32.mrb[90].mxu1 }
 0xc8f   : > { %20155 = vmatmul.mubr.msk.f32.gmra.mrb[222].mxu1 %vm4706_vm2, %v9491_v38  ;;  %v9493_v2 = vpop.f32.mrb[91].mxu1 }
 0xc92   : > { %v9496_v30 = vpop.f32.mrb[92].mxu1 }
 0xc93   : > { %v9498_v58 = vpop.f32.mrb[93].mxu1  ;;  %20157 = vmatprep.mubr.msk.f32.mxu1 %vm4706_vm2, %v9496_v30 }
 0xc96   : > { %v9501_v44 = vpop.f32.mrb[94].mxu1 }
 0xc97   : > { %20158 = vmatmul.mubr.msk.f32.gmra.mrb[224].mxu1 %vm4706_vm2, %v9501_v44  ;;  %v9503_v12 = vpop.f32.mrb[95].mxu1 }
 0xc9a   : > { %v9506_v11 = vpop.f32.mrb[96].mxu1 }
 0xc9b   : > { %v9508_v35 = vpop.f32.mrb[97].mxu1  ;;  %20160 = vmatprep.mubr.msk.f32.mxu1 %vm4706_vm2, %v9506_v11 }
 0xc9e   : > { %v9511_v57 = vpop.f32.mrb[98].mxu1 }
 0xc9f   : > { %20161 = vmatmul.mubr.msk.f32.gmra.mrb[226].mxu1 %vm4706_vm2, %v9511_v57  ;;  %v9513_v49 = vpop.f32.mrb[99].mxu1 }
 0xcfa   : > { %v20117_v59 = vpop.f32.mrb[196].mxu1 }
 0xcfb   : > { %v9879_v22 = vadd.f32 %v20117_v59, %v25993_v21  ;;  %v9680_v8 = vpop.f32.mrb[197].mxu1 }
 0xcfc   : > { %v9878_v37 = vadd.f32 %v25993_v21, %v9680_v8 }
 0xcfe   : > { %v25997_v42 = vpack.c.bf16 %v9879_v22, %v9878_v37 }
 0xd02   : > { %v20120_v10 = vpop.f32.mrb[198].mxu1 }
 0xd03   : > { %v9881_v43 = vadd.f32 %v20120_v10, %v25993_v21  ;;  %v9690_v24 = vpop.f32.mrb[199].mxu1 }
 0xd04   : > { %v9880_v41 = vadd.f32 %v25993_v21, %v9690_v24 }
 0xd06   : > { %v26001_v45 = vpack.c.bf16 %v9881_v43, %v9880_v41 }
 0xd0a   : > { %v20123_v15 = vpop.f32.mrb[200].mxu1 }
 0xd0b   : > { %v9883_v4 = vadd.f32 %v20123_v15, %v25993_v21  ;;  %v9700_v32 = vpop.f32.mrb[201].mxu1 }
 0xd0c   : > { %v9882_v7 = vadd.f32 %v25993_v21, %v9700_v32 }
 0xd0e   : > { %v26005_v25 = vpack.c.bf16 %v9883_v4, %v9882_v7 }
 0xd12   : > { %v20126_v51 = vpop.f32.mrb[202].mxu1 }
 0xd13   : > { %v9885_v31 = vadd.f32 %v20126_v51, %v25993_v21  ;;  %v9710_v26 = vpop.f32.mrb[203].mxu1 }
 0xd14   : > { %v9884_v33 = vadd.f32 %v25993_v21, %v9710_v26 }
 0xd16   : > { %v26009_v36 = vpack.c.bf16 %v9885_v31, %v9884_v33 }
 0xd1a   : > { %v20129_v13 = vpop.f32.mrb[204].mxu1 }
 0xd1b   : > { %v9887_v14 = vadd.f32 %v20129_v13, %v25993_v21  ;;  %v9720_v47 = vpop.f32.mrb[205].mxu1 }
 0xd1c   : > { %v9886_v53 = vadd.f32 %v25993_v21, %v9720_v47  ;;  %v9910_v47 = vld [vmem:[#allocation15] sm:$0xff] }
 0xd1e   : > { %v26013_v27 = vpack.c.bf16 %v9887_v14, %v9886_v53  ;;  %v9913_v53 = vld [vmem:[#allocation15 + $0x18] sm:$0xff] }
 0xd22   : > { %v20132_v46 = vpop.f32.mrb[206].mxu1 }
 0xd23   : > { %v9889_v1 = vadd.f32 %v20132_v46, %v25993_v21  ;;  %v9730_v9 = vpop.f32.mrb[207].mxu1  ;;  %v9912_v46 = vld [vmem:[#allocation15 + $0x10] sm:$0xff] }
 0xd24   : > { %v9888_v39 = vadd.f32 %v25993_v21, %v9730_v9  ;;  %v9917_v9 = vld [vmem:[#allocation15 + $0x38] sm:$0xff] }
 0xd26   : > { %v26017_v5 = vpack.c.bf16 %v9889_v1, %v9888_v39  ;;  %v9915_v1 = vld [vmem:[#allocation15 + $0x28] sm:$0xff]  ;;  %v9916_v39 = vld [vmem:[#allocation15 + $0x30] sm:$0xff] }
 0xd2a   : > { %v20135_v61 = vpop.f32.mrb[208].mxu1 }
 0xd2b   : > { %v9891_v52 = vadd.f32 %v20135_v61, %v25993_v21  ;;  %v9740_v28 = vpop.f32.mrb[209].mxu1  ;;  %v9919_v61 = vld [vmem:[#allocation15 + $0x48] sm:$0xff] }
 0xd2c   : > { %v9890_v62 = vadd.f32 %v25993_v21, %v9740_v28  ;;  %v9921_v28 = vld [vmem:[#allocation15 + $0x58] sm:$0xff] }
 0xd2e   : > { %v26021_v60 = vpack.c.bf16 %v9891_v52, %v9890_v62  ;;  %v9918_v52 = vld [vmem:[#allocation15 + $0x40] sm:$0xff]  ;;  %v9920_v62 = vld [vmem:[#allocation15 + $0x50] sm:$0xff] }
 0xd32   : > { %v20138_v54 = vpop.f32.mrb[210].mxu1 }
 0xd33   : > { %v9893_v34 = vadd.f32 %v20138_v54, %v25993_v21  ;;  %v9750_v20 = vpop.f32.mrb[211].mxu1  ;;  %v9923_v54 = vld [vmem:[#allocation15 + $0x68] sm:$0xff] }
 0xd34   : > { %v9892_v17 = vadd.f32 %v25993_v21, %v9750_v20  ;;  %v9925_v20 = vld [vmem:[#allocation15 + $0x78] sm:$0xff] }
 0xd36   : > { %v26025_v63 = vpack.c.bf16 %v9893_v34, %v9892_v17  ;;  %v9922_v34 = vld [vmem:[#allocation15 + $0x60] sm:$0xff]  ;;  %v9924_v17 = vld [vmem:[#allocation15 + $0x70] sm:$0xff] }
 0xd3a   : > { %v20141_v6 = vpop.f32.mrb[212].mxu1 }
 0xd3b   : > { %v9895_v3 = vadd.f32 %v20141_v6, %v25993_v21  ;;  %v9760_v56 = vpop.f32.mrb[213].mxu1  ;;  %v10033_v6 = vld [vmem:[#allocation15 + $0x88] sm:$0xff] }
 0xd3c   : > { %v9894_v48 = vadd.f32 %v25993_v21, %v9760_v56  ;;  %v10035_v56 = vld [vmem:[#allocation15 + $0x98] sm:$0xff] }
 0xd3e   : > { %v26029_v18 = vpack.c.bf16 %v9895_v3, %v9894_v48  ;;  %v10032_v3 = vld [vmem:[#allocation15 + $0x80] sm:$0xff]  ;;  %v10034_v48 = vld [vmem:[#allocation15 + $0x90] sm:$0xff] }
 0xd40   : > { %21616 = vmatprep.subr.bf16.mxu0 %v26029_v18 }
 0xd41   : > { %21618 = vmatpush3.bf16.msra.mxu0 %v25997_v42 }
 0xd42   : > { %v20144_v55 = vpop.f32.mrb[214].mxu1 }
 0xd43   : > { %v9897_v19 = vadd.f32 %v20144_v55, %v25993_v21  ;;  %v9770_v29 = vpop.f32.mrb[215].mxu1  ;;  %v10037_v55 = vld [vmem:[#allocation15 + $0xa8] sm:$0xff] }
 0xd44   : > { %v9896_v40 = vadd.f32 %v25993_v21, %v9770_v29  ;;  %v10039_v29 = vld [vmem:[#allocation15 + $0xb8] sm:$0xff] }
 0xd46   : > { %v26035_v50 = vpack.c.bf16 %v9897_v19, %v9896_v40  ;;  %v10036_v19 = vld [vmem:[#allocation15 + $0xa0] sm:$0xff]  ;;  %v10038_v40 = vld [vmem:[#allocation15 + $0xb0] sm:$0xff] }
 0xd48   : > { %21620 = vmatprep.subr.bf16.mxu0 %v26035_v50 }
 0xd49   : > { %21622 = vmatpush3.bf16.msra.mxu0 %v26001_v45 }
 0xd4a   : > { %v20147_v0 = vpop.f32.mrb[216].mxu1 }
 0xd4b   : > { %v9899_v38 = vadd.f32 %v20147_v0, %v25993_v21  ;;  %v9780_v2 = vpop.f32.mrb[217].mxu1  ;;  %v10041_v0 = vld [vmem:[#allocation15 + $0xc8] sm:$0xff] }
 0xd4c   : > { %v9898_v30 = vadd.f32 %v25993_v21, %v9780_v2  ;;  %v10043_v2 = vld [vmem:[#allocation15 + $0xd8] sm:$0xff] }
 0xd4e   : > { %v26041_v58 = vpack.c.bf16 %v9899_v38, %v9898_v30  ;;  %v10040_v38 = vld [vmem:[#allocation15 + $0xc0] sm:$0xff]  ;;  %v10042_v30 = vld [vmem:[#allocation15 + $0xd0] sm:$0xff] }
 0xd50   : > { %21624 = vmatprep.subr.bf16.mxu0 %v26041_v58 }
 0xd51   : > { %21626 = vmatpush3.bf16.msra.mxu0 %v26005_v25 }
 0xd52   : > { %v20150_v44 = vpop.f32.mrb[218].mxu1 }
 0xd53   : > { %v9901_v12 = vadd.f32 %v20150_v44, %v25993_v21  ;;  %v9790_v11 = vpop.f32.mrb[219].mxu1  ;;  %v10045_v44 = vld [vmem:[#allocation15 + $0xe8] sm:$0xff] }
 0xd54   : > { %v9900_v35 = vadd.f32 %v25993_v21, %v9790_v11  ;;  %v10047_v11 = vld [vmem:[#allocation15 + $0xf8] sm:$0xff] }
 0xd56   : > { %v26047_v57 = vpack.c.bf16 %v9901_v12, %v9900_v35  ;;  %v10044_v12 = vld [vmem:[#allocation15 + $0xe0] sm:$0xff]  ;;  %v10046_v35 = vld [vmem:[#allocation15 + $0xf0] sm:$0xff] }
 0xd58   : > { %21628 = vmatprep.subr.bf16.mxu0 %v26047_v57 }
 0xd59   : > { %21630 = vmatpush3.bf16.msra.mxu0 %v26009_v36 }
 0xd5a   : > { %v20153_v49 = vpop.f32.mrb[220].mxu1 }
 0xd5b   : > { %v9903_v59 = vadd.f32 %v20153_v49, %v25993_v21  ;;  %v9800_v16 = vpop.f32.mrb[221].mxu1  ;;  %v10155_v49 = vld [vmem:[#allocation15 + $0x108] sm:$0xff] }
 0xd5c   : > { %v9902_v22 = vadd.f32 %v25993_v21, %v9800_v16  ;;  %v10157_v16 = vld [vmem:[#allocation15 + $0x118] sm:$0xff] }
 0xd5e   : > { %v26053_v8 = vpack.c.bf16 %v9903_v59, %v9902_v22  ;;  %v10154_v59 = vld [vmem:[#allocation15 + $0x100] sm:$0xff]  ;;  %v10156_v22 = vld [vmem:[#allocation15 + $0x110] sm:$0xff] }
 0xd60   : > { %21632 = vmatprep.subr.bf16.mxu0 %v26053_v8 }
 0xd61   : > { %21634 = vmatpush3.bf16.msra.mxu0 %v26013_v27 }
 0xd62   : > { %v20156_v37 = vpop.f32.mrb[222].mxu1 }
 0xd63   : > { %v9905_v10 = vadd.f32 %v20156_v37, %v25993_v21  ;;  %v9810_v43 = vpop.f32.mrb[223].mxu1  ;;  %v10159_v37 = vld [vmem:[#allocation15 + $0x128] sm:$0xff] }
 0xd64   : > { %v9904_v24 = vadd.f32 %v25993_v21, %v9810_v43  ;;  %v10161_v43 = vld [vmem:[#allocation15 + $0x138] sm:$0xff] }
 0xd66   : > { %v26059_v41 = vpack.c.bf16 %v9905_v10, %v9904_v24  ;;  %v10158_v10 = vld [vmem:[#allocation15 + $0x120] sm:$0xff] }
 0xd67   : > { %v10276_v24 = vld [vmem:[#allocation15 + $0x180] sm:$0xff] }
 0xd68   : > { %21636 = vmatprep.subr.bf16.mxu0 %v26059_v41 }
 0xd69   : > { %21638 = vmatpush3.bf16.msra.mxu0 %v26017_v5 }
 0xd6a   : > { %v20159_v15 = vpop.f32.mrb[224].mxu1 }
 0xd6b   : > { %v9907_v4 = vadd.f32 %v20159_v15, %v25993_v21  ;;  %v9820_v32 = vpop.f32.mrb[225].mxu1  ;;  %v10281_v15 = vld [vmem:[#allocation15 + $0x1a8] sm:$0xff] }
 0xd6c   : > { %v9906_v7 = vadd.f32 %v25993_v21, %v9820_v32  ;;  %v10283_v32 = vld [vmem:[#allocation15 + $0x1b8] sm:$0xff] }
 0xd6e   : > { %v26065_v51 = vpack.c.bf16 %v9907_v4, %v9906_v7  ;;  %v10280_v4 = vld [vmem:[#allocation15 + $0x1a0] sm:$0xff]  ;;  %v10285_v7 = vld [vmem:[#allocation15 + $0x1c8] sm:$0xff] }
 0xd70   : > { %21640 = vmatprep.subr.bf16.mxu0 %v26065_v51 }
 0xd71   : > { %21642 = vmatpush3.bf16.msra.mxu0 %v26021_v60 }
 0xd72   : > { %v20162_v31 = vpop.f32.mrb[226].mxu1 }
 0xd73   : > { %v9909_v26 = vadd.f32 %v20162_v31, %v25993_v21  ;;  %v9830_v33 = vpop.f32.mrb[227].mxu1  ;;  %v10287_v31 = vld [vmem:[#allocation15 + $0x1d8] sm:$0xff] }
 0xd74   : > { %v9908_v13 = vadd.f32 %v25993_v21, %v9830_v33  ;;  %v9914_v21 = vld [vmem:[#allocation15 + $0x20] sm:$0xff] }
 0xd75   : > { %v10288_v33 = vld [vmem:[#allocation15 + $0x1e0] sm:$0xff] }
 0xd76   : > { %v26071_v14 = vpack.c.bf16 %v9909_v26, %v9908_v13  ;;  %v10289_v26 = vld [vmem:[#allocation15 + $0x1e8] sm:$0xff]  ;;  %v10291_v13 = vld [vmem:[#allocation15 + $0x1f8] sm:$0xff] }
 0xd78   : > { %21644 = vmatprep.subr.bf16.mxu0 %v26071_v14 }
 0xd79   : > { %21646 = vmatpush3.bf16.msra.mxu0 %v26025_v63 }
 0xd7a   : > { %21648 = vmatprep.subr.bf16.mxu0 %v26029_v18 }
 0xd7c   : > { %9991 = vmatmul.mubr.f32.vlgmr.msra.gmra.mrb[226].mxu0 %v9910_v47 }
 0xd7d   : > { %21650 = vmatpush3.bf16.msra.mxu0 %v25997_v42  ;;  %9995 = vmatprep.mubr.f32.mxu0 %v9913_v53 }
 0xd7e   : > { %21652 = vmatprep.subr.bf16.mxu0 %v26035_v50 }
 0xd80   : > { %9996 = vmatmul.mubr.f32.gmra.mrb[228].mxu0 %v9912_v46 }
 0xd81   : > { %21654 = vmatpush3.bf16.msra.mxu0 %v26001_v45  ;;  %10000 = vmatprep.mubr.f32.mxu0 %v9915_v1 }
 0xd82   : > { %21656 = vmatprep.subr.bf16.mxu0 %v26041_v58 }
 0xd84   : > { %10001 = vmatmul.mubr.f32.gmra.mrb[230].mxu0 %v9914_v21 }
 0xd85   : > { %21658 = vmatpush3.bf16.msra.mxu0 %v26005_v25  ;;  %10005 = vmatprep.mubr.f32.mxu0 %v9917_v9 }
 0xd86   : > { %21660 = vmatprep.subr.bf16.mxu0 %v26047_v57 }
 0xd88   : > { %10006 = vmatmul.mubr.f32.gmra.mrb[232].mxu0 %v9916_v39 }
 0xd89   : > { %21662 = vmatpush3.bf16.msra.mxu0 %v26009_v36  ;;  %10010 = vmatprep.mubr.f32.mxu0 %v9919_v61  ;;  %v10562_v61 = vld [vmem:[#allocation16 + $0x40] sm:$0xff] }
 0xd8a   : > { %21664 = vmatprep.subr.bf16.mxu0 %v26053_v8  ;;  %20207 = vmatprep.mubr.msk.f32.mxu1 %vm10429_vm3, %v10562_v61 }
 0xd8c   : > { %10011 = vmatmul.mubr.f32.gmra.mrb[234].mxu0 %v9918_v52 }
 0xd8d   : > { %21666 = vmatpush3.bf16.msra.mxu0 %v26013_v27  ;;  %10015 = vmatprep.mubr.f32.mxu0 %v9921_v28 }
 0xd8e   : > { %21668 = vmatprep.subr.bf16.mxu0 %v26059_v41 }
 0xd90   : > { %10016 = vmatmul.mubr.f32.gmra.mrb[236].mxu0 %v9920_v62 }
 0xd91   : > { %21670 = vmatpush3.bf16.msra.mxu0 %v26017_v5  ;;  %10020 = vmatprep.mubr.f32.mxu0 %v9923_v54 }
 0xd92   : > { %21672 = vmatprep.subr.bf16.mxu0 %v26065_v51 }
 0xd94   : > { %10021 = vmatmul.mubr.f32.gmra.mrb[238].mxu0 %v9922_v34 }
 0xd95   : > { %21674 = vmatpush3.bf16.msra.mxu0 %v26021_v60  ;;  %10025 = vmatprep.mubr.f32.mxu0 %v9925_v20 }
 0xd96   : > { %21676 = vmatprep.subr.bf16.mxu0 %v26071_v14 }
 0xd98   : > { %10026 = vmatmul.mubr.f32.gmra.mrb[240].mxu0 %v9924_v17 }
 0xd99   : > { %21678 = vmatpush3.bf16.msra.mxu0 %v26025_v63  ;;  %10112 = vmatprep.mubr.f32.mxu0 %v10033_v6 }
 0xd9a   : > { %21680 = vmatprep.subr.bf16.mxu0 %v26029_v18 }
 0xd9c   : > { %10113 = vmatmul.mubr.f32.vlgmr.msra.gmra.mrb[242].mxu0 %v10032_v3 }
 0xd9d   : > { %21682 = vmatpush3.bf16.msra.mxu0 %v25997_v42  ;;  %10117 = vmatprep.mubr.f32.mxu0 %v10035_v56 }
 0xd9e   : > { %21684 = vmatprep.subr.bf16.mxu0 %v26035_v50 }
 0xda0   : > { %10118 = vmatmul.mubr.f32.gmra.mrb[244].mxu0 %v10034_v48 }
 0xda1   : > { %21686 = vmatpush3.bf16.msra.mxu0 %v26001_v45  ;;  %10122 = vmatprep.mubr.f32.mxu0 %v10037_v55 }
 0xda2   : > { %21688 = vmatprep.subr.bf16.mxu0 %v26041_v58 }
 0xda4   : > { %10123 = vmatmul.mubr.f32.gmra.mrb[246].mxu0 %v10036_v19  ;;  %v10421_v19 = vld [vmem:[#allocation16] sm:$0xff] }
 0xda5   : > { %21690 = vmatpush3.bf16.msra.mxu0 %v26005_v25  ;;  %10127 = vmatprep.mubr.f32.mxu0 %v10039_v29 }
 0xda6   : > { %21692 = vmatprep.subr.bf16.mxu0 %v26047_v57 }
 0xda8   : > { %10128 = vmatmul.mubr.f32.gmra.mrb[248].mxu0 %v10038_v40 }
 0xda9   : > { %21694 = vmatpush3.bf16.msra.mxu0 %v26009_v36  ;;  %10132 = vmatprep.mubr.f32.mxu0 %v10041_v0 }
 0xdaa   : > { %21696 = vmatprep.subr.bf16.mxu0 %v26053_v8 }
 0xdac   : > { %10133 = vmatmul.mubr.f32.gmra.mrb[250].mxu0 %v10040_v38 }
 0xdad   : > { %21698 = vmatpush3.bf16.msra.mxu0 %v26013_v27  ;;  %10137 = vmatprep.mubr.f32.mxu0 %v10043_v2 }
 0xdae   : > { %21700 = vmatprep.subr.bf16.mxu0 %v26059_v41 }
 0xdb0   : > { %10138 = vmatmul.mubr.f32.gmra.mrb[252].mxu0 %v10042_v30 }
 0xdb1   : > { %21702 = vmatpush3.bf16.msra.mxu0 %v26017_v5  ;;  %10142 = vmatprep.mubr.f32.mxu0 %v10045_v44 }
 0xdb2   : > { %21704 = vmatprep.subr.bf16.mxu0 %v26065_v51 }
 0xdb4   : > { %10143 = vmatmul.mubr.f32.gmra.mrb[254].mxu0 %v10044_v12 }
 0xdb5   : > { %21706 = vmatpush3.bf16.msra.mxu0 %v26021_v60  ;;  %10147 = vmatprep.mubr.f32.mxu0 %v10047_v11 }
 0xdb6   : > { %21708 = vmatprep.subr.bf16.mxu0 %v26071_v14 }
 0xdb8   : > { %10148 = vmatmul.mubr.f32.gmra.mrb[0].mxu0 %v10046_v35 }
 0xdb9   : > { %21710 = vmatpush3.bf16.msra.mxu0 %v26025_v63  ;;  %10234 = vmatprep.mubr.f32.mxu0 %v10155_v49 }
 0xdba   : > { %21712 = vmatprep.subr.bf16.mxu0 %v26029_v18  ;;  %v10160_v18 = vld [vmem:[#allocation15 + $0x130] sm:$0xff] }
 0xdbc   : > { %10235 = vmatmul.mubr.f32.vlgmr.msra.gmra.mrb[2].mxu0 %v10154_v59 }
 0xdbd   : > { %21714 = vmatpush3.bf16.msra.mxu0 %v25997_v42  ;;  %10239 = vmatprep.mubr.f32.mxu0 %v10157_v16  ;;  %v10163_v42 = vld [vmem:[#allocation15 + $0x148] sm:$0xff] }
 0xdbe   : > { %21716 = vmatprep.subr.bf16.mxu0 %v26035_v50  ;;  %v10162_v50 = vld [vmem:[#allocation15 + $0x140] sm:$0xff] }
 0xdc0   : > { %10240 = vmatmul.mubr.f32.gmra.mrb[4].mxu0 %v10156_v22 }
 0xdc1   : > { %21718 = vmatpush3.bf16.msra.mxu0 %v26001_v45  ;;  %10244 = vmatprep.mubr.f32.mxu0 %v10159_v37  ;;  %v10165_v45 = vld [vmem:[#allocation15 + $0x158] sm:$0xff] }
 0xdc2   : > { %21720 = vmatprep.subr.bf16.mxu0 %v26041_v58  ;;  %v10164_v58 = vld [vmem:[#allocation15 + $0x150] sm:$0xff] }
 0xdc4   : > { %10245 = vmatmul.mubr.f32.gmra.mrb[6].mxu0 %v10158_v10 }
 0xdc5   : > { %21722 = vmatpush3.bf16.msra.mxu0 %v26005_v25  ;;  %10249 = vmatprep.mubr.f32.mxu0 %v10161_v43  ;;  %v10167_v25 = vld [vmem:[#allocation15 + $0x168] sm:$0xff] }
 0xdc6   : > { %21724 = vmatprep.subr.bf16.mxu0 %v26047_v57  ;;  %v10166_v57 = vld [vmem:[#allocation15 + $0x160] sm:$0xff] }
 0xdc8   : > { %10250 = vmatmul.mubr.f32.gmra.mrb[8].mxu0 %v10160_v18 }
 0xdc9   : > { %21726 = vmatpush3.bf16.msra.mxu0 %v26009_v36  ;;  %10254 = vmatprep.mubr.f32.mxu0 %v10163_v42  ;;  %v10169_v36 = vld [vmem:[#allocation15 + $0x178] sm:$0xff] }
 0xdca   : > { %21728 = vmatprep.subr.bf16.mxu0 %v26053_v8  ;;  %v10168_v8 = vld [vmem:[#allocation15 + $0x170] sm:$0xff] }
 0xdcc   : > { %10255 = vmatmul.mubr.f32.gmra.mrb[10].mxu0 %v10162_v50 }
 0xdcd   : > { %21730 = vmatpush3.bf16.msra.mxu0 %v26013_v27  ;;  %10259 = vmatprep.mubr.f32.mxu0 %v10165_v45  ;;  %v10277_v27 = vld [vmem:[#allocation15 + $0x188] sm:$0xff] }
 0xdce   : > { %21732 = vmatprep.subr.bf16.mxu0 %v26059_v41  ;;  %v10279_v41 = vld [vmem:[#allocation15 + $0x198] sm:$0xff] }
 0xdd0   : > { %10260 = vmatmul.mubr.f32.gmra.mrb[12].mxu0 %v10164_v58 }
 0xdd1   : > { %21734 = vmatpush3.bf16.msra.mxu0 %v26017_v5  ;;  %10264 = vmatprep.mubr.f32.mxu0 %v10167_v25  ;;  %v10278_v5 = vld [vmem:[#allocation15 + $0x190] sm:$0xff] }
 0xdd2   : > { %21736 = vmatprep.subr.bf16.mxu0 %v26065_v51  ;;  %v10284_v51 = vld [vmem:[#allocation15 + $0x1c0] sm:$0xff] }
 0xdd4   : > { %10265 = vmatmul.mubr.f32.gmra.mrb[14].mxu0 %v10166_v57 }
 0xdd5   : > { %21738 = vmatpush3.bf16.msra.mxu0 %v26021_v60  ;;  %10269 = vmatprep.mubr.f32.mxu0 %v10169_v36  ;;  %v10282_v60 = vld [vmem:[#allocation15 + $0x1b0] sm:$0xff] }
 0xdd6   : > { %21740 = vmatprep.subr.bf16.mxu0 %v26071_v14  ;;  %v10290_v14 = vld [vmem:[#allocation15 + $0x1f0] sm:$0xff] }
 0xdd8   : > { %10270 = vmatmul.mubr.f32.gmra.mrb[16].mxu0 %v10168_v8 }
 0xdd9   : > { %21742 = vmatpush3.bf16.msra.mxu0 %v26025_v63  ;;  %10356 = vmatprep.mubr.f32.mxu0 %v10277_v27  ;;  %v10286_v63 = vld [vmem:[#allocation15 + $0x1d0] sm:$0xff] }
 0xddc   : > { %10357 = vmatmul.mubr.f32.vlgmr.msra.gmra.mrb[18].mxu0 %v10276_v24 }
 0xddd   : > { %10361 = vmatprep.mubr.f32.mxu0 %v10279_v41 }
 0xde0   : > { %10362 = vmatmul.mubr.f32.gmra.mrb[20].mxu0 %v10278_v5 }
 0xde1   : > { %10366 = vmatprep.mubr.f32.mxu0 %v10281_v15 }
 0xde4   : > { %10367 = vmatmul.mubr.f32.gmra.mrb[22].mxu0 %v10280_v4 }
 0xde5   : > { %10371 = vmatprep.mubr.f32.mxu0 %v10283_v32 }
 0xde8   : > { %10372 = vmatmul.mubr.f32.gmra.mrb[24].mxu0 %v10282_v60 }
 0xde9   : > { %10376 = vmatprep.mubr.f32.mxu0 %v10285_v7 }
 0xdec   : > { %10377 = vmatmul.mubr.f32.gmra.mrb[26].mxu0 %v10284_v51 }
 0xded   : > { %10381 = vmatprep.mubr.f32.mxu0 %v10287_v31 }
 0xdf0   : > { %10382 = vmatmul.mubr.f32.gmra.mrb[28].mxu0 %v10286_v63 }
 0xdf1   : > { %10386 = vmatprep.mubr.f32.mxu0 %v10289_v26 }
 0xdf4   : > { %10387 = vmatmul.mubr.f32.gmra.mrb[30].mxu0 %v10288_v33 }
 0xdf5   : > { %10391 = vmatprep.mubr.f32.mxu0 %v10291_v13 }
 0xdf8   : > { %10392 = vmatmul.mubr.f32.gmra.mrb[32].mxu0 %v10290_v14 }
 0xdf9   : > { %20179 = vmatprep.mubr.msk.f32.mxu0 %vm10429_vm3, %v10421_v19 }
 0xe4f   : > { %v18780_v47 = vpop.f32.mrb[226].mxu0 }
 0xe50   : > { %v18781_v53 = vpop.f32.mrb[227].mxu0 }
 0xe51   : > { %v26123_v46 = vadd.f32 %v18781_v53, %v18780_v47 }
 0xe53   : > { %v18783_v1 = vpop.f32.mrb[228].mxu0 }
 0xe54   : > { %v18784_v21 = vpop.f32.mrb[229].mxu0 }
 0xe55   : > { %v26125_v9 = vadd.f32 %v18784_v21, %v18783_v1 }
 0xe57   : > { %v18786_v39 = vpop.f32.mrb[230].mxu0 }
 0xe58   : > { %v18787_v52 = vpop.f32.mrb[231].mxu0 }
 0xe59   : > { %v26128_v28 = vadd.f32 %v18787_v52, %v18786_v39 }
 0xe5b   : > { %v18789_v62 = vpop.f32.mrb[232].mxu0 }
 0xe5c   : > { %v18790_v54 = vpop.f32.mrb[233].mxu0 }
 0xe5d   : > { %v26130_v34 = vadd.f32 %v18790_v54, %v18789_v62 }
 0xe5f   : > { %v18792_v20 = vpop.f32.mrb[234].mxu0 }
 0xe60   : > { %v18793_v17 = vpop.f32.mrb[235].mxu0 }
 0xe61   : > { %v26132_v6 = vadd.f32 %v18793_v17, %v18792_v20 }
 0xe63   : > { %v18795_v3 = vpop.f32.mrb[236].mxu0 }
 0xe64   : > { %v18796_v56 = vpop.f32.mrb[237].mxu0 }
 0xe65   : > { %v26134_v48 = vadd.f32 %v18796_v56, %v18795_v3 }
 0xe67   : > { %v18798_v55 = vpop.f32.mrb[238].mxu0 }
 0xe68   : > { %v18799_v29 = vpop.f32.mrb[239].mxu0 }
 0xe69   : > { %v26137_v40 = vadd.f32 %v18799_v29, %v18798_v55 }
 0xe6b   : > { %v18801_v0 = vpop.f32.mrb[240].mxu0 }
 0xe6c   : > { %v18802_v38 = vpop.f32.mrb[241].mxu0 }
 0xe6d   : > { %v26139_v2 = vadd.f32 %v18802_v38, %v18801_v0 }
 0xe6f   : > { %v18836_v30 = vpop.f32.mrb[242].mxu0 }
 0xe70   : > { %v18837_v44 = vpop.f32.mrb[243].mxu0 }
 0xe71   : > { %v18838_v12 = vadd.f32 %v18837_v44, %v18836_v30 }
 0xe73   : > { %v10397_v11 = vmax.f32 %v26123_v46, %v18838_v12  ;;  %v18839_v35 = vpop.f32.mrb[244].mxu0 }
 0xe74   : > { %v18840_v49 = vpop.f32.mrb[245].mxu0 }
 0xe75   : > { %v18841_v59 = vadd.f32 %v18840_v49, %v18839_v35 }
 0xe77   : > { %v10398_v16 = vmax.f32 %v26125_v9, %v18841_v59  ;;  %v18842_v22 = vpop.f32.mrb[246].mxu0 }
 0xe78   : > { %v18843_v37 = vpop.f32.mrb[247].mxu0 }
 0xe79   : > { %v26143_v10 = vadd.f32 %v18843_v37, %v18842_v22 }
 0xe7b   : > { %v10399_v43 = vmax.f32 %v26128_v28, %v26143_v10  ;;  %v18845_v18 = vpop.f32.mrb[248].mxu0 }
 0xe7c   : > { %v18846_v42 = vpop.f32.mrb[249].mxu0 }
 0xe7d   : > { %v26147_v50 = vadd.f32 %v18846_v42, %v18845_v18 }
 0xe7f   : > { %v10400_v45 = vmax.f32 %v26130_v34, %v26147_v50  ;;  %v18848_v58 = vpop.f32.mrb[250].mxu0 }
 0xe80   : > { %v18849_v25 = vpop.f32.mrb[251].mxu0 }
 0xe81   : > { %v26151_v57 = vadd.f32 %v18849_v25, %v18848_v58 }
 0xe83   : > { %v10401_v36 = vmax.f32 %v26132_v6, %v26151_v57  ;;  %v18851_v8 = vpop.f32.mrb[252].mxu0 }
 0xe84   : > { %v18852_v27 = vpop.f32.mrb[253].mxu0 }
 0xe85   : > { %v26155_v24 = vadd.f32 %v18852_v27, %v18851_v8 }
 0xe87   : > { %v10402_v41 = vmax.f32 %v26134_v48, %v26155_v24  ;;  %v18854_v5 = vpop.f32.mrb[254].mxu0 }
 0xe88   : > { %v18855_v15 = vpop.f32.mrb[255].mxu0 }
 0xe89   : > { %v26159_v4 = vadd.f32 %v18855_v15, %v18854_v5 }
 0xe8b   : > { %v10403_v32 = vmax.f32 %v26137_v40, %v26159_v4  ;;  %v18857_v60 = vpop.f32.mrb[0].mxu0  ;;  %v10700_v40 = vld [vmem:[#allocation18 + $0x10] sm:$0xff]  ;;  %v10701_v4 = vld [vmem:[#allocation18 + $0x18] sm:$0xff] }
 0xe8c   : > { %v18858_v7 = vpop.f32.mrb[1].mxu0 }
 0xe8d   : > { %v26163_v51 = vadd.f32 %v18858_v7, %v18857_v60 }
 0xe8f   : > { %v10404_v31 = vmax.f32 %v26139_v2, %v26163_v51  ;;  %v18892_v63 = vpop.f32.mrb[2].mxu0  ;;  %v10423_v2 = vld [vmem:[#allocation16 + $0x10] sm:$0xff]  ;;  %v10565_v51 = vld [vmem:[#allocation16 + $0x58] sm:$0xff] }
 0xe90   : > { %v18893_v26 = vpop.f32.mrb[3].mxu0 }
 0xe91   : > { %v18894_v33 = vadd.f32 %v18893_v26, %v18892_v63 }
 0xe93   : > { %v18895_v13 = vpop.f32.mrb[4].mxu0 }
 0xe94   : > { %v18896_v14 = vpop.f32.mrb[5].mxu0 }
 0xe95   : > { %v18897_v47 = vadd.f32 %v18896_v14, %v18895_v13 }
 0xe97   : > { %v18898_v53 = vpop.f32.mrb[6].mxu0 }
 0xe98   : > { %v18899_v46 = vpop.f32.mrb[7].mxu0 }
 0xe99   : > { %v18900_v1 = vadd.f32 %v18899_v46, %v18898_v53 }
 0xe9b   : > { %v18901_v21 = vpop.f32.mrb[8].mxu0 }
 0xe9c   : > { %v18902_v9 = vpop.f32.mrb[9].mxu0 }
 0xe9d   : > { %v18903_v39 = vadd.f32 %v18902_v9, %v18901_v21 }
 0xe9f   : > { %v18904_v61 = vpop.f32.mrb[10].mxu0 }
 0xea0   : > { %v18905_v52 = vpop.f32.mrb[11].mxu0 }
 0xea1   : > { %v18906_v28 = vadd.f32 %v18905_v52, %v18904_v61  ;;  %v21775_v61 = vpack.c.bf16 %v10701_v4, %v10700_v40  ;;  %v10564_v52 = vld [vmem:[#allocation16 + $0x50] sm:$0xff]  ;;  %v10559_v4 = vld [vmem:[#allocation18] sm:$0xff] }
 0xea2   : > { %v12353_v40 = vld [vmem:[#allocation16 + $0x1d0] sm:$0xff] }
 0xea3   : > { %v18907_v62 = vpop.f32.mrb[12].mxu0 }
 0xea4   : > { %v18908_v54 = vpop.f32.mrb[13].mxu0 }
 0xea5   : > { %v18909_v20 = vadd.f32 %v18908_v54, %v18907_v62  ;;  %v10425_v62 = vld [vmem:[#allocation16 + $0x20] sm:$0xff]  ;;  %v10567_v54 = vld [vmem:[#allocation16 + $0x68] sm:$0xff] }
 0xea7   : > { %v18910_v17 = vpop.f32.mrb[14].mxu0 }
 0xea8   : > { %v18911_v3 = vpop.f32.mrb[15].mxu0 }
 0xea9   : > { %v18912_v56 = vadd.f32 %v18911_v3, %v18910_v17  ;;  %v10568_v17 = vld [vmem:[#allocation16 + $0x70] sm:$0xff] }
 0xeaa   : > { %v10427_v3 = vld [vmem:[#allocation16 + $0x30] sm:$0xff] }
 0xeab   : > { %v18913_v55 = vpop.f32.mrb[16].mxu0 }
 0xeac   : > { %v18914_v19 = vpop.f32.mrb[17].mxu0 }
 0xead   : > { %v18915_v29 = vadd.f32 %v18914_v19, %v18913_v55  ;;  %v10428_v55 = vld [vmem:[#allocation16 + $0x38] sm:$0xff]  ;;  %v10961_v19 = vld [vmem:[#allocation16 + $0x80] sm:$0xff] }
 0xeaf   : > { %v18948_v0 = vpop.f32.mrb[18].mxu0 }
 0xeb0   : > { %v18949_v38 = vpop.f32.mrb[19].mxu0 }
 0xeb1   : > { %v18950_v30 = vadd.f32 %v18949_v38, %v18948_v0  ;;  %v10963_v0 = vld [vmem:[#allocation16 + $0x90] sm:$0xff]  ;;  %v10964_v38 = vld [vmem:[#allocation16 + $0x98] sm:$0xff] }
 0xeb3   : > { %v10405_v44 = vmax.f32 %v18894_v33, %v18950_v30  ;;  %v18951_v12 = vpop.f32.mrb[20].mxu0  ;;  %v10965_v30 = vld [vmem:[#allocation16 + $0xa0] sm:$0xff] }
 0xeb4   : > { %v18952_v35 = vpop.f32.mrb[21].mxu0 }
 0xeb5   : > { %v10413_v49 = vmax.f32 %v10397_v11, %v10405_v44  ;;  %v18953_v59 = vadd.f32 %v18952_v35, %v18951_v12  ;;  %v10966_v44 = vld [vmem:[#allocation16 + $0xa8] sm:$0xff]  ;;  %v10967_v12 = vld [vmem:[#allocation16 + $0xb0] sm:$0xff]  ;;  %v10968_v35 = vld [vmem:[#allocation16 + $0xb8] sm:$0xff] }
 0xeb7   : > { %v10406_v22 = vmax.f32 %v18897_v47, %v18953_v59  ;;  %v18954_v37 = vpop.f32.mrb[22].mxu0  ;;  %v11240_v59 = vld [vmem:[#allocation16 + $0xc8] sm:$0xff] }
 0xeb8   : > { %v18955_v10 = vpop.f32.mrb[23].mxu0 }
 0xeb9   : > { %v10414_v18 = vmax.f32 %v10398_v16, %v10406_v22  ;;  %v18956_v42 = vadd.f32 %v18955_v10, %v18954_v37  ;;  %v11241_v22 = vld [vmem:[#allocation16 + $0xd0] sm:$0xff]  ;;  %v11242_v37 = vld [vmem:[#allocation16 + $0xd8] sm:$0xff]  ;;  %v11243_v10 = vld [vmem:[#allocation16 + $0xe0] sm:$0xff] }
 0xebb   : > { %v26167_v58 = vpack.c.bf16 %v10414_v18, %v10413_v49  ;;  %v10407_v25 = vmax.f32 %v18900_v1, %v18956_v42  ;;  %v18957_v8 = vpop.f32.mrb[24].mxu0  ;;  %v11239_v49 = vld [vmem:[#allocation16 + $0xc0] sm:$0xff]  ;;  %v11244_v18 = vld [vmem:[#allocation16 + $0xe8] sm:$0xff]  ;;  %v11245_v42 = vld [vmem:[#allocation16 + $0xf0] sm:$0xff] }
 0xebc   : > { %v18958_v27 = vpop.f32.mrb[25].mxu0 }
 0xebd   : > { %v10415_v5 = vmax.f32 %v10399_v43, %v10407_v25  ;;  %v18959_v15 = vadd.f32 %v18958_v27, %v18957_v8  ;;  %21744 = vmatprep.subr.bf16.mxu0 %v26167_v58  ;;  %21760 = vmatprep.subr.bf16.mxu1 %v26167_v58  ;;  %v11246_v25 = vld [vmem:[#allocation16 + $0xf8] sm:$0xff]  ;;  %v11517_v8 = vld [vmem:[#allocation16 + $0x100] sm:$0xff]  ;;  %v11518_v27 = vld [vmem:[#allocation16 + $0x108] sm:$0xff] }
 0xebe   : > { %21746 = vmatpush3.bf16.msra.mxu0 %v26167_v58  ;;  %21762 = vmatpush3.bf16.msra.mxu1 %v26167_v58 }
 0xebf   : > { %v10408_v11 = vmax.f32 %v18903_v39, %v18959_v15  ;;  %v18960_v60 = vpop.f32.mrb[26].mxu0  ;;  %v10422_v39 = vld [vmem:[#allocation16 + $0x8] sm:$0xff]  ;;  %v11520_v15 = vld [vmem:[#allocation16 + $0x118] sm:$0xff] }
 0xec0   : > { %v18961_v7 = vpop.f32.mrb[27].mxu0 }
 0xec1   : > { %v10416_v16 = vmax.f32 %v10400_v45, %v10408_v11  ;;  %v18962_v63 = vadd.f32 %v18961_v7, %v18960_v60  ;;  %v11521_v11 = vld [vmem:[#allocation16 + $0x120] sm:$0xff]  ;;  %v11522_v60 = vld [vmem:[#allocation16 + $0x128] sm:$0xff]  ;;  %v11523_v7 = vld [vmem:[#allocation16 + $0x130] sm:$0xff] }
 0xec3   : > { %v26176_v26 = vpack.c.bf16 %v10416_v16, %v10415_v5  ;;  %v10409_v43 = vmax.f32 %v18906_v28, %v18962_v63  ;;  %v18963_v33 = vpop.f32.mrb[28].mxu0  ;;  %v10566_v28 = vld [vmem:[#allocation16 + $0x60] sm:$0xff]  ;;  %v11519_v5 = vld [vmem:[#allocation16 + $0x110] sm:$0xff]  ;;  %v11524_v16 = vld [vmem:[#allocation16 + $0x138] sm:$0xff] }
 0xec4   : > { %v18964_v13 = vpop.f32.mrb[29].mxu0  ;;  %v11795_v63 = vld [vmem:[#allocation16 + $0x140] sm:$0xff] }
 0xec5   : > { %v10417_v14 = vmax.f32 %v10401_v36, %v10409_v43  ;;  %v18965_v47 = vadd.f32 %v18964_v13, %v18963_v33  ;;  %21748 = vmatprep.subr.bf16.mxu0 %v26176_v26  ;;  %21764 = vmatprep.subr.bf16.mxu1 %v26176_v26  ;;  %v11796_v43 = vld [vmem:[#allocation16 + $0x148] sm:$0xff]  ;;  %v11797_v33 = vld [vmem:[#allocation16 + $0x150] sm:$0xff]  ;;  %v11798_v13 = vld [vmem:[#allocation16 + $0x158] sm:$0xff] }
 0xec6   : > { %21750 = vmatpush3.bf16.msra.mxu0 %v26176_v26  ;;  %21766 = vmatpush3.bf16.msra.mxu1 %v26176_v26 }
 0xec7   : > { %v10410_v34 = vmax.f32 %v18909_v20, %v18965_v47  ;;  %v18966_v50 = vpop.f32.mrb[30].mxu0  ;;  %v10426_v20 = vld [vmem:[#allocation16 + $0x28] sm:$0xff] }
 0xec8   : > { %v18967_v45 = vpop.f32.mrb[31].mxu0  ;;  %v11800_v47 = vld [vmem:[#allocation16 + $0x168] sm:$0xff] }
 0xec9   : > { %v10418_v53 = vmax.f32 %v10402_v41, %v10410_v34  ;;  %v18968_v46 = vadd.f32 %v18967_v45, %v18966_v50  ;;  %v11801_v34 = vld [vmem:[#allocation16 + $0x170] sm:$0xff]  ;;  %v11802_v50 = vld [vmem:[#allocation16 + $0x178] sm:$0xff]  ;;  %v12073_v45 = vld [vmem:[#allocation16 + $0x180] sm:$0xff] }
 0xecb   : > { %v26188_v1 = vpack.c.bf16 %v10418_v53, %v10417_v14  ;;  %v10411_v6 = vmax.f32 %v18912_v56, %v18968_v46  ;;  %v18969_v57 = vpop.f32.mrb[32].mxu0  ;;  %v10569_v56 = vld [vmem:[#allocation16 + $0x78] sm:$0xff]  ;;  %v11799_v14 = vld [vmem:[#allocation16 + $0x160] sm:$0xff]  ;;  %v12074_v53 = vld [vmem:[#allocation16 + $0x188] sm:$0xff] }
 0xecc   : > { %v18970_v36 = vpop.f32.mrb[33].mxu0  ;;  %v12075_v46 = vld [vmem:[#allocation16 + $0x190] sm:$0xff] }
 0xecd   : > { %v10419_v21 = vmax.f32 %v10403_v32, %v10411_v6  ;;  %v18971_v9 = vadd.f32 %v18970_v36, %v18969_v57  ;;  %21752 = vmatprep.subr.bf16.mxu0 %v26188_v1  ;;  %21768 = vmatprep.subr.bf16.mxu1 %v26188_v1  ;;  %v10563_v32 = vld [vmem:[#allocation16 + $0x48] sm:$0xff]  ;;  %v12076_v6 = vld [vmem:[#allocation16 + $0x198] sm:$0xff]  ;;  %v12077_v57 = vld [vmem:[#allocation16 + $0x1a0] sm:$0xff] }
 0xece   : > { %21754 = vmatpush3.bf16.msra.mxu0 %v26188_v1  ;;  %21770 = vmatpush3.bf16.msra.mxu1 %v26188_v1  ;;  %v12078_v36 = vld [vmem:[#allocation16 + $0x1a8] sm:$0xff] }
 0xecf   : > { %v10412_v48 = vmax.f32 %v18915_v29, %v18971_v9  ;;  %v10962_v29 = vld [vmem:[#allocation16 + $0x88] sm:$0xff]  ;;  %v12080_v9 = vld [vmem:[#allocation16 + $0x1b8] sm:$0xff] }
 0xed1   : > { %v10420_v24 = vmax.f32 %v10404_v31, %v10412_v48  ;;  %v10424_v31 = vld [vmem:[#allocation16 + $0x18] sm:$0xff]  ;;  %v12351_v48 = vld [vmem:[#allocation16 + $0x1c0] sm:$0xff] }
 0xed3   : > { %v26200_v41 = vpack.c.bf16 %v10420_v24, %v10419_v21  ;;  %v12079_v21 = vld [vmem:[#allocation16 + $0x1b0] sm:$0xff]  ;;  %v12352_v24 = vld [vmem:[#allocation16 + $0x1c8] sm:$0xff] }
 0xed5   : > { %21756 = vmatprep.subr.bf16.mxu0 %v26200_v41  ;;  %21772 = vmatprep.subr.bf16.mxu1 %v26200_v41 }
 0xed6   : > { %21758 = vmatpush3.bf16.msra.mxu0 %v26200_v41  ;;  %21774 = vmatpush3.bf16.msra.mxu1 %v26200_v41 }
 0xed7   : > { %21784 = vmatprep.subr.bf16.mxu1 %v26167_v58  ;;  %21776 = vmatprep.subr.bf16.mxu0 %v21775_v61 }
 0xed9   : > { %20208 = vmatmul.mubr.msk.f32.vlgmr.msra.gmra.mrb[100].mxu1 %vm10429_vm3, %v10563_v32  ;;  %20180 = vmatmul.mubr.msk.f32.vlgmr.msra.gmra.mrb[34].mxu0 %vm10429_vm3, %v10422_v39  ;;  %v10560_v32 = vld [vmem:[#allocation18 + $0x8] sm:$0xff]  ;;  %v12354_v39 = vld [vmem:[#allocation16 + $0x1d8] sm:$0xff] }
 0xeda   : > { %21786 = vmatpush3.bf16.msra.mxu1 %v26167_v58  ;;  %20210 = vmatprep.mubr.msk.f32.mxu1 %vm10429_vm3, %v10564_v52  ;;  %v12355_v52 = vld [vmem:[#allocation16 + $0x1e0] sm:$0xff] }
 0xedb   : > { %21788 = vmatprep.subr.bf16.mxu1 %v26176_v26  ;;  %20182 = vmatprep.mubr.msk.f32.mxu0 %vm10429_vm3, %v10423_v2  ;;  %v12356_v2 = vld [vmem:[#allocation16 + $0x1e8] sm:$0xff] }
 0xedc   : > { %21778 = vmatpush3.bf16.msra.mxu0 %v21775_v61  ;;  %v21779_v61 = vpack.c.bf16 %v10560_v32, %v10559_v4 }
 0xedd   : > { %20211 = vmatmul.mubr.msk.f32.gmra.mrb[102].mxu1 %vm10429_vm3, %v10565_v51  ;;  %20183 = vmatmul.mubr.msk.f32.gmra.mrb[36].mxu0 %vm10429_vm3, %v10424_v31  ;;  %v12357_v51 = vld [vmem:[#allocation16 + $0x1f0] sm:$0xff]  ;;  %v12629_v31 = vld [vmem:[#allocation16 + $0x200] sm:$0xff] }
 0xede   : > { %21790 = vmatpush3.bf16.msra.mxu1 %v26176_v26  ;;  %20213 = vmatprep.mubr.msk.f32.mxu1 %vm10429_vm3, %v10566_v28  ;;  %v12631_v28 = vld [vmem:[#allocation16 + $0x210] sm:$0xff] }
 0xedf   : > { %21792 = vmatprep.subr.bf16.mxu1 %v26188_v1  ;;  %20185 = vmatprep.mubr.msk.f32.mxu0 %vm10429_vm3, %v10425_v62  ;;  %v12632_v62 = vld [vmem:[#allocation16 + $0x218] sm:$0xff] }
 0xee0   : > { %21780 = vmatprep.subr.bf16.mxu0 %v21779_v61 }
 0xee1   : > { %20214 = vmatmul.mubr.msk.f32.gmra.mrb[104].mxu1 %vm10429_vm3, %v10567_v54  ;;  %20186 = vmatmul.mubr.msk.f32.gmra.mrb[38].mxu0 %vm10429_vm3, %v10426_v20  ;;  %v12634_v54 = vld [vmem:[#allocation16 + $0x228] sm:$0xff]  ;;  %v12635_v20 = vld [vmem:[#allocation16 + $0x230] sm:$0xff] }
 0xee2   : > { %21794 = vmatpush3.bf16.msra.mxu1 %v26188_v1  ;;  %20216 = vmatprep.mubr.msk.f32.mxu1 %vm10429_vm3, %v10568_v17  ;;  %v11099_v17 = vld [vmem:[#allocation18 + $0x20] sm:$0xff] }
 0xee3   : > { %21796 = vmatprep.subr.bf16.mxu1 %v26200_v41  ;;  %20188 = vmatprep.mubr.msk.f32.mxu0 %vm10429_vm3, %v10427_v3  ;;  %v11100_v3 = vld [vmem:[#allocation18 + $0x28] sm:$0xff] }
 0xee5   : > { %20217 = vmatmul.mubr.msk.f32.gmra.mrb[106].mxu1 %vm10429_vm3, %v10569_v56  ;;  %20189 = vmatmul.mubr.msk.f32.gmra.mrb[40].mxu0 %vm10429_vm3, %v10428_v55 }
 0xee6   : > { %21798 = vmatpush3.bf16.msra.mxu1 %v26200_v41  ;;  %20267 = vmatprep.mubr.msk.f32.mxu1 %vm10429_vm3, %v10961_v19 }
 0xee7   : > { %21804 = vmatprep.subr.bf16.mxu1 %v26167_v58 }
 0xee9   : > { %20268 = vmatmul.mubr.msk.f32.vlgmr.msra.gmra.mrb[108].mxu1 %vm10429_vm3, %v10962_v29 }
 0xeea   : > { %21806 = vmatpush3.bf16.msra.mxu1 %v26167_v58  ;;  %20270 = vmatprep.mubr.msk.f32.mxu1 %vm10429_vm3, %v10963_v0  ;;  %v21799_v0 = vpack.c.bf16 %v11100_v3, %v11099_v17  ;;  %v12489_v17 = vld [vmem:[#allocation18 + $0x70] sm:$0xff]  ;;  %v12490_v3 = vld [vmem:[#allocation18 + $0x78] sm:$0xff] }
 0xeeb   : > { %21808 = vmatprep.subr.bf16.mxu1 %v26176_v26 }
 0xeed   : > { %20271 = vmatmul.mubr.msk.f32.gmra.mrb[110].mxu1 %vm10429_vm3, %v10964_v38 }
 0xeee   : > { %21810 = vmatpush3.bf16.msra.mxu1 %v26176_v26  ;;  %20273 = vmatprep.mubr.msk.f32.mxu1 %vm10429_vm3, %v10965_v30 }
 0xeef   : > { %21812 = vmatprep.subr.bf16.mxu1 %v26188_v1 }
 0xef1   : > { %20274 = vmatmul.mubr.msk.f32.gmra.mrb[112].mxu1 %vm10429_vm3, %v10966_v44 }
 0xef2   : > { %21814 = vmatpush3.bf16.msra.mxu1 %v26188_v1  ;;  %20276 = vmatprep.mubr.msk.f32.mxu1 %vm10429_vm3, %v10967_v12 }
 0xef3   : > { %21816 = vmatprep.subr.bf16.mxu1 %v26200_v41 }
 0xef5   : > { %20277 = vmatmul.mubr.msk.f32.gmra.mrb[114].mxu1 %vm10429_vm3, %v10968_v35 }
 0xef6   : > { %21818 = vmatpush3.bf16.msra.mxu1 %v26200_v41  ;;  %20311 = vmatprep.mubr.msk.f32.mxu1 %vm10429_vm3, %v11239_v49 }
 0xef7   : > { %21824 = vmatprep.subr.bf16.mxu1 %v26167_v58 }
 0xef9   : > { %20312 = vmatmul.mubr.msk.f32.vlgmr.msra.gmra.mrb[116].mxu1 %vm10429_vm3, %v11240_v59 }
 0xefa   : > { %21826 = vmatpush3.bf16.msra.mxu1 %v26167_v58  ;;  %20314 = vmatprep.mubr.msk.f32.mxu1 %vm10429_vm3, %v11241_v22 }
 0xefb   : > { %21828 = vmatprep.subr.bf16.mxu1 %v26176_v26 }
 0xefd   : > { %20315 = vmatmul.mubr.msk.f32.gmra.mrb[118].mxu1 %vm10429_vm3, %v11242_v37 }
 0xefe   : > { %21830 = vmatpush3.bf16.msra.mxu1 %v26176_v26  ;;  %20317 = vmatprep.mubr.msk.f32.mxu1 %vm10429_vm3, %v11243_v10 }
 0xeff   : > { %21832 = vmatprep.subr.bf16.mxu1 %v26188_v1 }
 0xf01   : > { %20318 = vmatmul.mubr.msk.f32.gmra.mrb[120].mxu1 %vm10429_vm3, %v11244_v18 }
 0xf02   : > { %21834 = vmatpush3.bf16.msra.mxu1 %v26188_v1  ;;  %20320 = vmatprep.mubr.msk.f32.mxu1 %vm10429_vm3, %v11245_v42 }
 0xf03   : > { %21836 = vmatprep.subr.bf16.mxu1 %v26200_v41 }
 0xf05   : > { %20321 = vmatmul.mubr.msk.f32.gmra.mrb[122].mxu1 %vm10429_vm3, %v11246_v25  ;;  %v11377_v25 = vld [vmem:[#allocation18 + $0x30] sm:$0xff] }
 0xf06   : > { %21838 = vmatpush3.bf16.msra.mxu1 %v26200_v41  ;;  %20355 = vmatprep.mubr.msk.f32.mxu1 %vm10429_vm3, %v11517_v8  ;;  %v11378_v8 = vld [vmem:[#allocation18 + $0x38] sm:$0xff] }
 0xf07   : > { %21844 = vmatprep.subr.bf16.mxu1 %v26167_v58 }
 0xf09   : > { %20356 = vmatmul.mubr.msk.f32.vlgmr.msra.gmra.mrb[124].mxu1 %vm10429_vm3, %v11518_v27 }
 0xf0a   : > { %21846 = vmatpush3.bf16.msra.mxu1 %v26167_v58  ;;  %20358 = vmatprep.mubr.msk.f32.mxu1 %vm10429_vm3, %v11519_v5 }
 0xf0b   : > { %21848 = vmatprep.subr.bf16.mxu1 %v26176_v26 }
 0xf0d   : > { %20359 = vmatmul.mubr.msk.f32.gmra.mrb[126].mxu1 %vm10429_vm3, %v11520_v15  ;;  %v21819_v15 = vpack.c.bf16 %v11378_v8, %v11377_v25 }
 0xf0e   : > { %21850 = vmatpush3.bf16.msra.mxu1 %v26176_v26  ;;  %20361 = vmatprep.mubr.msk.f32.mxu1 %vm10429_vm3, %v11521_v11 }
 0xf0f   : > { %21852 = vmatprep.subr.bf16.mxu1 %v26188_v1 }
 0xf11   : > { %20362 = vmatmul.mubr.msk.f32.gmra.mrb[128].mxu1 %vm10429_vm3, %v11522_v60 }
 0xf12   : > { %21854 = vmatpush3.bf16.msra.mxu1 %v26188_v1  ;;  %20364 = vmatprep.mubr.msk.f32.mxu1 %vm10429_vm3, %v11523_v7 }
 0xf13   : > { %21856 = vmatprep.subr.bf16.mxu1 %v26200_v41 }
 0xf15   : > { %20365 = vmatmul.mubr.msk.f32.gmra.mrb[130].mxu1 %vm10429_vm3, %v11524_v16 }
 0xf16   : > { %21858 = vmatpush3.bf16.msra.mxu1 %v26200_v41  ;;  %20399 = vmatprep.mubr.msk.f32.mxu1 %vm10429_vm3, %v11795_v63 }
 0xf17   : > { %21864 = vmatprep.subr.bf16.mxu1 %v26167_v58 }
 0xf19   : > { %20400 = vmatmul.mubr.msk.f32.vlgmr.msra.gmra.mrb[132].mxu1 %vm10429_vm3, %v11796_v43 }
 0xf1a   : > { %21866 = vmatpush3.bf16.msra.mxu1 %v26167_v58  ;;  %20402 = vmatprep.mubr.msk.f32.mxu1 %vm10429_vm3, %v11797_v33  ;;  %v11655_v33 = vld [vmem:[#allocation18 + $0x40] sm:$0xff] }
 0xf1b   : > { %21868 = vmatprep.subr.bf16.mxu1 %v26176_v26 }
 0xf1d   : > { %20403 = vmatmul.mubr.msk.f32.gmra.mrb[134].mxu1 %vm10429_vm3, %v11798_v13  ;;  %v11656_v13 = vld [vmem:[#allocation18 + $0x48] sm:$0xff] }
 0xf1e   : > { %21870 = vmatpush3.bf16.msra.mxu1 %v26176_v26  ;;  %20405 = vmatprep.mubr.msk.f32.mxu1 %vm10429_vm3, %v11799_v14 }
 0xf1f   : > { %21872 = vmatprep.subr.bf16.mxu1 %v26188_v1 }
 0xf21   : > { %20406 = vmatmul.mubr.msk.f32.gmra.mrb[136].mxu1 %vm10429_vm3, %v11800_v47 }
 0xf22   : > { %21874 = vmatpush3.bf16.msra.mxu1 %v26188_v1  ;;  %20408 = vmatprep.mubr.msk.f32.mxu1 %vm10429_vm3, %v11801_v34  ;;  %v21839_v34 = vpack.c.bf16 %v11656_v13, %v11655_v33  ;;  %v12921_v33 = vld [vmem:[#allocation21] sm:$0xff] }
 0xf23   : > { %21876 = vmatprep.subr.bf16.mxu1 %v26200_v41  ;;  %v13089_v13 = vld [vmem:[#allocation21 + $0x20] sm:$0xff] }
 0xf25   : > { %20409 = vmatmul.mubr.msk.f32.gmra.mrb[138].mxu1 %vm10429_vm3, %v11802_v50 }
 0xf26   : > { %21878 = vmatpush3.bf16.msra.mxu1 %v26200_v41  ;;  %20443 = vmatprep.mubr.msk.f32.mxu1 %vm10429_vm3, %v12073_v45 }
 0xf27   : > { %21884 = vmatprep.subr.bf16.mxu1 %v26167_v58 }
 0xf29   : > { %20444 = vmatmul.mubr.msk.f32.vlgmr.msra.gmra.mrb[140].mxu1 %vm10429_vm3, %v12074_v53 }
 0xf2a   : > { %21886 = vmatpush3.bf16.msra.mxu1 %v26167_v58  ;;  %20446 = vmatprep.mubr.msk.f32.mxu1 %vm10429_vm3, %v12075_v46 }
 0xf2b   : > { %21888 = vmatprep.subr.bf16.mxu1 %v26176_v26 }
 0xf2d   : > { %20447 = vmatmul.mubr.msk.f32.gmra.mrb[142].mxu1 %vm10429_vm3, %v12076_v6 }
 0xf2e   : > { %21890 = vmatpush3.bf16.msra.mxu1 %v26176_v26  ;;  %20449 = vmatprep.mubr.msk.f32.mxu1 %vm10429_vm3, %v12077_v57 }
 0xf2f   : > { %21892 = vmatprep.subr.bf16.mxu1 %v26188_v1 }
 0xf31   : > { %20450 = vmatmul.mubr.msk.f32.gmra.mrb[144].mxu1 %vm10429_vm3, %v12078_v36  ;;  %v11933_v36 = vld [vmem:[#allocation18 + $0x50] sm:$0xff] }
 0xf32   : > { %21894 = vmatpush3.bf16.msra.mxu1 %v26188_v1  ;;  %20452 = vmatprep.mubr.msk.f32.mxu1 %vm10429_vm3, %v12079_v21  ;;  %v11934_v21 = vld [vmem:[#allocation18 + $0x58] sm:$0xff] }
 0xf33   : > { %21896 = vmatprep.subr.bf16.mxu1 %v26200_v41 }
 0xf35   : > { %20453 = vmatmul.mubr.msk.f32.gmra.mrb[146].mxu1 %vm10429_vm3, %v12080_v9 }
 0xf36   : > { %21898 = vmatpush3.bf16.msra.mxu1 %v26200_v41  ;;  %20487 = vmatprep.mubr.msk.f32.mxu1 %vm10429_vm3, %v12351_v48 }
 0xf37   : > { %21904 = vmatprep.subr.bf16.mxu1 %v26167_v58 }
 0xf39   : > { %20488 = vmatmul.mubr.msk.f32.vlgmr.msra.gmra.mrb[148].mxu1 %vm10429_vm3, %v12352_v24  ;;  %v21859_v24 = vpack.c.bf16 %v11934_v21, %v11933_v36 }
 0xf3a   : > { %21906 = vmatpush3.bf16.msra.mxu1 %v26167_v58  ;;  %20490 = vmatprep.mubr.msk.f32.mxu1 %vm10429_vm3, %v12353_v40  ;;  %v12358_v58 = vld [vmem:[#allocation16 + $0x1f8] sm:$0xff] }
 0xf3b   : > { %21908 = vmatprep.subr.bf16.mxu1 %v26176_v26 }
 0xf3d   : > { %20491 = vmatmul.mubr.msk.f32.gmra.mrb[150].mxu1 %vm10429_vm3, %v12354_v39 }
 0xf3e   : > { %21910 = vmatpush3.bf16.msra.mxu1 %v26176_v26  ;;  %20493 = vmatprep.mubr.msk.f32.mxu1 %vm10429_vm3, %v12355_v52  ;;  %v12630_v26 = vld [vmem:[#allocation16 + $0x208] sm:$0xff] }
 0xf3f   : > { %21912 = vmatprep.subr.bf16.mxu1 %v26188_v1 }
 0xf41   : > { %20494 = vmatmul.mubr.msk.f32.gmra.mrb[152].mxu1 %vm10429_vm3, %v12356_v2  ;;  %v12211_v2 = vld [vmem:[#allocation18 + $0x60] sm:$0xff] }
 0xf42   : > { %21914 = vmatpush3.bf16.msra.mxu1 %v26188_v1  ;;  %20496 = vmatprep.mubr.msk.f32.mxu1 %vm10429_vm3, %v12357_v51  ;;  %v12633_v1 = vld [vmem:[#allocation16 + $0x220] sm:$0xff]  ;;  %v12212_v51 = vld [vmem:[#allocation18 + $0x68] sm:$0xff] }
 0xf43   : > { %21916 = vmatprep.subr.bf16.mxu1 %v26200_v41 }
 0xf45   : > { %20497 = vmatmul.mubr.msk.f32.gmra.mrb[154].mxu1 %vm10429_vm3, %v12358_v58 }
 0xf46   : > { %21918 = vmatpush3.bf16.msra.mxu1 %v26200_v41  ;;  %20531 = vmatprep.mubr.msk.f32.mxu1 %vm10429_vm3, %v12629_v31  ;;  %v12636_v41 = vld [vmem:[#allocation16 + $0x238] sm:$0xff] }
 0xf49   : > { %20532 = vmatmul.mubr.msk.f32.vlgmr.msra.gmra.mrb[156].mxu1 %vm10429_vm3, %v12630_v26  ;;  %v21879_v26 = vpack.c.bf16 %v12212_v51, %v12211_v2  ;;  %v12922_v51 = vld [vmem:[#allocation21 + $0x8] sm:$0xff] }
 0xf4a   : > { %20534 = vmatprep.mubr.msk.f32.mxu1 %vm10429_vm3, %v12631_v28 }
 0xf4d   : > { %20535 = vmatmul.mubr.msk.f32.gmra.mrb[158].mxu1 %vm10429_vm3, %v12632_v62 }
 0xf4e   : > { %20537 = vmatprep.mubr.msk.f32.mxu1 %vm10429_vm3, %v12633_v1 }
 0xf51   : > { %20538 = vmatmul.mubr.msk.f32.gmra.mrb[160].mxu1 %vm10429_vm3, %v12634_v54 }
 0xf52   : > { %20540 = vmatprep.mubr.msk.f32.mxu1 %vm10429_vm3, %v12635_v20 }
 0xf55   : > { %20541 = vmatmul.mubr.msk.f32.gmra.mrb[162].mxu1 %vm10429_vm3, %v12636_v41 }
 0xf56   : > { %20575 = vmatprep.mubr.msk.f32.mxu1 %vm10429_vm3, %v12921_v33  ;;  %v14291_v33 = vld [vmem:[#allocation22 + $0x68] sm:$0xff] }
 0xfac   : > { %v20209_v56 = vpop.f32.mrb[100].mxu1  ;;  %v20181_v55 = vpop.f32.mrb[34].mxu0 }
 0xfad   : > { %v10660_v19 = vpop.f32.mrb[101].mxu1  ;;  %v10520_v29 = vpop.f32.mrb[35].mxu0 }
 0xfae   : > { %20223 = vmatprep.mubr.msk.f32.mxu0 %vm4706_vm2, %v10660_v19  ;;  %v21899_v19 = vpack.c.bf16 %v12490_v3, %v12489_v17 }
 0xfaf   : > { %20224 = vmatmul.mubr.msk.f32.vlgmr.msra.gmra.mrb[42].mxu0 %vm4706_vm2, %v20209_v56 }
 0xfb0   : > { %v20212_v38 = vpop.f32.mrb[102].mxu1  ;;  %21782 = vmatpush3.bf16.msra.mxu0 %v21779_v61  ;;  %v20184_v30 = vpop.f32.mrb[36].mxu0 }
 0xfb1   : > { %v10670_v44 = vpop.f32.mrb[103].mxu1  ;;  %v10530_v12 = vpop.f32.mrb[37].mxu0  ;;  %21800 = vmatprep.subr.bf16.mxu0 %v21799_v0 }
 0xfb2   : > { %20226 = vmatprep.mubr.msk.f32.mxu0 %vm4706_vm2, %v10670_v44 }
 0xfb3   : > { %20227 = vmatmul.mubr.msk.f32.gmra.mrb[44].mxu0 %vm4706_vm2, %v20212_v38 }
 0xfb4   : > { %v20215_v35 = vpop.f32.mrb[104].mxu1  ;;  %v20187_v49 = vpop.f32.mrb[38].mxu0 }
 0xfb5   : > { %v10680_v59 = vpop.f32.mrb[105].mxu1  ;;  %v10540_v22 = vpop.f32.mrb[39].mxu0 }
 0xfb6   : > { %20229 = vmatprep.mubr.msk.f32.mxu0 %vm4706_vm2, %v10680_v59 }
 0xfb7   : > { %20230 = vmatmul.mubr.msk.f32.gmra.mrb[46].mxu0 %vm4706_vm2, %v20215_v35  ;;  %v12767_v35 = vld [vmem:[#allocation18 + $0x80] sm:$0xff] }
 0xfb8   : > { %v20218_v37 = vpop.f32.mrb[106].mxu1  ;;  %v20190_v10 = vpop.f32.mrb[40].mxu0 }
 0xfb9   : > { %v10690_v18 = vpop.f32.mrb[107].mxu1  ;;  %v10550_v42 = vpop.f32.mrb[41].mxu0 }
 0xfba   : > { %20232 = vmatprep.mubr.msk.f32.mxu0 %vm4706_vm2, %v10690_v18 }
 0xfbb   : > { %20233 = vmatmul.mubr.msk.f32.gmra.mrb[48].mxu0 %vm4706_vm2, %v20218_v37 }
 0xfbc   : > { %20239 = vmatprep.mubr.msk.f32.mxu0 %vm4706_vm2, %v10520_v29  ;;  %v20269_v27 = vpop.f32.mrb[108].mxu1 }
 0xfbd   : > { %v11059_v5 = vpop.f32.mrb[109].mxu1 }
 0xfbf   : > { %20240 = vmatmul.mubr.msk.f32.vlgmr.msra.gmra.mrb[42].mxu0 %vm4706_vm2, %v20181_v55 }
 0xfc0   : > { %20242 = vmatprep.mubr.msk.f32.mxu0 %vm4706_vm2, %v10530_v12  ;;  %21802 = vmatpush3.bf16.msra.mxu0 %v21799_v0  ;;  %v20272_v11 = vpop.f32.mrb[110].mxu1 }
 0xfc1   : > { %v11069_v60 = vpop.f32.mrb[111].mxu1  ;;  %21820 = vmatprep.subr.bf16.mxu0 %v21819_v15 }
 0xfc3   : > { %20243 = vmatmul.mubr.msk.f32.gmra.mrb[44].mxu0 %vm4706_vm2, %v20184_v30 }
 0xfc4   : > { %20245 = vmatprep.mubr.msk.f32.mxu0 %vm4706_vm2, %v10540_v22  ;;  %v20275_v7 = vpop.f32.mrb[112].mxu1 }
 0xfc5   : > { %v11079_v16 = vpop.f32.mrb[113].mxu1 }
 0xfc7   : > { %20246 = vmatmul.mubr.msk.f32.gmra.mrb[46].mxu0 %vm4706_vm2, %v20187_v49  ;;  %v12768_v49 = vld [vmem:[#allocation18 + $0x88] sm:$0xff] }
 0xfc8   : > { %20248 = vmatprep.mubr.msk.f32.mxu0 %vm4706_vm2, %v10550_v42  ;;  %v20278_v63 = vpop.f32.mrb[114].mxu1  ;;  %v21919_v37 = vpack.c.bf16 %v12768_v49, %v12767_v35  ;;  %v13434_v35 = vld [vmem:[#allocation24 + $0x20] sm:$0xff]  ;;  %v13435_v49 = vld [vmem:[#allocation24 + $0x28] sm:$0xff] }
 0xfc9   : > { %v11089_v43 = vpop.f32.mrb[115].mxu1 }
 0xfcb   : > { %20249 = vmatmul.mubr.msk.f32.gmra.mrb[48].mxu0 %vm4706_vm2, %v20190_v10 }
 0xfcc   : > { %20283 = vmatprep.mubr.msk.f32.mxu0 %vm4706_vm2, %v11059_v5  ;;  %v20313_v14 = vpop.f32.mrb[116].mxu1 }
 0xfcd   : > { %v11337_v47 = vpop.f32.mrb[117].mxu1 }
 0xfcf   : > { %20284 = vmatmul.mubr.msk.f32.vlgmr.msra.gmra.mrb[42].mxu0 %vm4706_vm2, %v20269_v27 }
 0xfd0   : > { %20286 = vmatprep.mubr.msk.f32.mxu0 %vm4706_vm2, %v11069_v60  ;;  %21822 = vmatpush3.bf16.msra.mxu0 %v21819_v15  ;;  %v20316_v50 = vpop.f32.mrb[118].mxu1 }
 0xfd1   : > { %v11347_v45 = vpop.f32.mrb[119].mxu1  ;;  %21840 = vmatprep.subr.bf16.mxu0 %v21839_v34 }
 0xfd3   : > { %20287 = vmatmul.mubr.msk.f32.gmra.mrb[44].mxu0 %vm4706_vm2, %v20272_v11 }
 0xfd4   : > { %20289 = vmatprep.mubr.msk.f32.mxu0 %vm4706_vm2, %v11079_v16  ;;  %v20319_v53 = vpop.f32.mrb[120].mxu1 }
 0xfd5   : > { %v11357_v46 = vpop.f32.mrb[121].mxu1 }
 0xfd7   : > { %20290 = vmatmul.mubr.msk.f32.gmra.mrb[46].mxu0 %vm4706_vm2, %v20275_v7 }
 0xfd8   : > { %20292 = vmatprep.mubr.msk.f32.mxu0 %vm4706_vm2, %v11089_v43  ;;  %v20322_v6 = vpop.f32.mrb[122].mxu1 }
 0xfd9   : > { %v11367_v57 = vpop.f32.mrb[123].mxu1 }
 0xfdb   : > { %20293 = vmatmul.mubr.msk.f32.gmra.mrb[48].mxu0 %vm4706_vm2, %v20278_v63 }
 0xfdc   : > { %20327 = vmatprep.mubr.msk.f32.mxu0 %vm4706_vm2, %v11337_v47  ;;  %v20357_v9 = vpop.f32.mrb[124].mxu1 }
 0xfdd   : > { %v11615_v48 = vpop.f32.mrb[125].mxu1 }
 0xfdf   : > { %20328 = vmatmul.mubr.msk.f32.vlgmr.msra.gmra.mrb[42].mxu0 %vm4706_vm2, %v20313_v14  ;;  %v18170_v14 = vld [vmem:[#allocation19] ss:$0 sm:$0xff] }
 0xfe0   : > { %20330 = vmatprep.mubr.msk.f32.mxu0 %vm4706_vm2, %v11347_v45  ;;  %21842 = vmatpush3.bf16.msra.mxu0 %v21839_v34  ;;  %v20360_v40 = vpop.f32.mrb[126].mxu1 }
 0xfe1   : > { %v11625_v4 = vpop.f32.mrb[127].mxu1  ;;  %21860 = vmatprep.subr.bf16.mxu0 %v21859_v24 }
 0xfe3   : > { %20331 = vmatmul.mubr.msk.f32.gmra.mrb[44].mxu0 %vm4706_vm2, %v20316_v50 }
 0xfe4   : > { %20333 = vmatprep.mubr.msk.f32.mxu0 %vm4706_vm2, %v11357_v46  ;;  %v20363_v32 = vpop.f32.mrb[128].mxu1 }
 0xfe5   : > { %v11635_v39 = vpop.f32.mrb[129].mxu1 }
 0xfe7   : > { %20334 = vmatmul.mubr.msk.f32.gmra.mrb[46].mxu0 %vm4706_vm2, %v20319_v53 }
 0xfe8   : > { %20336 = vmatprep.mubr.msk.f32.mxu0 %vm4706_vm2, %v11367_v57  ;;  %v20366_v61 = vpop.f32.mrb[130].mxu1 }
 0xfe9   : > { %v11645_v52 = vpop.f32.mrb[131].mxu1 }
 0xfeb   : > { %20337 = vmatmul.mubr.msk.f32.gmra.mrb[48].mxu0 %vm4706_vm2, %v20322_v6 }
 0xfec   : > { %20371 = vmatprep.mubr.msk.f32.mxu0 %vm4706_vm2, %v11615_v48  ;;  %v20401_v58 = vpop.f32.mrb[132].mxu1 }
 0xfed   : > { %v11893_v31 = vpop.f32.mrb[133].mxu1 }
 0xfef   : > { %20372 = vmatmul.mubr.msk.f32.vlgmr.msra.gmra.mrb[42].mxu0 %vm4706_vm2, %v20357_v9 }
 0xff0   : > { %20374 = vmatprep.mubr.msk.f32.mxu0 %vm4706_vm2, %v11625_v4  ;;  %21862 = vmatpush3.bf16.msra.mxu0 %v21859_v24  ;;  %v20404_v28 = vpop.f32.mrb[134].mxu1 }
 0xff1   : > { %v11903_v62 = vpop.f32.mrb[135].mxu1  ;;  %21880 = vmatprep.subr.bf16.mxu0 %v21879_v26 }
 0xff3   : > { %20375 = vmatmul.mubr.msk.f32.gmra.mrb[44].mxu0 %vm4706_vm2, %v20360_v40 }
 0xff4   : > { %20377 = vmatprep.mubr.msk.f32.mxu0 %vm4706_vm2, %v11635_v39  ;;  %v20407_v1 = vpop.f32.mrb[136].mxu1 }
 0xff5   : > { %v11913_v54 = vpop.f32.mrb[137].mxu1 }
 0xff7   : > { %20378 = vmatmul.mubr.msk.f32.gmra.mrb[46].mxu0 %vm4706_vm2, %v20363_v32 }
 0xff8   : > { %20380 = vmatprep.mubr.msk.f32.mxu0 %vm4706_vm2, %v11645_v52  ;;  %v20410_v20 = vpop.f32.mrb[138].mxu1 }
 0xff9   : > { %v11923_v41 = vpop.f32.mrb[139].mxu1 }
 0xffb   : > { %20381 = vmatmul.mubr.msk.f32.gmra.mrb[48].mxu0 %vm4706_vm2, %v20366_v61 }
 0xffc   : > { %20415 = vmatprep.mubr.msk.f32.mxu0 %vm4706_vm2, %v11893_v31  ;;  %v20445_v56 = vpop.f32.mrb[140].mxu1  ;;  %v13005_v31 = vld [vmem:[#allocation21 + $0x10] sm:$0xff] }
 0xffd   : > { %v12171_v55 = vpop.f32.mrb[141].mxu1 }
 0xfff   : > { %20416 = vmatmul.mubr.msk.f32.vlgmr.msra.gmra.mrb[42].mxu0 %vm4706_vm2, %v20401_v58  ;;  %v13090_v58 = vld [vmem:[#allocation21 + $0x28] sm:$0xff] }
0x1000   : > { %20418 = vmatprep.mubr.msk.f32.mxu0 %vm4706_vm2, %v11903_v62  ;;  %21882 = vmatpush3.bf16.msra.mxu0 %v21879_v26  ;;  %v20448_v29 = vpop.f32.mrb[142].mxu1  ;;  %v13006_v26 = vld [vmem:[#allocation21 + $0x18] sm:$0xff] }
0x1001   : > { %v12181_v0 = vpop.f32.mrb[143].mxu1  ;;  %21900 = vmatprep.subr.bf16.mxu0 %v21899_v19  ;;  %v13174_v62 = vld [vmem:[#allocation21 + $0x38] sm:$0xff] }
0x1003   : > { %20419 = vmatmul.mubr.msk.f32.gmra.mrb[44].mxu0 %vm4706_vm2, %v20404_v28  ;;  %v13173_v28 = vld [vmem:[#allocation21 + $0x30] sm:$0xff] }
0x1004   : > { %20421 = vmatprep.mubr.msk.f32.mxu0 %vm4706_vm2, %v11913_v54  ;;  %v20451_v38 = vpop.f32.mrb[144].mxu1  ;;  %v13262_v54 = vld [vmem:[#allocation22] sm:$0xff] }
0x1005   : > { %v12191_v30 = vpop.f32.mrb[145].mxu1 }
0x1007   : > { %20422 = vmatmul.mubr.msk.f32.gmra.mrb[46].mxu0 %vm4706_vm2, %v20407_v1  ;;  %v13350_v1 = vld [vmem:[#allocation22 + $0x10] sm:$0xff] }
0x1008   : > { %20424 = vmatprep.mubr.msk.f32.mxu0 %vm4706_vm2, %v11923_v41  ;;  %v20454_v44 = vpop.f32.mrb[146].mxu1 }
0x1009   : > { %v12201_v12 = vpop.f32.mrb[147].mxu1 }
0x100b   : > { %20425 = vmatmul.mubr.msk.f32.gmra.mrb[48].mxu0 %vm4706_vm2, %v20410_v20 }
0x100c   : > { %20459 = vmatprep.mubr.msk.f32.mxu0 %vm4706_vm2, %v12171_v55  ;;  %v20489_v59 = vpop.f32.mrb[148].mxu1 }
0x100d   : > { %v12449_v22 = vpop.f32.mrb[149].mxu1 }
0x100f   : > { %20460 = vmatmul.mubr.msk.f32.vlgmr.msra.gmra.mrb[42].mxu0 %vm4706_vm2, %v20445_v56 }
0x1010   : > { %20462 = vmatprep.mubr.msk.f32.mxu0 %vm4706_vm2, %v12181_v0  ;;  %21902 = vmatpush3.bf16.msra.mxu0 %v21899_v19  ;;  %v20492_v10 = vpop.f32.mrb[150].mxu1 }
0x1011   : > { %v12459_v18 = vpop.f32.mrb[151].mxu1  ;;  %21920 = vmatprep.subr.bf16.mxu0 %v21919_v37 }
0x1013   : > { %20463 = vmatmul.mubr.msk.f32.gmra.mrb[44].mxu0 %vm4706_vm2, %v20448_v29 }
0x1014   : > { %20465 = vmatprep.mubr.msk.f32.mxu0 %vm4706_vm2, %v12191_v30  ;;  %v20495_v42 = vpop.f32.mrb[152].mxu1 }
0x1015   : > { %v12469_v25 = vpop.f32.mrb[153].mxu1 }
0x1017   : > { %20466 = vmatmul.mubr.msk.f32.gmra.mrb[46].mxu0 %vm4706_vm2, %v20451_v38 }
0x1018   : > { %20468 = vmatprep.mubr.msk.f32.mxu0 %vm4706_vm2, %v12201_v12  ;;  %v20498_v8 = vpop.f32.mrb[154].mxu1 }
0x1019   : > { %v12479_v27 = vpop.f32.mrb[155].mxu1 }
0x101b   : > { %20469 = vmatmul.mubr.msk.f32.gmra.mrb[48].mxu0 %vm4706_vm2, %v20454_v44 }
0x101c   : > { %20503 = vmatprep.mubr.msk.f32.mxu0 %vm4706_vm2, %v12449_v22  ;;  %v20533_v5 = vpop.f32.mrb[156].mxu1 }
0x101d   : > { %v12727_v15 = vpop.f32.mrb[157].mxu1 }
0x101f   : > { %20504 = vmatmul.mubr.msk.f32.vlgmr.msra.gmra.mrb[42].mxu0 %vm4706_vm2, %v20489_v59 }
0x1020   : > { %20506 = vmatprep.mubr.msk.f32.mxu0 %vm4706_vm2, %v12459_v18  ;;  %21922 = vmatpush3.bf16.msra.mxu0 %v21919_v37  ;;  %v20536_v11 = vpop.f32.mrb[158].mxu1  ;;  %v21995_v37 = vpack.c.bf16 %v13435_v49, %v13434_v35  ;;  %v13437_v18 = vld [vmem:[#allocation24 + $0x38] sm:$0xff]  ;;  %v14202_v49 = vld [vmem:[#allocation24 + $0xa0] sm:$0xff] }
0x1021   : > { %v12737_v60 = vpop.f32.mrb[159].mxu1 }
0x1023   : > { %20507 = vmatmul.mubr.msk.f32.gmra.mrb[44].mxu0 %vm4706_vm2, %v20492_v10  ;;  %v13436_v10 = vld [vmem:[#allocation24 + $0x30] sm:$0xff] }
0x1024   : > { %20509 = vmatprep.mubr.msk.f32.mxu0 %vm4706_vm2, %v12469_v25  ;;  %v20539_v7 = vpop.f32.mrb[160].mxu1  ;;  %v13263_v25 = vld [vmem:[#allocation22 + $0x8] sm:$0xff] }
0x1025   : > { %v12747_v16 = vpop.f32.mrb[161].mxu1 }
0x1027   : > { %20510 = vmatmul.mubr.msk.f32.gmra.mrb[46].mxu0 %vm4706_vm2, %v20495_v42  ;;  %v13351_v42 = vld [vmem:[#allocation22 + $0x18] sm:$0xff] }
0x1028   : > { %20512 = vmatprep.mubr.msk.f32.mxu0 %vm4706_vm2, %v12479_v27  ;;  %v20542_v63 = vpop.f32.mrb[162].mxu1  ;;  %v21999_v27 = vpack.c.bf16 %v13437_v18, %v13436_v10  ;;  %v14204_v18 = vld [vmem:[#allocation24 + $0xb0] sm:$0xff] }
0x1029   : > { %v12757_v43 = vpop.f32.mrb[163].mxu1 }
0x102b   : > { %20513 = vmatmul.mubr.msk.f32.gmra.mrb[48].mxu0 %vm4706_vm2, %v20498_v8  ;;  %v13602_v8 = vld [vmem:[#allocation22 + $0x20] sm:$0xff] }
0x102c   : > { %20547 = vmatprep.mubr.msk.f32.mxu0 %vm4706_vm2, %v12727_v15  ;;  %v13774_v15 = vld [vmem:[#allocation22 + $0x30] sm:$0xff] }
0x102f   : > { %20548 = vmatmul.mubr.msk.f32.vlgmr.msra.gmra.mrb[42].mxu0 %vm4706_vm2, %v20533_v5  ;;  %v13603_v5 = vld [vmem:[#allocation22 + $0x28] sm:$0xff] }
0x1030   : > { %20550 = vmatprep.mubr.msk.f32.mxu0 %vm4706_vm2, %v12737_v60  ;;  %v13946_v60 = vld [vmem:[#allocation22 + $0x40] sm:$0xff] }
0x1033   : > { %20551 = vmatmul.mubr.msk.f32.gmra.mrb[44].mxu0 %vm4706_vm2, %v20536_v11  ;;  %v13775_v11 = vld [vmem:[#allocation22 + $0x38] sm:$0xff] }
0x1034   : > { %20553 = vmatprep.mubr.msk.f32.mxu0 %vm4706_vm2, %v12747_v16  ;;  %v14118_v16 = vld [vmem:[#allocation22 + $0x50] sm:$0xff] }
0x1037   : > { %20554 = vmatmul.mubr.msk.f32.gmra.mrb[46].mxu0 %vm4706_vm2, %v20539_v7  ;;  %v13947_v7 = vld [vmem:[#allocation22 + $0x48] sm:$0xff] }
0x1038   : > { %20556 = vmatprep.mubr.msk.f32.mxu0 %vm4706_vm2, %v12757_v43  ;;  %v14290_v43 = vld [vmem:[#allocation22 + $0x60] sm:$0xff] }
0x103b   : > { %20557 = vmatmul.mubr.msk.f32.gmra.mrb[48].mxu0 %vm4706_vm2, %v20542_v63  ;;  %v14119_v63 = vld [vmem:[#allocation22 + $0x58] sm:$0xff] }
0x103c   : > { %20613 = vmatprep.mubr.msk.f32.mxu0 %vm10429_vm3, %v13089_v13  ;;  %v14462_v13 = vld [vmem:[#allocation22 + $0x70] sm:$0xff] }
0x1102   : > { %v20549_v47 = vpop.f32.mrb[42].mxu0 }
0x1103   : > { %v12914_v34 = vadd.f32 %v20549_v47, %v18170_v14  ;;  %v12859_v50 = vpop.f32.mrb[43].mxu0  ;;  %v14634_v47 = vld [vmem:[#allocation22 + $0x80] sm:$0xff] }
0x1104   : > { %v12913_v45 = vadd.f32 %v18170_v14, %v12859_v50  ;;  %v13345_v50 = vld [vmem:[#allocation24] sm:$0xff] }
0x1106   : > { %v21923_v53 = vpack.c.bf16 %v12914_v34, %v12913_v45  ;;  %v20552_v46 = vpop.f32.mrb[44].mxu0  ;;  %v14635_v34 = vld [vmem:[#allocation22 + $0x88] sm:$0xff]  ;;  %v13346_v45 = vld [vmem:[#allocation24 + $0x8] sm:$0xff] }
0x1107   : > { %v12916_v6 = vadd.f32 %v20552_v46, %v18170_v14  ;;  %v12869_v57 = vpop.f32.mrb[45].mxu0  ;;  %v13347_v46 = vld [vmem:[#allocation24 + $0x10] sm:$0xff] }
0x1108   : > { %v12915_v36 = vadd.f32 %v18170_v14, %v12869_v57  ;;  %21924 = vmatprep.subr.bf16.mxu1 %v21923_v53  ;;  %21956 = vmatprep.subr.bf16.mxu0 %v21923_v53 }
0x1109   : > { %21926 = vmatpush3.bf16.msra.mxu1 %v21923_v53  ;;  %21958 = vmatpush3.bf16.msra.mxu0 %v21923_v53 }
0x110a   : > { %v21927_v21 = vpack.c.bf16 %v12916_v6, %v12915_v36  ;;  %v20555_v9 = vpop.f32.mrb[46].mxu0  ;;  %v13348_v6 = vld [vmem:[#allocation24 + $0x18] sm:$0xff] }
0x110b   : > { %v12918_v48 = vadd.f32 %v20555_v9, %v18170_v14  ;;  %v12879_v24 = vpop.f32.mrb[47].mxu0  ;;  %v22007_v9 = vpack.c.bf16 %v13348_v6, %v13347_v46  ;;  %v14816_v46 = vld [vmem:[%s26812_s1] sm:$0xff]  ;;  %v18215_v6 = vld [vmem:[#allocation25] ss:$0 sm:$0xff] }
0x110c   : > { %v12917_v40 = vadd.f32 %v18170_v14, %v12879_v24  ;;  %21928 = vmatprep.subr.bf16.mxu1 %v21927_v21  ;;  %21960 = vmatprep.subr.bf16.mxu0 %v21927_v21  ;;  %v13686_v24 = vld [vmem:[#allocation24 + $0x40] sm:$0xff] }
0x110d   : > { %21930 = vmatpush3.bf16.msra.mxu1 %v21927_v21  ;;  %21962 = vmatpush3.bf16.msra.mxu0 %v21927_v21 }
0x110e   : > { %v21931_v4 = vpack.c.bf16 %v12918_v48, %v12917_v40  ;;  %v20558_v32 = vpop.f32.mrb[48].mxu0  ;;  %v13687_v40 = vld [vmem:[#allocation24 + $0x48] sm:$0xff] }
0x110f   : > { %v12920_v39 = vadd.f32 %v20558_v32, %v18170_v14  ;;  %v12889_v61 = vpop.f32.mrb[49].mxu0  ;;  %v22015_v32 = vpack.c.bf16 %v13687_v40, %v13686_v24 }
0x1110   : > { %v12919_v52 = vadd.f32 %v18170_v14, %v12889_v61  ;;  %21932 = vmatprep.subr.bf16.mxu1 %v21931_v4  ;;  %21964 = vmatprep.subr.bf16.mxu0 %v21931_v4  ;;  %v14463_v14 = vld [vmem:[#allocation22 + $0x78] sm:$0xff]  ;;  %v13688_v61 = vld [vmem:[#allocation24 + $0x50] sm:$0xff] }
0x1111   : > { %21934 = vmatpush3.bf16.msra.mxu1 %v21931_v4  ;;  %21966 = vmatpush3.bf16.msra.mxu0 %v21931_v4 }
0x1112   : > { %v21935_v2 = vpack.c.bf16 %v12920_v39, %v12919_v52  ;;  %v13689_v52 = vld [vmem:[#allocation24 + $0x58] sm:$0xff] }
0x1114   : > { %21936 = vmatprep.subr.bf16.mxu1 %v21935_v2  ;;  %21968 = vmatprep.subr.bf16.mxu0 %v21935_v2 }
0x1115   : > { %21938 = vmatpush3.bf16.msra.mxu1 %v21935_v2  ;;  %21970 = vmatpush3.bf16.msra.mxu0 %v21935_v2 }
0x1116   : > { %21940 = vmatprep.subr.bf16.mxu1 %v21923_v53 }
0x1118   : > { %20576 = vmatmul.mubr.msk.f32.vlgmr.msra.gmra.mrb[164].mxu1 %vm10429_vm3, %v12922_v51  ;;  %20614 = vmatmul.mubr.msk.f32.vlgmr.msra.gmra.mrb[50].mxu0 %vm10429_vm3, %v13090_v58  ;;  %v22019_v51 = vpack.c.bf16 %v13689_v52, %v13688_v61  ;;  %v18222_v61 = vld [vmem:[%s26812_s1 + $0x20] sm:$0xff]  ;;  %v18223_v52 = vld [vmem:[%s26812_s1 + $0x28] sm:$0x1] }
0x1119   : > { %21942 = vmatpush3.bf16.msra.mxu1 %v21923_v53  ;;  %20594 = vmatprep.mubr.msk.f32.mxu1 %vm10429_vm3, %v13005_v31  ;;  %v13858_v31 = vld [vmem:[#allocation24 + $0x60] sm:$0xff] }
0x111a   : > { %21944 = vmatprep.subr.bf16.mxu1 %v21927_v21  ;;  %20639 = vmatprep.mubr.msk.f32.mxu0 %vm4706_vm2, %v13262_v54  ;;  %v13860_v54 = vld [vmem:[#allocation24 + $0x70] sm:$0xff] }
0x111d   : > { %21946 = vmatpush3.bf16.msra.mxu1 %v21927_v21 }
0x111e   : > { %21948 = vmatprep.subr.bf16.mxu1 %v21931_v4 }
0x1121   : > { %21950 = vmatpush3.bf16.msra.mxu1 %v21931_v4 }
0x1122   : > { %21952 = vmatprep.subr.bf16.mxu1 %v21935_v2 }
0x1125   : > { %21954 = vmatpush3.bf16.msra.mxu1 %v21935_v2 }
0x1126   : > { %21972 = vmatprep.subr.bf16.mxu1 %v21923_v53 }
0x1128   : > { %20595 = vmatmul.mubr.msk.f32.vlgmr.msra.gmra.mrb[166].mxu1 %vm10429_vm3, %v13006_v26  ;;  %v13859_v26 = vld [vmem:[#allocation24 + $0x68] sm:$0xff] }
0x1129   : > { %21974 = vmatpush3.bf16.msra.mxu1 %v21923_v53  ;;  %20632 = vmatprep.mubr.msk.f32.mxu1 %vm10429_vm3, %v13173_v28  ;;  %v22003_v53 = vpack.c.bf16 %v13346_v45, %v13345_v50  ;;  %v14720_v50 = vld [vmem:[#allocation24 + $0x110] sm:$0xff]  ;;  %v14721_v45 = vld [vmem:[#allocation24 + $0x118] sm:$0xff] }
0x112a   : > { %21976 = vmatprep.subr.bf16.mxu1 %v21927_v21 }
0x112d   : > { %21978 = vmatpush3.bf16.msra.mxu1 %v21927_v21 }
0x112e   : > { %21980 = vmatprep.subr.bf16.mxu1 %v21931_v4 }
0x1131   : > { %21982 = vmatpush3.bf16.msra.mxu1 %v21931_v4 }
0x1132   : > { %21984 = vmatprep.subr.bf16.mxu1 %v21935_v2 }
0x1135   : > { %21986 = vmatpush3.bf16.msra.mxu1 %v21935_v2 }
0x1138   : > { %20633 = vmatmul.mubr.msk.f32.vlgmr.msra.gmra.mrb[168].mxu1 %vm10429_vm3, %v13174_v62  ;;  %v22027_v62 = vpack.c.bf16 %v13859_v26, %v13858_v31  ;;  %v15673_v31 = vld [vmem:[#allocation27 + $0x30] sm:$0xff] }
0x1139   : > { %20646 = vmatprep.mubr.msk.f32.mxu1 %vm4706_vm2, %v13350_v1 }
0x11eb   : > { %v20577_v20 = vpop.f32.mrb[164].mxu1  ;;  %v20615_v41 = vpop.f32.mrb[50].mxu0 }
0x11ec   : > { %v12995_v17 = vpop.f32.mrb[165].mxu1  ;;  %v13163_v3 = vpop.f32.mrb[51].mxu0 }
0x11fb   : > { %v20596_v56 = vpop.f32.mrb[166].mxu1 }
0x11fc   : > { %v13257_v55 = vmax.f32 %v20577_v20, %v20596_v56  ;;  %v13079_v19 = vpop.f32.mrb[167].mxu1  ;;  %v13861_v20 = vld [vmem:[#allocation24 + $0x78] sm:$0xff]  ;;  %v14030_v56 = vld [vmem:[#allocation24 + $0x80] sm:$0xff] }
0x11fd   : > { %v13256_v29 = vmax.f32 %v12995_v17, %v13079_v19  ;;  %v22031_v17 = vpack.c.bf16 %v13861_v20, %v13860_v54 }
0x120b   : > { %v20634_v0 = vpop.f32.mrb[168].mxu1 }
0x120c   : > { %v13259_v38 = vmax.f32 %v20615_v41, %v20634_v0  ;;  %v13247_v30 = vpop.f32.mrb[169].mxu1 }
0x120d   : > { %v13258_v44 = vmax.f32 %v13163_v3, %v13247_v30  ;;  %v14033_v30 = vld [vmem:[#allocation24 + $0x98] sm:$0xff] }
0x120e   : > { %v13261_v12 = vmax.f32 %v13257_v55, %v13259_v38  ;;  %v14031_v55 = vld [vmem:[#allocation24 + $0x88] sm:$0xff]  ;;  %v14032_v38 = vld [vmem:[#allocation24 + $0x90] sm:$0xff] }
0x120f   : > { %v13260_v59 = vmax.f32 %v13256_v29, %v13258_v44  ;;  %v22039_v29 = vpack.c.bf16 %v14031_v55, %v14030_v56 }
0x1211   : > { %v21987_v22 = vpack.c.bf16 %v13261_v12, %v13260_v59  ;;  %v22043_v12 = vpack.c.bf16 %v14033_v30, %v14032_v38  ;;  %v14203_v59 = vld [vmem:[#allocation24 + $0xa8] sm:$0xff]  ;;  %v17041_v38 = vld [vmem:[#allocation33 + $0xa8] sm:$0xff] }
0x1213   : > { %21992 = vmatprep.subr.bf16.mxu1 %v21987_v22  ;;  %21988 = vmatprep.subr.bf16.mxu0 %v21987_v22 }
0x1214   : > { %21994 = vmatpush3.bf16.msra.mxu1 %v21987_v22  ;;  %21990 = vmatpush3.bf16.msra.mxu0 %v21987_v22 }
0x1215   : > { %22012 = vmatprep.subr.bf16.mxu1 %v21987_v22  ;;  %21996 = vmatprep.subr.bf16.mxu0 %v21995_v37 }
0x1217   : > { %20647 = vmatmul.mubr.msk.f32.vlgmr.msra.gmra.mrb[170].mxu1 %vm4706_vm2, %v13351_v42  ;;  %20640 = vmatmul.mubr.msk.f32.vlgmr.msra.gmra.mrb[52].mxu0 %vm4706_vm2, %v13263_v25  ;;  %v14205_v42 = vld [vmem:[#allocation24 + $0xb8] sm:$0xff] }
0x1218   : > { %22014 = vmatpush3.bf16.msra.mxu1 %v21987_v22  ;;  %20675 = vmatprep.mubr.msk.f32.mxu1 %vm4706_vm2, %v13602_v8  ;;  %v22055_v25 = vpack.c.bf16 %v14205_v42, %v14204_v18  ;;  %v14374_v8 = vld [vmem:[#allocation24 + $0xc0] sm:$0xff]  ;;  %v15846_v18 = vld [vmem:[#allocation27 + $0x48] sm:$0x1]  ;;  %v16017_v42 = vld [vmem:[#allocation27 + $0x50] sm:$0xff] }
0x1219   : > { %22024 = vmatprep.subr.bf16.mxu1 %v21987_v22  ;;  %21998 = vmatpush3.bf16.msra.mxu0 %v21995_v37  ;;  %v22051_v37 = vpack.c.bf16 %v14203_v59, %v14202_v49  ;;  %v15674_v49 = vld [vmem:[#allocation27 + $0x38] sm:$0x1]  ;;  %v15250_v59 = vld [vmem:[#allocation27 + $0x10] sm:$0xff] }
0x121a   : > { %22000 = vmatprep.subr.bf16.mxu0 %v21999_v27 }
0x121b   : > { %20676 = vmatmul.mubr.msk.f32.vlgmr.msra.gmra.mrb[172].mxu1 %vm4706_vm2, %v13603_v5 }
0x121c   : > { %22026 = vmatpush3.bf16.msra.mxu1 %v21987_v22  ;;  %20693 = vmatprep.mubr.msk.f32.mxu1 %vm4706_vm2, %v13774_v15  ;;  %v14376_v15 = vld [vmem:[#allocation24 + $0xd0] sm:$0xff] }
0x121d   : > { %22036 = vmatprep.subr.bf16.mxu1 %v21987_v22  ;;  %22002 = vmatpush3.bf16.msra.mxu0 %v21999_v27  ;;  %v14375_v27 = vld [vmem:[#allocation24 + $0xc8] sm:$0xff] }
0x121e   : > { %22004 = vmatprep.subr.bf16.mxu0 %v22003_v53  ;;  %v22063_v5 = vpack.c.bf16 %v14375_v27, %v14374_v8  ;;  %v16189_v8 = vld [vmem:[#allocation27 + $0x60] sm:$0xff]  ;;  %v16190_v27 = vld [vmem:[#allocation27 + $0x68] sm:$0x1] }
0x121f   : > { %20694 = vmatmul.mubr.msk.f32.vlgmr.msra.gmra.mrb[174].mxu1 %vm4706_vm2, %v13775_v11  ;;  %v14377_v11 = vld [vmem:[#allocation24 + $0xd8] sm:$0xff] }
0x1220   : > { %22038 = vmatpush3.bf16.msra.mxu1 %v21987_v22  ;;  %20711 = vmatprep.mubr.msk.f32.mxu1 %vm4706_vm2, %v13946_v60  ;;  %v22067_v60 = vpack.c.bf16 %v14377_v11, %v14376_v15  ;;  %v16362_v15 = vld [vmem:[#allocation27 + $0x78] sm:$0x1]  ;;  %v15336_v11 = vld [vmem:[#allocation28 + $0x30] sm:$0xff] }
0x1221   : > { %22048 = vmatprep.subr.bf16.mxu1 %v21987_v22 }
0x1223   : > { %20712 = vmatmul.mubr.msk.f32.vlgmr.msra.gmra.mrb[176].mxu1 %vm4706_vm2, %v13947_v7  ;;  %v14546_v7 = vld [vmem:[#allocation24 + $0xe0] sm:$0xff] }
0x1224   : > { %22050 = vmatpush3.bf16.msra.mxu1 %v21987_v22  ;;  %20729 = vmatprep.mubr.msk.f32.mxu1 %vm4706_vm2, %v14118_v16  ;;  %v14547_v16 = vld [vmem:[#allocation24 + $0xe8] sm:$0xff] }
0x1225   : > { %22060 = vmatprep.subr.bf16.mxu1 %v21987_v22 }
0x1227   : > { %20730 = vmatmul.mubr.msk.f32.vlgmr.msra.gmra.mrb[178].mxu1 %vm4706_vm2, %v14119_v63  ;;  %v22075_v63 = vpack.c.bf16 %v14547_v16, %v14546_v7  ;;  %v15245_v16 = vld [vmem:[#allocation28] sm:$0xff] }
0x1228   : > { %22062 = vmatpush3.bf16.msra.mxu1 %v21987_v22  ;;  %20747 = vmatprep.mubr.msk.f32.mxu1 %vm4706_vm2, %v14290_v43  ;;  %v14548_v43 = vld [vmem:[#allocation24 + $0xf0] sm:$0xff] }
0x1229   : > { %22072 = vmatprep.subr.bf16.mxu1 %v21987_v22 }
0x122b   : > { %20748 = vmatmul.mubr.msk.f32.vlgmr.msra.gmra.mrb[180].mxu1 %vm4706_vm2, %v14291_v33  ;;  %v14549_v33 = vld [vmem:[#allocation24 + $0xf8] sm:$0xff] }
0x122c   : > { %22074 = vmatpush3.bf16.msra.mxu1 %v21987_v22  ;;  %20765 = vmatprep.mubr.msk.f32.mxu1 %vm4706_vm2, %v14462_v13  ;;  %v22079_v13 = vpack.c.bf16 %v14549_v33, %v14548_v43  ;;  %v16533_v33 = vld [vmem:[#allocation27 + $0x80] sm:$0xff] }
0x122d   : > { %22084 = vmatprep.subr.bf16.mxu1 %v21987_v22 }
0x122f   : > { %20766 = vmatmul.mubr.msk.f32.vlgmr.msra.gmra.mrb[182].mxu1 %vm4706_vm2, %v14463_v14  ;;  %v14718_v14 = vld [vmem:[#allocation24 + $0x100] sm:$0xff] }
0x1230   : > { %22086 = vmatpush3.bf16.msra.mxu1 %v21987_v22  ;;  %20783 = vmatprep.mubr.msk.f32.mxu1 %vm4706_vm2, %v14634_v47  ;;  %v14719_v47 = vld [vmem:[#allocation24 + $0x108] sm:$0xff] }
0x1233   : > { %20784 = vmatmul.mubr.msk.f32.vlgmr.msra.gmra.mrb[184].mxu1 %vm4706_vm2, %v14635_v34  ;;  %v22087_v34 = vpack.c.bf16 %v14719_v47, %v14718_v14 }
0x1234   : > { %20801 = vmatprep.mubr.msk.f32.mxu1 %vm4706_vm2, %v14816_v46 }
0x12ea   : > { %v20648_v57 = vpop.f32.mrb[170].mxu1  ;;  %v20641_v36 = vpop.f32.mrb[52].mxu0 }
0x12eb   : > { %v13424_v21 = vpop.f32.mrb[171].mxu1  ;;  %v13336_v48 = vpop.f32.mrb[53].mxu0 }
0x12ec   : > { %20657 = vmatprep.mubr.msk.f32.mxu0 %vm13438_vm4, %v13424_v21 }
0x12ed   : > { %20658 = vmatmul.mubr.msk.f32.vlgmr.msra.gmra.mrb[54].mxu0 %vm13438_vm4, %v20648_v57 }
0x12ee   : > { %22006 = vmatpush3.bf16.msra.mxu0 %v22003_v53  ;;  %20668 = vmatprep.mubr.msk.f32.mxu0 %vm13438_vm4, %v13336_v48  ;;  %v20677_v4 = vpop.f32.mrb[172].mxu1  ;;  %v22091_v53 = vpack.c.bf16 %v14721_v45, %v14720_v50  ;;  %v15248_v50 = vld [vmem:[#allocation28 + $0x18] sm:$0xff] }
0x12ef   : > { %22008 = vmatprep.subr.bf16.mxu0 %v22007_v9  ;;  %v13676_v39 = vpop.f32.mrb[173].mxu1 }
0x12f2   : > { %22010 = vmatpush3.bf16.msra.mxu0 %v22007_v9  ;;  %v20695_v2 = vpop.f32.mrb[174].mxu1 }
0x12f3   : > { %22016 = vmatprep.subr.bf16.mxu0 %v22015_v32  ;;  %v13848_v58 = vpop.f32.mrb[175].mxu1 }
0x12f5   : > { %20669 = vmatmul.mubr.msk.f32.vlgmr.msra.gmra.mrb[54].mxu0 %vm13438_vm4, %v20641_v36 }
0x12f6   : > { %22018 = vmatpush3.bf16.msra.mxu0 %v22015_v32  ;;  %20686 = vmatprep.mubr.msk.f32.mxu0 %vm13438_vm4, %v13676_v39  ;;  %v20713_v28 = vpop.f32.mrb[176].mxu1  ;;  %v18218_v32 = vld [vmem:[%s26812_s1 + $0x10] sm:$0xff]  ;;  %v18219_v39 = vld [vmem:[%s26812_s1 + $0x18] sm:$0x1] }
0x12f7   : > { %22020 = vmatprep.subr.bf16.mxu0 %v22019_v51  ;;  %v14020_v1 = vpop.f32.mrb[177].mxu1 }
0x12fa   : > { %22022 = vmatpush3.bf16.msra.mxu0 %v22019_v51  ;;  %v20731_v41 = vpop.f32.mrb[178].mxu1  ;;  %v18227_v51 = vld [vmem:[%s26812_s1 + $0x38] sm:$0x1] }
0x12fb   : > { %22028 = vmatprep.subr.bf16.mxu0 %v22027_v62  ;;  %v14192_v3 = vpop.f32.mrb[179].mxu1 }
0x12fd   : > { %20687 = vmatmul.mubr.msk.f32.vlgmr.msra.gmra.mrb[54].mxu0 %vm13438_vm4, %v20677_v4  ;;  %v14817_v4 = vld [vmem:[%s26812_s1 + $0x8] sm:$0x1] }
0x12fe   : > { %22030 = vmatpush3.bf16.msra.mxu0 %v22027_v62  ;;  %20704 = vmatprep.mubr.msk.f32.mxu0 %vm13438_vm4, %v13848_v58  ;;  %v20749_v19 = vpop.f32.mrb[180].mxu1  ;;  %v15157_v58 = vld [vmem:[#allocation27] sm:$0xff] }
0x12ff   : > { %22032 = vmatprep.subr.bf16.mxu0 %v22031_v17  ;;  %v14364_v0 = vpop.f32.mrb[181].mxu1 }
0x1302   : > { %22034 = vmatpush3.bf16.msra.mxu0 %v22031_v17  ;;  %v20767_v44 = vpop.f32.mrb[182].mxu1 }
0x1303   : > { %22040 = vmatprep.subr.bf16.mxu0 %v22039_v29  ;;  %v14536_v35 = vpop.f32.mrb[183].mxu1 }
0x1305   : > { %20705 = vmatmul.mubr.msk.f32.vlgmr.msra.gmra.mrb[54].mxu0 %vm13438_vm4, %v20695_v2  ;;  %v18226_v2 = vld [vmem:[%s26812_s1 + $0x30] sm:$0xff] }
0x1306   : > { %22042 = vmatpush3.bf16.msra.mxu0 %v22039_v29  ;;  %20722 = vmatprep.mubr.msk.f32.mxu0 %vm13438_vm4, %v14020_v1  ;;  %v20785_v22 = vpop.f32.mrb[184].mxu1 }
0x1307   : > { %22044 = vmatprep.subr.bf16.mxu0 %v22043_v12  ;;  %v14708_v10 = vpop.f32.mrb[185].mxu1 }
0x130a   : > { %22046 = vmatpush3.bf16.msra.mxu0 %v22043_v12  ;;  %v15335_v12 = vld [vmem:[#allocation28 + $0x28] sm:$0xff] }
0x130b   : > { %22052 = vmatprep.subr.bf16.mxu0 %v22051_v37 }
0x130d   : > { %20723 = vmatmul.mubr.msk.f32.vlgmr.msra.gmra.mrb[54].mxu0 %vm13438_vm4, %v20713_v28 }
0x130e   : > { %22054 = vmatpush3.bf16.msra.mxu0 %v22051_v37  ;;  %20740 = vmatprep.mubr.msk.f32.mxu0 %vm13438_vm4, %v14192_v3 }
0x130f   : > { %22056 = vmatprep.subr.bf16.mxu0 %v22055_v25 }
0x1312   : > { %22058 = vmatpush3.bf16.msra.mxu0 %v22055_v25  ;;  %v16018_v25 = vld [vmem:[#allocation27 + $0x58] sm:$0x1] }
0x1313   : > { %22064 = vmatprep.subr.bf16.mxu0 %v22063_v5 }
0x1315   : > { %20741 = vmatmul.mubr.msk.f32.vlgmr.msra.gmra.mrb[54].mxu0 %vm13438_vm4, %v20731_v41 }
0x1316   : > { %22066 = vmatpush3.bf16.msra.mxu0 %v22063_v5  ;;  %20758 = vmatprep.mubr.msk.f32.mxu0 %vm13438_vm4, %v14364_v0  ;;  %v16361_v5 = vld [vmem:[#allocation27 + $0x70] sm:$0xff] }
0x1317   : > { %22068 = vmatprep.subr.bf16.mxu0 %v22067_v60 }
0x131a   : > { %22070 = vmatpush3.bf16.msra.mxu0 %v22067_v60  ;;  %v15337_v60 = vld [vmem:[#allocation28 + $0x38] sm:$0xff] }
0x131b   : > { %22076 = vmatprep.subr.bf16.mxu0 %v22075_v63  ;;  %v22127_v7 = vpack.c.bf16 %v15337_v60, %v15336_v11  ;;  %v16446_v11 = vld [vmem:[#allocation28 + $0xe8] sm:$0xff] }
0x131d   : > { %20759 = vmatmul.mubr.msk.f32.vlgmr.msra.gmra.mrb[54].mxu0 %vm13438_vm4, %v20749_v19 }
0x131e   : > { %22078 = vmatpush3.bf16.msra.mxu0 %v22075_v63  ;;  %20776 = vmatprep.mubr.msk.f32.mxu0 %vm13438_vm4, %v14536_v35  ;;  %v15158_v35 = vld [vmem:[#allocation27 + $0x8] sm:$0x1]  ;;  %v15246_v63 = vld [vmem:[#allocation28 + $0x8] sm:$0xff] }
0x131f   : > { %22080 = vmatprep.subr.bf16.mxu0 %v22079_v13  ;;  %v22131_v43 = vpack.c.bf16 %v15246_v63, %v15245_v16  ;;  %v16448_v16 = vld [vmem:[#allocation28 + $0xf8] sm:$0xff] }
0x1322   : > { %22082 = vmatpush3.bf16.msra.mxu0 %v22079_v13  ;;  %v16534_v13 = vld [vmem:[#allocation27 + $0x88] sm:$0x1] }
0x1323   : > { %22088 = vmatprep.subr.bf16.mxu0 %v22087_v34 }
0x1325   : > { %20777 = vmatmul.mubr.msk.f32.vlgmr.msra.gmra.mrb[54].mxu0 %vm13438_vm4, %v20767_v44  ;;  %v15334_v44 = vld [vmem:[#allocation28 + $0x20] sm:$0xff] }
0x1326   : > { %22090 = vmatpush3.bf16.msra.mxu0 %v22087_v34  ;;  %20794 = vmatprep.mubr.msk.f32.mxu0 %vm13438_vm4, %v14708_v10  ;;  %v22123_v37 = vpack.c.bf16 %v15335_v12, %v15334_v44  ;;  %v15251_v10 = vld [vmem:[#allocation27 + $0x18] sm:$0x1]  ;;  %v15247_v34 = vld [vmem:[#allocation28 + $0x10] sm:$0xff]  ;;  %v15932_v44 = vld [vmem:[#allocation28 + $0x98] sm:$0xff] }
0x1327   : > { %22092 = vmatprep.subr.bf16.mxu0 %v22091_v53  ;;  %v22135_v46 = vpack.c.bf16 %v15248_v50, %v15247_v34  ;;  %v23711_v50 = vmov 0.0  }
0x132a   : > { %22094 = vmatpush3.bf16.msra.mxu0 %v22091_v53 }
0x132d   : > { %20795 = vmatmul.mubr.msk.f32.vlgmr.msra.gmra.mrb[54].mxu0 %vm13438_vm4, %v20785_v22  ;;  %v15845_v22 = vld [vmem:[#allocation27 + $0x40] sm:$0xff] }
0x132e   : > { %20883 = vmatprep.mubr.msk.f32.mxu0 %vm15159_vm5, %v15673_v31 }
0x1400   : > { %v20796_v57 = vpop.f32.mrb[54].mxu0 }
0x1401   : > { %v14813_v36 = vadd.f32 %v20796_v57, %v18215_v6  ;;  %v14794_v21 = vpop.f32.mrb[55].mxu0  ;;  %v15586_v57 = vld [vmem:[#allocation28 + $0x48] sm:$0xff] }
0x1402   : > { %v14812_v9 = vadd.f32 %v18215_v6, %v14794_v21  ;;  %v15585_v6 = vld [vmem:[#allocation28 + $0x40] sm:$0xff] }
0x1403   : > { %v14815_v48 = vmax.f32 %v14813_v36, 0.0  ;;  %v15501_v36 = vld [vmem:[#allocation27 + $0x20] sm:$0xff]  ;;  %v22145_v21 = vpack.c.bf16 %v15586_v57, %v15585_v6 }
0x1404   : > { %v14814_v24 = vmax.f32 %v14812_v9, 0.0  ;;  %v15587_v9 = vld [vmem:[#allocation28 + $0x50] sm:$0xff] }
0x1406   : > { %v22095_v40 = vpack.c.bf16 %v14815_v48, %v14814_v24  ;;  %v15588_v48 = vld [vmem:[#allocation28 + $0x58] sm:$0xff] }
0x1407   : > { %v15502_v24 = vld [vmem:[#allocation27 + $0x28] sm:$0x1] }
0x1408   : > { %22096 = vmatprep.subr.bf16.mxu1 %v22095_v40 }
0x1409   : > { %22098 = vmatpush3.bf16.msra.mxu1 %v22095_v40 }
0x140a   : > { %22100 = vmatprep.subr.bf16.mxu1 %v22095_v40 }
0x140c   : > { %20802 = vmatmul.mubr.msk.f32.vlgmr.msra.gmra.mrb[186].mxu1 %vm4706_vm2, %v14817_v4  ;;  %v15757_v4 = vld [vmem:[#allocation28 + $0x60] sm:$0xff] }
0x140d   : > { %22102 = vmatpush3.bf16.msra.mxu1 %v22095_v40  ;;  %20808 = vmatprep.mubr.msk.f32.mxu1 %vm4706_vm2, %v18218_v32  ;;  %v15758_v32 = vld [vmem:[#allocation28 + $0x68] sm:$0xff] }
0x140e   : > { %22104 = vmatprep.subr.bf16.mxu1 %v22095_v40 }
0x1410   : > { %20809 = vmatmul.mubr.msk.f32.vlgmr.msra.gmra.mrb[188].mxu1 %vm4706_vm2, %v18219_v39  ;;  %v22159_v39 = vpack.c.bf16 %v15758_v32, %v15757_v4  ;;  %v17025_v4 = vld [vmem:[#allocation33 + $0x28] sm:$0xff]  ;;  %v16868_v32 = vld [vmem:[#allocation31 + $0x2] sm:$0x1] }
0x1411   : > { %22106 = vmatpush3.bf16.msra.mxu1 %v22095_v40  ;;  %20815 = vmatprep.mubr.msk.f32.mxu1 %vm4706_vm2, %v18222_v61 }
0x1412   : > { %22108 = vmatprep.subr.bf16.mxu1 %v22095_v40 }
0x1414   : > { %20816 = vmatmul.mubr.msk.f32.vlgmr.msra.gmra.mrb[190].mxu1 %vm4706_vm2, %v18223_v52 }
0x1415   : > { %22110 = vmatpush3.bf16.msra.mxu1 %v22095_v40  ;;  %20822 = vmatprep.mubr.msk.f32.mxu1 %vm4706_vm2, %v18226_v2  ;;  %v22149_v40 = vpack.c.bf16 %v15588_v48, %v15587_v9  ;;  %v16715_v48 = vld [vmem:[#allocation31] sm:$0x1] }
0x1418   : > { %20823 = vmatmul.mubr.msk.f32.vlgmr.msra.gmra.mrb[192].mxu1 %vm4706_vm2, %v18227_v51 }
0x1419   : > { %20829 = vmatprep.mubr.msk.f32.mxu1 %vm15159_vm5, %v15157_v58 }
0x14df   : > { %v20803_v26 = vpop.f32.mrb[186].mxu1 }
0x14e0   : > { %v14890_v28 = vpop.f32.mrb[187].mxu1 }
0x14e3   : > { %v20810_v62 = vpop.f32.mrb[188].mxu1 }
0x14e4   : > { %v15152_v1 = vmax.f32 %v20803_v26, %v20810_v62  ;;  %v14974_v54 = vpop.f32.mrb[189].mxu1 }
0x14e5   : > { %v15151_v20 = vmax.f32 %v14890_v28, %v14974_v54 }
0x14e7   : > { %v20817_v41 = vpop.f32.mrb[190].mxu1 }
0x14e8   : > { %v15058_v17 = vpop.f32.mrb[191].mxu1 }
0x14eb   : > { %v20824_v3 = vpop.f32.mrb[192].mxu1 }
0x14ec   : > { %v15154_v56 = vmax.f32 %v20817_v41, %v20824_v3  ;;  %v15142_v55 = vpop.f32.mrb[193].mxu1  ;;  %v15759_v41 = vld [vmem:[#allocation28 + $0x70] sm:$0xff] }
0x14ed   : > { %v15153_v19 = vmax.f32 %v15058_v17, %v15142_v55  ;;  %v15760_v17 = vld [vmem:[#allocation28 + $0x78] sm:$0xff] }
0x14ee   : > { %v15156_v29 = vmax.f32 %v15152_v1, %v15154_v56  ;;  %v22163_v55 = vpack.c.bf16 %v15760_v17, %v15759_v41  ;;  %v17040_v41 = vld [vmem:[#allocation33 + $0xa0] sm:$0xff] }
0x14ef   : > { %v15155_v0 = vmax.f32 %v15151_v20, %v15153_v19  ;;  %v15929_v19 = vld [vmem:[#allocation28 + $0x80] sm:$0xff] }
0x14f1   : > { %v26470_v30 = vpack.c.bf16 %v15156_v29, %v15155_v0  ;;  %v15930_v29 = vld [vmem:[#allocation28 + $0x88] sm:$0xff] }
0x14f2   : > { %v22173_v0 = vpack.c.bf16 %v15930_v29, %v15929_v19  ;;  %v17044_v19 = vld [vmem:[#allocation33 + $0xc0] sm:$0xff] }
0x14f3   : > { %22113 = vmatprep.subr.msk.bf16.mxu1 %vm26466_vm8, %v26470_v30  ;;  %22155 = vmatprep.subr.msk.bf16.mxu0 %vm26466_vm8, %v26470_v30  ;;  %v17048_v29 = vld [vmem:[#allocation33 + $0xe0] sm:$0xff] }
0x14f4   : > { %22116 = vmatpush3.bf16.msk.msra.mxu1 %vm26466_vm8, %v26470_v30  ;;  %22158 = vmatpush3.bf16.msk.msra.mxu0 %vm26466_vm8, %v26470_v30 }
0x14f5   : > { %22119 = vmatprep.subr.msk.bf16.mxu1 %vm26466_vm8, %v26470_v30  ;;  %22169 = vmatprep.subr.msk.bf16.mxu0 %vm26466_vm8, %v26470_v30 }
0x14f7   : > { %20830 = vmatmul.mubr.msk.f32.vlgmr.msra.gmra.mrb[194].mxu1 %vm15159_vm5, %v15158_v35  ;;  %20884 = vmatmul.mubr.msk.f32.vlgmr.msra.gmra.mrb[56].mxu0 %vm15159_vm5, %v15674_v49  ;;  %v16101_v35 = vld [vmem:[#allocation28 + $0xa0] sm:$0xff]  ;;  %v16102_v49 = vld [vmem:[#allocation28 + $0xa8] sm:$0xff] }
0x14f8   : > { %22122 = vmatpush3.bf16.msk.msra.mxu1 %vm26466_vm8, %v26470_v30  ;;  %20836 = vmatprep.mubr.msk.f32.mxu1 %vm15159_vm5, %v15250_v59  ;;  %v22187_v59 = vpack.c.bf16 %v16102_v49, %v16101_v35 }
0x14f9   : > { %22172 = vmatpush3.bf16.msk.msra.mxu0 %vm26466_vm8, %v26470_v30  ;;  %20901 = vmatprep.mubr.msk.f32.mxu0 %vm15159_vm5, %v15845_v22  ;;  %v16103_v22 = vld [vmem:[#allocation28 + $0xb0] sm:$0xff] }
0x14fa   : > { %22183 = vmatprep.subr.msk.bf16.mxu0 %vm26466_vm8, %v26470_v30  ;;  %22124 = vmatprep.subr.bf16.mxu1 %v22123_v37 }
0x14fb   : > { %20837 = vmatmul.mubr.msk.f32.vlgmr.msra.gmra.mrb[228].mxu1 %vm15159_vm5, %v15251_v10 }
0x14fc   : > { %20902 = vmatmul.mubr.msk.f32.vlgmr.msra.gmra.mrb[58].mxu0 %vm15159_vm5, %v15846_v18  ;;  %22126 = vmatpush3.bf16.msra.mxu1 %v22123_v37  ;;  %v16104_v37 = vld [vmem:[#allocation28 + $0xb8] sm:$0xff]  ;;  %v16273_v18 = vld [vmem:[#allocation28 + $0xc0] sm:$0xff] }
0x14fd   : > { %22186 = vmatpush3.bf16.msk.msra.mxu0 %vm26466_vm8, %v26470_v30  ;;  %20919 = vmatprep.mubr.msk.f32.mxu0 %vm15159_vm5, %v16017_v42  ;;  %v22191_v10 = vpack.c.bf16 %v16104_v37, %v16103_v22  ;;  %v16274_v42 = vld [vmem:[#allocation28 + $0xc8] sm:$0xff] }
0x14fe   : > { %22197 = vmatprep.subr.msk.bf16.mxu0 %vm26466_vm8, %v26470_v30  ;;  %22128 = vmatprep.subr.bf16.mxu1 %v22127_v7 }
0x1500   : > { %20920 = vmatmul.mubr.msk.f32.vlgmr.msra.gmra.mrb[60].mxu0 %vm15159_vm5, %v16018_v25  ;;  %22130 = vmatpush3.bf16.msra.mxu1 %v22127_v7  ;;  %v22201_v25 = vpack.c.bf16 %v16274_v42, %v16273_v18  ;;  %v16447_v7 = vld [vmem:[#allocation28 + $0xf0] sm:$0xff] }
0x1501   : > { %22200 = vmatpush3.bf16.msk.msra.mxu0 %vm26466_vm8, %v26470_v30  ;;  %20937 = vmatprep.mubr.msk.f32.mxu0 %vm15159_vm5, %v16189_v8  ;;  %v16275_v8 = vld [vmem:[#allocation28 + $0xd0] sm:$0xff]  ;;  %v22219_v63 = vpack.c.bf16 %v16448_v16, %v16447_v7 }
0x1502   : > { %22211 = vmatprep.subr.msk.bf16.mxu0 %vm26466_vm8, %v26470_v30  ;;  %22132 = vmatprep.subr.bf16.mxu1 %v22131_v43  ;;  %v17022_v42 = vld [vmem:[#allocation33 + $0x10] sm:$0xff] }
0x1504   : > { %20938 = vmatmul.mubr.msk.f32.vlgmr.msra.gmra.mrb[62].mxu0 %vm15159_vm5, %v16190_v27  ;;  %v16276_v27 = vld [vmem:[#allocation28 + $0xd8] sm:$0xff] }
0x1505   : > { %22214 = vmatpush3.bf16.msk.msra.mxu0 %vm26466_vm8, %v26470_v30  ;;  %20955 = vmatprep.mubr.msk.f32.mxu0 %vm15159_vm5, %v16361_v5  ;;  %v22205_v5 = vpack.c.bf16 %v16276_v27, %v16275_v8  ;;  %v17031_v27 = vld [vmem:[#allocation33 + $0x58] sm:$0xff] }
0x1506   : > { %22225 = vmatprep.subr.msk.bf16.mxu0 %vm26466_vm8, %v26470_v30 }
0x1508   : > { %20956 = vmatmul.mubr.msk.f32.vlgmr.msra.gmra.mrb[64].mxu0 %vm15159_vm5, %v16362_v15  ;;  %v16445_v15 = vld [vmem:[#allocation28 + $0xe0] sm:$0xff] }
0x1509   : > { %22228 = vmatpush3.bf16.msk.msra.mxu0 %vm26466_vm8, %v26470_v30  ;;  %20973 = vmatprep.mubr.msk.f32.mxu0 %vm15159_vm5, %v16533_v33  ;;  %v22215_v60 = vpack.c.bf16 %v16446_v11, %v16445_v15  ;;  %v16618_v33 = vld [vmem:[#allocation28 + $0x108] sm:$0xff] }
0x150a   : > { %22237 = vmatprep.subr.bf16.mxu0 %v26719_v23 }
0x150c   : > { %20974 = vmatmul.mubr.msk.f32.vlgmr.msra.gmra.mrb[66].mxu0 %vm15159_vm5, %v16534_v13 }
0x150d   : > { %20991 = vmatprep.mubr.msk.f32.mxu0 %vm23710_vm9, %v23711_v50 }
0x15ca   : > { %v20831_v14 = vpop.f32.mrb[194].mxu1  ;;  %v20885_v61 = vpop.f32.mrb[56].mxu0 }
0x15cb   : > { %v15236_v47 = vpop.f32.mrb[195].mxu1  ;;  %v15747_v52 = vpop.f32.mrb[57].mxu0 }
0x15ce   : > { %v20838_v45 = vpop.f32.mrb[228].mxu1 }
0x15cf   : > { %v15324_v53 = vpop.f32.mrb[229].mxu1  ;;  %v20903_v2 = vpop.f32.mrb[58].mxu0 }
0x15d0   : > { %20847 = vmatprep.mubr.msk.f32.mxu1 %vm13438_vm4, %v15324_v53  ;;  %v15919_v51 = vpop.f32.mrb[59].mxu0 }
0x15d1   : > { %20848 = vmatmul.mubr.msk.f32.vlgmr.msra.gmra.mrb[230].mxu1 %vm13438_vm4, %v20838_v45  ;;  %v18275_v45 = vld [vmem:[#allocation30] ss:$0 sm:$0xff] }
0x15d2   : > { %22134 = vmatpush3.bf16.msra.mxu1 %v22131_v43  ;;  %20858 = vmatprep.mubr.msk.f32.mxu1 %vm13438_vm4, %v15236_v47  ;;  %v16617_v43 = vld [vmem:[#allocation28 + $0x100] sm:$0xff]  ;;  %v16620_v47 = vld [vmem:[#allocation28 + $0x118] sm:$0xff] }
0x15d3   : > { %22136 = vmatprep.subr.bf16.mxu1 %v22135_v46  ;;  %v20921_v58 = vpop.f32.mrb[60].mxu0  ;;  %v22229_v13 = vpack.c.bf16 %v16618_v33, %v16617_v43  ;;  %v17034_v43 = vld [vmem:[#allocation33 + $0x70] sm:$0xff]  ;;  %v17039_v33 = vld [vmem:[#allocation33 + $0x98] sm:$0xff] }
0x15d4   : > { %v16091_v31 = vpop.f32.mrb[61].mxu0 }
0x15d6   : > { %22138 = vmatpush3.bf16.msra.mxu1 %v22135_v46 }
0x15d7   : > { %22141 = vmatprep.subr.msk.bf16.mxu1 %vm26466_vm8, %v26470_v30  ;;  %v20939_v26 = vpop.f32.mrb[62].mxu0 }
0x15d8   : > { %v16263_v28 = vpop.f32.mrb[63].mxu0 }
0x15d9   : > { %20859 = vmatmul.mubr.msk.f32.vlgmr.msra.gmra.mrb[230].mxu1 %vm13438_vm4, %v20831_v14  ;;  %v16619_v14 = vld [vmem:[#allocation28 + $0x110] sm:$0xff] }
0x15da   : > { %22144 = vmatpush3.bf16.msk.msra.mxu1 %vm26466_vm8, %v26470_v30  ;;  %20865 = vmatprep.mubr.msk.f32.mxu1 %vm15159_vm5, %v15501_v36  ;;  %v15931_v30 = vld [vmem:[#allocation28 + $0x90] sm:$0xff]  ;;  %v22233_v34 = vpack.c.bf16 %v16620_v47, %v16619_v14 }
0x15db   : > { %22146 = vmatprep.subr.bf16.mxu1 %v22145_v21  ;;  %v26547_v62 = vpop.f32.mrb[64].mxu0  ;;  %v22177_v12 = vpack.c.bf16 %v15932_v44, %v15931_v30  ;;  %v17023_v30 = vld [vmem:[#allocation33 + $0x18] sm:$0xff] }
0x15dc   : > { %v16435_v1 = vpop.f32.mrb[65].mxu0  ;;  %v17027_v44 = vld [vmem:[#allocation33 + $0x38] sm:$0xff] }
0x15dd   : > { %20866 = vmatmul.mubr.msk.f32.vlgmr.msra.gmra.mrb[232].mxu1 %vm15159_vm5, %v15502_v24  ;;  %v16793_v24 = vld [vmem:[#allocation31 + $0x1] sm:$0x1] }
0x15de   : > { %22148 = vmatpush3.bf16.msra.mxu1 %v22145_v21 }
0x15df   : > { %22150 = vmatprep.subr.bf16.mxu1 %v22149_v40  ;;  %v26549_v54 = vpop.f32.mrb[66].mxu0 }
0x15e0   : > { %v26551_v20 = vpop.f32.mrb[67].mxu0 }
0x15e2   : > { %22152 = vmatpush3.bf16.msra.mxu1 %v22149_v40  ;;  %v17021_v40 = vld [vmem:[#allocation33 + $0x8] sm:$0xff] }
0x15e3   : > { %22160 = vmatprep.subr.bf16.mxu1 %v22159_v39 }
0x16b0   : > { %v20867_v3 = vpop.f32.mrb[232].mxu1 }
0x16b1   : > { %v15575_v56 = vpop.f32.mrb[233].mxu1 }
0x16b2   : > { %20876 = vmatprep.mubr.msk.f32.mxu1 %vm13438_vm4, %v15575_v56  ;;  %v17049_v56 = vld [vmem:[#allocation33 + $0xe8] sm:$0xff] }
0x16b3   : > { %20877 = vmatmul.mubr.msk.f32.vlgmr.msra.gmra.mrb[230].mxu1 %vm13438_vm4, %v20867_v3  ;;  %v17045_v3 = vld [vmem:[#allocation33 + $0xc8] sm:$0xff] }
0x16b4   : > { %22162 = vmatpush3.bf16.msra.mxu1 %v22159_v39  ;;  %20894 = vmatprep.mubr.msk.f32.mxu1 %vm13438_vm4, %v15747_v52  ;;  %v22253_v39 = vpack.c.bf16 %v17025_v4, %v17021_v40  ;;  %v17024_v52 = vld [vmem:[#allocation33 + $0x20] sm:$0xff] }
0x16b5   : > { %22164 = vmatprep.subr.bf16.mxu1 %v22163_v55  ;;  %v17052_v40 = vld [vmem:[#allocation34] sm:$0xf] }
0x16b8   : > { %22166 = vmatpush3.bf16.msra.mxu1 %v22163_v55  ;;  %v22265_v55 = vpack.c.bf16 %v17049_v56, %v17045_v3 }
0x16b9   : > { %22174 = vmatprep.subr.bf16.mxu1 %v22173_v0 }
0x16bb   : > { %20895 = vmatmul.mubr.msk.f32.vlgmr.msra.gmra.mrb[230].mxu1 %vm13438_vm4, %v20885_v61  ;;  %v17020_v61 = vld [vmem:[#allocation33] sm:$0xff] }
0x16bc   : > { %22176 = vmatpush3.bf16.msra.mxu1 %v22173_v0  ;;  %20912 = vmatprep.mubr.msk.f32.mxu1 %vm13438_vm4, %v15919_v51  ;;  %v17033_v51 = vld [vmem:[#allocation33 + $0x68] sm:$0xff]  ;;  %v22267_v0 = vpack.c.bf16 %v17048_v29, %v17044_v19 }
0x16bd   : > { %22178 = vmatprep.subr.bf16.mxu1 %v22177_v12 }
0x16c0   : > { %22180 = vmatpush3.bf16.msra.mxu1 %v22177_v12  ;;  %v22269_v12 = vpack.c.bf16 %v17027_v44, %v17023_v30 }
0x16c1   : > { %22188 = vmatprep.subr.bf16.mxu1 %v22187_v59 }
0x16c3   : > { %20913 = vmatmul.mubr.msk.f32.vlgmr.msra.gmra.mrb[230].mxu1 %vm13438_vm4, %v20903_v2  ;;  %v17029_v2 = vld [vmem:[#allocation33 + $0x48] sm:$0xff] }
0x16c4   : > { %22190 = vmatpush3.bf16.msra.mxu1 %v22187_v59  ;;  %20930 = vmatprep.mubr.msk.f32.mxu1 %vm13438_vm4, %v16091_v31  ;;  %v22255_v31 = vpack.c.bf16 %v17024_v52, %v17020_v61 }
0x16c5   : > { %22192 = vmatprep.subr.bf16.mxu1 %v22191_v10 }
0x16c8   : > { %22194 = vmatpush3.bf16.msra.mxu1 %v22191_v10 }
0x16c9   : > { %22202 = vmatprep.subr.bf16.mxu1 %v22201_v25 }
0x16cb   : > { %20931 = vmatmul.mubr.msk.f32.vlgmr.msra.gmra.mrb[230].mxu1 %vm13438_vm4, %v20921_v58  ;;  %v16943_v58 = vld [vmem:[#allocation31 + $0x3] sm:$0x1] }
0x16cc   : > { %22204 = vmatpush3.bf16.msra.mxu1 %v22201_v25  ;;  %20948 = vmatprep.mubr.msk.f32.mxu1 %vm13438_vm4, %v16263_v28  ;;  %v17028_v28 = vld [vmem:[#allocation33 + $0x40] sm:$0xff]  ;;  %v17026_v25 = vld [vmem:[#allocation33 + $0x30] sm:$0xff] }
0x16cd   : > { %22206 = vmatprep.subr.bf16.mxu1 %v22205_v5 }
0x16d0   : > { %22208 = vmatpush3.bf16.msra.mxu1 %v22205_v5  ;;  %v17035_v5 = vld [vmem:[#allocation33 + $0x78] sm:$0xff] }
0x16d1   : > { %22216 = vmatprep.subr.bf16.mxu1 %v22215_v60  ;;  %v22273_v16 = vpack.c.bf16 %v17035_v5, %v17031_v27 }
0x16d3   : > { %20949 = vmatmul.mubr.msk.f32.vlgmr.msra.gmra.mrb[230].mxu1 %vm13438_vm4, %v20939_v26  ;;  %v22257_v26 = vpack.c.bf16 %v17033_v51, %v17029_v2 }
0x16d4   : > { %22218 = vmatpush3.bf16.msra.mxu1 %v22215_v60  ;;  %20966 = vmatprep.mubr.msk.f32.mxu1 %vm13438_vm4, %v16435_v1  ;;  %v17037_v1 = vld [vmem:[#allocation33 + $0x88] sm:$0xff]  ;;  %v22271_v60 = vpack.c.bf16 %v17026_v25, %v17022_v42 }
0x16d5   : > { %22220 = vmatprep.subr.bf16.mxu1 %v22219_v63 }
0x16d8   : > { %22222 = vmatpush3.bf16.msra.mxu1 %v22219_v63  ;;  %v17030_v63 = vld [vmem:[#allocation33 + $0x50] sm:$0xff] }
0x16d9   : > { %22230 = vmatprep.subr.bf16.mxu1 %v22229_v13  ;;  %v22275_v14 = vpack.c.bf16 %v17034_v43, %v17030_v63 }
0x16db   : > { %20967 = vmatmul.mubr.msk.f32.vlgmr.msra.gmra.mrb[230].mxu1 %vm13438_vm4, %v26547_v62  ;;  %v17032_v62 = vld [vmem:[#allocation33 + $0x60] sm:$0xff] }
0x16dc   : > { %22232 = vmatpush3.bf16.msra.mxu1 %v22229_v13  ;;  %20984 = vmatprep.mubr.msk.f32.mxu1 %vm13438_vm4, %v26551_v20  ;;  %v22261_v20 = vpack.c.bf16 %v17041_v38, %v17037_v1  ;;  %v17043_v13 = vld [vmem:[#allocation33 + $0xb8] sm:$0xff] }
0x16dd   : > { %22234 = vmatprep.subr.bf16.mxu1 %v22233_v34  ;;  %v22277_v47 = vpack.c.bf16 %v17043_v13, %v17039_v33 }
0x16e0   : > { %22236 = vmatpush3.bf16.msra.mxu1 %v22233_v34  ;;  %v17038_v34 = vld [vmem:[#allocation33 + $0x90] sm:$0xff] }
0x16e3   : > { %20985 = vmatmul.mubr.msk.f32.vlgmr.msra.gmra.mrb[230].mxu1 %vm13438_vm4, %v26549_v54  ;;  %v17036_v54 = vld [vmem:[#allocation33 + $0x80] sm:$0xff] }
0x16e4   : > { %v22263_v17 = vpack.c.bf16 %v17040_v41, %v17036_v54 }
0x17b6   : > { %v20986_v53 = vpop.f32.mrb[230].mxu1 }
0x17b7   : > { %v16712_v46 = vadd.f32 %v20986_v53, %v18275_v45  ;;  %v16693_v6 = vpop.f32.mrb[231].mxu1  ;;  %v17047_v53 = vld [vmem:[#allocation33 + $0xd8] sm:$0xff] }
0x17b8   : > { %v16711_v57 = vadd.f32 %v18275_v45, %v16693_v6  ;;  %v17042_v45 = vld [vmem:[#allocation33 + $0xb0] sm:$0xff] }
0x17b9   : > { %v16714_v36 = vmax.f32 %v16712_v46, 0.0  ;;  %v17051_v46 = vld [vmem:[#allocation33 + $0xf8] sm:$0xff]  ;;  %v22279_v6 = vpack.c.bf16 %v17042_v45, %v17038_v34 }
0x17ba   : > { %v16713_v21 = vmax.f32 %v16711_v57, 0.0  ;;  %v22281_v57 = vpack.c.bf16 %v17051_v46, %v17047_v53 }
0x17bc   : > { %v22238_v9 = vpack.c.bf16 %v16714_v36, %v16713_v21  ;;  %v17046_v36 = vld [vmem:[#allocation33 + $0xd0] sm:$0xff] }
0x17bd   : > { %v17050_v21 = vld [vmem:[#allocation33 + $0xf0] sm:$0xff] }
0x17be   : > { %22240 = vmatpush3.bf16.msk.msra.mxu0 %vm26466_vm8, %v22238_v9 }
0x17bf   : > { %22241 = vmatprep.subr.bf16.mxu0 %v26719_v23 }
0x17c1   : > { %20992 = vmatmul.mubr.msk.f32.vlgmr.msra.gmra.mrb[68].mxu0 %vm15159_vm5, %v16715_v48  ;;  %v17054_v48 = vlaneseq }
0x17c2   : > { %22244 = vmatpush3.bf16.msk.msra.mxu0 %vm26466_vm8, %v22238_v9  ;;  %20998 = vmatprep.mubr.msk.f32.mxu0 %vm23710_vm9, %v23711_v50 }
0x17c3   : > { %22245 = vmatprep.subr.bf16.mxu0 %v26719_v23  ;;  %vm17254_vm10 = vcmp.lt.s32.totalorder %v17054_v48, 512 }
0x17c5   : > { %20999 = vmatmul.mubr.msk.f32.vlgmr.msra.gmra.mrb[70].mxu0 %vm15159_vm5, %v16793_v24 }
0x17c6   : > { %22248 = vmatpush3.bf16.msk.msra.mxu0 %vm26466_vm8, %v22238_v9  ;;  %21005 = vmatprep.mubr.msk.f32.mxu0 %vm23710_vm9, %v23711_v50 }
0x17c7   : > { %22249 = vmatprep.subr.bf16.mxu0 %v26719_v23  ;;  %v22259_v23 = vpack.c.bf16 %v17032_v62, %v17028_v28 }
0x17c9   : > { %21006 = vmatmul.mubr.msk.f32.vlgmr.msra.gmra.mrb[72].mxu0 %vm15159_vm5, %v16868_v32 }
0x17ca   : > { %22252 = vmatpush3.bf16.msk.msra.mxu0 %vm26466_vm8, %v22238_v9  ;;  %21012 = vmatprep.mubr.msk.f32.mxu0 %vm23710_vm9, %v23711_v50  ;;  %v22283_v9 = vpack.c.bf16 %v17050_v21, %v17046_v36 }
0x17cb   : > { %22254 = vmatprep.subr.bf16.mxu0 %v22253_v39 }
0x17cd   : > { %21013 = vmatmul.mubr.msk.f32.vlgmr.msra.gmra.mrb[74].mxu0 %vm15159_vm5, %v16943_v58 }
0x17ce   : > { %22256 = vmatpush1.bf16.msra.mxu0 %v22255_v31  ;;  %17141 = vmatprep.mubr.f32.mxu0 %v23711_v50 }
0x17cf   : > { %22258 = vmatprep.subr.bf16.mxu0 %v22257_v26 }
0x17d2   : > { %22260 = vmatpush1.bf16.msra.mxu0 %v22259_v23  ;;  %v23712_v23 = vmov 1966171168  }
0x17d3   : > { %22262 = vmatprep.subr.bf16.mxu0 %v22261_v20  ;;  %v17230_v1 = vunpack.c.l.s4 %v23712_v23 }
0x17d5   : > { %v17231_v20 = vunpack.c.0.s8 %v17230_v1 }
0x17d6   : > { %22264 = vmatpush1.bf16.msra.mxu0 %v22263_v17 }
0x17d7   : > { %22266 = vmatprep.subr.bf16.mxu0 %v22265_v55 }
0x17da   : > { %22268 = vmatpush1.bf16.msra.mxu0 %v22267_v0 }
0x17db   : > { %22270 = vmatprep.subr.bf16.mxu0 %v22269_v12 }
0x1894   : > { %v16788_v35 = vpop.f32.mrb[68].mxu0 }
0x1895   : > { %v20993_v49 = vpop.f32.mrb[69].mxu0 }
0x1898   : > { %v16863_v59 = vpop.f32.mrb[70].mxu0 }
0x1899   : > { %v17017_v22 = vmax.f32 %v16788_v35, %v16863_v59  ;;  %v21000_v37 = vpop.f32.mrb[71].mxu0 }
0x189c   : > { %v16938_v10 = vpop.f32.mrb[72].mxu0 }
0x189d   : > { %v21007_v18 = vpop.f32.mrb[73].mxu0 }
0x18a0   : > { %v17013_v8 = vpop.f32.mrb[74].mxu0 }
0x18a1   : > { %v17018_v15 = vmax.f32 %v16938_v10, %v17013_v8  ;;  %v21014_v11 = vpop.f32.mrb[75].mxu0 }
0x18a3   : > { %v17019_v7 = vmax.f32 %v17017_v22, %v17018_v15 }
0x18a5   : > { %18284 = vmatmul.mubr.msk.f32.vlgmr.msra.gmra.mrb[76].mxu0 %vm10429_vm3, %v17019_v7 }
0x18a6   : > { %22272 = vmatpush1.bf16.msra.mxu0 %v22271_v60  ;;  %17212 = vmatprep.mubr.f32.mxu0 %v23711_v50  ;;  %v17055_v50 = vshrl.u32 %v17054_v48, 7 }
0x18a7   : > { %22274 = vmatprep.subr.bf16.mxu0 %v22273_v16 }
0x18a8   : > { %v17056_v24 = vsub.s32 0, %v17055_v50  ;;  %v17060_v4 = vsub.s32 1, %v17055_v50  ;;  %v17064_v28 = vsub.s32 2, %v17055_v50  ;;  %v17068_v62 = vsub.s32 3, %v17055_v50 }
0x18a9   : > { %v17234_v19 = vsub.s32 %v17231_v20, %v17055_v50 }
0x18aa   : > { %22276 = vmatpush1.bf16.msra.mxu0 %v22275_v14  ;;  %v17057_v32 = vrot.slane %v17052_v40, %v17056_v24  ;;  %v17061_v39 = vrot.slane %v17052_v40, %v17060_v4  ;;  %v17065_v38 = vrot.slane %v17052_v40, %v17064_v28  ;;  %v17069_v54 = vrot.slane %v17052_v40, %v17068_v62 }
0x18ab   : > { %22278 = vmatprep.subr.bf16.mxu0 %v22277_v47 }
0x18ae   : > { %22280 = vmatpush1.bf16.msra.mxu0 %v22279_v6 }
0x18af   : > { %22282 = vmatprep.subr.bf16.mxu0 %v22281_v57 }
0x18b2   : > { %22284 = vmatpush1.bf16.msra.mxu0 %v22283_v9 }
0x18b5   : > { %18285 = vmatmul.mubr.msk.f32.vlgmr.msra.gmra.mrb[78].mxu0 %vm10429_vm3, %v17019_v7 }
0x1978   : > { %v17143_v61 = vpop.f32.mrb[76].mxu0 }
0x1979   : > { %v17144_v52 = vadd.f32 %v17143_v61, %v17057_v32  ;;  %v17145_v2 = vpop.f32.mrb[77].mxu0 }
0x197a   : > { %v17146_v51 = vadd.f32 %v17145_v2, %v17061_v39 }
0x197b   : > { %v17219_v58 = vmax.f32 %v17144_v52, 0.0 }
0x197c   : > { %v17220_v31 = vmax.f32 %v17146_v51, 0.0 }
0x197e   : > { %v17227_v26 = vcombine.low %v17219_v58, %v17220_v31 }
0x1980   : > { %v17235_v30 = vrot.slane %v17227_v26, %v17234_v19 }
0x1988   : > { %v17214_v41 = vpop.f32.mrb[78].mxu0 }
0x1989   : > { %v17215_v17 = vadd.f32 %v17214_v41, %v17065_v38  ;;  %v17216_v3 = vpop.f32.mrb[79].mxu0 }
0x198a   : > { %v17217_v56 = vadd.f32 %v17216_v3, %v17069_v54 }
0x198b   : > { %v17221_v55 = vmax.f32 %v17215_v17, 0.0 }
0x198c   : > { %v17222_v29 = vmax.f32 %v17217_v56, 0.0 }
0x198e   : > { %v17228_v0 = vcombine.low %v17221_v55, %v17222_v29 }
0x1990   : > { %v17242_v44 = vrot.slane %v17228_v0, %v17234_v19 }
0x1992   : > { %v17243_v12 = vcombine.low %v17235_v30, %v17242_v44 }
0x1994   : > { %v17250_v35 = vrot.slane %v17243_v12, %v17234_v19 }
0x1996   : > { %17256 = vst.msk [vmem:[%s1234_s22] sm:$0xf] %vm17254_vm10, %v17250_v35 }
0x1997 PF: > { %s83_s15 = sadd.s32 1, %s23646_s15  }
0x1998   : > { %p80_p1 = scmp.ge.s32.totalorder %s83_s15, 6  }
0x199a   :  { %82 = sbr.rel (!%p80_p1) target bundleno = 62 (0x3e), region = 365 }
0x19a1   :  { %17276 = vsyncpa [#allocation3], 1 }
0x19a2   :  { %17278 = vsyncpa [#allocation3 + $0x1], 1 }
0x19a3   :  { %17279 = vsyncpa [#allocation5], 1 }
0x19a4   :  { %17280 = vsyncpa [#allocation8], 1 }
0x19a5   :  { %17281 = vsyncpa [#allocation11], 1 }
0x19a6   :  { %17282 = vsyncpa [#allocation14], 1 }
0x19a7   :  { %17283 = vsyncpa [#allocation17], 1 }
0x19a8   :  { %17284 = vsyncpa [#allocation20], 1 }
0x19a9   :  { %17285 = vsyncpa [#allocation23], 1 }
0x19aa   :  { %17286 = vsyncpa [#allocation26], 1 }
0x19ab   :  { %17287 = vsyncpa [#allocation29], 1 }
0x19ac   :  { %17288 = vsyncpa [#allocation32], 1 }
0x19ad   :  { %17289 = vsyncpa [#allocation35], 1 }

</bundles_post_ra>
